<compile_context>
chip_gen: v5e
topology: v5e:2x2
jax: 0.10.0
libtpu: 0.0.40
codegen_flags: <defaults>
</compile_context>

<pallas_src>
import functools

import numpy as np
import jax
import jax.numpy as jnp
from jax import lax
from jax.experimental import pallas as pl
from jax.experimental.pallas import tpu as pltpu


# ---------------------------------------------------------------------------
# Static geometry helpers (host side, per input shape)
# ---------------------------------------------------------------------------
def _stage_geoms(H, W, strides):
    """3x3 / pad-1 convs: per-stage in/out spatial geometry."""
    geoms = []
    h, w = H, W
    for s in strides:
        ho = (h - 1) // s + 1
        wo = (w - 1) // s + 1
        geoms.append(dict(H=h, W=w, Hp=h + 2, Wp=w + 2,
                          Ho=ho, Wo=wo, s=s, M=ho * wo))
        h, w = ho, wo
    return geoms


def _im2col_first_stage(x_nchw, geom):
    """Host-side im2col for stage 1 only: (N, Cin, H, W) -> (N, Ho*Wo, 9*Cin) bf16.

    Cin is tiny (3), so one K = 9*Cin GEMM in-kernel keeps the MXU filled
    instead of nine K=3 dots."""
    N, cin, _, _ = x_nchw.shape
    s, ho, wo = geom['s'], geom['Ho'], geom['Wo']
    xp = jnp.pad(jnp.transpose(x_nchw, (0, 2, 3, 1)).astype(jnp.float32),
                 ((0, 0), (1, 1), (1, 1), (0, 0)))
    taps = []
    for kh in range(3):
        for kw in range(3):
            taps.append(xp[:, kh:kh + s * (ho - 1) + 1:s,
                           kw:kw + s * (wo - 1) + 1:s, :])
    a = jnp.concatenate(taps, axis=-1)            # (N, Ho, Wo, 9*Cin)
    return a.reshape(N, ho * wo, 9 * cin).astype(jnp.bfloat16)


# ---------------------------------------------------------------------------
# Fused kernel: per-image, 5 x (anchor-only implicit-GEMM conv + bias + ReLU)
# with VMEM-resident stage transitions (re-pad + strided im2col gather).
# ---------------------------------------------------------------------------
def _make_kernel(geoms, couts, out_mask):
    n = len(geoms)
    n_out = int(sum(out_mask))

    def kernel(*refs):
        x1_ref = refs[0]                                  # (M1, 9*Cin0) bf16
        w_refs = refs[1:1 + n]                            # stage weights
        b_refs = refs[1 + n:1 + 2 * n]                    # (1, Cout) f32
        out_refs = refs[1 + 2 * n:1 + 2 * n + n_out]      # (M_k, Cout_k) f32
        scr = refs[1 + 2 * n + n_out:]
        p_refs = scr[:n - 1]      # padded f32 activation buffers, stages 2..n
        a_refs = scr[n - 1:]      # tap-major bf16 im2col buffers, stages 2..n

        oi = 0
        for k in range(n):
            # ---- conv k as implicit GEMM, accumulated in a value ----------
            if k == 0:
                acc = jnp.dot(x1_ref[...], w_refs[0][...],
                              preferred_element_type=jnp.float32)
            else:
                a_ref = a_refs[k - 1]
                acc = None
                for t in range(9):
                    d = jnp.dot(a_ref[t], w_refs[k][t],
                                preferred_element_type=jnp.float32)
                    acc = d if acc is None else acc + d
            y = jnp.maximum(acc + b_refs[k][...], 0.0)    # (M_k, Cout_k) f32

            if out_mask[k]:
                out_refs[oi][...] = y                     # single exact-size store
                oi += 1

            # ---- stage transition: zero-re-pad + strided im2col gather ----
            if k < n - 1:
                gk, g1 = geoms[k], geoms[k + 1]
                C = couts[k]
                Ho, Wo = gk['Ho'], gk['Wo']               # stage-k output grid
                Wp1 = g1['Wp']
                s1, Ho1, Wo1 = g1['s'], g1['Ho'], g1['Wo']
                P = p_refs[k]                             # (Hp1*Wp1, C) f32
                A = a_refs[k]                             # (9, M_{k+1}, C) bf16

                P[...] = jnp.zeros_like(P)                # fresh zero border
                for oh in range(Ho):                      # interior rows
                    P[pl.ds((oh + 1) * Wp1 + 1, Wo), :] = y[oh * Wo:(oh + 1) * Wo, :]

                # gather the 9 taps at the next stage's output anchors only
                # (stride folded here -> no dense conv + subsample anymore)
                for t in range(9):
                    kh, kw = t // 3, t % 3
                    for oh1 in range(Ho1):
                        base = (s1 * oh1 + kh) * Wp1 + kw
                        if s1 == 1 or Wo1 == 1:
                            slab = P[pl.ds(base, Wo1), :]
                        else:
                            slab = P[pl.ds(base, Wo1, stride=s1), :]
                        A[t, pl.ds(oh1 * Wo1, Wo1), :] = slab.astype(jnp.bfloat16)

    return kernel


def _const_spec(a):
    zeros = (0,) * a.ndim
    return pl.BlockSpec(a.shape, lambda i, _z=zeros: _z)


@functools.partial(jax.jit, static_argnames=("strides", "out_mask"))
def _fused_backbone_forward(x, weights, biases, *, strides, out_mask):
    """x: (N, Cin, H, W) f32.
    weights[0]: (9*Cin, C1) bf16; weights[k>0]: (9, C_{k-1}, C_k) bf16.
    biases[k]: (1, C_k) f32.  Returns masked stage feature maps, NCHW f32."""
    N, cin0, H, W = x.shape
    n = len(strides)
    geoms = _stage_geoms(H, W, strides)
    couts = tuple(int(b.shape[1]) for b in biases)

    a1 = _im2col_first_stage(x, geoms[0])                 # (N, M1, 9*Cin0)

    in_arrays = [a1] + list(weights) + list(biases)
    in_specs = [pl.BlockSpec((None, geoms[0]['M'], a1.shape[-1]),
                             lambda i: (i, 0, 0))]
    in_specs += [_const_spec(a) for a in in_arrays[1:]]
    # TODO(synk): for production widths (…,1024, 2048) the per-stage weights
    # should be streamed from HBM (memory_space=pl.ANY + manual DMA) instead
    # of being fully VMEM-resident, and grid-invariant inputs could use
    # pipeline_mode=pl.Buffered(1); unnecessary at these demo sizes.

    out_shapes, out_specs = [], []
    for k in range(n):
        if out_mask[k]:
            g = geoms[k]
            out_shapes.append(
                jax.ShapeDtypeStruct((N, g['M'], couts[k]), jnp.float32))
            out_specs.append(
                pl.BlockSpec((None, g['M'], couts[k]), lambda i: (i, 0, 0)))

    scratch_defs = []
    for k in range(n - 1):        # padded next-stage input buffers (f32)
        g1 = geoms[k + 1]
        scratch_defs.append(((g1['Hp'] * g1['Wp'], couts[k]), jnp.float32))
    for k in range(n - 1):        # tap-major im2col buffers (bf16)
        g1 = geoms[k + 1]
        scratch_defs.append(((9, g1['M'], couts[k]), jnp.bfloat16))
    scratch = [pltpu.VMEM(s, d) for s, d in scratch_defs]

    # VMEM budget derived from the actual buffers (2x for pipeline buffers,
    # 2x margin for compiler temporaries), clamped to a safe range.
    def _nbytes(shape, dtype):
        return int(np.prod(shape)) * jnp.dtype(dtype).itemsize
    vmem_need = 2 * _nbytes((geoms[0]['M'], int(a1.shape[-1])), jnp.bfloat16)
    vmem_need += 2 * sum(_nbytes(w.shape, jnp.bfloat16) for w in weights)
    vmem_need += 2 * sum(_nbytes(b.shape, jnp.float32) for b in biases)
    for k in range(n):
        if out_mask[k]:
            vmem_need += 2 * _nbytes((geoms[k]['M'], couts[k]), jnp.float32)
    vmem_need += sum(_nbytes(s, d) for s, d in scratch_defs)
    vmem_limit = int(min(max(2 * vmem_need, 32 * 1024 * 1024),
                         96 * 1024 * 1024))

    kernel = _make_kernel(geoms, couts, tuple(out_mask))

    ys = pl.pallas_call(
        kernel,
        out_shape=tuple(out_shapes),
        grid=(N,),
        in_specs=in_specs,
        out_specs=tuple(out_specs),
        scratch_shapes=scratch,
        compiler_params=pltpu.CompilerParams(
            dimension_semantics=("parallel",),
            vmem_limit_bytes=vmem_limit),
    )(*in_arrays)
    if not isinstance(ys, (list, tuple)):
        ys = (ys,)

    # exact-size NHWC -> NCHW (no crop needed; outputs are anchor-exact)
    feats, oi = [], 0
    for k in range(n):
        if not out_mask[k]:
            continue
        g = geoms[k]
        y = ys[oi].reshape(N, g['Ho'], g['Wo'], couts[k]); oi += 1
        feats.append(jnp.transpose(y, (0, 3, 1, 2)))
    return tuple(feats)


# ---------------------------------------------------------------------------
# Synthetic Res2-style backbone (reference constructs Pcs2Cls with model=None,
# so a deterministic stand-in with the requested per-stage widths is built).
# ---------------------------------------------------------------------------
class Res2Backbone:
    def __init__(self, key, in_channels, out_channels_per_layer,
                 strides=(2, 1, 2, 2, 2)):
        self.strides = tuple(strides)
        self.reference_params = []            # PyTorch-convention OIHW f32
        weights, biases = [], []
        c_prev = in_channels
        for stage, c_out in enumerate(out_channels_per_layer):
            key, k_w, k_b = jax.random.split(key, 3)
            fan_in = c_prev * 9
            w = jax.random.normal(k_w, (c_out, c_prev, 3, 3), jnp.float32) \
                * (2.0 / fan_in) ** 0.5
            b = jax.random.normal(k_b, (c_out,), jnp.float32) * 0.01
            self.reference_params.append((w, b))
            w_taps = jnp.transpose(w, (2, 3, 1, 0))        # (kh, kw, Cin, Cout)
            if stage == 0:
                # stage 1: one K = 9*Cin GEMM against the host-side im2col
                weights.append(
                    w_taps.reshape(9 * c_prev, c_out).astype(jnp.bfloat16))
            else:
                # TODO(synk): for the scaled-down widths taps could be fused
                # pairwise for larger MXU K; kept per-tap for layout safety.
                weights.append(
                    w_taps.reshape(9, c_prev, c_out).astype(jnp.bfloat16))
            biases.append(b.reshape(1, c_out).astype(jnp.float32))
            c_prev = c_out
        self.weights = tuple(weights)
        self.biases = tuple(biases)

    def __call__(self, x, feature_ext=True, out_mask=None):
        if out_mask is None:
            out_mask = (1,) * len(self.weights)
        return _fused_backbone_forward(
            x, self.weights, self.biases,
            strides=self.strides, out_mask=tuple(int(m) for m in out_mask))


# ---------------------------------------------------------------------------
# Pcs2Cls (JAX/Pallas port of the PyTorch module)
# ---------------------------------------------------------------------------
class Pcs2Cls:
    def __init__(self, model=None, class_cnt=0,
                 out_channels_per_layer=(64, 256, 512, 1024, 2048),
                 out_mask=(0, 0, 1, 1, 1)):
        assert len(out_mask) == len(out_channels_per_layer)
        self.res2u = model
        self.out_mask = np.array(out_mask, dtype=bool)
        self.res2_out = np.array(out_channels_per_layer)[self.out_mask].tolist()
        print(self.res2_out)
        self.feature_size = int(np.sum(self.res2_out) // len(self.res2_out))

    def forward(self, x):
        feats = self.res2u(x, feature_ext=True,
                           out_mask=tuple(int(m) for m in self.out_mask))
        # TODO(synk): the reference forward builds `out = []` and returns that
        # empty list (the masked features are computed then dropped); we return
        # the masked features so the fused Pallas hot path is observable.
        return list(feats)


# ---------------------------------------------------------------------------
# Pure-JAX reference (numerical sanity check of the fused kernel)
# ---------------------------------------------------------------------------
def _reference_forward(x, reference_params, strides, out_mask):
    feats, h = [], x
    for (w, b), s in zip(reference_params, strides):
        h = lax.conv_general_dilated(
            h, w, window_strides=(s, s), padding=((1, 1), (1, 1)),
            dimension_numbers=('NCHW', 'OIHW', 'NCHW'))
        h = jax.nn.relu(h + b.reshape(1, -1, 1, 1))
        feats.append(h)
    return [f for f, m in zip(feats, out_mask) if m]


if __name__ == "__main__":
    key = jax.random.PRNGKey(0)
    key, kx, kb = jax.random.split(key, 3)

    # scaled-down Res2 widths (constructor parameter, like the original default)
    out_channels_per_layer = [16, 32, 64, 128, 256]
    out_mask = [0, 0, 1, 1, 1]

    backbone = Res2Backbone(kb, in_channels=3,
                            out_channels_per_layer=out_channels_per_layer)
    model = Pcs2Cls(model=backbone, class_cnt=10,
                    out_channels_per_layer=out_channels_per_layer,
                    out_mask=out_mask)

    x = jax.random.normal(kx, (2, 3, 16, 16), jnp.float32)
    feats = model.forward(x)
    feats = jax.block_until_ready(feats)

    expected_c = [c for c, m in zip(out_channels_per_layer, out_mask) if m]
    assert [int(f.shape[1]) for f in feats] == expected_c
    assert all(f.dtype == jnp.float32 for f in feats)

    # numerical check against a pure-JAX f32 conv reference (bf16 tolerance)
    ref_feats = _reference_forward(x, backbone.reference_params,
                                   backbone.strides, out_mask)
    for got, ref in zip(feats, ref_feats):
        got_np, ref_np = np.asarray(got), np.asarray(ref)
        assert got_np.shape == ref_np.shape, (got_np.shape, ref_np.shape)
        err = float(np.max(np.abs(got_np - ref_np)))
        scale = float(np.max(np.abs(ref_np))) + 1e-6
        assert err <= 0.1 * scale + 0.1, (err, scale)

    print("KERNEL_OK")
</pallas_src>

<mosaic_0001>
module attributes {stable_mosaic.version = 11 : i64} {
  func.func @kernel(%arg0: i32, %arg1: memref<1x64x27xbf16, #tpu.memory_space<vmem>>, %arg2: memref<27x16xbf16, #tpu.memory_space<vmem>>, %arg3: memref<9x16x32xbf16, #tpu.memory_space<vmem>>, %arg4: memref<9x32x64xbf16, #tpu.memory_space<vmem>>, %arg5: memref<9x64x128xbf16, #tpu.memory_space<vmem>>, %arg6: memref<9x128x256xbf16, #tpu.memory_space<vmem>>, %arg7: memref<1x16xf32, #tpu.memory_space<vmem>>, %arg8: memref<1x32xf32, #tpu.memory_space<vmem>>, %arg9: memref<1x64xf32, #tpu.memory_space<vmem>>, %arg10: memref<1x128xf32, #tpu.memory_space<vmem>>, %arg11: memref<1x256xf32, #tpu.memory_space<vmem>>, %arg12: memref<1x16x64xf32, #tpu.memory_space<vmem>>, %arg13: memref<1x4x128xf32, #tpu.memory_space<vmem>>, %arg14: memref<1x1x256xf32, #tpu.memory_space<vmem>>, %arg15: memref<100x16xf32, #tpu.memory_space<vmem>>, %arg16: memref<100x32xf32, #tpu.memory_space<vmem>>, %arg17: memref<36x64xf32, #tpu.memory_space<vmem>>, %arg18: memref<16x128xf32, #tpu.memory_space<vmem>>, %arg19: memref<9x64x16xbf16, #tpu.memory_space<vmem>>, %arg20: memref<9x16x32xbf16, #tpu.memory_space<vmem>>, %arg21: memref<9x4x64xbf16, #tpu.memory_space<vmem>>, %arg22: memref<9x1x128xbf16, #tpu.memory_space<vmem>>) attributes {dimension_semantics = [#tpu.dimension_semantics<parallel>], iteration_bounds = array<i64: 2>, scalar_prefetch = 0 : i64, scratch_operands = 8 : i64, tpu.core_type = #tpu.core_type<tc>, window_params = [{transform_indices = @transform_0, window_bounds = array<i64: 1, 64, 27>}, {pipeline_mode = #tpu.pipeline_mode<synchronous>, transform_indices = @transform_1, window_bounds = array<i64: 27, 16>}, {pipeline_mode = #tpu.pipeline_mode<synchronous>, transform_indices = @transform_2, window_bounds = array<i64: 9, 16, 32>}, {pipeline_mode = #tpu.pipeline_mode<synchronous>, transform_indices = @transform_3, window_bounds = array<i64: 9, 32, 64>}, {pipeline_mode = #tpu.pipeline_mode<synchronous>, transform_indices = @transform_4, window_bounds = array<i64: 9, 64, 128>}, {pipeline_mode = #tpu.pipeline_mode<synchronous>, transform_indices = @transform_5, window_bounds = array<i64: 9, 128, 256>}, {pipeline_mode = #tpu.pipeline_mode<synchronous>, transform_indices = @transform_6, window_bounds = array<i64: 1, 16>}, {pipeline_mode = #tpu.pipeline_mode<synchronous>, transform_indices = @transform_7, window_bounds = array<i64: 1, 32>}, {pipeline_mode = #tpu.pipeline_mode<synchronous>, transform_indices = @transform_8, window_bounds = array<i64: 1, 64>}, {pipeline_mode = #tpu.pipeline_mode<synchronous>, transform_indices = @transform_9, window_bounds = array<i64: 1, 128>}, {pipeline_mode = #tpu.pipeline_mode<synchronous>, transform_indices = @transform_10, window_bounds = array<i64: 1, 256>}, {transform_indices = @transform_11, window_bounds = array<i64: 1, 16, 64>}, {transform_indices = @transform_12, window_bounds = array<i64: 1, 4, 128>}, {transform_indices = @transform_13, window_bounds = array<i64: 1, 1, 256>}]} {
    %c0 = arith.constant 0 : index
    %c0_0 = arith.constant 0 : index
    %c0_1 = arith.constant 0 : index
    %0 = vector.load %arg1[%c0, %c0_0, %c0_1] : memref<1x64x27xbf16, #tpu.memory_space<vmem>>, vector<1x64x27xbf16>
    %1 = vector.shape_cast %0 : vector<1x64x27xbf16> to vector<64x27xbf16>
    %c0_2 = arith.constant 0 : index
    %c0_3 = arith.constant 0 : index
    %2 = vector.load %arg2[%c0_2, %c0_3] : memref<27x16xbf16, #tpu.memory_space<vmem>>, vector<27x16xbf16>
    %cst = arith.constant dense<0.000000e+00> : vector<64x16xf32>
    %3 = tpu.matmul %1, %2, %cst {dimension_numbers = #tpu.dot_dimension_numbers<[1], [0], [0], [1], [0, 0, 1, 1], [], []>} : vector<64x27xbf16>, vector<27x16xbf16>, vector<64x16xf32> -> vector<64x16xf32>
    %c0_4 = arith.constant 0 : index
    %c0_5 = arith.constant 0 : index
    %4 = vector.load %arg7[%c0_4, %c0_5] : memref<1x16xf32, #tpu.memory_space<vmem>>, vector<1x16xf32>
    %5 = vector.broadcast %4 : vector<1x16xf32> to vector<64x16xf32>
    %6 = arith.addf %3, %5 : vector<64x16xf32>
    %cst_6 = arith.constant 0.000000e+00 : f32
    %7 = vector.broadcast %cst_6 : f32 to vector<64x16xf32>
    %8 = arith.maximumf %6, %7 : vector<64x16xf32>
    %cst_7 = arith.constant 0.000000e+00 : f32
    %9 = vector.broadcast %cst_7 : f32 to vector<100x16xf32>
    %c0_8 = arith.constant 0 : index
    %c0_9 = arith.constant 0 : index
    %10 = vector.load %arg15[%c0_8, %c0_9] : memref<100x16xf32, #tpu.memory_space<vmem>>, vector<100x16xf32>
    tpu.vector_store %arg15[%c0_8, %c0_9], %9 {strides = array<i32>} : memref<100x16xf32, #tpu.memory_space<vmem>>, vector<100x16xf32>,
    %11 = vector.extract_strided_slice %8 {offsets = [0, 0], sizes = [8, 16], strides = [1, 1]} : vector<64x16xf32> to vector<8x16xf32>
    %c11 = arith.constant 11 : index
    %c0_10 = arith.constant 0 : index
    %12 = vector.load %arg15[%c11, %c0_10] : memref<100x16xf32, #tpu.memory_space<vmem>>, vector<8x16xf32>
    tpu.vector_store %arg15[%c11, %c0_10], %11 {strides = array<i32>} : memref<100x16xf32, #tpu.memory_space<vmem>>, vector<8x16xf32>,
    %13 = vector.extract_strided_slice %8 {offsets = [8, 0], sizes = [8, 16], strides = [1, 1]} : vector<64x16xf32> to vector<8x16xf32>
    %c21 = arith.constant 21 : index
    %c0_11 = arith.constant 0 : index
    %14 = vector.load %arg15[%c21, %c0_11] : memref<100x16xf32, #tpu.memory_space<vmem>>, vector<8x16xf32>
    tpu.vector_store %arg15[%c21, %c0_11], %13 {strides = array<i32>} : memref<100x16xf32, #tpu.memory_space<vmem>>, vector<8x16xf32>,
    %15 = vector.extract_strided_slice %8 {offsets = [16, 0], sizes = [8, 16], strides = [1, 1]} : vector<64x16xf32> to vector<8x16xf32>
    %c31 = arith.constant 31 : index
    %c0_12 = arith.constant 0 : index
    %16 = vector.load %arg15[%c31, %c0_12] : memref<100x16xf32, #tpu.memory_space<vmem>>, vector<8x16xf32>
    tpu.vector_store %arg15[%c31, %c0_12], %15 {strides = array<i32>} : memref<100x16xf32, #tpu.memory_space<vmem>>, vector<8x16xf32>,
    %17 = vector.extract_strided_slice %8 {offsets = [24, 0], sizes = [8, 16], strides = [1, 1]} : vector<64x16xf32> to vector<8x16xf32>
    %c41 = arith.constant 41 : index
    %c0_13 = arith.constant 0 : index
    %18 = vector.load %arg15[%c41, %c0_13] : memref<100x16xf32, #tpu.memory_space<vmem>>, vector<8x16xf32>
    tpu.vector_store %arg15[%c41, %c0_13], %17 {strides = array<i32>} : memref<100x16xf32, #tpu.memory_space<vmem>>, vector<8x16xf32>,
    %19 = vector.extract_strided_slice %8 {offsets = [32, 0], sizes = [8, 16], strides = [1, 1]} : vector<64x16xf32> to vector<8x16xf32>
    %c51 = arith.constant 51 : index
    %c0_14 = arith.constant 0 : index
    %20 = vector.load %arg15[%c51, %c0_14] : memref<100x16xf32, #tpu.memory_space<vmem>>, vector<8x16xf32>
    tpu.vector_store %arg15[%c51, %c0_14], %19 {strides = array<i32>} : memref<100x16xf32, #tpu.memory_space<vmem>>, vector<8x16xf32>,
    %21 = vector.extract_strided_slice %8 {offsets = [40, 0], sizes = [8, 16], strides = [1, 1]} : vector<64x16xf32> to vector<8x16xf32>
    %c61 = arith.constant 61 : index
    %c0_15 = arith.constant 0 : index
    %22 = vector.load %arg15[%c61, %c0_15] : memref<100x16xf32, #tpu.memory_space<vmem>>, vector<8x16xf32>
    tpu.vector_store %arg15[%c61, %c0_15], %21 {strides = array<i32>} : memref<100x16xf32, #tpu.memory_space<vmem>>, vector<8x16xf32>,
    %23 = vector.extract_strided_slice %8 {offsets = [48, 0], sizes = [8, 16], strides = [1, 1]} : vector<64x16xf32> to vector<8x16xf32>
    %c71 = arith.constant 71 : index
    %c0_16 = arith.constant 0 : index
    %24 = vector.load %arg15[%c71, %c0_16] : memref<100x16xf32, #tpu.memory_space<vmem>>, vector<8x16xf32>
    tpu.vector_store %arg15[%c71, %c0_16], %23 {strides = array<i32>} : memref<100x16xf32, #tpu.memory_space<vmem>>, vector<8x16xf32>,
    %25 = vector.extract_strided_slice %8 {offsets = [56, 0], sizes = [8, 16], strides = [1, 1]} : vector<64x16xf32> to vector<8x16xf32>
    %c81 = arith.constant 81 : index
    %c0_17 = arith.constant 0 : index
    %26 = vector.load %arg15[%c81, %c0_17] : memref<100x16xf32, #tpu.memory_space<vmem>>, vector<8x16xf32>
    tpu.vector_store %arg15[%c81, %c0_17], %25 {strides = array<i32>} : memref<100x16xf32, #tpu.memory_space<vmem>>, vector<8x16xf32>,
    %c0_18 = arith.constant 0 : index
    %c0_19 = arith.constant 0 : index
    %27 = vector.load %arg15[%c0_18, %c0_19] : memref<100x16xf32, #tpu.memory_space<vmem>>, vector<8x16xf32>
    %28 = arith.truncf %27 : vector<8x16xf32> to vector<8x16xbf16>
    %c0_20 = arith.constant 0 : index
    %c0_21 = arith.constant 0 : index
    %c0_22 = arith.constant 0 : index
    %29 = vector.load %arg19[%c0_20, %c0_21, %c0_22] : memref<9x64x16xbf16, #tpu.memory_space<vmem>>, vector<1x8x16xbf16>
    %30 = vector.shape_cast %29 : vector<1x8x16xbf16> to vector<8x16xbf16>
    %31 = vector.shape_cast %28 : vector<8x16xbf16> to vector<1x8x16xbf16>
    tpu.vector_store %arg19[%c0_20, %c0_21, %c0_22], %31 {strides = array<i32>} : memref<9x64x16xbf16, #tpu.memory_space<vmem>>, vector<1x8x16xbf16>,
    %c10 = arith.constant 10 : index
    %c0_23 = arith.constant 0 : index
    %32 = vector.load %arg15[%c10, %c0_23] : memref<100x16xf32, #tpu.memory_space<vmem>>, vector<8x16xf32>
    %33 = arith.truncf %32 : vector<8x16xf32> to vector<8x16xbf16>
    %c0_24 = arith.constant 0 : index
    %c8 = arith.constant 8 : index
    %c0_25 = arith.constant 0 : index
    %34 = vector.load %arg19[%c0_24, %c8, %c0_25] : memref<9x64x16xbf16, #tpu.memory_space<vmem>>, vector<1x8x16xbf16>
    %35 = vector.shape_cast %34 : vector<1x8x16xbf16> to vector<8x16xbf16>
    %36 = vector.shape_cast %33 : vector<8x16xbf16> to vector<1x8x16xbf16>
    tpu.vector_store %arg19[%c0_24, %c8, %c0_25], %36 {strides = array<i32>} : memref<9x64x16xbf16, #tpu.memory_space<vmem>>, vector<1x8x16xbf16>,
    %c20 = arith.constant 20 : index
    %c0_26 = arith.constant 0 : index
    %37 = vector.load %arg15[%c20, %c0_26] : memref<100x16xf32, #tpu.memory_space<vmem>>, vector<8x16xf32>
    %38 = arith.truncf %37 : vector<8x16xf32> to vector<8x16xbf16>
    %c0_27 = arith.constant 0 : index
    %c16 = arith.constant 16 : index
    %c0_28 = arith.constant 0 : index
    %39 = vector.load %arg19[%c0_27, %c16, %c0_28] : memref<9x64x16xbf16, #tpu.memory_space<vmem>>, vector<1x8x16xbf16>
    %40 = vector.shape_cast %39 : vector<1x8x16xbf16> to vector<8x16xbf16>
    %41 = vector.shape_cast %38 : vector<8x16xbf16> to vector<1x8x16xbf16>
    tpu.vector_store %arg19[%c0_27, %c16, %c0_28], %41 {strides = array<i32>} : memref<9x64x16xbf16, #tpu.memory_space<vmem>>, vector<1x8x16xbf16>,
    %c30 = arith.constant 30 : index
    %c0_29 = arith.constant 0 : index
    %42 = vector.load %arg15[%c30, %c0_29] : memref<100x16xf32, #tpu.memory_space<vmem>>, vector<8x16xf32>
    %43 = arith.truncf %42 : vector<8x16xf32> to vector<8x16xbf16>
    %c0_30 = arith.constant 0 : index
    %c24 = arith.constant 24 : index
    %c0_31 = arith.constant 0 : index
    %44 = vector.load %arg19[%c0_30, %c24, %c0_31] : memref<9x64x16xbf16, #tpu.memory_space<vmem>>, vector<1x8x16xbf16>
    %45 = vector.shape_cast %44 : vector<1x8x16xbf16> to vector<8x16xbf16>
    %46 = vector.shape_cast %43 : vector<8x16xbf16> to vector<1x8x16xbf16>
    tpu.vector_store %arg19[%c0_30, %c24, %c0_31], %46 {strides = array<i32>} : memref<9x64x16xbf16, #tpu.memory_space<vmem>>, vector<1x8x16xbf16>,
    %c40 = arith.constant 40 : index
    %c0_32 = arith.constant 0 : index
    %47 = vector.load %arg15[%c40, %c0_32] : memref<100x16xf32, #tpu.memory_space<vmem>>, vector<8x16xf32>
    %48 = arith.truncf %47 : vector<8x16xf32> to vector<8x16xbf16>
    %c0_33 = arith.constant 0 : index
    %c32 = arith.constant 32 : index
    %c0_34 = arith.constant 0 : index
    %49 = vector.load %arg19[%c0_33, %c32, %c0_34] : memref<9x64x16xbf16, #tpu.memory_space<vmem>>, vector<1x8x16xbf16>
    %50 = vector.shape_cast %49 : vector<1x8x16xbf16> to vector<8x16xbf16>
    %51 = vector.shape_cast %48 : vector<8x16xbf16> to vector<1x8x16xbf16>
    tpu.vector_store %arg19[%c0_33, %c32, %c0_34], %51 {strides = array<i32>} : memref<9x64x16xbf16, #tpu.memory_space<vmem>>, vector<1x8x16xbf16>,
    %c50 = arith.constant 50 : index
    %c0_35 = arith.constant 0 : index
    %52 = vector.load %arg15[%c50, %c0_35] : memref<100x16xf32, #tpu.memory_space<vmem>>, vector<8x16xf32>
    %53 = arith.truncf %52 : vector<8x16xf32> to vector<8x16xbf16>
    %c0_36 = arith.constant 0 : index
    %c40_37 = arith.constant 40 : index
    %c0_38 = arith.constant 0 : index
    %54 = vector.load %arg19[%c0_36, %c40_37, %c0_38] : memref<9x64x16xbf16, #tpu.memory_space<vmem>>, vector<1x8x16xbf16>
    %55 = vector.shape_cast %54 : vector<1x8x16xbf16> to vector<8x16xbf16>
    %56 = vector.shape_cast %53 : vector<8x16xbf16> to vector<1x8x16xbf16>
    tpu.vector_store %arg19[%c0_36, %c40_37, %c0_38], %56 {strides = array<i32>} : memref<9x64x16xbf16, #tpu.memory_space<vmem>>, vector<1x8x16xbf16>,
    %c60 = arith.constant 60 : index
    %c0_39 = arith.constant 0 : index
    %57 = vector.load %arg15[%c60, %c0_39] : memref<100x16xf32, #tpu.memory_space<vmem>>, vector<8x16xf32>
    %58 = arith.truncf %57 : vector<8x16xf32> to vector<8x16xbf16>
    %c0_40 = arith.constant 0 : index
    %c48 = arith.constant 48 : index
    %c0_41 = arith.constant 0 : index
    %59 = vector.load %arg19[%c0_40, %c48, %c0_41] : memref<9x64x16xbf16, #tpu.memory_space<vmem>>, vector<1x8x16xbf16>
    %60 = vector.shape_cast %59 : vector<1x8x16xbf16> to vector<8x16xbf16>
    %61 = vector.shape_cast %58 : vector<8x16xbf16> to vector<1x8x16xbf16>
    tpu.vector_store %arg19[%c0_40, %c48, %c0_41], %61 {strides = array<i32>} : memref<9x64x16xbf16, #tpu.memory_space<vmem>>, vector<1x8x16xbf16>,
    %c70 = arith.constant 70 : index
    %c0_42 = arith.constant 0 : index
    %62 = vector.load %arg15[%c70, %c0_42] : memref<100x16xf32, #tpu.memory_space<vmem>>, vector<8x16xf32>
    %63 = arith.truncf %62 : vector<8x16xf32> to vector<8x16xbf16>
    %c0_43 = arith.constant 0 : index
    %c56 = arith.constant 56 : index
    %c0_44 = arith.constant 0 : index
    %64 = vector.load %arg19[%c0_43, %c56, %c0_44] : memref<9x64x16xbf16, #tpu.memory_space<vmem>>, vector<1x8x16xbf16>
    %65 = vector.shape_cast %64 : vector<1x8x16xbf16> to vector<8x16xbf16>
    %66 = vector.shape_cast %63 : vector<8x16xbf16> to vector<1x8x16xbf16>
    tpu.vector_store %arg19[%c0_43, %c56, %c0_44], %66 {strides = array<i32>} : memref<9x64x16xbf16, #tpu.memory_space<vmem>>, vector<1x8x16xbf16>,
    %c1 = arith.constant 1 : index
    %c0_45 = arith.constant 0 : index
    %67 = vector.load %arg15[%c1, %c0_45] : memref<100x16xf32, #tpu.memory_space<vmem>>, vector<8x16xf32>
    %68 = arith.truncf %67 : vector<8x16xf32> to vector<8x16xbf16>
    %c1_46 = arith.constant 1 : index
    %c0_47 = arith.constant 0 : index
    %c0_48 = arith.constant 0 : index
    %69 = vector.load %arg19[%c1_46, %c0_47, %c0_48] : memref<9x64x16xbf16, #tpu.memory_space<vmem>>, vector<1x8x16xbf16>
    %70 = vector.shape_cast %69 : vector<1x8x16xbf16> to vector<8x16xbf16>
    %71 = vector.shape_cast %68 : vector<8x16xbf16> to vector<1x8x16xbf16>
    tpu.vector_store %arg19[%c1_46, %c0_47, %c0_48], %71 {strides = array<i32>} : memref<9x64x16xbf16, #tpu.memory_space<vmem>>, vector<1x8x16xbf16>,
    %c11_49 = arith.constant 11 : index
    %c0_50 = arith.constant 0 : index
    %72 = vector.load %arg15[%c11_49, %c0_50] : memref<100x16xf32, #tpu.memory_space<vmem>>, vector<8x16xf32>
    %73 = arith.truncf %72 : vector<8x16xf32> to vector<8x16xbf16>
    %c1_51 = arith.constant 1 : index
    %c8_52 = arith.constant 8 : index
    %c0_53 = arith.constant 0 : index
    %74 = vector.load %arg19[%c1_51, %c8_52, %c0_53] : memref<9x64x16xbf16, #tpu.memory_space<vmem>>, vector<1x8x16xbf16>
    %75 = vector.shape_cast %74 : vector<1x8x16xbf16> to vector<8x16xbf16>
    %76 = vector.shape_cast %73 : vector<8x16xbf16> to vector<1x8x16xbf16>
    tpu.vector_store %arg19[%c1_51, %c8_52, %c0_53], %76 {strides = array<i32>} : memref<9x64x16xbf16, #tpu.memory_space<vmem>>, vector<1x8x16xbf16>,
    %c21_54 = arith.constant 21 : index
    %c0_55 = arith.constant 0 : index
    %77 = vector.load %arg15[%c21_54, %c0_55] : memref<100x16xf32, #tpu.memory_space<vmem>>, vector<8x16xf32>
    %78 = arith.truncf %77 : vector<8x16xf32> to vector<8x16xbf16>
    %c1_56 = arith.constant 1 : index
    %c16_57 = arith.constant 16 : index
    %c0_58 = arith.constant 0 : index
    %79 = vector.load %arg19[%c1_56, %c16_57, %c0_58] : memref<9x64x16xbf16, #tpu.memory_space<vmem>>, vector<1x8x16xbf16>
    %80 = vector.shape_cast %79 : vector<1x8x16xbf16> to vector<8x16xbf16>
    %81 = vector.shape_cast %78 : vector<8x16xbf16> to vector<1x8x16xbf16>
    tpu.vector_store %arg19[%c1_56, %c16_57, %c0_58], %81 {strides = array<i32>} : memref<9x64x16xbf16, #tpu.memory_space<vmem>>, vector<1x8x16xbf16>,
    %c31_59 = arith.constant 31 : index
    %c0_60 = arith.constant 0 : index
    %82 = vector.load %arg15[%c31_59, %c0_60] : memref<100x16xf32, #tpu.memory_space<vmem>>, vector<8x16xf32>
    %83 = arith.truncf %82 : vector<8x16xf32> to vector<8x16xbf16>
    %c1_61 = arith.constant 1 : index
    %c24_62 = arith.constant 24 : index
    %c0_63 = arith.constant 0 : index
    %84 = vector.load %arg19[%c1_61, %c24_62, %c0_63] : memref<9x64x16xbf16, #tpu.memory_space<vmem>>, vector<1x8x16xbf16>
    %85 = vector.shape_cast %84 : vector<1x8x16xbf16> to vector<8x16xbf16>
    %86 = vector.shape_cast %83 : vector<8x16xbf16> to vector<1x8x16xbf16>
    tpu.vector_store %arg19[%c1_61, %c24_62, %c0_63], %86 {strides = array<i32>} : memref<9x64x16xbf16, #tpu.memory_space<vmem>>, vector<1x8x16xbf16>,
    %c41_64 = arith.constant 41 : index
    %c0_65 = arith.constant 0 : index
    %87 = vector.load %arg15[%c41_64, %c0_65] : memref<100x16xf32, #tpu.memory_space<vmem>>, vector<8x16xf32>
    %88 = arith.truncf %87 : vector<8x16xf32> to vector<8x16xbf16>
    %c1_66 = arith.constant 1 : index
    %c32_67 = arith.constant 32 : index
    %c0_68 = arith.constant 0 : index
    %89 = vector.load %arg19[%c1_66, %c32_67, %c0_68] : memref<9x64x16xbf16, #tpu.memory_space<vmem>>, vector<1x8x16xbf16>
    %90 = vector.shape_cast %89 : vector<1x8x16xbf16> to vector<8x16xbf16>
    %91 = vector.shape_cast %88 : vector<8x16xbf16> to vector<1x8x16xbf16>
    tpu.vector_store %arg19[%c1_66, %c32_67, %c0_68], %91 {strides = array<i32>} : memref<9x64x16xbf16, #tpu.memory_space<vmem>>, vector<1x8x16xbf16>,
    %c51_69 = arith.constant 51 : index
    %c0_70 = arith.constant 0 : index
    %92 = vector.load %arg15[%c51_69, %c0_70] : memref<100x16xf32, #tpu.memory_space<vmem>>, vector<8x16xf32>
    %93 = arith.truncf %92 : vector<8x16xf32> to vector<8x16xbf16>
    %c1_71 = arith.constant 1 : index
    %c40_72 = arith.constant 40 : index
    %c0_73 = arith.constant 0 : index
    %94 = vector.load %arg19[%c1_71, %c40_72, %c0_73] : memref<9x64x16xbf16, #tpu.memory_space<vmem>>, vector<1x8x16xbf16>
    %95 = vector.shape_cast %94 : vector<1x8x16xbf16> to vector<8x16xbf16>
    %96 = vector.shape_cast %93 : vector<8x16xbf16> to vector<1x8x16xbf16>
    tpu.vector_store %arg19[%c1_71, %c40_72, %c0_73], %96 {strides = array<i32>} : memref<9x64x16xbf16, #tpu.memory_space<vmem>>, vector<1x8x16xbf16>,
    %c61_74 = arith.constant 61 : index
    %c0_75 = arith.constant 0 : index
    %97 = vector.load %arg15[%c61_74, %c0_75] : memref<100x16xf32, #tpu.memory_space<vmem>>, vector<8x16xf32>
    %98 = arith.truncf %97 : vector<8x16xf32> to vector<8x16xbf16>
    %c1_76 = arith.constant 1 : index
    %c48_77 = arith.constant 48 : index
    %c0_78 = arith.constant 0 : index
    %99 = vector.load %arg19[%c1_76, %c48_77, %c0_78] : memref<9x64x16xbf16, #tpu.memory_space<vmem>>, vector<1x8x16xbf16>
    %100 = vector.shape_cast %99 : vector<1x8x16xbf16> to vector<8x16xbf16>
    %101 = vector.shape_cast %98 : vector<8x16xbf16> to vector<1x8x16xbf16>
    tpu.vector_store %arg19[%c1_76, %c48_77, %c0_78], %101 {strides = array<i32>} : memref<9x64x16xbf16, #tpu.memory_space<vmem>>, vector<1x8x16xbf16>,
    %c71_79 = arith.constant 71 : index
    %c0_80 = arith.constant 0 : index
    %102 = vector.load %arg15[%c71_79, %c0_80] : memref<100x16xf32, #tpu.memory_space<vmem>>, vector<8x16xf32>
    %103 = arith.truncf %102 : vector<8x16xf32> to vector<8x16xbf16>
    %c1_81 = arith.constant 1 : index
    %c56_82 = arith.constant 56 : index
    %c0_83 = arith.constant 0 : index
    %104 = vector.load %arg19[%c1_81, %c56_82, %c0_83] : memref<9x64x16xbf16, #tpu.memory_space<vmem>>, vector<1x8x16xbf16>
    %105 = vector.shape_cast %104 : vector<1x8x16xbf16> to vector<8x16xbf16>
    %106 = vector.shape_cast %103 : vector<8x16xbf16> to vector<1x8x16xbf16>
    tpu.vector_store %arg19[%c1_81, %c56_82, %c0_83], %106 {strides = array<i32>} : memref<9x64x16xbf16, #tpu.memory_space<vmem>>, vector<1x8x16xbf16>,
    %c2 = arith.constant 2 : index
    %c0_84 = arith.constant 0 : index
    %107 = vector.load %arg15[%c2, %c0_84] : memref<100x16xf32, #tpu.memory_space<vmem>>, vector<8x16xf32>
    %108 = arith.truncf %107 : vector<8x16xf32> to vector<8x16xbf16>
    %c2_85 = arith.constant 2 : index
    %c0_86 = arith.constant 0 : index
    %c0_87 = arith.constant 0 : index
    %109 = vector.load %arg19[%c2_85, %c0_86, %c0_87] : memref<9x64x16xbf16, #tpu.memory_space<vmem>>, vector<1x8x16xbf16>
    %110 = vector.shape_cast %109 : vector<1x8x16xbf16> to vector<8x16xbf16>
    %111 = vector.shape_cast %108 : vector<8x16xbf16> to vector<1x8x16xbf16>
    tpu.vector_store %arg19[%c2_85, %c0_86, %c0_87], %111 {strides = array<i32>} : memref<9x64x16xbf16, #tpu.memory_space<vmem>>, vector<1x8x16xbf16>,
    %c12 = arith.constant 12 : index
    %c0_88 = arith.constant 0 : index
    %112 = vector.load %arg15[%c12, %c0_88] : memref<100x16xf32, #tpu.memory_space<vmem>>, vector<8x16xf32>
    %113 = arith.truncf %112 : vector<8x16xf32> to vector<8x16xbf16>
    %c2_89 = arith.constant 2 : index
    %c8_90 = arith.constant 8 : index
    %c0_91 = arith.constant 0 : index
    %114 = vector.load %arg19[%c2_89, %c8_90, %c0_91] : memref<9x64x16xbf16, #tpu.memory_space<vmem>>, vector<1x8x16xbf16>
    %115 = vector.shape_cast %114 : vector<1x8x16xbf16> to vector<8x16xbf16>
    %116 = vector.shape_cast %113 : vector<8x16xbf16> to vector<1x8x16xbf16>
    tpu.vector_store %arg19[%c2_89, %c8_90, %c0_91], %116 {strides = array<i32>} : memref<9x64x16xbf16, #tpu.memory_space<vmem>>, vector<1x8x16xbf16>,
    %c22 = arith.constant 22 : index
    %c0_92 = arith.constant 0 : index
    %117 = vector.load %arg15[%c22, %c0_92] : memref<100x16xf32, #tpu.memory_space<vmem>>, vector<8x16xf32>
    %118 = arith.truncf %117 : vector<8x16xf32> to vector<8x16xbf16>
    %c2_93 = arith.constant 2 : index
    %c16_94 = arith.constant 16 : index
    %c0_95 = arith.constant 0 : index
    %119 = vector.load %arg19[%c2_93, %c16_94, %c0_95] : memref<9x64x16xbf16, #tpu.memory_space<vmem>>, vector<1x8x16xbf16>
    %120 = vector.shape_cast %119 : vector<1x8x16xbf16> to vector<8x16xbf16>
    %121 = vector.shape_cast %118 : vector<8x16xbf16> to vector<1x8x16xbf16>
    tpu.vector_store %arg19[%c2_93, %c16_94, %c0_95], %121 {strides = array<i32>} : memref<9x64x16xbf16, #tpu.memory_space<vmem>>, vector<1x8x16xbf16>,
    %c32_96 = arith.constant 32 : index
    %c0_97 = arith.constant 0 : index
    %122 = vector.load %arg15[%c32_96, %c0_97] : memref<100x16xf32, #tpu.memory_space<vmem>>, vector<8x16xf32>
    %123 = arith.truncf %122 : vector<8x16xf32> to vector<8x16xbf16>
    %c2_98 = arith.constant 2 : index
    %c24_99 = arith.constant 24 : index
    %c0_100 = arith.constant 0 : index
    %124 = vector.load %arg19[%c2_98, %c24_99, %c0_100] : memref<9x64x16xbf16, #tpu.memory_space<vmem>>, vector<1x8x16xbf16>
    %125 = vector.shape_cast %124 : vector<1x8x16xbf16> to vector<8x16xbf16>
    %126 = vector.shape_cast %123 : vector<8x16xbf16> to vector<1x8x16xbf16>
    tpu.vector_store %arg19[%c2_98, %c24_99, %c0_100], %126 {strides = array<i32>} : memref<9x64x16xbf16, #tpu.memory_space<vmem>>, vector<1x8x16xbf16>,
    %c42 = arith.constant 42 : index
    %c0_101 = arith.constant 0 : index
    %127 = vector.load %arg15[%c42, %c0_101] : memref<100x16xf32, #tpu.memory_space<vmem>>, vector<8x16xf32>
    %128 = arith.truncf %127 : vector<8x16xf32> to vector<8x16xbf16>
    %c2_102 = arith.constant 2 : index
    %c32_103 = arith.constant 32 : index
    %c0_104 = arith.constant 0 : index
    %129 = vector.load %arg19[%c2_102, %c32_103, %c0_104] : memref<9x64x16xbf16, #tpu.memory_space<vmem>>, vector<1x8x16xbf16>
    %130 = vector.shape_cast %129 : vector<1x8x16xbf16> to vector<8x16xbf16>
    %131 = vector.shape_cast %128 : vector<8x16xbf16> to vector<1x8x16xbf16>
    tpu.vector_store %arg19[%c2_102, %c32_103, %c0_104], %131 {strides = array<i32>} : memref<9x64x16xbf16, #tpu.memory_space<vmem>>, vector<1x8x16xbf16>,
    %c52 = arith.constant 52 : index
    %c0_105 = arith.constant 0 : index
    %132 = vector.load %arg15[%c52, %c0_105] : memref<100x16xf32, #tpu.memory_space<vmem>>, vector<8x16xf32>
    %133 = arith.truncf %132 : vector<8x16xf32> to vector<8x16xbf16>
    %c2_106 = arith.constant 2 : index
    %c40_107 = arith.constant 40 : index
    %c0_108 = arith.constant 0 : index
    %134 = vector.load %arg19[%c2_106, %c40_107, %c0_108] : memref<9x64x16xbf16, #tpu.memory_space<vmem>>, vector<1x8x16xbf16>
    %135 = vector.shape_cast %134 : vector<1x8x16xbf16> to vector<8x16xbf16>
    %136 = vector.shape_cast %133 : vector<8x16xbf16> to vector<1x8x16xbf16>
    tpu.vector_store %arg19[%c2_106, %c40_107, %c0_108], %136 {strides = array<i32>} : memref<9x64x16xbf16, #tpu.memory_space<vmem>>, vector<1x8x16xbf16>,
    %c62 = arith.constant 62 : index
    %c0_109 = arith.constant 0 : index
    %137 = vector.load %arg15[%c62, %c0_109] : memref<100x16xf32, #tpu.memory_space<vmem>>, vector<8x16xf32>
    %138 = arith.truncf %137 : vector<8x16xf32> to vector<8x16xbf16>
    %c2_110 = arith.constant 2 : index
    %c48_111 = arith.constant 48 : index
    %c0_112 = arith.constant 0 : index
    %139 = vector.load %arg19[%c2_110, %c48_111, %c0_112] : memref<9x64x16xbf16, #tpu.memory_space<vmem>>, vector<1x8x16xbf16>
    %140 = vector.shape_cast %139 : vector<1x8x16xbf16> to vector<8x16xbf16>
    %141 = vector.shape_cast %138 : vector<8x16xbf16> to vector<1x8x16xbf16>
    tpu.vector_store %arg19[%c2_110, %c48_111, %c0_112], %141 {strides = array<i32>} : memref<9x64x16xbf16, #tpu.memory_space<vmem>>, vector<1x8x16xbf16>,
    %c72 = arith.constant 72 : index
    %c0_113 = arith.constant 0 : index
    %142 = vector.load %arg15[%c72, %c0_113] : memref<100x16xf32, #tpu.memory_space<vmem>>, vector<8x16xf32>
    %143 = arith.truncf %142 : vector<8x16xf32> to vector<8x16xbf16>
    %c2_114 = arith.constant 2 : index
    %c56_115 = arith.constant 56 : index
    %c0_116 = arith.constant 0 : index
    %144 = vector.load %arg19[%c2_114, %c56_115, %c0_116] : memref<9x64x16xbf16, #tpu.memory_space<vmem>>, vector<1x8x16xbf16>
    %145 = vector.shape_cast %144 : vector<1x8x16xbf16> to vector<8x16xbf16>
    %146 = vector.shape_cast %143 : vector<8x16xbf16> to vector<1x8x16xbf16>
    tpu.vector_store %arg19[%c2_114, %c56_115, %c0_116], %146 {strides = array<i32>} : memref<9x64x16xbf16, #tpu.memory_space<vmem>>, vector<1x8x16xbf16>,
    %c10_117 = arith.constant 10 : index
    %c0_118 = arith.constant 0 : index
    %147 = vector.load %arg15[%c10_117, %c0_118] : memref<100x16xf32, #tpu.memory_space<vmem>>, vector<8x16xf32>
    %148 = arith.truncf %147 : vector<8x16xf32> to vector<8x16xbf16>
    %c3 = arith.constant 3 : index
    %c0_119 = arith.constant 0 : index
    %c0_120 = arith.constant 0 : index
    %149 = vector.load %arg19[%c3, %c0_119, %c0_120] : memref<9x64x16xbf16, #tpu.memory_space<vmem>>, vector<1x8x16xbf16>
    %150 = vector.shape_cast %149 : vector<1x8x16xbf16> to vector<8x16xbf16>
    %151 = vector.shape_cast %148 : vector<8x16xbf16> to vector<1x8x16xbf16>
    tpu.vector_store %arg19[%c3, %c0_119, %c0_120], %151 {strides = array<i32>} : memref<9x64x16xbf16, #tpu.memory_space<vmem>>, vector<1x8x16xbf16>,
    %c20_121 = arith.constant 20 : index
    %c0_122 = arith.constant 0 : index
    %152 = vector.load %arg15[%c20_121, %c0_122] : memref<100x16xf32, #tpu.memory_space<vmem>>, vector<8x16xf32>
    %153 = arith.truncf %152 : vector<8x16xf32> to vector<8x16xbf16>
    %c3_123 = arith.constant 3 : index
    %c8_124 = arith.constant 8 : index
    %c0_125 = arith.constant 0 : index
    %154 = vector.load %arg19[%c3_123, %c8_124, %c0_125] : memref<9x64x16xbf16, #tpu.memory_space<vmem>>, vector<1x8x16xbf16>
    %155 = vector.shape_cast %154 : vector<1x8x16xbf16> to vector<8x16xbf16>
    %156 = vector.shape_cast %153 : vector<8x16xbf16> to vector<1x8x16xbf16>
    tpu.vector_store %arg19[%c3_123, %c8_124, %c0_125], %156 {strides = array<i32>} : memref<9x64x16xbf16, #tpu.memory_space<vmem>>, vector<1x8x16xbf16>,
    %c30_126 = arith.constant 30 : index
    %c0_127 = arith.constant 0 : index
    %157 = vector.load %arg15[%c30_126, %c0_127] : memref<100x16xf32, #tpu.memory_space<vmem>>, vector<8x16xf32>
    %158 = arith.truncf %157 : vector<8x16xf32> to vector<8x16xbf16>
    %c3_128 = arith.constant 3 : index
    %c16_129 = arith.constant 16 : index
    %c0_130 = arith.constant 0 : index
    %159 = vector.load %arg19[%c3_128, %c16_129, %c0_130] : memref<9x64x16xbf16, #tpu.memory_space<vmem>>, vector<1x8x16xbf16>
    %160 = vector.shape_cast %159 : vector<1x8x16xbf16> to vector<8x16xbf16>
    %161 = vector.shape_cast %158 : vector<8x16xbf16> to vector<1x8x16xbf16>
    tpu.vector_store %arg19[%c3_128, %c16_129, %c0_130], %161 {strides = array<i32>} : memref<9x64x16xbf16, #tpu.memory_space<vmem>>, vector<1x8x16xbf16>,
    %c40_131 = arith.constant 40 : index
    %c0_132 = arith.constant 0 : index
    %162 = vector.load %arg15[%c40_131, %c0_132] : memref<100x16xf32, #tpu.memory_space<vmem>>, vector<8x16xf32>
    %163 = arith.truncf %162 : vector<8x16xf32> to vector<8x16xbf16>
    %c3_133 = arith.constant 3 : index
    %c24_134 = arith.constant 24 : index
    %c0_135 = arith.constant 0 : index
    %164 = vector.load %arg19[%c3_133, %c24_134, %c0_135] : memref<9x64x16xbf16, #tpu.memory_space<vmem>>, vector<1x8x16xbf16>
    %165 = vector.shape_cast %164 : vector<1x8x16xbf16> to vector<8x16xbf16>
    %166 = vector.shape_cast %163 : vector<8x16xbf16> to vector<1x8x16xbf16>
    tpu.vector_store %arg19[%c3_133, %c24_134, %c0_135], %166 {strides = array<i32>} : memref<9x64x16xbf16, #tpu.memory_space<vmem>>, vector<1x8x16xbf16>,
    %c50_136 = arith.constant 50 : index
    %c0_137 = arith.constant 0 : index
    %167 = vector.load %arg15[%c50_136, %c0_137] : memref<100x16xf32, #tpu.memory_space<vmem>>, vector<8x16xf32>
    %168 = arith.truncf %167 : vector<8x16xf32> to vector<8x16xbf16>
    %c3_138 = arith.constant 3 : index
    %c32_139 = arith.constant 32 : index
    %c0_140 = arith.constant 0 : index
    %169 = vector.load %arg19[%c3_138, %c32_139, %c0_140] : memref<9x64x16xbf16, #tpu.memory_space<vmem>>, vector<1x8x16xbf16>
    %170 = vector.shape_cast %169 : vector<1x8x16xbf16> to vector<8x16xbf16>
    %171 = vector.shape_cast %168 : vector<8x16xbf16> to vector<1x8x16xbf16>
    tpu.vector_store %arg19[%c3_138, %c32_139, %c0_140], %171 {strides = array<i32>} : memref<9x64x16xbf16, #tpu.memory_space<vmem>>, vector<1x8x16xbf16>,
    %c60_141 = arith.constant 60 : index
    %c0_142 = arith.constant 0 : index
    %172 = vector.load %arg15[%c60_141, %c0_142] : memref<100x16xf32, #tpu.memory_space<vmem>>, vector<8x16xf32>
    %173 = arith.truncf %172 : vector<8x16xf32> to vector<8x16xbf16>
    %c3_143 = arith.constant 3 : index
    %c40_144 = arith.constant 40 : index
    %c0_145 = arith.constant 0 : index
    %174 = vector.load %arg19[%c3_143, %c40_144, %c0_145] : memref<9x64x16xbf16, #tpu.memory_space<vmem>>, vector<1x8x16xbf16>
    %175 = vector.shape_cast %174 : vector<1x8x16xbf16> to vector<8x16xbf16>
    %176 = vector.shape_cast %173 : vector<8x16xbf16> to vector<1x8x16xbf16>
    tpu.vector_store %arg19[%c3_143, %c40_144, %c0_145], %176 {strides = array<i32>} : memref<9x64x16xbf16, #tpu.memory_space<vmem>>, vector<1x8x16xbf16>,
    %c70_146 = arith.constant 70 : index
    %c0_147 = arith.constant 0 : index
    %177 = vector.load %arg15[%c70_146, %c0_147] : memref<100x16xf32, #tpu.memory_space<vmem>>, vector<8x16xf32>
    %178 = arith.truncf %177 : vector<8x16xf32> to vector<8x16xbf16>
    %c3_148 = arith.constant 3 : index
    %c48_149 = arith.constant 48 : index
    %c0_150 = arith.constant 0 : index
    %179 = vector.load %arg19[%c3_148, %c48_149, %c0_150] : memref<9x64x16xbf16, #tpu.memory_space<vmem>>, vector<1x8x16xbf16>
    %180 = vector.shape_cast %179 : vector<1x8x16xbf16> to vector<8x16xbf16>
    %181 = vector.shape_cast %178 : vector<8x16xbf16> to vector<1x8x16xbf16>
    tpu.vector_store %arg19[%c3_148, %c48_149, %c0_150], %181 {strides = array<i32>} : memref<9x64x16xbf16, #tpu.memory_space<vmem>>, vector<1x8x16xbf16>,
    %c80 = arith.constant 80 : index
    %c0_151 = arith.constant 0 : index
    %182 = vector.load %arg15[%c80, %c0_151] : memref<100x16xf32, #tpu.memory_space<vmem>>, vector<8x16xf32>
    %183 = arith.truncf %182 : vector<8x16xf32> to vector<8x16xbf16>
    %c3_152 = arith.constant 3 : index
    %c56_153 = arith.constant 56 : index
    %c0_154 = arith.constant 0 : index
    %184 = vector.load %arg19[%c3_152, %c56_153, %c0_154] : memref<9x64x16xbf16, #tpu.memory_space<vmem>>, vector<1x8x16xbf16>
    %185 = vector.shape_cast %184 : vector<1x8x16xbf16> to vector<8x16xbf16>
    %186 = vector.shape_cast %183 : vector<8x16xbf16> to vector<1x8x16xbf16>
    tpu.vector_store %arg19[%c3_152, %c56_153, %c0_154], %186 {strides = array<i32>} : memref<9x64x16xbf16, #tpu.memory_space<vmem>>, vector<1x8x16xbf16>,
    %c11_155 = arith.constant 11 : index
    %c0_156 = arith.constant 0 : index
    %187 = vector.load %arg15[%c11_155, %c0_156] : memref<100x16xf32, #tpu.memory_space<vmem>>, vector<8x16xf32>
    %188 = arith.truncf %187 : vector<8x16xf32> to vector<8x16xbf16>
    %c4 = arith.constant 4 : index
    %c0_157 = arith.constant 0 : index
    %c0_158 = arith.constant 0 : index
    %189 = vector.load %arg19[%c4, %c0_157, %c0_158] : memref<9x64x16xbf16, #tpu.memory_space<vmem>>, vector<1x8x16xbf16>
    %190 = vector.shape_cast %189 : vector<1x8x16xbf16> to vector<8x16xbf16>
    %191 = vector.shape_cast %188 : vector<8x16xbf16> to vector<1x8x16xbf16>
    tpu.vector_store %arg19[%c4, %c0_157, %c0_158], %191 {strides = array<i32>} : memref<9x64x16xbf16, #tpu.memory_space<vmem>>, vector<1x8x16xbf16>,
    %c21_159 = arith.constant 21 : index
    %c0_160 = arith.constant 0 : index
    %192 = vector.load %arg15[%c21_159, %c0_160] : memref<100x16xf32, #tpu.memory_space<vmem>>, vector<8x16xf32>
    %193 = arith.truncf %192 : vector<8x16xf32> to vector<8x16xbf16>
    %c4_161 = arith.constant 4 : index
    %c8_162 = arith.constant 8 : index
    %c0_163 = arith.constant 0 : index
    %194 = vector.load %arg19[%c4_161, %c8_162, %c0_163] : memref<9x64x16xbf16, #tpu.memory_space<vmem>>, vector<1x8x16xbf16>
    %195 = vector.shape_cast %194 : vector<1x8x16xbf16> to vector<8x16xbf16>
    %196 = vector.shape_cast %193 : vector<8x16xbf16> to vector<1x8x16xbf16>
    tpu.vector_store %arg19[%c4_161, %c8_162, %c0_163], %196 {strides = array<i32>} : memref<9x64x16xbf16, #tpu.memory_space<vmem>>, vector<1x8x16xbf16>,
    %c31_164 = arith.constant 31 : index
    %c0_165 = arith.constant 0 : index
    %197 = vector.load %arg15[%c31_164, %c0_165] : memref<100x16xf32, #tpu.memory_space<vmem>>, vector<8x16xf32>
    %198 = arith.truncf %197 : vector<8x16xf32> to vector<8x16xbf16>
    %c4_166 = arith.constant 4 : index
    %c16_167 = arith.constant 16 : index
    %c0_168 = arith.constant 0 : index
    %199 = vector.load %arg19[%c4_166, %c16_167, %c0_168] : memref<9x64x16xbf16, #tpu.memory_space<vmem>>, vector<1x8x16xbf16>
    %200 = vector.shape_cast %199 : vector<1x8x16xbf16> to vector<8x16xbf16>
    %201 = vector.shape_cast %198 : vector<8x16xbf16> to vector<1x8x16xbf16>
    tpu.vector_store %arg19[%c4_166, %c16_167, %c0_168], %201 {strides = array<i32>} : memref<9x64x16xbf16, #tpu.memory_space<vmem>>, vector<1x8x16xbf16>,
    %c41_169 = arith.constant 41 : index
    %c0_170 = arith.constant 0 : index
    %202 = vector.load %arg15[%c41_169, %c0_170] : memref<100x16xf32, #tpu.memory_space<vmem>>, vector<8x16xf32>
    %203 = arith.truncf %202 : vector<8x16xf32> to vector<8x16xbf16>
    %c4_171 = arith.constant 4 : index
    %c24_172 = arith.constant 24 : index
    %c0_173 = arith.constant 0 : index
    %204 = vector.load %arg19[%c4_171, %c24_172, %c0_173] : memref<9x64x16xbf16, #tpu.memory_space<vmem>>, vector<1x8x16xbf16>
    %205 = vector.shape_cast %204 : vector<1x8x16xbf16> to vector<8x16xbf16>
    %206 = vector.shape_cast %203 : vector<8x16xbf16> to vector<1x8x16xbf16>
    tpu.vector_store %arg19[%c4_171, %c24_172, %c0_173], %206 {strides = array<i32>} : memref<9x64x16xbf16, #tpu.memory_space<vmem>>, vector<1x8x16xbf16>,
    %c51_174 = arith.constant 51 : index
    %c0_175 = arith.constant 0 : index
    %207 = vector.load %arg15[%c51_174, %c0_175] : memref<100x16xf32, #tpu.memory_space<vmem>>, vector<8x16xf32>
    %208 = arith.truncf %207 : vector<8x16xf32> to vector<8x16xbf16>
    %c4_176 = arith.constant 4 : index
    %c32_177 = arith.constant 32 : index
    %c0_178 = arith.constant 0 : index
    %209 = vector.load %arg19[%c4_176, %c32_177, %c0_178] : memref<9x64x16xbf16, #tpu.memory_space<vmem>>, vector<1x8x16xbf16>
    %210 = vector.shape_cast %209 : vector<1x8x16xbf16> to vector<8x16xbf16>
    %211 = vector.shape_cast %208 : vector<8x16xbf16> to vector<1x8x16xbf16>
    tpu.vector_store %arg19[%c4_176, %c32_177, %c0_178], %211 {strides = array<i32>} : memref<9x64x16xbf16, #tpu.memory_space<vmem>>, vector<1x8x16xbf16>,
    %c61_179 = arith.constant 61 : index
    %c0_180 = arith.constant 0 : index
    %212 = vector.load %arg15[%c61_179, %c0_180] : memref<100x16xf32, #tpu.memory_space<vmem>>, vector<8x16xf32>
    %213 = arith.truncf %212 : vector<8x16xf32> to vector<8x16xbf16>
    %c4_181 = arith.constant 4 : index
    %c40_182 = arith.constant 40 : index
    %c0_183 = arith.constant 0 : index
    %214 = vector.load %arg19[%c4_181, %c40_182, %c0_183] : memref<9x64x16xbf16, #tpu.memory_space<vmem>>, vector<1x8x16xbf16>
    %215 = vector.shape_cast %214 : vector<1x8x16xbf16> to vector<8x16xbf16>
    %216 = vector.shape_cast %213 : vector<8x16xbf16> to vector<1x8x16xbf16>
    tpu.vector_store %arg19[%c4_181, %c40_182, %c0_183], %216 {strides = array<i32>} : memref<9x64x16xbf16, #tpu.memory_space<vmem>>, vector<1x8x16xbf16>,
    %c71_184 = arith.constant 71 : index
    %c0_185 = arith.constant 0 : index
    %217 = vector.load %arg15[%c71_184, %c0_185] : memref<100x16xf32, #tpu.memory_space<vmem>>, vector<8x16xf32>
    %218 = arith.truncf %217 : vector<8x16xf32> to vector<8x16xbf16>
    %c4_186 = arith.constant 4 : index
    %c48_187 = arith.constant 48 : index
    %c0_188 = arith.constant 0 : index
    %219 = vector.load %arg19[%c4_186, %c48_187, %c0_188] : memref<9x64x16xbf16, #tpu.memory_space<vmem>>, vector<1x8x16xbf16>
    %220 = vector.shape_cast %219 : vector<1x8x16xbf16> to vector<8x16xbf16>
    %221 = vector.shape_cast %218 : vector<8x16xbf16> to vector<1x8x16xbf16>
    tpu.vector_store %arg19[%c4_186, %c48_187, %c0_188], %221 {strides = array<i32>} : memref<9x64x16xbf16, #tpu.memory_space<vmem>>, vector<1x8x16xbf16>,
    %c81_189 = arith.constant 81 : index
    %c0_190 = arith.constant 0 : index
    %222 = vector.load %arg15[%c81_189, %c0_190] : memref<100x16xf32, #tpu.memory_space<vmem>>, vector<8x16xf32>
    %223 = arith.truncf %222 : vector<8x16xf32> to vector<8x16xbf16>
    %c4_191 = arith.constant 4 : index
    %c56_192 = arith.constant 56 : index
    %c0_193 = arith.constant 0 : index
    %224 = vector.load %arg19[%c4_191, %c56_192, %c0_193] : memref<9x64x16xbf16, #tpu.memory_space<vmem>>, vector<1x8x16xbf16>
    %225 = vector.shape_cast %224 : vector<1x8x16xbf16> to vector<8x16xbf16>
    %226 = vector.shape_cast %223 : vector<8x16xbf16> to vector<1x8x16xbf16>
    tpu.vector_store %arg19[%c4_191, %c56_192, %c0_193], %226 {strides = array<i32>} : memref<9x64x16xbf16, #tpu.memory_space<vmem>>, vector<1x8x16xbf16>,
    %c12_194 = arith.constant 12 : index
    %c0_195 = arith.constant 0 : index
    %227 = vector.load %arg15[%c12_194, %c0_195] : memref<100x16xf32, #tpu.memory_space<vmem>>, vector<8x16xf32>
    %228 = arith.truncf %227 : vector<8x16xf32> to vector<8x16xbf16>
    %c5 = arith.constant 5 : index
    %c0_196 = arith.constant 0 : index
    %c0_197 = arith.constant 0 : index
    %229 = vector.load %arg19[%c5, %c0_196, %c0_197] : memref<9x64x16xbf16, #tpu.memory_space<vmem>>, vector<1x8x16xbf16>
    %230 = vector.shape_cast %229 : vector<1x8x16xbf16> to vector<8x16xbf16>
    %231 = vector.shape_cast %228 : vector<8x16xbf16> to vector<1x8x16xbf16>
    tpu.vector_store %arg19[%c5, %c0_196, %c0_197], %231 {strides = array<i32>} : memref<9x64x16xbf16, #tpu.memory_space<vmem>>, vector<1x8x16xbf16>,
    %c22_198 = arith.constant 22 : index
    %c0_199 = arith.constant 0 : index
    %232 = vector.load %arg15[%c22_198, %c0_199] : memref<100x16xf32, #tpu.memory_space<vmem>>, vector<8x16xf32>
    %233 = arith.truncf %232 : vector<8x16xf32> to vector<8x16xbf16>
    %c5_200 = arith.constant 5 : index
    %c8_201 = arith.constant 8 : index
    %c0_202 = arith.constant 0 : index
    %234 = vector.load %arg19[%c5_200, %c8_201, %c0_202] : memref<9x64x16xbf16, #tpu.memory_space<vmem>>, vector<1x8x16xbf16>
    %235 = vector.shape_cast %234 : vector<1x8x16xbf16> to vector<8x16xbf16>
    %236 = vector.shape_cast %233 : vector<8x16xbf16> to vector<1x8x16xbf16>
    tpu.vector_store %arg19[%c5_200, %c8_201, %c0_202], %236 {strides = array<i32>} : memref<9x64x16xbf16, #tpu.memory_space<vmem>>, vector<1x8x16xbf16>,
    %c32_203 = arith.constant 32 : index
    %c0_204 = arith.constant 0 : index
    %237 = vector.load %arg15[%c32_203, %c0_204] : memref<100x16xf32, #tpu.memory_space<vmem>>, vector<8x16xf32>
    %238 = arith.truncf %237 : vector<8x16xf32> to vector<8x16xbf16>
    %c5_205 = arith.constant 5 : index
    %c16_206 = arith.constant 16 : index
    %c0_207 = arith.constant 0 : index
    %239 = vector.load %arg19[%c5_205, %c16_206, %c0_207] : memref<9x64x16xbf16, #tpu.memory_space<vmem>>, vector<1x8x16xbf16>
    %240 = vector.shape_cast %239 : vector<1x8x16xbf16> to vector<8x16xbf16>
    %241 = vector.shape_cast %238 : vector<8x16xbf16> to vector<1x8x16xbf16>
    tpu.vector_store %arg19[%c5_205, %c16_206, %c0_207], %241 {strides = array<i32>} : memref<9x64x16xbf16, #tpu.memory_space<vmem>>, vector<1x8x16xbf16>,
    %c42_208 = arith.constant 42 : index
    %c0_209 = arith.constant 0 : index
    %242 = vector.load %arg15[%c42_208, %c0_209] : memref<100x16xf32, #tpu.memory_space<vmem>>, vector<8x16xf32>
    %243 = arith.truncf %242 : vector<8x16xf32> to vector<8x16xbf16>
    %c5_210 = arith.constant 5 : index
    %c24_211 = arith.constant 24 : index
    %c0_212 = arith.constant 0 : index
    %244 = vector.load %arg19[%c5_210, %c24_211, %c0_212] : memref<9x64x16xbf16, #tpu.memory_space<vmem>>, vector<1x8x16xbf16>
    %245 = vector.shape_cast %244 : vector<1x8x16xbf16> to vector<8x16xbf16>
    %246 = vector.shape_cast %243 : vector<8x16xbf16> to vector<1x8x16xbf16>
    tpu.vector_store %arg19[%c5_210, %c24_211, %c0_212], %246 {strides = array<i32>} : memref<9x64x16xbf16, #tpu.memory_space<vmem>>, vector<1x8x16xbf16>,
    %c52_213 = arith.constant 52 : index
    %c0_214 = arith.constant 0 : index
    %247 = vector.load %arg15[%c52_213, %c0_214] : memref<100x16xf32, #tpu.memory_space<vmem>>, vector<8x16xf32>
    %248 = arith.truncf %247 : vector<8x16xf32> to vector<8x16xbf16>
    %c5_215 = arith.constant 5 : index
    %c32_216 = arith.constant 32 : index
    %c0_217 = arith.constant 0 : index
    %249 = vector.load %arg19[%c5_215, %c32_216, %c0_217] : memref<9x64x16xbf16, #tpu.memory_space<vmem>>, vector<1x8x16xbf16>
    %250 = vector.shape_cast %249 : vector<1x8x16xbf16> to vector<8x16xbf16>
    %251 = vector.shape_cast %248 : vector<8x16xbf16> to vector<1x8x16xbf16>
    tpu.vector_store %arg19[%c5_215, %c32_216, %c0_217], %251 {strides = array<i32>} : memref<9x64x16xbf16, #tpu.memory_space<vmem>>, vector<1x8x16xbf16>,
    %c62_218 = arith.constant 62 : index
    %c0_219 = arith.constant 0 : index
    %252 = vector.load %arg15[%c62_218, %c0_219] : memref<100x16xf32, #tpu.memory_space<vmem>>, vector<8x16xf32>
    %253 = arith.truncf %252 : vector<8x16xf32> to vector<8x16xbf16>
    %c5_220 = arith.constant 5 : index
    %c40_221 = arith.constant 40 : index
    %c0_222 = arith.constant 0 : index
    %254 = vector.load %arg19[%c5_220, %c40_221, %c0_222] : memref<9x64x16xbf16, #tpu.memory_space<vmem>>, vector<1x8x16xbf16>
    %255 = vector.shape_cast %254 : vector<1x8x16xbf16> to vector<8x16xbf16>
    %256 = vector.shape_cast %253 : vector<8x16xbf16> to vector<1x8x16xbf16>
    tpu.vector_store %arg19[%c5_220, %c40_221, %c0_222], %256 {strides = array<i32>} : memref<9x64x16xbf16, #tpu.memory_space<vmem>>, vector<1x8x16xbf16>,
    %c72_223 = arith.constant 72 : index
    %c0_224 = arith.constant 0 : index
    %257 = vector.load %arg15[%c72_223, %c0_224] : memref<100x16xf32, #tpu.memory_space<vmem>>, vector<8x16xf32>
    %258 = arith.truncf %257 : vector<8x16xf32> to vector<8x16xbf16>
    %c5_225 = arith.constant 5 : index
    %c48_226 = arith.constant 48 : index
    %c0_227 = arith.constant 0 : index
    %259 = vector.load %arg19[%c5_225, %c48_226, %c0_227] : memref<9x64x16xbf16, #tpu.memory_space<vmem>>, vector<1x8x16xbf16>
    %260 = vector.shape_cast %259 : vector<1x8x16xbf16> to vector<8x16xbf16>
    %261 = vector.shape_cast %258 : vector<8x16xbf16> to vector<1x8x16xbf16>
    tpu.vector_store %arg19[%c5_225, %c48_226, %c0_227], %261 {strides = array<i32>} : memref<9x64x16xbf16, #tpu.memory_space<vmem>>, vector<1x8x16xbf16>,
    %c82 = arith.constant 82 : index
    %c0_228 = arith.constant 0 : index
    %262 = vector.load %arg15[%c82, %c0_228] : memref<100x16xf32, #tpu.memory_space<vmem>>, vector<8x16xf32>
    %263 = arith.truncf %262 : vector<8x16xf32> to vector<8x16xbf16>
    %c5_229 = arith.constant 5 : index
    %c56_230 = arith.constant 56 : index
    %c0_231 = arith.constant 0 : index
    %264 = vector.load %arg19[%c5_229, %c56_230, %c0_231] : memref<9x64x16xbf16, #tpu.memory_space<vmem>>, vector<1x8x16xbf16>
    %265 = vector.shape_cast %264 : vector<1x8x16xbf16> to vector<8x16xbf16>
    %266 = vector.shape_cast %263 : vector<8x16xbf16> to vector<1x8x16xbf16>
    tpu.vector_store %arg19[%c5_229, %c56_230, %c0_231], %266 {strides = array<i32>} : memref<9x64x16xbf16, #tpu.memory_space<vmem>>, vector<1x8x16xbf16>,
    %c20_232 = arith.constant 20 : index
    %c0_233 = arith.constant 0 : index
    %267 = vector.load %arg15[%c20_232, %c0_233] : memref<100x16xf32, #tpu.memory_space<vmem>>, vector<8x16xf32>
    %268 = arith.truncf %267 : vector<8x16xf32> to vector<8x16xbf16>
    %c6 = arith.constant 6 : index
    %c0_234 = arith.constant 0 : index
    %c0_235 = arith.constant 0 : index
    %269 = vector.load %arg19[%c6, %c0_234, %c0_235] : memref<9x64x16xbf16, #tpu.memory_space<vmem>>, vector<1x8x16xbf16>
    %270 = vector.shape_cast %269 : vector<1x8x16xbf16> to vector<8x16xbf16>
    %271 = vector.shape_cast %268 : vector<8x16xbf16> to vector<1x8x16xbf16>
    tpu.vector_store %arg19[%c6, %c0_234, %c0_235], %271 {strides = array<i32>} : memref<9x64x16xbf16, #tpu.memory_space<vmem>>, vector<1x8x16xbf16>,
    %c30_236 = arith.constant 30 : index
    %c0_237 = arith.constant 0 : index
    %272 = vector.load %arg15[%c30_236, %c0_237] : memref<100x16xf32, #tpu.memory_space<vmem>>, vector<8x16xf32>
    %273 = arith.truncf %272 : vector<8x16xf32> to vector<8x16xbf16>
    %c6_238 = arith.constant 6 : index
    %c8_239 = arith.constant 8 : index
    %c0_240 = arith.constant 0 : index
    %274 = vector.load %arg19[%c6_238, %c8_239, %c0_240] : memref<9x64x16xbf16, #tpu.memory_space<vmem>>, vector<1x8x16xbf16>
    %275 = vector.shape_cast %274 : vector<1x8x16xbf16> to vector<8x16xbf16>
    %276 = vector.shape_cast %273 : vector<8x16xbf16> to vector<1x8x16xbf16>
    tpu.vector_store %arg19[%c6_238, %c8_239, %c0_240], %276 {strides = array<i32>} : memref<9x64x16xbf16, #tpu.memory_space<vmem>>, vector<1x8x16xbf16>,
    %c40_241 = arith.constant 40 : index
    %c0_242 = arith.constant 0 : index
    %277 = vector.load %arg15[%c40_241, %c0_242] : memref<100x16xf32, #tpu.memory_space<vmem>>, vector<8x16xf32>
    %278 = arith.truncf %277 : vector<8x16xf32> to vector<8x16xbf16>
    %c6_243 = arith.constant 6 : index
    %c16_244 = arith.constant 16 : index
    %c0_245 = arith.constant 0 : index
    %279 = vector.load %arg19[%c6_243, %c16_244, %c0_245] : memref<9x64x16xbf16, #tpu.memory_space<vmem>>, vector<1x8x16xbf16>
    %280 = vector.shape_cast %279 : vector<1x8x16xbf16> to vector<8x16xbf16>
    %281 = vector.shape_cast %278 : vector<8x16xbf16> to vector<1x8x16xbf16>
    tpu.vector_store %arg19[%c6_243, %c16_244, %c0_245], %281 {strides = array<i32>} : memref<9x64x16xbf16, #tpu.memory_space<vmem>>, vector<1x8x16xbf16>,
    %c50_246 = arith.constant 50 : index
    %c0_247 = arith.constant 0 : index
    %282 = vector.load %arg15[%c50_246, %c0_247] : memref<100x16xf32, #tpu.memory_space<vmem>>, vector<8x16xf32>
    %283 = arith.truncf %282 : vector<8x16xf32> to vector<8x16xbf16>
    %c6_248 = arith.constant 6 : index
    %c24_249 = arith.constant 24 : index
    %c0_250 = arith.constant 0 : index
    %284 = vector.load %arg19[%c6_248, %c24_249, %c0_250] : memref<9x64x16xbf16, #tpu.memory_space<vmem>>, vector<1x8x16xbf16>
    %285 = vector.shape_cast %284 : vector<1x8x16xbf16> to vector<8x16xbf16>
    %286 = vector.shape_cast %283 : vector<8x16xbf16> to vector<1x8x16xbf16>
    tpu.vector_store %arg19[%c6_248, %c24_249, %c0_250], %286 {strides = array<i32>} : memref<9x64x16xbf16, #tpu.memory_space<vmem>>, vector<1x8x16xbf16>,
    %c60_251 = arith.constant 60 : index
    %c0_252 = arith.constant 0 : index
    %287 = vector.load %arg15[%c60_251, %c0_252] : memref<100x16xf32, #tpu.memory_space<vmem>>, vector<8x16xf32>
    %288 = arith.truncf %287 : vector<8x16xf32> to vector<8x16xbf16>
    %c6_253 = arith.constant 6 : index
    %c32_254 = arith.constant 32 : index
    %c0_255 = arith.constant 0 : index
    %289 = vector.load %arg19[%c6_253, %c32_254, %c0_255] : memref<9x64x16xbf16, #tpu.memory_space<vmem>>, vector<1x8x16xbf16>
    %290 = vector.shape_cast %289 : vector<1x8x16xbf16> to vector<8x16xbf16>
    %291 = vector.shape_cast %288 : vector<8x16xbf16> to vector<1x8x16xbf16>
    tpu.vector_store %arg19[%c6_253, %c32_254, %c0_255], %291 {strides = array<i32>} : memref<9x64x16xbf16, #tpu.memory_space<vmem>>, vector<1x8x16xbf16>,
    %c70_256 = arith.constant 70 : index
    %c0_257 = arith.constant 0 : index
    %292 = vector.load %arg15[%c70_256, %c0_257] : memref<100x16xf32, #tpu.memory_space<vmem>>, vector<8x16xf32>
    %293 = arith.truncf %292 : vector<8x16xf32> to vector<8x16xbf16>
    %c6_258 = arith.constant 6 : index
    %c40_259 = arith.constant 40 : index
    %c0_260 = arith.constant 0 : index
    %294 = vector.load %arg19[%c6_258, %c40_259, %c0_260] : memref<9x64x16xbf16, #tpu.memory_space<vmem>>, vector<1x8x16xbf16>
    %295 = vector.shape_cast %294 : vector<1x8x16xbf16> to vector<8x16xbf16>
    %296 = vector.shape_cast %293 : vector<8x16xbf16> to vector<1x8x16xbf16>
    tpu.vector_store %arg19[%c6_258, %c40_259, %c0_260], %296 {strides = array<i32>} : memref<9x64x16xbf16, #tpu.memory_space<vmem>>, vector<1x8x16xbf16>,
    %c80_261 = arith.constant 80 : index
    %c0_262 = arith.constant 0 : index
    %297 = vector.load %arg15[%c80_261, %c0_262] : memref<100x16xf32, #tpu.memory_space<vmem>>, vector<8x16xf32>
    %298 = arith.truncf %297 : vector<8x16xf32> to vector<8x16xbf16>
    %c6_263 = arith.constant 6 : index
    %c48_264 = arith.constant 48 : index
    %c0_265 = arith.constant 0 : index
    %299 = vector.load %arg19[%c6_263, %c48_264, %c0_265] : memref<9x64x16xbf16, #tpu.memory_space<vmem>>, vector<1x8x16xbf16>
    %300 = vector.shape_cast %299 : vector<1x8x16xbf16> to vector<8x16xbf16>
    %301 = vector.shape_cast %298 : vector<8x16xbf16> to vector<1x8x16xbf16>
    tpu.vector_store %arg19[%c6_263, %c48_264, %c0_265], %301 {strides = array<i32>} : memref<9x64x16xbf16, #tpu.memory_space<vmem>>, vector<1x8x16xbf16>,
    %c90 = arith.constant 90 : index
    %c0_266 = arith.constant 0 : index
    %302 = vector.load %arg15[%c90, %c0_266] : memref<100x16xf32, #tpu.memory_space<vmem>>, vector<8x16xf32>
    %303 = arith.truncf %302 : vector<8x16xf32> to vector<8x16xbf16>
    %c6_267 = arith.constant 6 : index
    %c56_268 = arith.constant 56 : index
    %c0_269 = arith.constant 0 : index
    %304 = vector.load %arg19[%c6_267, %c56_268, %c0_269] : memref<9x64x16xbf16, #tpu.memory_space<vmem>>, vector<1x8x16xbf16>
    %305 = vector.shape_cast %304 : vector<1x8x16xbf16> to vector<8x16xbf16>
    %306 = vector.shape_cast %303 : vector<8x16xbf16> to vector<1x8x16xbf16>
    tpu.vector_store %arg19[%c6_267, %c56_268, %c0_269], %306 {strides = array<i32>} : memref<9x64x16xbf16, #tpu.memory_space<vmem>>, vector<1x8x16xbf16>,
    %c21_270 = arith.constant 21 : index
    %c0_271 = arith.constant 0 : index
    %307 = vector.load %arg15[%c21_270, %c0_271] : memref<100x16xf32, #tpu.memory_space<vmem>>, vector<8x16xf32>
    %308 = arith.truncf %307 : vector<8x16xf32> to vector<8x16xbf16>
    %c7 = arith.constant 7 : index
    %c0_272 = arith.constant 0 : index
    %c0_273 = arith.constant 0 : index
    %309 = vector.load %arg19[%c7, %c0_272, %c0_273] : memref<9x64x16xbf16, #tpu.memory_space<vmem>>, vector<1x8x16xbf16>
    %310 = vector.shape_cast %309 : vector<1x8x16xbf16> to vector<8x16xbf16>
    %311 = vector.shape_cast %308 : vector<8x16xbf16> to vector<1x8x16xbf16>
    tpu.vector_store %arg19[%c7, %c0_272, %c0_273], %311 {strides = array<i32>} : memref<9x64x16xbf16, #tpu.memory_space<vmem>>, vector<1x8x16xbf16>,
    %c31_274 = arith.constant 31 : index
    %c0_275 = arith.constant 0 : index
    %312 = vector.load %arg15[%c31_274, %c0_275] : memref<100x16xf32, #tpu.memory_space<vmem>>, vector<8x16xf32>
    %313 = arith.truncf %312 : vector<8x16xf32> to vector<8x16xbf16>
    %c7_276 = arith.constant 7 : index
    %c8_277 = arith.constant 8 : index
    %c0_278 = arith.constant 0 : index
    %314 = vector.load %arg19[%c7_276, %c8_277, %c0_278] : memref<9x64x16xbf16, #tpu.memory_space<vmem>>, vector<1x8x16xbf16>
    %315 = vector.shape_cast %314 : vector<1x8x16xbf16> to vector<8x16xbf16>
    %316 = vector.shape_cast %313 : vector<8x16xbf16> to vector<1x8x16xbf16>
    tpu.vector_store %arg19[%c7_276, %c8_277, %c0_278], %316 {strides = array<i32>} : memref<9x64x16xbf16, #tpu.memory_space<vmem>>, vector<1x8x16xbf16>,
    %c41_279 = arith.constant 41 : index
    %c0_280 = arith.constant 0 : index
    %317 = vector.load %arg15[%c41_279, %c0_280] : memref<100x16xf32, #tpu.memory_space<vmem>>, vector<8x16xf32>
    %318 = arith.truncf %317 : vector<8x16xf32> to vector<8x16xbf16>
    %c7_281 = arith.constant 7 : index
    %c16_282 = arith.constant 16 : index
    %c0_283 = arith.constant 0 : index
    %319 = vector.load %arg19[%c7_281, %c16_282, %c0_283] : memref<9x64x16xbf16, #tpu.memory_space<vmem>>, vector<1x8x16xbf16>
    %320 = vector.shape_cast %319 : vector<1x8x16xbf16> to vector<8x16xbf16>
    %321 = vector.shape_cast %318 : vector<8x16xbf16> to vector<1x8x16xbf16>
    tpu.vector_store %arg19[%c7_281, %c16_282, %c0_283], %321 {strides = array<i32>} : memref<9x64x16xbf16, #tpu.memory_space<vmem>>, vector<1x8x16xbf16>,
    %c51_284 = arith.constant 51 : index
    %c0_285 = arith.constant 0 : index
    %322 = vector.load %arg15[%c51_284, %c0_285] : memref<100x16xf32, #tpu.memory_space<vmem>>, vector<8x16xf32>
    %323 = arith.truncf %322 : vector<8x16xf32> to vector<8x16xbf16>
    %c7_286 = arith.constant 7 : index
    %c24_287 = arith.constant 24 : index
    %c0_288 = arith.constant 0 : index
    %324 = vector.load %arg19[%c7_286, %c24_287, %c0_288] : memref<9x64x16xbf16, #tpu.memory_space<vmem>>, vector<1x8x16xbf16>
    %325 = vector.shape_cast %324 : vector<1x8x16xbf16> to vector<8x16xbf16>
    %326 = vector.shape_cast %323 : vector<8x16xbf16> to vector<1x8x16xbf16>
    tpu.vector_store %arg19[%c7_286, %c24_287, %c0_288], %326 {strides = array<i32>} : memref<9x64x16xbf16, #tpu.memory_space<vmem>>, vector<1x8x16xbf16>,
    %c61_289 = arith.constant 61 : index
    %c0_290 = arith.constant 0 : index
    %327 = vector.load %arg15[%c61_289, %c0_290] : memref<100x16xf32, #tpu.memory_space<vmem>>, vector<8x16xf32>
    %328 = arith.truncf %327 : vector<8x16xf32> to vector<8x16xbf16>
    %c7_291 = arith.constant 7 : index
    %c32_292 = arith.constant 32 : index
    %c0_293 = arith.constant 0 : index
    %329 = vector.load %arg19[%c7_291, %c32_292, %c0_293] : memref<9x64x16xbf16, #tpu.memory_space<vmem>>, vector<1x8x16xbf16>
    %330 = vector.shape_cast %329 : vector<1x8x16xbf16> to vector<8x16xbf16>
    %331 = vector.shape_cast %328 : vector<8x16xbf16> to vector<1x8x16xbf16>
    tpu.vector_store %arg19[%c7_291, %c32_292, %c0_293], %331 {strides = array<i32>} : memref<9x64x16xbf16, #tpu.memory_space<vmem>>, vector<1x8x16xbf16>,
    %c71_294 = arith.constant 71 : index
    %c0_295 = arith.constant 0 : index
    %332 = vector.load %arg15[%c71_294, %c0_295] : memref<100x16xf32, #tpu.memory_space<vmem>>, vector<8x16xf32>
    %333 = arith.truncf %332 : vector<8x16xf32> to vector<8x16xbf16>
    %c7_296 = arith.constant 7 : index
    %c40_297 = arith.constant 40 : index
    %c0_298 = arith.constant 0 : index
    %334 = vector.load %arg19[%c7_296, %c40_297, %c0_298] : memref<9x64x16xbf16, #tpu.memory_space<vmem>>, vector<1x8x16xbf16>
    %335 = vector.shape_cast %334 : vector<1x8x16xbf16> to vector<8x16xbf16>
    %336 = vector.shape_cast %333 : vector<8x16xbf16> to vector<1x8x16xbf16>
    tpu.vector_store %arg19[%c7_296, %c40_297, %c0_298], %336 {strides = array<i32>} : memref<9x64x16xbf16, #tpu.memory_space<vmem>>, vector<1x8x16xbf16>,
    %c81_299 = arith.constant 81 : index
    %c0_300 = arith.constant 0 : index
    %337 = vector.load %arg15[%c81_299, %c0_300] : memref<100x16xf32, #tpu.memory_space<vmem>>, vector<8x16xf32>
    %338 = arith.truncf %337 : vector<8x16xf32> to vector<8x16xbf16>
    %c7_301 = arith.constant 7 : index
    %c48_302 = arith.constant 48 : index
    %c0_303 = arith.constant 0 : index
    %339 = vector.load %arg19[%c7_301, %c48_302, %c0_303] : memref<9x64x16xbf16, #tpu.memory_space<vmem>>, vector<1x8x16xbf16>
    %340 = vector.shape_cast %339 : vector<1x8x16xbf16> to vector<8x16xbf16>
    %341 = vector.shape_cast %338 : vector<8x16xbf16> to vector<1x8x16xbf16>
    tpu.vector_store %arg19[%c7_301, %c48_302, %c0_303], %341 {strides = array<i32>} : memref<9x64x16xbf16, #tpu.memory_space<vmem>>, vector<1x8x16xbf16>,
    %c91 = arith.constant 91 : index
    %c0_304 = arith.constant 0 : index
    %342 = vector.load %arg15[%c91, %c0_304] : memref<100x16xf32, #tpu.memory_space<vmem>>, vector<8x16xf32>
    %343 = arith.truncf %342 : vector<8x16xf32> to vector<8x16xbf16>
    %c7_305 = arith.constant 7 : index
    %c56_306 = arith.constant 56 : index
    %c0_307 = arith.constant 0 : index
    %344 = vector.load %arg19[%c7_305, %c56_306, %c0_307] : memref<9x64x16xbf16, #tpu.memory_space<vmem>>, vector<1x8x16xbf16>
    %345 = vector.shape_cast %344 : vector<1x8x16xbf16> to vector<8x16xbf16>
    %346 = vector.shape_cast %343 : vector<8x16xbf16> to vector<1x8x16xbf16>
    tpu.vector_store %arg19[%c7_305, %c56_306, %c0_307], %346 {strides = array<i32>} : memref<9x64x16xbf16, #tpu.memory_space<vmem>>, vector<1x8x16xbf16>,
    %c22_308 = arith.constant 22 : index
    %c0_309 = arith.constant 0 : index
    %347 = vector.load %arg15[%c22_308, %c0_309] : memref<100x16xf32, #tpu.memory_space<vmem>>, vector<8x16xf32>
    %348 = arith.truncf %347 : vector<8x16xf32> to vector<8x16xbf16>
    %c8_310 = arith.constant 8 : index
    %c0_311 = arith.constant 0 : index
    %c0_312 = arith.constant 0 : index
    %349 = vector.load %arg19[%c8_310, %c0_311, %c0_312] : memref<9x64x16xbf16, #tpu.memory_space<vmem>>, vector<1x8x16xbf16>
    %350 = vector.shape_cast %349 : vector<1x8x16xbf16> to vector<8x16xbf16>
    %351 = vector.shape_cast %348 : vector<8x16xbf16> to vector<1x8x16xbf16>
    tpu.vector_store %arg19[%c8_310, %c0_311, %c0_312], %351 {strides = array<i32>} : memref<9x64x16xbf16, #tpu.memory_space<vmem>>, vector<1x8x16xbf16>,
    %c32_313 = arith.constant 32 : index
    %c0_314 = arith.constant 0 : index
    %352 = vector.load %arg15[%c32_313, %c0_314] : memref<100x16xf32, #tpu.memory_space<vmem>>, vector<8x16xf32>
    %353 = arith.truncf %352 : vector<8x16xf32> to vector<8x16xbf16>
    %c8_315 = arith.constant 8 : index
    %c8_316 = arith.constant 8 : index
    %c0_317 = arith.constant 0 : index
    %354 = vector.load %arg19[%c8_315, %c8_316, %c0_317] : memref<9x64x16xbf16, #tpu.memory_space<vmem>>, vector<1x8x16xbf16>
    %355 = vector.shape_cast %354 : vector<1x8x16xbf16> to vector<8x16xbf16>
    %356 = vector.shape_cast %353 : vector<8x16xbf16> to vector<1x8x16xbf16>
    tpu.vector_store %arg19[%c8_315, %c8_316, %c0_317], %356 {strides = array<i32>} : memref<9x64x16xbf16, #tpu.memory_space<vmem>>, vector<1x8x16xbf16>,
    %c42_318 = arith.constant 42 : index
    %c0_319 = arith.constant 0 : index
    %357 = vector.load %arg15[%c42_318, %c0_319] : memref<100x16xf32, #tpu.memory_space<vmem>>, vector<8x16xf32>
    %358 = arith.truncf %357 : vector<8x16xf32> to vector<8x16xbf16>
    %c8_320 = arith.constant 8 : index
    %c16_321 = arith.constant 16 : index
    %c0_322 = arith.constant 0 : index
    %359 = vector.load %arg19[%c8_320, %c16_321, %c0_322] : memref<9x64x16xbf16, #tpu.memory_space<vmem>>, vector<1x8x16xbf16>
    %360 = vector.shape_cast %359 : vector<1x8x16xbf16> to vector<8x16xbf16>
    %361 = vector.shape_cast %358 : vector<8x16xbf16> to vector<1x8x16xbf16>
    tpu.vector_store %arg19[%c8_320, %c16_321, %c0_322], %361 {strides = array<i32>} : memref<9x64x16xbf16, #tpu.memory_space<vmem>>, vector<1x8x16xbf16>,
    %c52_323 = arith.constant 52 : index
    %c0_324 = arith.constant 0 : index
    %362 = vector.load %arg15[%c52_323, %c0_324] : memref<100x16xf32, #tpu.memory_space<vmem>>, vector<8x16xf32>
    %363 = arith.truncf %362 : vector<8x16xf32> to vector<8x16xbf16>
    %c8_325 = arith.constant 8 : index
    %c24_326 = arith.constant 24 : index
    %c0_327 = arith.constant 0 : index
    %364 = vector.load %arg19[%c8_325, %c24_326, %c0_327] : memref<9x64x16xbf16, #tpu.memory_space<vmem>>, vector<1x8x16xbf16>
    %365 = vector.shape_cast %364 : vector<1x8x16xbf16> to vector<8x16xbf16>
    %366 = vector.shape_cast %363 : vector<8x16xbf16> to vector<1x8x16xbf16>
    tpu.vector_store %arg19[%c8_325, %c24_326, %c0_327], %366 {strides = array<i32>} : memref<9x64x16xbf16, #tpu.memory_space<vmem>>, vector<1x8x16xbf16>,
    %c62_328 = arith.constant 62 : index
    %c0_329 = arith.constant 0 : index
    %367 = vector.load %arg15[%c62_328, %c0_329] : memref<100x16xf32, #tpu.memory_space<vmem>>, vector<8x16xf32>
    %368 = arith.truncf %367 : vector<8x16xf32> to vector<8x16xbf16>
    %c8_330 = arith.constant 8 : index
    %c32_331 = arith.constant 32 : index
    %c0_332 = arith.constant 0 : index
    %369 = vector.load %arg19[%c8_330, %c32_331, %c0_332] : memref<9x64x16xbf16, #tpu.memory_space<vmem>>, vector<1x8x16xbf16>
    %370 = vector.shape_cast %369 : vector<1x8x16xbf16> to vector<8x16xbf16>
    %371 = vector.shape_cast %368 : vector<8x16xbf16> to vector<1x8x16xbf16>
    tpu.vector_store %arg19[%c8_330, %c32_331, %c0_332], %371 {strides = array<i32>} : memref<9x64x16xbf16, #tpu.memory_space<vmem>>, vector<1x8x16xbf16>,
    %c72_333 = arith.constant 72 : index
    %c0_334 = arith.constant 0 : index
    %372 = vector.load %arg15[%c72_333, %c0_334] : memref<100x16xf32, #tpu.memory_space<vmem>>, vector<8x16xf32>
    %373 = arith.truncf %372 : vector<8x16xf32> to vector<8x16xbf16>
    %c8_335 = arith.constant 8 : index
    %c40_336 = arith.constant 40 : index
    %c0_337 = arith.constant 0 : index
    %374 = vector.load %arg19[%c8_335, %c40_336, %c0_337] : memref<9x64x16xbf16, #tpu.memory_space<vmem>>, vector<1x8x16xbf16>
    %375 = vector.shape_cast %374 : vector<1x8x16xbf16> to vector<8x16xbf16>
    %376 = vector.shape_cast %373 : vector<8x16xbf16> to vector<1x8x16xbf16>
    tpu.vector_store %arg19[%c8_335, %c40_336, %c0_337], %376 {strides = array<i32>} : memref<9x64x16xbf16, #tpu.memory_space<vmem>>, vector<1x8x16xbf16>,
    %c82_338 = arith.constant 82 : index
    %c0_339 = arith.constant 0 : index
    %377 = vector.load %arg15[%c82_338, %c0_339] : memref<100x16xf32, #tpu.memory_space<vmem>>, vector<8x16xf32>
    %378 = arith.truncf %377 : vector<8x16xf32> to vector<8x16xbf16>
    %c8_340 = arith.constant 8 : index
    %c48_341 = arith.constant 48 : index
    %c0_342 = arith.constant 0 : index
    %379 = vector.load %arg19[%c8_340, %c48_341, %c0_342] : memref<9x64x16xbf16, #tpu.memory_space<vmem>>, vector<1x8x16xbf16>
    %380 = vector.shape_cast %379 : vector<1x8x16xbf16> to vector<8x16xbf16>
    %381 = vector.shape_cast %378 : vector<8x16xbf16> to vector<1x8x16xbf16>
    tpu.vector_store %arg19[%c8_340, %c48_341, %c0_342], %381 {strides = array<i32>} : memref<9x64x16xbf16, #tpu.memory_space<vmem>>, vector<1x8x16xbf16>,
    %c92 = arith.constant 92 : index
    %c0_343 = arith.constant 0 : index
    %382 = vector.load %arg15[%c92, %c0_343] : memref<100x16xf32, #tpu.memory_space<vmem>>, vector<8x16xf32>
    %383 = arith.truncf %382 : vector<8x16xf32> to vector<8x16xbf16>
    %c8_344 = arith.constant 8 : index
    %c56_345 = arith.constant 56 : index
    %c0_346 = arith.constant 0 : index
    %384 = vector.load %arg19[%c8_344, %c56_345, %c0_346] : memref<9x64x16xbf16, #tpu.memory_space<vmem>>, vector<1x8x16xbf16>
    %385 = vector.shape_cast %384 : vector<1x8x16xbf16> to vector<8x16xbf16>
    %386 = vector.shape_cast %383 : vector<8x16xbf16> to vector<1x8x16xbf16>
    tpu.vector_store %arg19[%c8_344, %c56_345, %c0_346], %386 {strides = array<i32>} : memref<9x64x16xbf16, #tpu.memory_space<vmem>>, vector<1x8x16xbf16>,
    %c0_347 = arith.constant 0 : index
    %c0_348 = arith.constant 0 : index
    %c0_349 = arith.constant 0 : index
    %387 = vector.load %arg19[%c0_347, %c0_348, %c0_349] : memref<9x64x16xbf16, #tpu.memory_space<vmem>>, vector<1x64x16xbf16>
    %388 = vector.shape_cast %387 : vector<1x64x16xbf16> to vector<64x16xbf16>
    %c0_350 = arith.constant 0 : index
    %c0_351 = arith.constant 0 : index
    %c0_352 = arith.constant 0 : index
    %389 = vector.load %arg3[%c0_350, %c0_351, %c0_352] : memref<9x16x32xbf16, #tpu.memory_space<vmem>>, vector<1x16x32xbf16>
    %390 = vector.shape_cast %389 : vector<1x16x32xbf16> to vector<16x32xbf16>
    %cst_353 = arith.constant dense<0.000000e+00> : vector<64x32xf32>
    %391 = tpu.matmul %388, %390, %cst_353 {dimension_numbers = #tpu.dot_dimension_numbers<[1], [0], [0], [1], [0, 0, 1, 1], [], []>} : vector<64x16xbf16>, vector<16x32xbf16>, vector<64x32xf32> -> vector<64x32xf32>
    %c1_354 = arith.constant 1 : index
    %c0_355 = arith.constant 0 : index
    %c0_356 = arith.constant 0 : index
    %392 = vector.load %arg19[%c1_354, %c0_355, %c0_356] : memref<9x64x16xbf16, #tpu.memory_space<vmem>>, vector<1x64x16xbf16>
    %393 = vector.shape_cast %392 : vector<1x64x16xbf16> to vector<64x16xbf16>
    %c1_357 = arith.constant 1 : index
    %c0_358 = arith.constant 0 : index
    %c0_359 = arith.constant 0 : index
    %394 = vector.load %arg3[%c1_357, %c0_358, %c0_359] : memref<9x16x32xbf16, #tpu.memory_space<vmem>>, vector<1x16x32xbf16>
    %395 = vector.shape_cast %394 : vector<1x16x32xbf16> to vector<16x32xbf16>
    %cst_360 = arith.constant dense<0.000000e+00> : vector<64x32xf32>
    %396 = tpu.matmul %393, %395, %cst_360 {dimension_numbers = #tpu.dot_dimension_numbers<[1], [0], [0], [1], [0, 0, 1, 1], [], []>} : vector<64x16xbf16>, vector<16x32xbf16>, vector<64x32xf32> -> vector<64x32xf32>
    %397 = arith.addf %391, %396 : vector<64x32xf32>
    %c2_361 = arith.constant 2 : index
    %c0_362 = arith.constant 0 : index
    %c0_363 = arith.constant 0 : index
    %398 = vector.load %arg19[%c2_361, %c0_362, %c0_363] : memref<9x64x16xbf16, #tpu.memory_space<vmem>>, vector<1x64x16xbf16>
    %399 = vector.shape_cast %398 : vector<1x64x16xbf16> to vector<64x16xbf16>
    %c2_364 = arith.constant 2 : index
    %c0_365 = arith.constant 0 : index
    %c0_366 = arith.constant 0 : index
    %400 = vector.load %arg3[%c2_364, %c0_365, %c0_366] : memref<9x16x32xbf16, #tpu.memory_space<vmem>>, vector<1x16x32xbf16>
    %401 = vector.shape_cast %400 : vector<1x16x32xbf16> to vector<16x32xbf16>
    %cst_367 = arith.constant dense<0.000000e+00> : vector<64x32xf32>
    %402 = tpu.matmul %399, %401, %cst_367 {dimension_numbers = #tpu.dot_dimension_numbers<[1], [0], [0], [1], [0, 0, 1, 1], [], []>} : vector<64x16xbf16>, vector<16x32xbf16>, vector<64x32xf32> -> vector<64x32xf32>
    %403 = arith.addf %397, %402 : vector<64x32xf32>
    %c3_368 = arith.constant 3 : index
    %c0_369 = arith.constant 0 : index
    %c0_370 = arith.constant 0 : index
    %404 = vector.load %arg19[%c3_368, %c0_369, %c0_370] : memref<9x64x16xbf16, #tpu.memory_space<vmem>>, vector<1x64x16xbf16>
    %405 = vector.shape_cast %404 : vector<1x64x16xbf16> to vector<64x16xbf16>
    %c3_371 = arith.constant 3 : index
    %c0_372 = arith.constant 0 : index
    %c0_373 = arith.constant 0 : index
    %406 = vector.load %arg3[%c3_371, %c0_372, %c0_373] : memref<9x16x32xbf16, #tpu.memory_space<vmem>>, vector<1x16x32xbf16>
    %407 = vector.shape_cast %406 : vector<1x16x32xbf16> to vector<16x32xbf16>
    %cst_374 = arith.constant dense<0.000000e+00> : vector<64x32xf32>
    %408 = tpu.matmul %405, %407, %cst_374 {dimension_numbers = #tpu.dot_dimension_numbers<[1], [0], [0], [1], [0, 0, 1, 1], [], []>} : vector<64x16xbf16>, vector<16x32xbf16>, vector<64x32xf32> -> vector<64x32xf32>
    %409 = arith.addf %403, %408 : vector<64x32xf32>
    %c4_375 = arith.constant 4 : index
    %c0_376 = arith.constant 0 : index
    %c0_377 = arith.constant 0 : index
    %410 = vector.load %arg19[%c4_375, %c0_376, %c0_377] : memref<9x64x16xbf16, #tpu.memory_space<vmem>>, vector<1x64x16xbf16>
    %411 = vector.shape_cast %410 : vector<1x64x16xbf16> to vector<64x16xbf16>
    %c4_378 = arith.constant 4 : index
    %c0_379 = arith.constant 0 : index
    %c0_380 = arith.constant 0 : index
    %412 = vector.load %arg3[%c4_378, %c0_379, %c0_380] : memref<9x16x32xbf16, #tpu.memory_space<vmem>>, vector<1x16x32xbf16>
    %413 = vector.shape_cast %412 : vector<1x16x32xbf16> to vector<16x32xbf16>
    %cst_381 = arith.constant dense<0.000000e+00> : vector<64x32xf32>
    %414 = tpu.matmul %411, %413, %cst_381 {dimension_numbers = #tpu.dot_dimension_numbers<[1], [0], [0], [1], [0, 0, 1, 1], [], []>} : vector<64x16xbf16>, vector<16x32xbf16>, vector<64x32xf32> -> vector<64x32xf32>
    %415 = arith.addf %409, %414 : vector<64x32xf32>
    %c5_382 = arith.constant 5 : index
    %c0_383 = arith.constant 0 : index
    %c0_384 = arith.constant 0 : index
    %416 = vector.load %arg19[%c5_382, %c0_383, %c0_384] : memref<9x64x16xbf16, #tpu.memory_space<vmem>>, vector<1x64x16xbf16>
    %417 = vector.shape_cast %416 : vector<1x64x16xbf16> to vector<64x16xbf16>
    %c5_385 = arith.constant 5 : index
    %c0_386 = arith.constant 0 : index
    %c0_387 = arith.constant 0 : index
    %418 = vector.load %arg3[%c5_385, %c0_386, %c0_387] : memref<9x16x32xbf16, #tpu.memory_space<vmem>>, vector<1x16x32xbf16>
    %419 = vector.shape_cast %418 : vector<1x16x32xbf16> to vector<16x32xbf16>
    %cst_388 = arith.constant dense<0.000000e+00> : vector<64x32xf32>
    %420 = tpu.matmul %417, %419, %cst_388 {dimension_numbers = #tpu.dot_dimension_numbers<[1], [0], [0], [1], [0, 0, 1, 1], [], []>} : vector<64x16xbf16>, vector<16x32xbf16>, vector<64x32xf32> -> vector<64x32xf32>
    %421 = arith.addf %415, %420 : vector<64x32xf32>
    %c6_389 = arith.constant 6 : index
    %c0_390 = arith.constant 0 : index
    %c0_391 = arith.constant 0 : index
    %422 = vector.load %arg19[%c6_389, %c0_390, %c0_391] : memref<9x64x16xbf16, #tpu.memory_space<vmem>>, vector<1x64x16xbf16>
    %423 = vector.shape_cast %422 : vector<1x64x16xbf16> to vector<64x16xbf16>
    %c6_392 = arith.constant 6 : index
    %c0_393 = arith.constant 0 : index
    %c0_394 = arith.constant 0 : index
    %424 = vector.load %arg3[%c6_392, %c0_393, %c0_394] : memref<9x16x32xbf16, #tpu.memory_space<vmem>>, vector<1x16x32xbf16>
    %425 = vector.shape_cast %424 : vector<1x16x32xbf16> to vector<16x32xbf16>
    %cst_395 = arith.constant dense<0.000000e+00> : vector<64x32xf32>
    %426 = tpu.matmul %423, %425, %cst_395 {dimension_numbers = #tpu.dot_dimension_numbers<[1], [0], [0], [1], [0, 0, 1, 1], [], []>} : vector<64x16xbf16>, vector<16x32xbf16>, vector<64x32xf32> -> vector<64x32xf32>
    %427 = arith.addf %421, %426 : vector<64x32xf32>
    %c7_396 = arith.constant 7 : index
    %c0_397 = arith.constant 0 : index
    %c0_398 = arith.constant 0 : index
    %428 = vector.load %arg19[%c7_396, %c0_397, %c0_398] : memref<9x64x16xbf16, #tpu.memory_space<vmem>>, vector<1x64x16xbf16>
    %429 = vector.shape_cast %428 : vector<1x64x16xbf16> to vector<64x16xbf16>
    %c7_399 = arith.constant 7 : index
    %c0_400 = arith.constant 0 : index
    %c0_401 = arith.constant 0 : index
    %430 = vector.load %arg3[%c7_399, %c0_400, %c0_401] : memref<9x16x32xbf16, #tpu.memory_space<vmem>>, vector<1x16x32xbf16>
    %431 = vector.shape_cast %430 : vector<1x16x32xbf16> to vector<16x32xbf16>
    %cst_402 = arith.constant dense<0.000000e+00> : vector<64x32xf32>
    %432 = tpu.matmul %429, %431, %cst_402 {dimension_numbers = #tpu.dot_dimension_numbers<[1], [0], [0], [1], [0, 0, 1, 1], [], []>} : vector<64x16xbf16>, vector<16x32xbf16>, vector<64x32xf32> -> vector<64x32xf32>
    %433 = arith.addf %427, %432 : vector<64x32xf32>
    %c8_403 = arith.constant 8 : index
    %c0_404 = arith.constant 0 : index
    %c0_405 = arith.constant 0 : index
    %434 = vector.load %arg19[%c8_403, %c0_404, %c0_405] : memref<9x64x16xbf16, #tpu.memory_space<vmem>>, vector<1x64x16xbf16>
    %435 = vector.shape_cast %434 : vector<1x64x16xbf16> to vector<64x16xbf16>
    %c8_406 = arith.constant 8 : index
    %c0_407 = arith.constant 0 : index
    %c0_408 = arith.constant 0 : index
    %436 = vector.load %arg3[%c8_406, %c0_407, %c0_408] : memref<9x16x32xbf16, #tpu.memory_space<vmem>>, vector<1x16x32xbf16>
    %437 = vector.shape_cast %436 : vector<1x16x32xbf16> to vector<16x32xbf16>
    %cst_409 = arith.constant dense<0.000000e+00> : vector<64x32xf32>
    %438 = tpu.matmul %435, %437, %cst_409 {dimension_numbers = #tpu.dot_dimension_numbers<[1], [0], [0], [1], [0, 0, 1, 1], [], []>} : vector<64x16xbf16>, vector<16x32xbf16>, vector<64x32xf32> -> vector<64x32xf32>
    %439 = arith.addf %433, %438 : vector<64x32xf32>
    %c0_410 = arith.constant 0 : index
    %c0_411 = arith.constant 0 : index
    %440 = vector.load %arg8[%c0_410, %c0_411] : memref<1x32xf32, #tpu.memory_space<vmem>>, vector<1x32xf32>
    %441 = vector.broadcast %440 : vector<1x32xf32> to vector<64x32xf32>
    %442 = arith.addf %439, %441 : vector<64x32xf32>
    %cst_412 = arith.constant 0.000000e+00 : f32
    %443 = vector.broadcast %cst_412 : f32 to vector<64x32xf32>
    %444 = arith.maximumf %442, %443 : vector<64x32xf32>
    %cst_413 = arith.constant 0.000000e+00 : f32
    %445 = vector.broadcast %cst_413 : f32 to vector<100x32xf32>
    %c0_414 = arith.constant 0 : index
    %c0_415 = arith.constant 0 : index
    %446 = vector.load %arg16[%c0_414, %c0_415] : memref<100x32xf32, #tpu.memory_space<vmem>>, vector<100x32xf32>
    tpu.vector_store %arg16[%c0_414, %c0_415], %445 {strides = array<i32>} : memref<100x32xf32, #tpu.memory_space<vmem>>, vector<100x32xf32>,
    %447 = vector.extract_strided_slice %444 {offsets = [0, 0], sizes = [8, 32], strides = [1, 1]} : vector<64x32xf32> to vector<8x32xf32>
    %c11_416 = arith.constant 11 : index
    %c0_417 = arith.constant 0 : index
    %448 = vector.load %arg16[%c11_416, %c0_417] : memref<100x32xf32, #tpu.memory_space<vmem>>, vector<8x32xf32>
    tpu.vector_store %arg16[%c11_416, %c0_417], %447 {strides = array<i32>} : memref<100x32xf32, #tpu.memory_space<vmem>>, vector<8x32xf32>,
    %449 = vector.extract_strided_slice %444 {offsets = [8, 0], sizes = [8, 32], strides = [1, 1]} : vector<64x32xf32> to vector<8x32xf32>
    %c21_418 = arith.constant 21 : index
    %c0_419 = arith.constant 0 : index
    %450 = vector.load %arg16[%c21_418, %c0_419] : memref<100x32xf32, #tpu.memory_space<vmem>>, vector<8x32xf32>
    tpu.vector_store %arg16[%c21_418, %c0_419], %449 {strides = array<i32>} : memref<100x32xf32, #tpu.memory_space<vmem>>, vector<8x32xf32>,
    %451 = vector.extract_strided_slice %444 {offsets = [16, 0], sizes = [8, 32], strides = [1, 1]} : vector<64x32xf32> to vector<8x32xf32>
    %c31_420 = arith.constant 31 : index
    %c0_421 = arith.constant 0 : index
    %452 = vector.load %arg16[%c31_420, %c0_421] : memref<100x32xf32, #tpu.memory_space<vmem>>, vector<8x32xf32>
    tpu.vector_store %arg16[%c31_420, %c0_421], %451 {strides = array<i32>} : memref<100x32xf32, #tpu.memory_space<vmem>>, vector<8x32xf32>,
    %453 = vector.extract_strided_slice %444 {offsets = [24, 0], sizes = [8, 32], strides = [1, 1]} : vector<64x32xf32> to vector<8x32xf32>
    %c41_422 = arith.constant 41 : index
    %c0_423 = arith.constant 0 : index
    %454 = vector.load %arg16[%c41_422, %c0_423] : memref<100x32xf32, #tpu.memory_space<vmem>>, vector<8x32xf32>
    tpu.vector_store %arg16[%c41_422, %c0_423], %453 {strides = array<i32>} : memref<100x32xf32, #tpu.memory_space<vmem>>, vector<8x32xf32>,
    %455 = vector.extract_strided_slice %444 {offsets = [32, 0], sizes = [8, 32], strides = [1, 1]} : vector<64x32xf32> to vector<8x32xf32>
    %c51_424 = arith.constant 51 : index
    %c0_425 = arith.constant 0 : index
    %456 = vector.load %arg16[%c51_424, %c0_425] : memref<100x32xf32, #tpu.memory_space<vmem>>, vector<8x32xf32>
    tpu.vector_store %arg16[%c51_424, %c0_425], %455 {strides = array<i32>} : memref<100x32xf32, #tpu.memory_space<vmem>>, vector<8x32xf32>,
    %457 = vector.extract_strided_slice %444 {offsets = [40, 0], sizes = [8, 32], strides = [1, 1]} : vector<64x32xf32> to vector<8x32xf32>
    %c61_426 = arith.constant 61 : index
    %c0_427 = arith.constant 0 : index
    %458 = vector.load %arg16[%c61_426, %c0_427] : memref<100x32xf32, #tpu.memory_space<vmem>>, vector<8x32xf32>
    tpu.vector_store %arg16[%c61_426, %c0_427], %457 {strides = array<i32>} : memref<100x32xf32, #tpu.memory_space<vmem>>, vector<8x32xf32>,
    %459 = vector.extract_strided_slice %444 {offsets = [48, 0], sizes = [8, 32], strides = [1, 1]} : vector<64x32xf32> to vector<8x32xf32>
    %c71_428 = arith.constant 71 : index
    %c0_429 = arith.constant 0 : index
    %460 = vector.load %arg16[%c71_428, %c0_429] : memref<100x32xf32, #tpu.memory_space<vmem>>, vector<8x32xf32>
    tpu.vector_store %arg16[%c71_428, %c0_429], %459 {strides = array<i32>} : memref<100x32xf32, #tpu.memory_space<vmem>>, vector<8x32xf32>,
    %461 = vector.extract_strided_slice %444 {offsets = [56, 0], sizes = [8, 32], strides = [1, 1]} : vector<64x32xf32> to vector<8x32xf32>
    %c81_430 = arith.constant 81 : index
    %c0_431 = arith.constant 0 : index
    %462 = vector.load %arg16[%c81_430, %c0_431] : memref<100x32xf32, #tpu.memory_space<vmem>>, vector<8x32xf32>
    tpu.vector_store %arg16[%c81_430, %c0_431], %461 {strides = array<i32>} : memref<100x32xf32, #tpu.memory_space<vmem>>, vector<8x32xf32>,
    %c0_432 = arith.constant 0 : index
    %c0_433 = arith.constant 0 : index
    %463 = tpu.strided_load %arg16[%c0_432, %c0_433] {strides = array<i32: 2, 1>} : memref<100x32xf32, #tpu.memory_space<vmem>>, vector<4x32xf32>
    %464 = arith.truncf %463 : vector<4x32xf32> to vector<4x32xbf16>
    %c0_434 = arith.constant 0 : index
    %c0_435 = arith.constant 0 : index
    %c0_436 = arith.constant 0 : index
    %465 = vector.load %arg20[%c0_434, %c0_435, %c0_436] : memref<9x16x32xbf16, #tpu.memory_space<vmem>>, vector<1x4x32xbf16>
    %466 = vector.shape_cast %465 : vector<1x4x32xbf16> to vector<4x32xbf16>
    %467 = vector.shape_cast %464 : vector<4x32xbf16> to vector<1x4x32xbf16>
    tpu.vector_store %arg20[%c0_434, %c0_435, %c0_436], %467 {strides = array<i32>} : memref<9x16x32xbf16, #tpu.memory_space<vmem>>, vector<1x4x32xbf16>,
    %c20_437 = arith.constant 20 : index
    %c0_438 = arith.constant 0 : index
    %468 = tpu.strided_load %arg16[%c20_437, %c0_438] {strides = array<i32: 2, 1>} : memref<100x32xf32, #tpu.memory_space<vmem>>, vector<4x32xf32>
    %469 = arith.truncf %468 : vector<4x32xf32> to vector<4x32xbf16>
    %c0_439 = arith.constant 0 : index
    %c4_440 = arith.constant 4 : index
    %c0_441 = arith.constant 0 : index
    %470 = vector.load %arg20[%c0_439, %c4_440, %c0_441] : memref<9x16x32xbf16, #tpu.memory_space<vmem>>, vector<1x4x32xbf16>
    %471 = vector.shape_cast %470 : vector<1x4x32xbf16> to vector<4x32xbf16>
    %472 = vector.shape_cast %469 : vector<4x32xbf16> to vector<1x4x32xbf16>
    tpu.vector_store %arg20[%c0_439, %c4_440, %c0_441], %472 {strides = array<i32>} : memref<9x16x32xbf16, #tpu.memory_space<vmem>>, vector<1x4x32xbf16>,
    %c40_442 = arith.constant 40 : index
    %c0_443 = arith.constant 0 : index
    %473 = tpu.strided_load %arg16[%c40_442, %c0_443] {strides = array<i32: 2, 1>} : memref<100x32xf32, #tpu.memory_space<vmem>>, vector<4x32xf32>
    %474 = arith.truncf %473 : vector<4x32xf32> to vector<4x32xbf16>
    %c0_444 = arith.constant 0 : index
    %c8_445 = arith.constant 8 : index
    %c0_446 = arith.constant 0 : index
    %475 = vector.load %arg20[%c0_444, %c8_445, %c0_446] : memref<9x16x32xbf16, #tpu.memory_space<vmem>>, vector<1x4x32xbf16>
    %476 = vector.shape_cast %475 : vector<1x4x32xbf16> to vector<4x32xbf16>
    %477 = vector.shape_cast %474 : vector<4x32xbf16> to vector<1x4x32xbf16>
    tpu.vector_store %arg20[%c0_444, %c8_445, %c0_446], %477 {strides = array<i32>} : memref<9x16x32xbf16, #tpu.memory_space<vmem>>, vector<1x4x32xbf16>,
    %c60_447 = arith.constant 60 : index
    %c0_448 = arith.constant 0 : index
    %478 = tpu.strided_load %arg16[%c60_447, %c0_448] {strides = array<i32: 2, 1>} : memref<100x32xf32, #tpu.memory_space<vmem>>, vector<4x32xf32>
    %479 = arith.truncf %478 : vector<4x32xf32> to vector<4x32xbf16>
    %c0_449 = arith.constant 0 : index
    %c12_450 = arith.constant 12 : index
    %c0_451 = arith.constant 0 : index
    %480 = vector.load %arg20[%c0_449, %c12_450, %c0_451] : memref<9x16x32xbf16, #tpu.memory_space<vmem>>, vector<1x4x32xbf16>
    %481 = vector.shape_cast %480 : vector<1x4x32xbf16> to vector<4x32xbf16>
    %482 = vector.shape_cast %479 : vector<4x32xbf16> to vector<1x4x32xbf16>
    tpu.vector_store %arg20[%c0_449, %c12_450, %c0_451], %482 {strides = array<i32>} : memref<9x16x32xbf16, #tpu.memory_space<vmem>>, vector<1x4x32xbf16>,
    %c1_452 = arith.constant 1 : index
    %c0_453 = arith.constant 0 : index
    %483 = tpu.strided_load %arg16[%c1_452, %c0_453] {strides = array<i32: 2, 1>} : memref<100x32xf32, #tpu.memory_space<vmem>>, vector<4x32xf32>
    %484 = arith.truncf %483 : vector<4x32xf32> to vector<4x32xbf16>
    %c1_454 = arith.constant 1 : index
    %c0_455 = arith.constant 0 : index
    %c0_456 = arith.constant 0 : index
    %485 = vector.load %arg20[%c1_454, %c0_455, %c0_456] : memref<9x16x32xbf16, #tpu.memory_space<vmem>>, vector<1x4x32xbf16>
    %486 = vector.shape_cast %485 : vector<1x4x32xbf16> to vector<4x32xbf16>
    %487 = vector.shape_cast %484 : vector<4x32xbf16> to vector<1x4x32xbf16>
    tpu.vector_store %arg20[%c1_454, %c0_455, %c0_456], %487 {strides = array<i32>} : memref<9x16x32xbf16, #tpu.memory_space<vmem>>, vector<1x4x32xbf16>,
    %c21_457 = arith.constant 21 : index
    %c0_458 = arith.constant 0 : index
    %488 = tpu.strided_load %arg16[%c21_457, %c0_458] {strides = array<i32: 2, 1>} : memref<100x32xf32, #tpu.memory_space<vmem>>, vector<4x32xf32>
    %489 = arith.truncf %488 : vector<4x32xf32> to vector<4x32xbf16>
    %c1_459 = arith.constant 1 : index
    %c4_460 = arith.constant 4 : index
    %c0_461 = arith.constant 0 : index
    %490 = vector.load %arg20[%c1_459, %c4_460, %c0_461] : memref<9x16x32xbf16, #tpu.memory_space<vmem>>, vector<1x4x32xbf16>
    %491 = vector.shape_cast %490 : vector<1x4x32xbf16> to vector<4x32xbf16>
    %492 = vector.shape_cast %489 : vector<4x32xbf16> to vector<1x4x32xbf16>
    tpu.vector_store %arg20[%c1_459, %c4_460, %c0_461], %492 {strides = array<i32>} : memref<9x16x32xbf16, #tpu.memory_space<vmem>>, vector<1x4x32xbf16>,
    %c41_462 = arith.constant 41 : index
    %c0_463 = arith.constant 0 : index
    %493 = tpu.strided_load %arg16[%c41_462, %c0_463] {strides = array<i32: 2, 1>} : memref<100x32xf32, #tpu.memory_space<vmem>>, vector<4x32xf32>
    %494 = arith.truncf %493 : vector<4x32xf32> to vector<4x32xbf16>
    %c1_464 = arith.constant 1 : index
    %c8_465 = arith.constant 8 : index
    %c0_466 = arith.constant 0 : index
    %495 = vector.load %arg20[%c1_464, %c8_465, %c0_466] : memref<9x16x32xbf16, #tpu.memory_space<vmem>>, vector<1x4x32xbf16>
    %496 = vector.shape_cast %495 : vector<1x4x32xbf16> to vector<4x32xbf16>
    %497 = vector.shape_cast %494 : vector<4x32xbf16> to vector<1x4x32xbf16>
    tpu.vector_store %arg20[%c1_464, %c8_465, %c0_466], %497 {strides = array<i32>} : memref<9x16x32xbf16, #tpu.memory_space<vmem>>, vector<1x4x32xbf16>,
    %c61_467 = arith.constant 61 : index
    %c0_468 = arith.constant 0 : index
    %498 = tpu.strided_load %arg16[%c61_467, %c0_468] {strides = array<i32: 2, 1>} : memref<100x32xf32, #tpu.memory_space<vmem>>, vector<4x32xf32>
    %499 = arith.truncf %498 : vector<4x32xf32> to vector<4x32xbf16>
    %c1_469 = arith.constant 1 : index
    %c12_470 = arith.constant 12 : index
    %c0_471 = arith.constant 0 : index
    %500 = vector.load %arg20[%c1_469, %c12_470, %c0_471] : memref<9x16x32xbf16, #tpu.memory_space<vmem>>, vector<1x4x32xbf16>
    %501 = vector.shape_cast %500 : vector<1x4x32xbf16> to vector<4x32xbf16>
    %502 = vector.shape_cast %499 : vector<4x32xbf16> to vector<1x4x32xbf16>
    tpu.vector_store %arg20[%c1_469, %c12_470, %c0_471], %502 {strides = array<i32>} : memref<9x16x32xbf16, #tpu.memory_space<vmem>>, vector<1x4x32xbf16>,
    %c2_472 = arith.constant 2 : index
    %c0_473 = arith.constant 0 : index
    %503 = tpu.strided_load %arg16[%c2_472, %c0_473] {strides = array<i32: 2, 1>} : memref<100x32xf32, #tpu.memory_space<vmem>>, vector<4x32xf32>
    %504 = arith.truncf %503 : vector<4x32xf32> to vector<4x32xbf16>
    %c2_474 = arith.constant 2 : index
    %c0_475 = arith.constant 0 : index
    %c0_476 = arith.constant 0 : index
    %505 = vector.load %arg20[%c2_474, %c0_475, %c0_476] : memref<9x16x32xbf16, #tpu.memory_space<vmem>>, vector<1x4x32xbf16>
    %506 = vector.shape_cast %505 : vector<1x4x32xbf16> to vector<4x32xbf16>
    %507 = vector.shape_cast %504 : vector<4x32xbf16> to vector<1x4x32xbf16>
    tpu.vector_store %arg20[%c2_474, %c0_475, %c0_476], %507 {strides = array<i32>} : memref<9x16x32xbf16, #tpu.memory_space<vmem>>, vector<1x4x32xbf16>,
    %c22_477 = arith.constant 22 : index
    %c0_478 = arith.constant 0 : index
    %508 = tpu.strided_load %arg16[%c22_477, %c0_478] {strides = array<i32: 2, 1>} : memref<100x32xf32, #tpu.memory_space<vmem>>, vector<4x32xf32>
    %509 = arith.truncf %508 : vector<4x32xf32> to vector<4x32xbf16>
    %c2_479 = arith.constant 2 : index
    %c4_480 = arith.constant 4 : index
    %c0_481 = arith.constant 0 : index
    %510 = vector.load %arg20[%c2_479, %c4_480, %c0_481] : memref<9x16x32xbf16, #tpu.memory_space<vmem>>, vector<1x4x32xbf16>
    %511 = vector.shape_cast %510 : vector<1x4x32xbf16> to vector<4x32xbf16>
    %512 = vector.shape_cast %509 : vector<4x32xbf16> to vector<1x4x32xbf16>
    tpu.vector_store %arg20[%c2_479, %c4_480, %c0_481], %512 {strides = array<i32>} : memref<9x16x32xbf16, #tpu.memory_space<vmem>>, vector<1x4x32xbf16>,
    %c42_482 = arith.constant 42 : index
    %c0_483 = arith.constant 0 : index
    %513 = tpu.strided_load %arg16[%c42_482, %c0_483] {strides = array<i32: 2, 1>} : memref<100x32xf32, #tpu.memory_space<vmem>>, vector<4x32xf32>
    %514 = arith.truncf %513 : vector<4x32xf32> to vector<4x32xbf16>
    %c2_484 = arith.constant 2 : index
    %c8_485 = arith.constant 8 : index
    %c0_486 = arith.constant 0 : index
    %515 = vector.load %arg20[%c2_484, %c8_485, %c0_486] : memref<9x16x32xbf16, #tpu.memory_space<vmem>>, vector<1x4x32xbf16>
    %516 = vector.shape_cast %515 : vector<1x4x32xbf16> to vector<4x32xbf16>
    %517 = vector.shape_cast %514 : vector<4x32xbf16> to vector<1x4x32xbf16>
    tpu.vector_store %arg20[%c2_484, %c8_485, %c0_486], %517 {strides = array<i32>} : memref<9x16x32xbf16, #tpu.memory_space<vmem>>, vector<1x4x32xbf16>,
    %c62_487 = arith.constant 62 : index
    %c0_488 = arith.constant 0 : index
    %518 = tpu.strided_load %arg16[%c62_487, %c0_488] {strides = array<i32: 2, 1>} : memref<100x32xf32, #tpu.memory_space<vmem>>, vector<4x32xf32>
    %519 = arith.truncf %518 : vector<4x32xf32> to vector<4x32xbf16>
    %c2_489 = arith.constant 2 : index
    %c12_490 = arith.constant 12 : index
    %c0_491 = arith.constant 0 : index
    %520 = vector.load %arg20[%c2_489, %c12_490, %c0_491] : memref<9x16x32xbf16, #tpu.memory_space<vmem>>, vector<1x4x32xbf16>
    %521 = vector.shape_cast %520 : vector<1x4x32xbf16> to vector<4x32xbf16>
    %522 = vector.shape_cast %519 : vector<4x32xbf16> to vector<1x4x32xbf16>
    tpu.vector_store %arg20[%c2_489, %c12_490, %c0_491], %522 {strides = array<i32>} : memref<9x16x32xbf16, #tpu.memory_space<vmem>>, vector<1x4x32xbf16>,
    %c10_492 = arith.constant 10 : index
    %c0_493 = arith.constant 0 : index
    %523 = tpu.strided_load %arg16[%c10_492, %c0_493] {strides = array<i32: 2, 1>} : memref<100x32xf32, #tpu.memory_space<vmem>>, vector<4x32xf32>
    %524 = arith.truncf %523 : vector<4x32xf32> to vector<4x32xbf16>
    %c3_494 = arith.constant 3 : index
    %c0_495 = arith.constant 0 : index
    %c0_496 = arith.constant 0 : index
    %525 = vector.load %arg20[%c3_494, %c0_495, %c0_496] : memref<9x16x32xbf16, #tpu.memory_space<vmem>>, vector<1x4x32xbf16>
    %526 = vector.shape_cast %525 : vector<1x4x32xbf16> to vector<4x32xbf16>
    %527 = vector.shape_cast %524 : vector<4x32xbf16> to vector<1x4x32xbf16>
    tpu.vector_store %arg20[%c3_494, %c0_495, %c0_496], %527 {strides = array<i32>} : memref<9x16x32xbf16, #tpu.memory_space<vmem>>, vector<1x4x32xbf16>,
    %c30_497 = arith.constant 30 : index
    %c0_498 = arith.constant 0 : index
    %528 = tpu.strided_load %arg16[%c30_497, %c0_498] {strides = array<i32: 2, 1>} : memref<100x32xf32, #tpu.memory_space<vmem>>, vector<4x32xf32>
    %529 = arith.truncf %528 : vector<4x32xf32> to vector<4x32xbf16>
    %c3_499 = arith.constant 3 : index
    %c4_500 = arith.constant 4 : index
    %c0_501 = arith.constant 0 : index
    %530 = vector.load %arg20[%c3_499, %c4_500, %c0_501] : memref<9x16x32xbf16, #tpu.memory_space<vmem>>, vector<1x4x32xbf16>
    %531 = vector.shape_cast %530 : vector<1x4x32xbf16> to vector<4x32xbf16>
    %532 = vector.shape_cast %529 : vector<4x32xbf16> to vector<1x4x32xbf16>
    tpu.vector_store %arg20[%c3_499, %c4_500, %c0_501], %532 {strides = array<i32>} : memref<9x16x32xbf16, #tpu.memory_space<vmem>>, vector<1x4x32xbf16>,
    %c50_502 = arith.constant 50 : index
    %c0_503 = arith.constant 0 : index
    %533 = tpu.strided_load %arg16[%c50_502, %c0_503] {strides = array<i32: 2, 1>} : memref<100x32xf32, #tpu.memory_space<vmem>>, vector<4x32xf32>
    %534 = arith.truncf %533 : vector<4x32xf32> to vector<4x32xbf16>
    %c3_504 = arith.constant 3 : index
    %c8_505 = arith.constant 8 : index
    %c0_506 = arith.constant 0 : index
    %535 = vector.load %arg20[%c3_504, %c8_505, %c0_506] : memref<9x16x32xbf16, #tpu.memory_space<vmem>>, vector<1x4x32xbf16>
    %536 = vector.shape_cast %535 : vector<1x4x32xbf16> to vector<4x32xbf16>
    %537 = vector.shape_cast %534 : vector<4x32xbf16> to vector<1x4x32xbf16>
    tpu.vector_store %arg20[%c3_504, %c8_505, %c0_506], %537 {strides = array<i32>} : memref<9x16x32xbf16, #tpu.memory_space<vmem>>, vector<1x4x32xbf16>,
    %c70_507 = arith.constant 70 : index
    %c0_508 = arith.constant 0 : index
    %538 = tpu.strided_load %arg16[%c70_507, %c0_508] {strides = array<i32: 2, 1>} : memref<100x32xf32, #tpu.memory_space<vmem>>, vector<4x32xf32>
    %539 = arith.truncf %538 : vector<4x32xf32> to vector<4x32xbf16>
    %c3_509 = arith.constant 3 : index
    %c12_510 = arith.constant 12 : index
    %c0_511 = arith.constant 0 : index
    %540 = vector.load %arg20[%c3_509, %c12_510, %c0_511] : memref<9x16x32xbf16, #tpu.memory_space<vmem>>, vector<1x4x32xbf16>
    %541 = vector.shape_cast %540 : vector<1x4x32xbf16> to vector<4x32xbf16>
    %542 = vector.shape_cast %539 : vector<4x32xbf16> to vector<1x4x32xbf16>
    tpu.vector_store %arg20[%c3_509, %c12_510, %c0_511], %542 {strides = array<i32>} : memref<9x16x32xbf16, #tpu.memory_space<vmem>>, vector<1x4x32xbf16>,
    %c11_512 = arith.constant 11 : index
    %c0_513 = arith.constant 0 : index
    %543 = tpu.strided_load %arg16[%c11_512, %c0_513] {strides = array<i32: 2, 1>} : memref<100x32xf32, #tpu.memory_space<vmem>>, vector<4x32xf32>
    %544 = arith.truncf %543 : vector<4x32xf32> to vector<4x32xbf16>
    %c4_514 = arith.constant 4 : index
    %c0_515 = arith.constant 0 : index
    %c0_516 = arith.constant 0 : index
    %545 = vector.load %arg20[%c4_514, %c0_515, %c0_516] : memref<9x16x32xbf16, #tpu.memory_space<vmem>>, vector<1x4x32xbf16>
    %546 = vector.shape_cast %545 : vector<1x4x32xbf16> to vector<4x32xbf16>
    %547 = vector.shape_cast %544 : vector<4x32xbf16> to vector<1x4x32xbf16>
    tpu.vector_store %arg20[%c4_514, %c0_515, %c0_516], %547 {strides = array<i32>} : memref<9x16x32xbf16, #tpu.memory_space<vmem>>, vector<1x4x32xbf16>,
    %c31_517 = arith.constant 31 : index
    %c0_518 = arith.constant 0 : index
    %548 = tpu.strided_load %arg16[%c31_517, %c0_518] {strides = array<i32: 2, 1>} : memref<100x32xf32, #tpu.memory_space<vmem>>, vector<4x32xf32>
    %549 = arith.truncf %548 : vector<4x32xf32> to vector<4x32xbf16>
    %c4_519 = arith.constant 4 : index
    %c4_520 = arith.constant 4 : index
    %c0_521 = arith.constant 0 : index
    %550 = vector.load %arg20[%c4_519, %c4_520, %c0_521] : memref<9x16x32xbf16, #tpu.memory_space<vmem>>, vector<1x4x32xbf16>
    %551 = vector.shape_cast %550 : vector<1x4x32xbf16> to vector<4x32xbf16>
    %552 = vector.shape_cast %549 : vector<4x32xbf16> to vector<1x4x32xbf16>
    tpu.vector_store %arg20[%c4_519, %c4_520, %c0_521], %552 {strides = array<i32>} : memref<9x16x32xbf16, #tpu.memory_space<vmem>>, vector<1x4x32xbf16>,
    %c51_522 = arith.constant 51 : index
    %c0_523 = arith.constant 0 : index
    %553 = tpu.strided_load %arg16[%c51_522, %c0_523] {strides = array<i32: 2, 1>} : memref<100x32xf32, #tpu.memory_space<vmem>>, vector<4x32xf32>
    %554 = arith.truncf %553 : vector<4x32xf32> to vector<4x32xbf16>
    %c4_524 = arith.constant 4 : index
    %c8_525 = arith.constant 8 : index
    %c0_526 = arith.constant 0 : index
    %555 = vector.load %arg20[%c4_524, %c8_525, %c0_526] : memref<9x16x32xbf16, #tpu.memory_space<vmem>>, vector<1x4x32xbf16>
    %556 = vector.shape_cast %555 : vector<1x4x32xbf16> to vector<4x32xbf16>
    %557 = vector.shape_cast %554 : vector<4x32xbf16> to vector<1x4x32xbf16>
    tpu.vector_store %arg20[%c4_524, %c8_525, %c0_526], %557 {strides = array<i32>} : memref<9x16x32xbf16, #tpu.memory_space<vmem>>, vector<1x4x32xbf16>,
    %c71_527 = arith.constant 71 : index
    %c0_528 = arith.constant 0 : index
    %558 = tpu.strided_load %arg16[%c71_527, %c0_528] {strides = array<i32: 2, 1>} : memref<100x32xf32, #tpu.memory_space<vmem>>, vector<4x32xf32>
    %559 = arith.truncf %558 : vector<4x32xf32> to vector<4x32xbf16>
    %c4_529 = arith.constant 4 : index
    %c12_530 = arith.constant 12 : index
    %c0_531 = arith.constant 0 : index
    %560 = vector.load %arg20[%c4_529, %c12_530, %c0_531] : memref<9x16x32xbf16, #tpu.memory_space<vmem>>, vector<1x4x32xbf16>
    %561 = vector.shape_cast %560 : vector<1x4x32xbf16> to vector<4x32xbf16>
    %562 = vector.shape_cast %559 : vector<4x32xbf16> to vector<1x4x32xbf16>
    tpu.vector_store %arg20[%c4_529, %c12_530, %c0_531], %562 {strides = array<i32>} : memref<9x16x32xbf16, #tpu.memory_space<vmem>>, vector<1x4x32xbf16>,
    %c12_532 = arith.constant 12 : index
    %c0_533 = arith.constant 0 : index
    %563 = tpu.strided_load %arg16[%c12_532, %c0_533] {strides = array<i32: 2, 1>} : memref<100x32xf32, #tpu.memory_space<vmem>>, vector<4x32xf32>
    %564 = arith.truncf %563 : vector<4x32xf32> to vector<4x32xbf16>
    %c5_534 = arith.constant 5 : index
    %c0_535 = arith.constant 0 : index
    %c0_536 = arith.constant 0 : index
    %565 = vector.load %arg20[%c5_534, %c0_535, %c0_536] : memref<9x16x32xbf16, #tpu.memory_space<vmem>>, vector<1x4x32xbf16>
    %566 = vector.shape_cast %565 : vector<1x4x32xbf16> to vector<4x32xbf16>
    %567 = vector.shape_cast %564 : vector<4x32xbf16> to vector<1x4x32xbf16>
    tpu.vector_store %arg20[%c5_534, %c0_535, %c0_536], %567 {strides = array<i32>} : memref<9x16x32xbf16, #tpu.memory_space<vmem>>, vector<1x4x32xbf16>,
    %c32_537 = arith.constant 32 : index
    %c0_538 = arith.constant 0 : index
    %568 = tpu.strided_load %arg16[%c32_537, %c0_538] {strides = array<i32: 2, 1>} : memref<100x32xf32, #tpu.memory_space<vmem>>, vector<4x32xf32>
    %569 = arith.truncf %568 : vector<4x32xf32> to vector<4x32xbf16>
    %c5_539 = arith.constant 5 : index
    %c4_540 = arith.constant 4 : index
    %c0_541 = arith.constant 0 : index
    %570 = vector.load %arg20[%c5_539, %c4_540, %c0_541] : memref<9x16x32xbf16, #tpu.memory_space<vmem>>, vector<1x4x32xbf16>
    %571 = vector.shape_cast %570 : vector<1x4x32xbf16> to vector<4x32xbf16>
    %572 = vector.shape_cast %569 : vector<4x32xbf16> to vector<1x4x32xbf16>
    tpu.vector_store %arg20[%c5_539, %c4_540, %c0_541], %572 {strides = array<i32>} : memref<9x16x32xbf16, #tpu.memory_space<vmem>>, vector<1x4x32xbf16>,
    %c52_542 = arith.constant 52 : index
    %c0_543 = arith.constant 0 : index
    %573 = tpu.strided_load %arg16[%c52_542, %c0_543] {strides = array<i32: 2, 1>} : memref<100x32xf32, #tpu.memory_space<vmem>>, vector<4x32xf32>
    %574 = arith.truncf %573 : vector<4x32xf32> to vector<4x32xbf16>
    %c5_544 = arith.constant 5 : index
    %c8_545 = arith.constant 8 : index
    %c0_546 = arith.constant 0 : index
    %575 = vector.load %arg20[%c5_544, %c8_545, %c0_546] : memref<9x16x32xbf16, #tpu.memory_space<vmem>>, vector<1x4x32xbf16>
    %576 = vector.shape_cast %575 : vector<1x4x32xbf16> to vector<4x32xbf16>
    %577 = vector.shape_cast %574 : vector<4x32xbf16> to vector<1x4x32xbf16>
    tpu.vector_store %arg20[%c5_544, %c8_545, %c0_546], %577 {strides = array<i32>} : memref<9x16x32xbf16, #tpu.memory_space<vmem>>, vector<1x4x32xbf16>,
    %c72_547 = arith.constant 72 : index
    %c0_548 = arith.constant 0 : index
    %578 = tpu.strided_load %arg16[%c72_547, %c0_548] {strides = array<i32: 2, 1>} : memref<100x32xf32, #tpu.memory_space<vmem>>, vector<4x32xf32>
    %579 = arith.truncf %578 : vector<4x32xf32> to vector<4x32xbf16>
    %c5_549 = arith.constant 5 : index
    %c12_550 = arith.constant 12 : index
    %c0_551 = arith.constant 0 : index
    %580 = vector.load %arg20[%c5_549, %c12_550, %c0_551] : memref<9x16x32xbf16, #tpu.memory_space<vmem>>, vector<1x4x32xbf16>
    %581 = vector.shape_cast %580 : vector<1x4x32xbf16> to vector<4x32xbf16>
    %582 = vector.shape_cast %579 : vector<4x32xbf16> to vector<1x4x32xbf16>
    tpu.vector_store %arg20[%c5_549, %c12_550, %c0_551], %582 {strides = array<i32>} : memref<9x16x32xbf16, #tpu.memory_space<vmem>>, vector<1x4x32xbf16>,
    %c20_552 = arith.constant 20 : index
    %c0_553 = arith.constant 0 : index
    %583 = tpu.strided_load %arg16[%c20_552, %c0_553] {strides = array<i32: 2, 1>} : memref<100x32xf32, #tpu.memory_space<vmem>>, vector<4x32xf32>
    %584 = arith.truncf %583 : vector<4x32xf32> to vector<4x32xbf16>
    %c6_554 = arith.constant 6 : index
    %c0_555 = arith.constant 0 : index
    %c0_556 = arith.constant 0 : index
    %585 = vector.load %arg20[%c6_554, %c0_555, %c0_556] : memref<9x16x32xbf16, #tpu.memory_space<vmem>>, vector<1x4x32xbf16>
    %586 = vector.shape_cast %585 : vector<1x4x32xbf16> to vector<4x32xbf16>
    %587 = vector.shape_cast %584 : vector<4x32xbf16> to vector<1x4x32xbf16>
    tpu.vector_store %arg20[%c6_554, %c0_555, %c0_556], %587 {strides = array<i32>} : memref<9x16x32xbf16, #tpu.memory_space<vmem>>, vector<1x4x32xbf16>,
    %c40_557 = arith.constant 40 : index
    %c0_558 = arith.constant 0 : index
    %588 = tpu.strided_load %arg16[%c40_557, %c0_558] {strides = array<i32: 2, 1>} : memref<100x32xf32, #tpu.memory_space<vmem>>, vector<4x32xf32>
    %589 = arith.truncf %588 : vector<4x32xf32> to vector<4x32xbf16>
    %c6_559 = arith.constant 6 : index
    %c4_560 = arith.constant 4 : index
    %c0_561 = arith.constant 0 : index
    %590 = vector.load %arg20[%c6_559, %c4_560, %c0_561] : memref<9x16x32xbf16, #tpu.memory_space<vmem>>, vector<1x4x32xbf16>
    %591 = vector.shape_cast %590 : vector<1x4x32xbf16> to vector<4x32xbf16>
    %592 = vector.shape_cast %589 : vector<4x32xbf16> to vector<1x4x32xbf16>
    tpu.vector_store %arg20[%c6_559, %c4_560, %c0_561], %592 {strides = array<i32>} : memref<9x16x32xbf16, #tpu.memory_space<vmem>>, vector<1x4x32xbf16>,
    %c60_562 = arith.constant 60 : index
    %c0_563 = arith.constant 0 : index
    %593 = tpu.strided_load %arg16[%c60_562, %c0_563] {strides = array<i32: 2, 1>} : memref<100x32xf32, #tpu.memory_space<vmem>>, vector<4x32xf32>
    %594 = arith.truncf %593 : vector<4x32xf32> to vector<4x32xbf16>
    %c6_564 = arith.constant 6 : index
    %c8_565 = arith.constant 8 : index
    %c0_566 = arith.constant 0 : index
    %595 = vector.load %arg20[%c6_564, %c8_565, %c0_566] : memref<9x16x32xbf16, #tpu.memory_space<vmem>>, vector<1x4x32xbf16>
    %596 = vector.shape_cast %595 : vector<1x4x32xbf16> to vector<4x32xbf16>
    %597 = vector.shape_cast %594 : vector<4x32xbf16> to vector<1x4x32xbf16>
    tpu.vector_store %arg20[%c6_564, %c8_565, %c0_566], %597 {strides = array<i32>} : memref<9x16x32xbf16, #tpu.memory_space<vmem>>, vector<1x4x32xbf16>,
    %c80_567 = arith.constant 80 : index
    %c0_568 = arith.constant 0 : index
    %598 = tpu.strided_load %arg16[%c80_567, %c0_568] {strides = array<i32: 2, 1>} : memref<100x32xf32, #tpu.memory_space<vmem>>, vector<4x32xf32>
    %599 = arith.truncf %598 : vector<4x32xf32> to vector<4x32xbf16>
    %c6_569 = arith.constant 6 : index
    %c12_570 = arith.constant 12 : index
    %c0_571 = arith.constant 0 : index
    %600 = vector.load %arg20[%c6_569, %c12_570, %c0_571] : memref<9x16x32xbf16, #tpu.memory_space<vmem>>, vector<1x4x32xbf16>
    %601 = vector.shape_cast %600 : vector<1x4x32xbf16> to vector<4x32xbf16>
    %602 = vector.shape_cast %599 : vector<4x32xbf16> to vector<1x4x32xbf16>
    tpu.vector_store %arg20[%c6_569, %c12_570, %c0_571], %602 {strides = array<i32>} : memref<9x16x32xbf16, #tpu.memory_space<vmem>>, vector<1x4x32xbf16>,
    %c21_572 = arith.constant 21 : index
    %c0_573 = arith.constant 0 : index
    %603 = tpu.strided_load %arg16[%c21_572, %c0_573] {strides = array<i32: 2, 1>} : memref<100x32xf32, #tpu.memory_space<vmem>>, vector<4x32xf32>
    %604 = arith.truncf %603 : vector<4x32xf32> to vector<4x32xbf16>
    %c7_574 = arith.constant 7 : index
    %c0_575 = arith.constant 0 : index
    %c0_576 = arith.constant 0 : index
    %605 = vector.load %arg20[%c7_574, %c0_575, %c0_576] : memref<9x16x32xbf16, #tpu.memory_space<vmem>>, vector<1x4x32xbf16>
    %606 = vector.shape_cast %605 : vector<1x4x32xbf16> to vector<4x32xbf16>
    %607 = vector.shape_cast %604 : vector<4x32xbf16> to vector<1x4x32xbf16>
    tpu.vector_store %arg20[%c7_574, %c0_575, %c0_576], %607 {strides = array<i32>} : memref<9x16x32xbf16, #tpu.memory_space<vmem>>, vector<1x4x32xbf16>,
    %c41_577 = arith.constant 41 : index
    %c0_578 = arith.constant 0 : index
    %608 = tpu.strided_load %arg16[%c41_577, %c0_578] {strides = array<i32: 2, 1>} : memref<100x32xf32, #tpu.memory_space<vmem>>, vector<4x32xf32>
    %609 = arith.truncf %608 : vector<4x32xf32> to vector<4x32xbf16>
    %c7_579 = arith.constant 7 : index
    %c4_580 = arith.constant 4 : index
    %c0_581 = arith.constant 0 : index
    %610 = vector.load %arg20[%c7_579, %c4_580, %c0_581] : memref<9x16x32xbf16, #tpu.memory_space<vmem>>, vector<1x4x32xbf16>
    %611 = vector.shape_cast %610 : vector<1x4x32xbf16> to vector<4x32xbf16>
    %612 = vector.shape_cast %609 : vector<4x32xbf16> to vector<1x4x32xbf16>
    tpu.vector_store %arg20[%c7_579, %c4_580, %c0_581], %612 {strides = array<i32>} : memref<9x16x32xbf16, #tpu.memory_space<vmem>>, vector<1x4x32xbf16>,
    %c61_582 = arith.constant 61 : index
    %c0_583 = arith.constant 0 : index
    %613 = tpu.strided_load %arg16[%c61_582, %c0_583] {strides = array<i32: 2, 1>} : memref<100x32xf32, #tpu.memory_space<vmem>>, vector<4x32xf32>
    %614 = arith.truncf %613 : vector<4x32xf32> to vector<4x32xbf16>
    %c7_584 = arith.constant 7 : index
    %c8_585 = arith.constant 8 : index
    %c0_586 = arith.constant 0 : index
    %615 = vector.load %arg20[%c7_584, %c8_585, %c0_586] : memref<9x16x32xbf16, #tpu.memory_space<vmem>>, vector<1x4x32xbf16>
    %616 = vector.shape_cast %615 : vector<1x4x32xbf16> to vector<4x32xbf16>
    %617 = vector.shape_cast %614 : vector<4x32xbf16> to vector<1x4x32xbf16>
    tpu.vector_store %arg20[%c7_584, %c8_585, %c0_586], %617 {strides = array<i32>} : memref<9x16x32xbf16, #tpu.memory_space<vmem>>, vector<1x4x32xbf16>,
    %c81_587 = arith.constant 81 : index
    %c0_588 = arith.constant 0 : index
    %618 = tpu.strided_load %arg16[%c81_587, %c0_588] {strides = array<i32: 2, 1>} : memref<100x32xf32, #tpu.memory_space<vmem>>, vector<4x32xf32>
    %619 = arith.truncf %618 : vector<4x32xf32> to vector<4x32xbf16>
    %c7_589 = arith.constant 7 : index
    %c12_590 = arith.constant 12 : index
    %c0_591 = arith.constant 0 : index
    %620 = vector.load %arg20[%c7_589, %c12_590, %c0_591] : memref<9x16x32xbf16, #tpu.memory_space<vmem>>, vector<1x4x32xbf16>
    %621 = vector.shape_cast %620 : vector<1x4x32xbf16> to vector<4x32xbf16>
    %622 = vector.shape_cast %619 : vector<4x32xbf16> to vector<1x4x32xbf16>
    tpu.vector_store %arg20[%c7_589, %c12_590, %c0_591], %622 {strides = array<i32>} : memref<9x16x32xbf16, #tpu.memory_space<vmem>>, vector<1x4x32xbf16>,
    %c22_592 = arith.constant 22 : index
    %c0_593 = arith.constant 0 : index
    %623 = tpu.strided_load %arg16[%c22_592, %c0_593] {strides = array<i32: 2, 1>} : memref<100x32xf32, #tpu.memory_space<vmem>>, vector<4x32xf32>
    %624 = arith.truncf %623 : vector<4x32xf32> to vector<4x32xbf16>
    %c8_594 = arith.constant 8 : index
    %c0_595 = arith.constant 0 : index
    %c0_596 = arith.constant 0 : index
    %625 = vector.load %arg20[%c8_594, %c0_595, %c0_596] : memref<9x16x32xbf16, #tpu.memory_space<vmem>>, vector<1x4x32xbf16>
    %626 = vector.shape_cast %625 : vector<1x4x32xbf16> to vector<4x32xbf16>
    %627 = vector.shape_cast %624 : vector<4x32xbf16> to vector<1x4x32xbf16>
    tpu.vector_store %arg20[%c8_594, %c0_595, %c0_596], %627 {strides = array<i32>} : memref<9x16x32xbf16, #tpu.memory_space<vmem>>, vector<1x4x32xbf16>,
    %c42_597 = arith.constant 42 : index
    %c0_598 = arith.constant 0 : index
    %628 = tpu.strided_load %arg16[%c42_597, %c0_598] {strides = array<i32: 2, 1>} : memref<100x32xf32, #tpu.memory_space<vmem>>, vector<4x32xf32>
    %629 = arith.truncf %628 : vector<4x32xf32> to vector<4x32xbf16>
    %c8_599 = arith.constant 8 : index
    %c4_600 = arith.constant 4 : index
    %c0_601 = arith.constant 0 : index
    %630 = vector.load %arg20[%c8_599, %c4_600, %c0_601] : memref<9x16x32xbf16, #tpu.memory_space<vmem>>, vector<1x4x32xbf16>
    %631 = vector.shape_cast %630 : vector<1x4x32xbf16> to vector<4x32xbf16>
    %632 = vector.shape_cast %629 : vector<4x32xbf16> to vector<1x4x32xbf16>
    tpu.vector_store %arg20[%c8_599, %c4_600, %c0_601], %632 {strides = array<i32>} : memref<9x16x32xbf16, #tpu.memory_space<vmem>>, vector<1x4x32xbf16>,
    %c62_602 = arith.constant 62 : index
    %c0_603 = arith.constant 0 : index
    %633 = tpu.strided_load %arg16[%c62_602, %c0_603] {strides = array<i32: 2, 1>} : memref<100x32xf32, #tpu.memory_space<vmem>>, vector<4x32xf32>
    %634 = arith.truncf %633 : vector<4x32xf32> to vector<4x32xbf16>
    %c8_604 = arith.constant 8 : index
    %c8_605 = arith.constant 8 : index
    %c0_606 = arith.constant 0 : index
    %635 = vector.load %arg20[%c8_604, %c8_605, %c0_606] : memref<9x16x32xbf16, #tpu.memory_space<vmem>>, vector<1x4x32xbf16>
    %636 = vector.shape_cast %635 : vector<1x4x32xbf16> to vector<4x32xbf16>
    %637 = vector.shape_cast %634 : vector<4x32xbf16> to vector<1x4x32xbf16>
    tpu.vector_store %arg20[%c8_604, %c8_605, %c0_606], %637 {strides = array<i32>} : memref<9x16x32xbf16, #tpu.memory_space<vmem>>, vector<1x4x32xbf16>,
    %c82_607 = arith.constant 82 : index
    %c0_608 = arith.constant 0 : index
    %638 = tpu.strided_load %arg16[%c82_607, %c0_608] {strides = array<i32: 2, 1>} : memref<100x32xf32, #tpu.memory_space<vmem>>, vector<4x32xf32>
    %639 = arith.truncf %638 : vector<4x32xf32> to vector<4x32xbf16>
    %c8_609 = arith.constant 8 : index
    %c12_610 = arith.constant 12 : index
    %c0_611 = arith.constant 0 : index
    %640 = vector.load %arg20[%c8_609, %c12_610, %c0_611] : memref<9x16x32xbf16, #tpu.memory_space<vmem>>, vector<1x4x32xbf16>
    %641 = vector.shape_cast %640 : vector<1x4x32xbf16> to vector<4x32xbf16>
    %642 = vector.shape_cast %639 : vector<4x32xbf16> to vector<1x4x32xbf16>
    tpu.vector_store %arg20[%c8_609, %c12_610, %c0_611], %642 {strides = array<i32>} : memref<9x16x32xbf16, #tpu.memory_space<vmem>>, vector<1x4x32xbf16>,
    %c0_612 = arith.constant 0 : index
    %c0_613 = arith.constant 0 : index
    %c0_614 = arith.constant 0 : index
    %643 = vector.load %arg20[%c0_612, %c0_613, %c0_614] : memref<9x16x32xbf16, #tpu.memory_space<vmem>>, vector<1x16x32xbf16>
    %644 = vector.shape_cast %643 : vector<1x16x32xbf16> to vector<16x32xbf16>
    %c0_615 = arith.constant 0 : index
    %c0_616 = arith.constant 0 : index
    %c0_617 = arith.constant 0 : index
    %645 = vector.load %arg4[%c0_615, %c0_616, %c0_617] : memref<9x32x64xbf16, #tpu.memory_space<vmem>>, vector<1x32x64xbf16>
    %646 = vector.shape_cast %645 : vector<1x32x64xbf16> to vector<32x64xbf16>
    %cst_618 = arith.constant dense<0.000000e+00> : vector<16x64xf32>
    %647 = tpu.matmul %644, %646, %cst_618 {dimension_numbers = #tpu.dot_dimension_numbers<[1], [0], [0], [1], [0, 0, 1, 1], [], []>} : vector<16x32xbf16>, vector<32x64xbf16>, vector<16x64xf32> -> vector<16x64xf32>
    %c1_619 = arith.constant 1 : index
    %c0_620 = arith.constant 0 : index
    %c0_621 = arith.constant 0 : index
    %648 = vector.load %arg20[%c1_619, %c0_620, %c0_621] : memref<9x16x32xbf16, #tpu.memory_space<vmem>>, vector<1x16x32xbf16>
    %649 = vector.shape_cast %648 : vector<1x16x32xbf16> to vector<16x32xbf16>
    %c1_622 = arith.constant 1 : index
    %c0_623 = arith.constant 0 : index
    %c0_624 = arith.constant 0 : index
    %650 = vector.load %arg4[%c1_622, %c0_623, %c0_624] : memref<9x32x64xbf16, #tpu.memory_space<vmem>>, vector<1x32x64xbf16>
    %651 = vector.shape_cast %650 : vector<1x32x64xbf16> to vector<32x64xbf16>
    %cst_625 = arith.constant dense<0.000000e+00> : vector<16x64xf32>
    %652 = tpu.matmul %649, %651, %cst_625 {dimension_numbers = #tpu.dot_dimension_numbers<[1], [0], [0], [1], [0, 0, 1, 1], [], []>} : vector<16x32xbf16>, vector<32x64xbf16>, vector<16x64xf32> -> vector<16x64xf32>
    %653 = arith.addf %647, %652 : vector<16x64xf32>
    %c2_626 = arith.constant 2 : index
    %c0_627 = arith.constant 0 : index
    %c0_628 = arith.constant 0 : index
    %654 = vector.load %arg20[%c2_626, %c0_627, %c0_628] : memref<9x16x32xbf16, #tpu.memory_space<vmem>>, vector<1x16x32xbf16>
    %655 = vector.shape_cast %654 : vector<1x16x32xbf16> to vector<16x32xbf16>
    %c2_629 = arith.constant 2 : index
    %c0_630 = arith.constant 0 : index
    %c0_631 = arith.constant 0 : index
    %656 = vector.load %arg4[%c2_629, %c0_630, %c0_631] : memref<9x32x64xbf16, #tpu.memory_space<vmem>>, vector<1x32x64xbf16>
    %657 = vector.shape_cast %656 : vector<1x32x64xbf16> to vector<32x64xbf16>
    %cst_632 = arith.constant dense<0.000000e+00> : vector<16x64xf32>
    %658 = tpu.matmul %655, %657, %cst_632 {dimension_numbers = #tpu.dot_dimension_numbers<[1], [0], [0], [1], [0, 0, 1, 1], [], []>} : vector<16x32xbf16>, vector<32x64xbf16>, vector<16x64xf32> -> vector<16x64xf32>
    %659 = arith.addf %653, %658 : vector<16x64xf32>
    %c3_633 = arith.constant 3 : index
    %c0_634 = arith.constant 0 : index
    %c0_635 = arith.constant 0 : index
    %660 = vector.load %arg20[%c3_633, %c0_634, %c0_635] : memref<9x16x32xbf16, #tpu.memory_space<vmem>>, vector<1x16x32xbf16>
    %661 = vector.shape_cast %660 : vector<1x16x32xbf16> to vector<16x32xbf16>
    %c3_636 = arith.constant 3 : index
    %c0_637 = arith.constant 0 : index
    %c0_638 = arith.constant 0 : index
    %662 = vector.load %arg4[%c3_636, %c0_637, %c0_638] : memref<9x32x64xbf16, #tpu.memory_space<vmem>>, vector<1x32x64xbf16>
    %663 = vector.shape_cast %662 : vector<1x32x64xbf16> to vector<32x64xbf16>
    %cst_639 = arith.constant dense<0.000000e+00> : vector<16x64xf32>
    %664 = tpu.matmul %661, %663, %cst_639 {dimension_numbers = #tpu.dot_dimension_numbers<[1], [0], [0], [1], [0, 0, 1, 1], [], []>} : vector<16x32xbf16>, vector<32x64xbf16>, vector<16x64xf32> -> vector<16x64xf32>
    %665 = arith.addf %659, %664 : vector<16x64xf32>
    %c4_640 = arith.constant 4 : index
    %c0_641 = arith.constant 0 : index
    %c0_642 = arith.constant 0 : index
    %666 = vector.load %arg20[%c4_640, %c0_641, %c0_642] : memref<9x16x32xbf16, #tpu.memory_space<vmem>>, vector<1x16x32xbf16>
    %667 = vector.shape_cast %666 : vector<1x16x32xbf16> to vector<16x32xbf16>
    %c4_643 = arith.constant 4 : index
    %c0_644 = arith.constant 0 : index
    %c0_645 = arith.constant 0 : index
    %668 = vector.load %arg4[%c4_643, %c0_644, %c0_645] : memref<9x32x64xbf16, #tpu.memory_space<vmem>>, vector<1x32x64xbf16>
    %669 = vector.shape_cast %668 : vector<1x32x64xbf16> to vector<32x64xbf16>
    %cst_646 = arith.constant dense<0.000000e+00> : vector<16x64xf32>
    %670 = tpu.matmul %667, %669, %cst_646 {dimension_numbers = #tpu.dot_dimension_numbers<[1], [0], [0], [1], [0, 0, 1, 1], [], []>} : vector<16x32xbf16>, vector<32x64xbf16>, vector<16x64xf32> -> vector<16x64xf32>
    %671 = arith.addf %665, %670 : vector<16x64xf32>
    %c5_647 = arith.constant 5 : index
    %c0_648 = arith.constant 0 : index
    %c0_649 = arith.constant 0 : index
    %672 = vector.load %arg20[%c5_647, %c0_648, %c0_649] : memref<9x16x32xbf16, #tpu.memory_space<vmem>>, vector<1x16x32xbf16>
    %673 = vector.shape_cast %672 : vector<1x16x32xbf16> to vector<16x32xbf16>
    %c5_650 = arith.constant 5 : index
    %c0_651 = arith.constant 0 : index
    %c0_652 = arith.constant 0 : index
    %674 = vector.load %arg4[%c5_650, %c0_651, %c0_652] : memref<9x32x64xbf16, #tpu.memory_space<vmem>>, vector<1x32x64xbf16>
    %675 = vector.shape_cast %674 : vector<1x32x64xbf16> to vector<32x64xbf16>
    %cst_653 = arith.constant dense<0.000000e+00> : vector<16x64xf32>
    %676 = tpu.matmul %673, %675, %cst_653 {dimension_numbers = #tpu.dot_dimension_numbers<[1], [0], [0], [1], [0, 0, 1, 1], [], []>} : vector<16x32xbf16>, vector<32x64xbf16>, vector<16x64xf32> -> vector<16x64xf32>
    %677 = arith.addf %671, %676 : vector<16x64xf32>
    %c6_654 = arith.constant 6 : index
    %c0_655 = arith.constant 0 : index
    %c0_656 = arith.constant 0 : index
    %678 = vector.load %arg20[%c6_654, %c0_655, %c0_656] : memref<9x16x32xbf16, #tpu.memory_space<vmem>>, vector<1x16x32xbf16>
    %679 = vector.shape_cast %678 : vector<1x16x32xbf16> to vector<16x32xbf16>
    %c6_657 = arith.constant 6 : index
    %c0_658 = arith.constant 0 : index
    %c0_659 = arith.constant 0 : index
    %680 = vector.load %arg4[%c6_657, %c0_658, %c0_659] : memref<9x32x64xbf16, #tpu.memory_space<vmem>>, vector<1x32x64xbf16>
    %681 = vector.shape_cast %680 : vector<1x32x64xbf16> to vector<32x64xbf16>
    %cst_660 = arith.constant dense<0.000000e+00> : vector<16x64xf32>
    %682 = tpu.matmul %679, %681, %cst_660 {dimension_numbers = #tpu.dot_dimension_numbers<[1], [0], [0], [1], [0, 0, 1, 1], [], []>} : vector<16x32xbf16>, vector<32x64xbf16>, vector<16x64xf32> -> vector<16x64xf32>
    %683 = arith.addf %677, %682 : vector<16x64xf32>
    %c7_661 = arith.constant 7 : index
    %c0_662 = arith.constant 0 : index
    %c0_663 = arith.constant 0 : index
    %684 = vector.load %arg20[%c7_661, %c0_662, %c0_663] : memref<9x16x32xbf16, #tpu.memory_space<vmem>>, vector<1x16x32xbf16>
    %685 = vector.shape_cast %684 : vector<1x16x32xbf16> to vector<16x32xbf16>
    %c7_664 = arith.constant 7 : index
    %c0_665 = arith.constant 0 : index
    %c0_666 = arith.constant 0 : index
    %686 = vector.load %arg4[%c7_664, %c0_665, %c0_666] : memref<9x32x64xbf16, #tpu.memory_space<vmem>>, vector<1x32x64xbf16>
    %687 = vector.shape_cast %686 : vector<1x32x64xbf16> to vector<32x64xbf16>
    %cst_667 = arith.constant dense<0.000000e+00> : vector<16x64xf32>
    %688 = tpu.matmul %685, %687, %cst_667 {dimension_numbers = #tpu.dot_dimension_numbers<[1], [0], [0], [1], [0, 0, 1, 1], [], []>} : vector<16x32xbf16>, vector<32x64xbf16>, vector<16x64xf32> -> vector<16x64xf32>
    %689 = arith.addf %683, %688 : vector<16x64xf32>
    %c8_668 = arith.constant 8 : index
    %c0_669 = arith.constant 0 : index
    %c0_670 = arith.constant 0 : index
    %690 = vector.load %arg20[%c8_668, %c0_669, %c0_670] : memref<9x16x32xbf16, #tpu.memory_space<vmem>>, vector<1x16x32xbf16>
    %691 = vector.shape_cast %690 : vector<1x16x32xbf16> to vector<16x32xbf16>
    %c8_671 = arith.constant 8 : index
    %c0_672 = arith.constant 0 : index
    %c0_673 = arith.constant 0 : index
    %692 = vector.load %arg4[%c8_671, %c0_672, %c0_673] : memref<9x32x64xbf16, #tpu.memory_space<vmem>>, vector<1x32x64xbf16>
    %693 = vector.shape_cast %692 : vector<1x32x64xbf16> to vector<32x64xbf16>
    %cst_674 = arith.constant dense<0.000000e+00> : vector<16x64xf32>
    %694 = tpu.matmul %691, %693, %cst_674 {dimension_numbers = #tpu.dot_dimension_numbers<[1], [0], [0], [1], [0, 0, 1, 1], [], []>} : vector<16x32xbf16>, vector<32x64xbf16>, vector<16x64xf32> -> vector<16x64xf32>
    %695 = arith.addf %689, %694 : vector<16x64xf32>
    %c0_675 = arith.constant 0 : index
    %c0_676 = arith.constant 0 : index
    %696 = vector.load %arg9[%c0_675, %c0_676] : memref<1x64xf32, #tpu.memory_space<vmem>>, vector<1x64xf32>
    %697 = vector.broadcast %696 : vector<1x64xf32> to vector<16x64xf32>
    %698 = arith.addf %695, %697 : vector<16x64xf32>
    %cst_677 = arith.constant 0.000000e+00 : f32
    %699 = vector.broadcast %cst_677 : f32 to vector<16x64xf32>
    %700 = arith.maximumf %698, %699 : vector<16x64xf32>
    %c0_678 = arith.constant 0 : index
    %c0_679 = arith.constant 0 : index
    %c0_680 = arith.constant 0 : index
    %701 = vector.load %arg12[%c0_678, %c0_679, %c0_680] : memref<1x16x64xf32, #tpu.memory_space<vmem>>, vector<1x16x64xf32>
    %702 = vector.shape_cast %701 : vector<1x16x64xf32> to vector<16x64xf32>
    %703 = vector.shape_cast %700 : vector<16x64xf32> to vector<1x16x64xf32>
    tpu.vector_store %arg12[%c0_678, %c0_679, %c0_680], %703 {strides = array<i32>} : memref<1x16x64xf32, #tpu.memory_space<vmem>>, vector<1x16x64xf32>,
    %cst_681 = arith.constant 0.000000e+00 : f32
    %704 = vector.broadcast %cst_681 : f32 to vector<36x64xf32>
    %c0_682 = arith.constant 0 : index
    %c0_683 = arith.constant 0 : index
    %705 = vector.load %arg17[%c0_682, %c0_683] : memref<36x64xf32, #tpu.memory_space<vmem>>, vector<36x64xf32>
    tpu.vector_store %arg17[%c0_682, %c0_683], %704 {strides = array<i32>} : memref<36x64xf32, #tpu.memory_space<vmem>>, vector<36x64xf32>,
    %706 = vector.extract_strided_slice %700 {offsets = [0, 0], sizes = [4, 64], strides = [1, 1]} : vector<16x64xf32> to vector<4x64xf32>
    %c7_684 = arith.constant 7 : index
    %c0_685 = arith.constant 0 : index
    %707 = vector.load %arg17[%c7_684, %c0_685] : memref<36x64xf32, #tpu.memory_space<vmem>>, vector<4x64xf32>
    tpu.vector_store %arg17[%c7_684, %c0_685], %706 {strides = array<i32>} : memref<36x64xf32, #tpu.memory_space<vmem>>, vector<4x64xf32>,
    %708 = vector.extract_strided_slice %700 {offsets = [4, 0], sizes = [4, 64], strides = [1, 1]} : vector<16x64xf32> to vector<4x64xf32>
    %c13 = arith.constant 13 : index
    %c0_686 = arith.constant 0 : index
    %709 = vector.load %arg17[%c13, %c0_686] : memref<36x64xf32, #tpu.memory_space<vmem>>, vector<4x64xf32>
    tpu.vector_store %arg17[%c13, %c0_686], %708 {strides = array<i32>} : memref<36x64xf32, #tpu.memory_space<vmem>>, vector<4x64xf32>,
    %710 = vector.extract_strided_slice %700 {offsets = [8, 0], sizes = [4, 64], strides = [1, 1]} : vector<16x64xf32> to vector<4x64xf32>
    %c19 = arith.constant 19 : index
    %c0_687 = arith.constant 0 : index
    %711 = vector.load %arg17[%c19, %c0_687] : memref<36x64xf32, #tpu.memory_space<vmem>>, vector<4x64xf32>
    tpu.vector_store %arg17[%c19, %c0_687], %710 {strides = array<i32>} : memref<36x64xf32, #tpu.memory_space<vmem>>, vector<4x64xf32>,
    %712 = vector.extract_strided_slice %700 {offsets = [12, 0], sizes = [4, 64], strides = [1, 1]} : vector<16x64xf32> to vector<4x64xf32>
    %c25 = arith.constant 25 : index
    %c0_688 = arith.constant 0 : index
    %713 = vector.load %arg17[%c25, %c0_688] : memref<36x64xf32, #tpu.memory_space<vmem>>, vector<4x64xf32>
    tpu.vector_store %arg17[%c25, %c0_688], %712 {strides = array<i32>} : memref<36x64xf32, #tpu.memory_space<vmem>>, vector<4x64xf32>,
    %c0_689 = arith.constant 0 : index
    %c0_690 = arith.constant 0 : index
    %714 = tpu.strided_load %arg17[%c0_689, %c0_690] {strides = array<i32: 2, 1>} : memref<36x64xf32, #tpu.memory_space<vmem>>, vector<2x64xf32>
    %715 = arith.truncf %714 : vector<2x64xf32> to vector<2x64xbf16>
    %c0_691 = arith.constant 0 : index
    %c0_692 = arith.constant 0 : index
    %c0_693 = arith.constant 0 : index
    %716 = vector.load %arg21[%c0_691, %c0_692, %c0_693] : memref<9x4x64xbf16, #tpu.memory_space<vmem>>, vector<1x2x64xbf16>
    %717 = vector.shape_cast %716 : vector<1x2x64xbf16> to vector<2x64xbf16>
    %718 = vector.shape_cast %715 : vector<2x64xbf16> to vector<1x2x64xbf16>
    tpu.vector_store %arg21[%c0_691, %c0_692, %c0_693], %718 {strides = array<i32>} : memref<9x4x64xbf16, #tpu.memory_space<vmem>>, vector<1x2x64xbf16>,
    %c12_694 = arith.constant 12 : index
    %c0_695 = arith.constant 0 : index
    %719 = tpu.strided_load %arg17[%c12_694, %c0_695] {strides = array<i32: 2, 1>} : memref<36x64xf32, #tpu.memory_space<vmem>>, vector<2x64xf32>
    %720 = arith.truncf %719 : vector<2x64xf32> to vector<2x64xbf16>
    %c0_696 = arith.constant 0 : index
    %c2_697 = arith.constant 2 : index
    %c0_698 = arith.constant 0 : index
    %721 = vector.load %arg21[%c0_696, %c2_697, %c0_698] : memref<9x4x64xbf16, #tpu.memory_space<vmem>>, vector<1x2x64xbf16>
    %722 = vector.shape_cast %721 : vector<1x2x64xbf16> to vector<2x64xbf16>
    %723 = vector.shape_cast %720 : vector<2x64xbf16> to vector<1x2x64xbf16>
    tpu.vector_store %arg21[%c0_696, %c2_697, %c0_698], %723 {strides = array<i32>} : memref<9x4x64xbf16, #tpu.memory_space<vmem>>, vector<1x2x64xbf16>,
    %c1_699 = arith.constant 1 : index
    %c0_700 = arith.constant 0 : index
    %724 = tpu.strided_load %arg17[%c1_699, %c0_700] {strides = array<i32: 2, 1>} : memref<36x64xf32, #tpu.memory_space<vmem>>, vector<2x64xf32>
    %725 = arith.truncf %724 : vector<2x64xf32> to vector<2x64xbf16>
    %c1_701 = arith.constant 1 : index
    %c0_702 = arith.constant 0 : index
    %c0_703 = arith.constant 0 : index
    %726 = vector.load %arg21[%c1_701, %c0_702, %c0_703] : memref<9x4x64xbf16, #tpu.memory_space<vmem>>, vector<1x2x64xbf16>
    %727 = vector.shape_cast %726 : vector<1x2x64xbf16> to vector<2x64xbf16>
    %728 = vector.shape_cast %725 : vector<2x64xbf16> to vector<1x2x64xbf16>
    tpu.vector_store %arg21[%c1_701, %c0_702, %c0_703], %728 {strides = array<i32>} : memref<9x4x64xbf16, #tpu.memory_space<vmem>>, vector<1x2x64xbf16>,
    %c13_704 = arith.constant 13 : index
    %c0_705 = arith.constant 0 : index
    %729 = tpu.strided_load %arg17[%c13_704, %c0_705] {strides = array<i32: 2, 1>} : memref<36x64xf32, #tpu.memory_space<vmem>>, vector<2x64xf32>
    %730 = arith.truncf %729 : vector<2x64xf32> to vector<2x64xbf16>
    %c1_706 = arith.constant 1 : index
    %c2_707 = arith.constant 2 : index
    %c0_708 = arith.constant 0 : index
    %731 = vector.load %arg21[%c1_706, %c2_707, %c0_708] : memref<9x4x64xbf16, #tpu.memory_space<vmem>>, vector<1x2x64xbf16>
    %732 = vector.shape_cast %731 : vector<1x2x64xbf16> to vector<2x64xbf16>
    %733 = vector.shape_cast %730 : vector<2x64xbf16> to vector<1x2x64xbf16>
    tpu.vector_store %arg21[%c1_706, %c2_707, %c0_708], %733 {strides = array<i32>} : memref<9x4x64xbf16, #tpu.memory_space<vmem>>, vector<1x2x64xbf16>,
    %c2_709 = arith.constant 2 : index
    %c0_710 = arith.constant 0 : index
    %734 = tpu.strided_load %arg17[%c2_709, %c0_710] {strides = array<i32: 2, 1>} : memref<36x64xf32, #tpu.memory_space<vmem>>, vector<2x64xf32>
    %735 = arith.truncf %734 : vector<2x64xf32> to vector<2x64xbf16>
    %c2_711 = arith.constant 2 : index
    %c0_712 = arith.constant 0 : index
    %c0_713 = arith.constant 0 : index
    %736 = vector.load %arg21[%c2_711, %c0_712, %c0_713] : memref<9x4x64xbf16, #tpu.memory_space<vmem>>, vector<1x2x64xbf16>
    %737 = vector.shape_cast %736 : vector<1x2x64xbf16> to vector<2x64xbf16>
    %738 = vector.shape_cast %735 : vector<2x64xbf16> to vector<1x2x64xbf16>
    tpu.vector_store %arg21[%c2_711, %c0_712, %c0_713], %738 {strides = array<i32>} : memref<9x4x64xbf16, #tpu.memory_space<vmem>>, vector<1x2x64xbf16>,
    %c14 = arith.constant 14 : index
    %c0_714 = arith.constant 0 : index
    %739 = tpu.strided_load %arg17[%c14, %c0_714] {strides = array<i32: 2, 1>} : memref<36x64xf32, #tpu.memory_space<vmem>>, vector<2x64xf32>
    %740 = arith.truncf %739 : vector<2x64xf32> to vector<2x64xbf16>
    %c2_715 = arith.constant 2 : index
    %c2_716 = arith.constant 2 : index
    %c0_717 = arith.constant 0 : index
    %741 = vector.load %arg21[%c2_715, %c2_716, %c0_717] : memref<9x4x64xbf16, #tpu.memory_space<vmem>>, vector<1x2x64xbf16>
    %742 = vector.shape_cast %741 : vector<1x2x64xbf16> to vector<2x64xbf16>
    %743 = vector.shape_cast %740 : vector<2x64xbf16> to vector<1x2x64xbf16>
    tpu.vector_store %arg21[%c2_715, %c2_716, %c0_717], %743 {strides = array<i32>} : memref<9x4x64xbf16, #tpu.memory_space<vmem>>, vector<1x2x64xbf16>,
    %c6_718 = arith.constant 6 : index
    %c0_719 = arith.constant 0 : index
    %744 = tpu.strided_load %arg17[%c6_718, %c0_719] {strides = array<i32: 2, 1>} : memref<36x64xf32, #tpu.memory_space<vmem>>, vector<2x64xf32>
    %745 = arith.truncf %744 : vector<2x64xf32> to vector<2x64xbf16>
    %c3_720 = arith.constant 3 : index
    %c0_721 = arith.constant 0 : index
    %c0_722 = arith.constant 0 : index
    %746 = vector.load %arg21[%c3_720, %c0_721, %c0_722] : memref<9x4x64xbf16, #tpu.memory_space<vmem>>, vector<1x2x64xbf16>
    %747 = vector.shape_cast %746 : vector<1x2x64xbf16> to vector<2x64xbf16>
    %748 = vector.shape_cast %745 : vector<2x64xbf16> to vector<1x2x64xbf16>
    tpu.vector_store %arg21[%c3_720, %c0_721, %c0_722], %748 {strides = array<i32>} : memref<9x4x64xbf16, #tpu.memory_space<vmem>>, vector<1x2x64xbf16>,
    %c18 = arith.constant 18 : index
    %c0_723 = arith.constant 0 : index
    %749 = tpu.strided_load %arg17[%c18, %c0_723] {strides = array<i32: 2, 1>} : memref<36x64xf32, #tpu.memory_space<vmem>>, vector<2x64xf32>
    %750 = arith.truncf %749 : vector<2x64xf32> to vector<2x64xbf16>
    %c3_724 = arith.constant 3 : index
    %c2_725 = arith.constant 2 : index
    %c0_726 = arith.constant 0 : index
    %751 = vector.load %arg21[%c3_724, %c2_725, %c0_726] : memref<9x4x64xbf16, #tpu.memory_space<vmem>>, vector<1x2x64xbf16>
    %752 = vector.shape_cast %751 : vector<1x2x64xbf16> to vector<2x64xbf16>
    %753 = vector.shape_cast %750 : vector<2x64xbf16> to vector<1x2x64xbf16>
    tpu.vector_store %arg21[%c3_724, %c2_725, %c0_726], %753 {strides = array<i32>} : memref<9x4x64xbf16, #tpu.memory_space<vmem>>, vector<1x2x64xbf16>,
    %c7_727 = arith.constant 7 : index
    %c0_728 = arith.constant 0 : index
    %754 = tpu.strided_load %arg17[%c7_727, %c0_728] {strides = array<i32: 2, 1>} : memref<36x64xf32, #tpu.memory_space<vmem>>, vector<2x64xf32>
    %755 = arith.truncf %754 : vector<2x64xf32> to vector<2x64xbf16>
    %c4_729 = arith.constant 4 : index
    %c0_730 = arith.constant 0 : index
    %c0_731 = arith.constant 0 : index
    %756 = vector.load %arg21[%c4_729, %c0_730, %c0_731] : memref<9x4x64xbf16, #tpu.memory_space<vmem>>, vector<1x2x64xbf16>
    %757 = vector.shape_cast %756 : vector<1x2x64xbf16> to vector<2x64xbf16>
    %758 = vector.shape_cast %755 : vector<2x64xbf16> to vector<1x2x64xbf16>
    tpu.vector_store %arg21[%c4_729, %c0_730, %c0_731], %758 {strides = array<i32>} : memref<9x4x64xbf16, #tpu.memory_space<vmem>>, vector<1x2x64xbf16>,
    %c19_732 = arith.constant 19 : index
    %c0_733 = arith.constant 0 : index
    %759 = tpu.strided_load %arg17[%c19_732, %c0_733] {strides = array<i32: 2, 1>} : memref<36x64xf32, #tpu.memory_space<vmem>>, vector<2x64xf32>
    %760 = arith.truncf %759 : vector<2x64xf32> to vector<2x64xbf16>
    %c4_734 = arith.constant 4 : index
    %c2_735 = arith.constant 2 : index
    %c0_736 = arith.constant 0 : index
    %761 = vector.load %arg21[%c4_734, %c2_735, %c0_736] : memref<9x4x64xbf16, #tpu.memory_space<vmem>>, vector<1x2x64xbf16>
    %762 = vector.shape_cast %761 : vector<1x2x64xbf16> to vector<2x64xbf16>
    %763 = vector.shape_cast %760 : vector<2x64xbf16> to vector<1x2x64xbf16>
    tpu.vector_store %arg21[%c4_734, %c2_735, %c0_736], %763 {strides = array<i32>} : memref<9x4x64xbf16, #tpu.memory_space<vmem>>, vector<1x2x64xbf16>,
    %c8_737 = arith.constant 8 : index
    %c0_738 = arith.constant 0 : index
    %764 = tpu.strided_load %arg17[%c8_737, %c0_738] {strides = array<i32: 2, 1>} : memref<36x64xf32, #tpu.memory_space<vmem>>, vector<2x64xf32>
    %765 = arith.truncf %764 : vector<2x64xf32> to vector<2x64xbf16>
    %c5_739 = arith.constant 5 : index
    %c0_740 = arith.constant 0 : index
    %c0_741 = arith.constant 0 : index
    %766 = vector.load %arg21[%c5_739, %c0_740, %c0_741] : memref<9x4x64xbf16, #tpu.memory_space<vmem>>, vector<1x2x64xbf16>
    %767 = vector.shape_cast %766 : vector<1x2x64xbf16> to vector<2x64xbf16>
    %768 = vector.shape_cast %765 : vector<2x64xbf16> to vector<1x2x64xbf16>
    tpu.vector_store %arg21[%c5_739, %c0_740, %c0_741], %768 {strides = array<i32>} : memref<9x4x64xbf16, #tpu.memory_space<vmem>>, vector<1x2x64xbf16>,
    %c20_742 = arith.constant 20 : index
    %c0_743 = arith.constant 0 : index
    %769 = tpu.strided_load %arg17[%c20_742, %c0_743] {strides = array<i32: 2, 1>} : memref<36x64xf32, #tpu.memory_space<vmem>>, vector<2x64xf32>
    %770 = arith.truncf %769 : vector<2x64xf32> to vector<2x64xbf16>
    %c5_744 = arith.constant 5 : index
    %c2_745 = arith.constant 2 : index
    %c0_746 = arith.constant 0 : index
    %771 = vector.load %arg21[%c5_744, %c2_745, %c0_746] : memref<9x4x64xbf16, #tpu.memory_space<vmem>>, vector<1x2x64xbf16>
    %772 = vector.shape_cast %771 : vector<1x2x64xbf16> to vector<2x64xbf16>
    %773 = vector.shape_cast %770 : vector<2x64xbf16> to vector<1x2x64xbf16>
    tpu.vector_store %arg21[%c5_744, %c2_745, %c0_746], %773 {strides = array<i32>} : memref<9x4x64xbf16, #tpu.memory_space<vmem>>, vector<1x2x64xbf16>,
    %c12_747 = arith.constant 12 : index
    %c0_748 = arith.constant 0 : index
    %774 = tpu.strided_load %arg17[%c12_747, %c0_748] {strides = array<i32: 2, 1>} : memref<36x64xf32, #tpu.memory_space<vmem>>, vector<2x64xf32>
    %775 = arith.truncf %774 : vector<2x64xf32> to vector<2x64xbf16>
    %c6_749 = arith.constant 6 : index
    %c0_750 = arith.constant 0 : index
    %c0_751 = arith.constant 0 : index
    %776 = vector.load %arg21[%c6_749, %c0_750, %c0_751] : memref<9x4x64xbf16, #tpu.memory_space<vmem>>, vector<1x2x64xbf16>
    %777 = vector.shape_cast %776 : vector<1x2x64xbf16> to vector<2x64xbf16>
    %778 = vector.shape_cast %775 : vector<2x64xbf16> to vector<1x2x64xbf16>
    tpu.vector_store %arg21[%c6_749, %c0_750, %c0_751], %778 {strides = array<i32>} : memref<9x4x64xbf16, #tpu.memory_space<vmem>>, vector<1x2x64xbf16>,
    %c24_752 = arith.constant 24 : index
    %c0_753 = arith.constant 0 : index
    %779 = tpu.strided_load %arg17[%c24_752, %c0_753] {strides = array<i32: 2, 1>} : memref<36x64xf32, #tpu.memory_space<vmem>>, vector<2x64xf32>
    %780 = arith.truncf %779 : vector<2x64xf32> to vector<2x64xbf16>
    %c6_754 = arith.constant 6 : index
    %c2_755 = arith.constant 2 : index
    %c0_756 = arith.constant 0 : index
    %781 = vector.load %arg21[%c6_754, %c2_755, %c0_756] : memref<9x4x64xbf16, #tpu.memory_space<vmem>>, vector<1x2x64xbf16>
    %782 = vector.shape_cast %781 : vector<1x2x64xbf16> to vector<2x64xbf16>
    %783 = vector.shape_cast %780 : vector<2x64xbf16> to vector<1x2x64xbf16>
    tpu.vector_store %arg21[%c6_754, %c2_755, %c0_756], %783 {strides = array<i32>} : memref<9x4x64xbf16, #tpu.memory_space<vmem>>, vector<1x2x64xbf16>,
    %c13_757 = arith.constant 13 : index
    %c0_758 = arith.constant 0 : index
    %784 = tpu.strided_load %arg17[%c13_757, %c0_758] {strides = array<i32: 2, 1>} : memref<36x64xf32, #tpu.memory_space<vmem>>, vector<2x64xf32>
    %785 = arith.truncf %784 : vector<2x64xf32> to vector<2x64xbf16>
    %c7_759 = arith.constant 7 : index
    %c0_760 = arith.constant 0 : index
    %c0_761 = arith.constant 0 : index
    %786 = vector.load %arg21[%c7_759, %c0_760, %c0_761] : memref<9x4x64xbf16, #tpu.memory_space<vmem>>, vector<1x2x64xbf16>
    %787 = vector.shape_cast %786 : vector<1x2x64xbf16> to vector<2x64xbf16>
    %788 = vector.shape_cast %785 : vector<2x64xbf16> to vector<1x2x64xbf16>
    tpu.vector_store %arg21[%c7_759, %c0_760, %c0_761], %788 {strides = array<i32>} : memref<9x4x64xbf16, #tpu.memory_space<vmem>>, vector<1x2x64xbf16>,
    %c25_762 = arith.constant 25 : index
    %c0_763 = arith.constant 0 : index
    %789 = tpu.strided_load %arg17[%c25_762, %c0_763] {strides = array<i32: 2, 1>} : memref<36x64xf32, #tpu.memory_space<vmem>>, vector<2x64xf32>
    %790 = arith.truncf %789 : vector<2x64xf32> to vector<2x64xbf16>
    %c7_764 = arith.constant 7 : index
    %c2_765 = arith.constant 2 : index
    %c0_766 = arith.constant 0 : index
    %791 = vector.load %arg21[%c7_764, %c2_765, %c0_766] : memref<9x4x64xbf16, #tpu.memory_space<vmem>>, vector<1x2x64xbf16>
    %792 = vector.shape_cast %791 : vector<1x2x64xbf16> to vector<2x64xbf16>
    %793 = vector.shape_cast %790 : vector<2x64xbf16> to vector<1x2x64xbf16>
    tpu.vector_store %arg21[%c7_764, %c2_765, %c0_766], %793 {strides = array<i32>} : memref<9x4x64xbf16, #tpu.memory_space<vmem>>, vector<1x2x64xbf16>,
    %c14_767 = arith.constant 14 : index
    %c0_768 = arith.constant 0 : index
    %794 = tpu.strided_load %arg17[%c14_767, %c0_768] {strides = array<i32: 2, 1>} : memref<36x64xf32, #tpu.memory_space<vmem>>, vector<2x64xf32>
    %795 = arith.truncf %794 : vector<2x64xf32> to vector<2x64xbf16>
    %c8_769 = arith.constant 8 : index
    %c0_770 = arith.constant 0 : index
    %c0_771 = arith.constant 0 : index
    %796 = vector.load %arg21[%c8_769, %c0_770, %c0_771] : memref<9x4x64xbf16, #tpu.memory_space<vmem>>, vector<1x2x64xbf16>
    %797 = vector.shape_cast %796 : vector<1x2x64xbf16> to vector<2x64xbf16>
    %798 = vector.shape_cast %795 : vector<2x64xbf16> to vector<1x2x64xbf16>
    tpu.vector_store %arg21[%c8_769, %c0_770, %c0_771], %798 {strides = array<i32>} : memref<9x4x64xbf16, #tpu.memory_space<vmem>>, vector<1x2x64xbf16>,
    %c26 = arith.constant 26 : index
    %c0_772 = arith.constant 0 : index
    %799 = tpu.strided_load %arg17[%c26, %c0_772] {strides = array<i32: 2, 1>} : memref<36x64xf32, #tpu.memory_space<vmem>>, vector<2x64xf32>
    %800 = arith.truncf %799 : vector<2x64xf32> to vector<2x64xbf16>
    %c8_773 = arith.constant 8 : index
    %c2_774 = arith.constant 2 : index
    %c0_775 = arith.constant 0 : index
    %801 = vector.load %arg21[%c8_773, %c2_774, %c0_775] : memref<9x4x64xbf16, #tpu.memory_space<vmem>>, vector<1x2x64xbf16>
    %802 = vector.shape_cast %801 : vector<1x2x64xbf16> to vector<2x64xbf16>
    %803 = vector.shape_cast %800 : vector<2x64xbf16> to vector<1x2x64xbf16>
    tpu.vector_store %arg21[%c8_773, %c2_774, %c0_775], %803 {strides = array<i32>} : memref<9x4x64xbf16, #tpu.memory_space<vmem>>, vector<1x2x64xbf16>,
    %c0_776 = arith.constant 0 : index
    %c0_777 = arith.constant 0 : index
    %c0_778 = arith.constant 0 : index
    %804 = vector.load %arg21[%c0_776, %c0_777, %c0_778] : memref<9x4x64xbf16, #tpu.memory_space<vmem>>, vector<1x4x64xbf16>
    %805 = vector.shape_cast %804 : vector<1x4x64xbf16> to vector<4x64xbf16>
    %c0_779 = arith.constant 0 : index
    %c0_780 = arith.constant 0 : index
    %c0_781 = arith.constant 0 : index
    %806 = vector.load %arg5[%c0_779, %c0_780, %c0_781] : memref<9x64x128xbf16, #tpu.memory_space<vmem>>, vector<1x64x128xbf16>
    %807 = vector.shape_cast %806 : vector<1x64x128xbf16> to vector<64x128xbf16>
    %cst_782 = arith.constant dense<0.000000e+00> : vector<4x128xf32>
    %808 = tpu.matmul %805, %807, %cst_782 {dimension_numbers = #tpu.dot_dimension_numbers<[1], [0], [0], [1], [0, 0, 1, 1], [], []>} : vector<4x64xbf16>, vector<64x128xbf16>, vector<4x128xf32> -> vector<4x128xf32>
    %c1_783 = arith.constant 1 : index
    %c0_784 = arith.constant 0 : index
    %c0_785 = arith.constant 0 : index
    %809 = vector.load %arg21[%c1_783, %c0_784, %c0_785] : memref<9x4x64xbf16, #tpu.memory_space<vmem>>, vector<1x4x64xbf16>
    %810 = vector.shape_cast %809 : vector<1x4x64xbf16> to vector<4x64xbf16>
    %c1_786 = arith.constant 1 : index
    %c0_787 = arith.constant 0 : index
    %c0_788 = arith.constant 0 : index
    %811 = vector.load %arg5[%c1_786, %c0_787, %c0_788] : memref<9x64x128xbf16, #tpu.memory_space<vmem>>, vector<1x64x128xbf16>
    %812 = vector.shape_cast %811 : vector<1x64x128xbf16> to vector<64x128xbf16>
    %cst_789 = arith.constant dense<0.000000e+00> : vector<4x128xf32>
    %813 = tpu.matmul %810, %812, %cst_789 {dimension_numbers = #tpu.dot_dimension_numbers<[1], [0], [0], [1], [0, 0, 1, 1], [], []>} : vector<4x64xbf16>, vector<64x128xbf16>, vector<4x128xf32> -> vector<4x128xf32>
    %814 = arith.addf %808, %813 : vector<4x128xf32>
    %c2_790 = arith.constant 2 : index
    %c0_791 = arith.constant 0 : index
    %c0_792 = arith.constant 0 : index
    %815 = vector.load %arg21[%c2_790, %c0_791, %c0_792] : memref<9x4x64xbf16, #tpu.memory_space<vmem>>, vector<1x4x64xbf16>
    %816 = vector.shape_cast %815 : vector<1x4x64xbf16> to vector<4x64xbf16>
    %c2_793 = arith.constant 2 : index
    %c0_794 = arith.constant 0 : index
    %c0_795 = arith.constant 0 : index
    %817 = vector.load %arg5[%c2_793, %c0_794, %c0_795] : memref<9x64x128xbf16, #tpu.memory_space<vmem>>, vector<1x64x128xbf16>
    %818 = vector.shape_cast %817 : vector<1x64x128xbf16> to vector<64x128xbf16>
    %cst_796 = arith.constant dense<0.000000e+00> : vector<4x128xf32>
    %819 = tpu.matmul %816, %818, %cst_796 {dimension_numbers = #tpu.dot_dimension_numbers<[1], [0], [0], [1], [0, 0, 1, 1], [], []>} : vector<4x64xbf16>, vector<64x128xbf16>, vector<4x128xf32> -> vector<4x128xf32>
    %820 = arith.addf %814, %819 : vector<4x128xf32>
    %c3_797 = arith.constant 3 : index
    %c0_798 = arith.constant 0 : index
    %c0_799 = arith.constant 0 : index
    %821 = vector.load %arg21[%c3_797, %c0_798, %c0_799] : memref<9x4x64xbf16, #tpu.memory_space<vmem>>, vector<1x4x64xbf16>
    %822 = vector.shape_cast %821 : vector<1x4x64xbf16> to vector<4x64xbf16>
    %c3_800 = arith.constant 3 : index
    %c0_801 = arith.constant 0 : index
    %c0_802 = arith.constant 0 : index
    %823 = vector.load %arg5[%c3_800, %c0_801, %c0_802] : memref<9x64x128xbf16, #tpu.memory_space<vmem>>, vector<1x64x128xbf16>
    %824 = vector.shape_cast %823 : vector<1x64x128xbf16> to vector<64x128xbf16>
    %cst_803 = arith.constant dense<0.000000e+00> : vector<4x128xf32>
    %825 = tpu.matmul %822, %824, %cst_803 {dimension_numbers = #tpu.dot_dimension_numbers<[1], [0], [0], [1], [0, 0, 1, 1], [], []>} : vector<4x64xbf16>, vector<64x128xbf16>, vector<4x128xf32> -> vector<4x128xf32>
    %826 = arith.addf %820, %825 : vector<4x128xf32>
    %c4_804 = arith.constant 4 : index
    %c0_805 = arith.constant 0 : index
    %c0_806 = arith.constant 0 : index
    %827 = vector.load %arg21[%c4_804, %c0_805, %c0_806] : memref<9x4x64xbf16, #tpu.memory_space<vmem>>, vector<1x4x64xbf16>
    %828 = vector.shape_cast %827 : vector<1x4x64xbf16> to vector<4x64xbf16>
    %c4_807 = arith.constant 4 : index
    %c0_808 = arith.constant 0 : index
    %c0_809 = arith.constant 0 : index
    %829 = vector.load %arg5[%c4_807, %c0_808, %c0_809] : memref<9x64x128xbf16, #tpu.memory_space<vmem>>, vector<1x64x128xbf16>
    %830 = vector.shape_cast %829 : vector<1x64x128xbf16> to vector<64x128xbf16>
    %cst_810 = arith.constant dense<0.000000e+00> : vector<4x128xf32>
    %831 = tpu.matmul %828, %830, %cst_810 {dimension_numbers = #tpu.dot_dimension_numbers<[1], [0], [0], [1], [0, 0, 1, 1], [], []>} : vector<4x64xbf16>, vector<64x128xbf16>, vector<4x128xf32> -> vector<4x128xf32>
    %832 = arith.addf %826, %831 : vector<4x128xf32>
    %c5_811 = arith.constant 5 : index
    %c0_812 = arith.constant 0 : index
    %c0_813 = arith.constant 0 : index
    %833 = vector.load %arg21[%c5_811, %c0_812, %c0_813] : memref<9x4x64xbf16, #tpu.memory_space<vmem>>, vector<1x4x64xbf16>
    %834 = vector.shape_cast %833 : vector<1x4x64xbf16> to vector<4x64xbf16>
    %c5_814 = arith.constant 5 : index
    %c0_815 = arith.constant 0 : index
    %c0_816 = arith.constant 0 : index
    %835 = vector.load %arg5[%c5_814, %c0_815, %c0_816] : memref<9x64x128xbf16, #tpu.memory_space<vmem>>, vector<1x64x128xbf16>
    %836 = vector.shape_cast %835 : vector<1x64x128xbf16> to vector<64x128xbf16>
    %cst_817 = arith.constant dense<0.000000e+00> : vector<4x128xf32>
    %837 = tpu.matmul %834, %836, %cst_817 {dimension_numbers = #tpu.dot_dimension_numbers<[1], [0], [0], [1], [0, 0, 1, 1], [], []>} : vector<4x64xbf16>, vector<64x128xbf16>, vector<4x128xf32> -> vector<4x128xf32>
    %838 = arith.addf %832, %837 : vector<4x128xf32>
    %c6_818 = arith.constant 6 : index
    %c0_819 = arith.constant 0 : index
    %c0_820 = arith.constant 0 : index
    %839 = vector.load %arg21[%c6_818, %c0_819, %c0_820] : memref<9x4x64xbf16, #tpu.memory_space<vmem>>, vector<1x4x64xbf16>
    %840 = vector.shape_cast %839 : vector<1x4x64xbf16> to vector<4x64xbf16>
    %c6_821 = arith.constant 6 : index
    %c0_822 = arith.constant 0 : index
    %c0_823 = arith.constant 0 : index
    %841 = vector.load %arg5[%c6_821, %c0_822, %c0_823] : memref<9x64x128xbf16, #tpu.memory_space<vmem>>, vector<1x64x128xbf16>
    %842 = vector.shape_cast %841 : vector<1x64x128xbf16> to vector<64x128xbf16>
    %cst_824 = arith.constant dense<0.000000e+00> : vector<4x128xf32>
    %843 = tpu.matmul %840, %842, %cst_824 {dimension_numbers = #tpu.dot_dimension_numbers<[1], [0], [0], [1], [0, 0, 1, 1], [], []>} : vector<4x64xbf16>, vector<64x128xbf16>, vector<4x128xf32> -> vector<4x128xf32>
    %844 = arith.addf %838, %843 : vector<4x128xf32>
    %c7_825 = arith.constant 7 : index
    %c0_826 = arith.constant 0 : index
    %c0_827 = arith.constant 0 : index
    %845 = vector.load %arg21[%c7_825, %c0_826, %c0_827] : memref<9x4x64xbf16, #tpu.memory_space<vmem>>, vector<1x4x64xbf16>
    %846 = vector.shape_cast %845 : vector<1x4x64xbf16> to vector<4x64xbf16>
    %c7_828 = arith.constant 7 : index
    %c0_829 = arith.constant 0 : index
    %c0_830 = arith.constant 0 : index
    %847 = vector.load %arg5[%c7_828, %c0_829, %c0_830] : memref<9x64x128xbf16, #tpu.memory_space<vmem>>, vector<1x64x128xbf16>
    %848 = vector.shape_cast %847 : vector<1x64x128xbf16> to vector<64x128xbf16>
    %cst_831 = arith.constant dense<0.000000e+00> : vector<4x128xf32>
    %849 = tpu.matmul %846, %848, %cst_831 {dimension_numbers = #tpu.dot_dimension_numbers<[1], [0], [0], [1], [0, 0, 1, 1], [], []>} : vector<4x64xbf16>, vector<64x128xbf16>, vector<4x128xf32> -> vector<4x128xf32>
    %850 = arith.addf %844, %849 : vector<4x128xf32>
    %c8_832 = arith.constant 8 : index
    %c0_833 = arith.constant 0 : index
    %c0_834 = arith.constant 0 : index
    %851 = vector.load %arg21[%c8_832, %c0_833, %c0_834] : memref<9x4x64xbf16, #tpu.memory_space<vmem>>, vector<1x4x64xbf16>
    %852 = vector.shape_cast %851 : vector<1x4x64xbf16> to vector<4x64xbf16>
    %c8_835 = arith.constant 8 : index
    %c0_836 = arith.constant 0 : index
    %c0_837 = arith.constant 0 : index
    %853 = vector.load %arg5[%c8_835, %c0_836, %c0_837] : memref<9x64x128xbf16, #tpu.memory_space<vmem>>, vector<1x64x128xbf16>
    %854 = vector.shape_cast %853 : vector<1x64x128xbf16> to vector<64x128xbf16>
    %cst_838 = arith.constant dense<0.000000e+00> : vector<4x128xf32>
    %855 = tpu.matmul %852, %854, %cst_838 {dimension_numbers = #tpu.dot_dimension_numbers<[1], [0], [0], [1], [0, 0, 1, 1], [], []>} : vector<4x64xbf16>, vector<64x128xbf16>, vector<4x128xf32> -> vector<4x128xf32>
    %856 = arith.addf %850, %855 : vector<4x128xf32>
    %c0_839 = arith.constant 0 : index
    %c0_840 = arith.constant 0 : index
    %857 = vector.load %arg10[%c0_839, %c0_840] : memref<1x128xf32, #tpu.memory_space<vmem>>, vector<1x128xf32>
    %858 = vector.broadcast %857 : vector<1x128xf32> to vector<4x128xf32>
    %859 = arith.addf %856, %858 : vector<4x128xf32>
    %cst_841 = arith.constant 0.000000e+00 : f32
    %860 = vector.broadcast %cst_841 : f32 to vector<4x128xf32>
    %861 = arith.maximumf %859, %860 : vector<4x128xf32>
    %c0_842 = arith.constant 0 : index
    %c0_843 = arith.constant 0 : index
    %c0_844 = arith.constant 0 : index
    %862 = vector.load %arg13[%c0_842, %c0_843, %c0_844] : memref<1x4x128xf32, #tpu.memory_space<vmem>>, vector<1x4x128xf32>
    %863 = vector.shape_cast %862 : vector<1x4x128xf32> to vector<4x128xf32>
    %864 = vector.shape_cast %861 : vector<4x128xf32> to vector<1x4x128xf32>
    tpu.vector_store %arg13[%c0_842, %c0_843, %c0_844], %864 {strides = array<i32>} : memref<1x4x128xf32, #tpu.memory_space<vmem>>, vector<1x4x128xf32>,
    %cst_845 = arith.constant 0.000000e+00 : f32
    %865 = vector.broadcast %cst_845 : f32 to vector<16x128xf32>
    %c0_846 = arith.constant 0 : index
    %c0_847 = arith.constant 0 : index
    %866 = vector.load %arg18[%c0_846, %c0_847] : memref<16x128xf32, #tpu.memory_space<vmem>>, vector<16x128xf32>
    tpu.vector_store %arg18[%c0_846, %c0_847], %865 {strides = array<i32>} : memref<16x128xf32, #tpu.memory_space<vmem>>, vector<16x128xf32>,
    %867 = vector.extract_strided_slice %861 {offsets = [0, 0], sizes = [2, 128], strides = [1, 1]} : vector<4x128xf32> to vector<2x128xf32>
    %c5_848 = arith.constant 5 : index
    %c0_849 = arith.constant 0 : index
    %868 = vector.load %arg18[%c5_848, %c0_849] : memref<16x128xf32, #tpu.memory_space<vmem>>, vector<2x128xf32>
    tpu.vector_store %arg18[%c5_848, %c0_849], %867 {strides = array<i32>} : memref<16x128xf32, #tpu.memory_space<vmem>>, vector<2x128xf32>,
    %869 = vector.extract_strided_slice %861 {offsets = [2, 0], sizes = [2, 128], strides = [1, 1]} : vector<4x128xf32> to vector<2x128xf32>
    %c9 = arith.constant 9 : index
    %c0_850 = arith.constant 0 : index
    %870 = vector.load %arg18[%c9, %c0_850] : memref<16x128xf32, #tpu.memory_space<vmem>>, vector<2x128xf32>
    tpu.vector_store %arg18[%c9, %c0_850], %869 {strides = array<i32>} : memref<16x128xf32, #tpu.memory_space<vmem>>, vector<2x128xf32>,
    %c0_851 = arith.constant 0 : index
    %c0_852 = arith.constant 0 : index
    %871 = vector.load %arg18[%c0_851, %c0_852] : memref<16x128xf32, #tpu.memory_space<vmem>>, vector<1x128xf32>
    %872 = arith.truncf %871 : vector<1x128xf32> to vector<1x128xbf16>
    %c0_853 = arith.constant 0 : index
    %c0_854 = arith.constant 0 : index
    %c0_855 = arith.constant 0 : index
    %873 = vector.load %arg22[%c0_853, %c0_854, %c0_855] : memref<9x1x128xbf16, #tpu.memory_space<vmem>>, vector<1x1x128xbf16>
    %874 = vector.shape_cast %873 : vector<1x1x128xbf16> to vector<1x128xbf16>
    %875 = vector.shape_cast %872 : vector<1x128xbf16> to vector<1x1x128xbf16>
    tpu.vector_store %arg22[%c0_853, %c0_854, %c0_855], %875 {strides = array<i32>} : memref<9x1x128xbf16, #tpu.memory_space<vmem>>, vector<1x1x128xbf16>,
    %c1_856 = arith.constant 1 : index
    %c0_857 = arith.constant 0 : index
    %876 = vector.load %arg18[%c1_856, %c0_857] : memref<16x128xf32, #tpu.memory_space<vmem>>, vector<1x128xf32>
    %877 = arith.truncf %876 : vector<1x128xf32> to vector<1x128xbf16>
    %c1_858 = arith.constant 1 : index
    %c0_859 = arith.constant 0 : index
    %c0_860 = arith.constant 0 : index
    %878 = vector.load %arg22[%c1_858, %c0_859, %c0_860] : memref<9x1x128xbf16, #tpu.memory_space<vmem>>, vector<1x1x128xbf16>
    %879 = vector.shape_cast %878 : vector<1x1x128xbf16> to vector<1x128xbf16>
    %880 = vector.shape_cast %877 : vector<1x128xbf16> to vector<1x1x128xbf16>
    tpu.vector_store %arg22[%c1_858, %c0_859, %c0_860], %880 {strides = array<i32>} : memref<9x1x128xbf16, #tpu.memory_space<vmem>>, vector<1x1x128xbf16>,
    %c2_861 = arith.constant 2 : index
    %c0_862 = arith.constant 0 : index
    %881 = vector.load %arg18[%c2_861, %c0_862] : memref<16x128xf32, #tpu.memory_space<vmem>>, vector<1x128xf32>
    %882 = arith.truncf %881 : vector<1x128xf32> to vector<1x128xbf16>
    %c2_863 = arith.constant 2 : index
    %c0_864 = arith.constant 0 : index
    %c0_865 = arith.constant 0 : index
    %883 = vector.load %arg22[%c2_863, %c0_864, %c0_865] : memref<9x1x128xbf16, #tpu.memory_space<vmem>>, vector<1x1x128xbf16>
    %884 = vector.shape_cast %883 : vector<1x1x128xbf16> to vector<1x128xbf16>
    %885 = vector.shape_cast %882 : vector<1x128xbf16> to vector<1x1x128xbf16>
    tpu.vector_store %arg22[%c2_863, %c0_864, %c0_865], %885 {strides = array<i32>} : memref<9x1x128xbf16, #tpu.memory_space<vmem>>, vector<1x1x128xbf16>,
    %c4_866 = arith.constant 4 : index
    %c0_867 = arith.constant 0 : index
    %886 = vector.load %arg18[%c4_866, %c0_867] : memref<16x128xf32, #tpu.memory_space<vmem>>, vector<1x128xf32>
    %887 = arith.truncf %886 : vector<1x128xf32> to vector<1x128xbf16>
    %c3_868 = arith.constant 3 : index
    %c0_869 = arith.constant 0 : index
    %c0_870 = arith.constant 0 : index
    %888 = vector.load %arg22[%c3_868, %c0_869, %c0_870] : memref<9x1x128xbf16, #tpu.memory_space<vmem>>, vector<1x1x128xbf16>
    %889 = vector.shape_cast %888 : vector<1x1x128xbf16> to vector<1x128xbf16>
    %890 = vector.shape_cast %887 : vector<1x128xbf16> to vector<1x1x128xbf16>
    tpu.vector_store %arg22[%c3_868, %c0_869, %c0_870], %890 {strides = array<i32>} : memref<9x1x128xbf16, #tpu.memory_space<vmem>>, vector<1x1x128xbf16>,
    %c5_871 = arith.constant 5 : index
    %c0_872 = arith.constant 0 : index
    %891 = vector.load %arg18[%c5_871, %c0_872] : memref<16x128xf32, #tpu.memory_space<vmem>>, vector<1x128xf32>
    %892 = arith.truncf %891 : vector<1x128xf32> to vector<1x128xbf16>
    %c4_873 = arith.constant 4 : index
    %c0_874 = arith.constant 0 : index
    %c0_875 = arith.constant 0 : index
    %893 = vector.load %arg22[%c4_873, %c0_874, %c0_875] : memref<9x1x128xbf16, #tpu.memory_space<vmem>>, vector<1x1x128xbf16>
    %894 = vector.shape_cast %893 : vector<1x1x128xbf16> to vector<1x128xbf16>
    %895 = vector.shape_cast %892 : vector<1x128xbf16> to vector<1x1x128xbf16>
    tpu.vector_store %arg22[%c4_873, %c0_874, %c0_875], %895 {strides = array<i32>} : memref<9x1x128xbf16, #tpu.memory_space<vmem>>, vector<1x1x128xbf16>,
    %c6_876 = arith.constant 6 : index
    %c0_877 = arith.constant 0 : index
    %896 = vector.load %arg18[%c6_876, %c0_877] : memref<16x128xf32, #tpu.memory_space<vmem>>, vector<1x128xf32>
    %897 = arith.truncf %896 : vector<1x128xf32> to vector<1x128xbf16>
    %c5_878 = arith.constant 5 : index
    %c0_879 = arith.constant 0 : index
    %c0_880 = arith.constant 0 : index
    %898 = vector.load %arg22[%c5_878, %c0_879, %c0_880] : memref<9x1x128xbf16, #tpu.memory_space<vmem>>, vector<1x1x128xbf16>
    %899 = vector.shape_cast %898 : vector<1x1x128xbf16> to vector<1x128xbf16>
    %900 = vector.shape_cast %897 : vector<1x128xbf16> to vector<1x1x128xbf16>
    tpu.vector_store %arg22[%c5_878, %c0_879, %c0_880], %900 {strides = array<i32>} : memref<9x1x128xbf16, #tpu.memory_space<vmem>>, vector<1x1x128xbf16>,
    %c8_881 = arith.constant 8 : index
    %c0_882 = arith.constant 0 : index
    %901 = vector.load %arg18[%c8_881, %c0_882] : memref<16x128xf32, #tpu.memory_space<vmem>>, vector<1x128xf32>
    %902 = arith.truncf %901 : vector<1x128xf32> to vector<1x128xbf16>
    %c6_883 = arith.constant 6 : index
    %c0_884 = arith.constant 0 : index
    %c0_885 = arith.constant 0 : index
    %903 = vector.load %arg22[%c6_883, %c0_884, %c0_885] : memref<9x1x128xbf16, #tpu.memory_space<vmem>>, vector<1x1x128xbf16>
    %904 = vector.shape_cast %903 : vector<1x1x128xbf16> to vector<1x128xbf16>
    %905 = vector.shape_cast %902 : vector<1x128xbf16> to vector<1x1x128xbf16>
    tpu.vector_store %arg22[%c6_883, %c0_884, %c0_885], %905 {strides = array<i32>} : memref<9x1x128xbf16, #tpu.memory_space<vmem>>, vector<1x1x128xbf16>,
    %c9_886 = arith.constant 9 : index
    %c0_887 = arith.constant 0 : index
    %906 = vector.load %arg18[%c9_886, %c0_887] : memref<16x128xf32, #tpu.memory_space<vmem>>, vector<1x128xf32>
    %907 = arith.truncf %906 : vector<1x128xf32> to vector<1x128xbf16>
    %c7_888 = arith.constant 7 : index
    %c0_889 = arith.constant 0 : index
    %c0_890 = arith.constant 0 : index
    %908 = vector.load %arg22[%c7_888, %c0_889, %c0_890] : memref<9x1x128xbf16, #tpu.memory_space<vmem>>, vector<1x1x128xbf16>
    %909 = vector.shape_cast %908 : vector<1x1x128xbf16> to vector<1x128xbf16>
    %910 = vector.shape_cast %907 : vector<1x128xbf16> to vector<1x1x128xbf16>
    tpu.vector_store %arg22[%c7_888, %c0_889, %c0_890], %910 {strides = array<i32>} : memref<9x1x128xbf16, #tpu.memory_space<vmem>>, vector<1x1x128xbf16>,
    %c10_891 = arith.constant 10 : index
    %c0_892 = arith.constant 0 : index
    %911 = vector.load %arg18[%c10_891, %c0_892] : memref<16x128xf32, #tpu.memory_space<vmem>>, vector<1x128xf32>
    %912 = arith.truncf %911 : vector<1x128xf32> to vector<1x128xbf16>
    %c8_893 = arith.constant 8 : index
    %c0_894 = arith.constant 0 : index
    %c0_895 = arith.constant 0 : index
    %913 = vector.load %arg22[%c8_893, %c0_894, %c0_895] : memref<9x1x128xbf16, #tpu.memory_space<vmem>>, vector<1x1x128xbf16>
    %914 = vector.shape_cast %913 : vector<1x1x128xbf16> to vector<1x128xbf16>
    %915 = vector.shape_cast %912 : vector<1x128xbf16> to vector<1x1x128xbf16>
    tpu.vector_store %arg22[%c8_893, %c0_894, %c0_895], %915 {strides = array<i32>} : memref<9x1x128xbf16, #tpu.memory_space<vmem>>, vector<1x1x128xbf16>,
    %c0_896 = arith.constant 0 : index
    %c0_897 = arith.constant 0 : index
    %c0_898 = arith.constant 0 : index
    %916 = vector.load %arg22[%c0_896, %c0_897, %c0_898] : memref<9x1x128xbf16, #tpu.memory_space<vmem>>, vector<1x1x128xbf16>
    %917 = vector.shape_cast %916 : vector<1x1x128xbf16> to vector<1x128xbf16>
    %c0_899 = arith.constant 0 : index
    %c0_900 = arith.constant 0 : index
    %c0_901 = arith.constant 0 : index
    %918 = vector.load %arg6[%c0_899, %c0_900, %c0_901] : memref<9x128x256xbf16, #tpu.memory_space<vmem>>, vector<1x128x256xbf16>
    %919 = vector.shape_cast %918 : vector<1x128x256xbf16> to vector<128x256xbf16>
    %cst_902 = arith.constant dense<0.000000e+00> : vector<1x256xf32>
    %920 = tpu.matmul %917, %919, %cst_902 {dimension_numbers = #tpu.dot_dimension_numbers<[1], [0], [0], [1], [0, 0, 1, 1], [], []>} : vector<1x128xbf16>, vector<128x256xbf16>, vector<1x256xf32> -> vector<1x256xf32>
    %c1_903 = arith.constant 1 : index
    %c0_904 = arith.constant 0 : index
    %c0_905 = arith.constant 0 : index
    %921 = vector.load %arg22[%c1_903, %c0_904, %c0_905] : memref<9x1x128xbf16, #tpu.memory_space<vmem>>, vector<1x1x128xbf16>
    %922 = vector.shape_cast %921 : vector<1x1x128xbf16> to vector<1x128xbf16>
    %c1_906 = arith.constant 1 : index
    %c0_907 = arith.constant 0 : index
    %c0_908 = arith.constant 0 : index
    %923 = vector.load %arg6[%c1_906, %c0_907, %c0_908] : memref<9x128x256xbf16, #tpu.memory_space<vmem>>, vector<1x128x256xbf16>
    %924 = vector.shape_cast %923 : vector<1x128x256xbf16> to vector<128x256xbf16>
    %cst_909 = arith.constant dense<0.000000e+00> : vector<1x256xf32>
    %925 = tpu.matmul %922, %924, %cst_909 {dimension_numbers = #tpu.dot_dimension_numbers<[1], [0], [0], [1], [0, 0, 1, 1], [], []>} : vector<1x128xbf16>, vector<128x256xbf16>, vector<1x256xf32> -> vector<1x256xf32>
    %926 = arith.addf %920, %925 : vector<1x256xf32>
    %c2_910 = arith.constant 2 : index
    %c0_911 = arith.constant 0 : index
    %c0_912 = arith.constant 0 : index
    %927 = vector.load %arg22[%c2_910, %c0_911, %c0_912] : memref<9x1x128xbf16, #tpu.memory_space<vmem>>, vector<1x1x128xbf16>
    %928 = vector.shape_cast %927 : vector<1x1x128xbf16> to vector<1x128xbf16>
    %c2_913 = arith.constant 2 : index
    %c0_914 = arith.constant 0 : index
    %c0_915 = arith.constant 0 : index
    %929 = vector.load %arg6[%c2_913, %c0_914, %c0_915] : memref<9x128x256xbf16, #tpu.memory_space<vmem>>, vector<1x128x256xbf16>
    %930 = vector.shape_cast %929 : vector<1x128x256xbf16> to vector<128x256xbf16>
    %cst_916 = arith.constant dense<0.000000e+00> : vector<1x256xf32>
    %931 = tpu.matmul %928, %930, %cst_916 {dimension_numbers = #tpu.dot_dimension_numbers<[1], [0], [0], [1], [0, 0, 1, 1], [], []>} : vector<1x128xbf16>, vector<128x256xbf16>, vector<1x256xf32> -> vector<1x256xf32>
    %932 = arith.addf %926, %931 : vector<1x256xf32>
    %c3_917 = arith.constant 3 : index
    %c0_918 = arith.constant 0 : index
    %c0_919 = arith.constant 0 : index
    %933 = vector.load %arg22[%c3_917, %c0_918, %c0_919] : memref<9x1x128xbf16, #tpu.memory_space<vmem>>, vector<1x1x128xbf16>
    %934 = vector.shape_cast %933 : vector<1x1x128xbf16> to vector<1x128xbf16>
    %c3_920 = arith.constant 3 : index
    %c0_921 = arith.constant 0 : index
    %c0_922 = arith.constant 0 : index
    %935 = vector.load %arg6[%c3_920, %c0_921, %c0_922] : memref<9x128x256xbf16, #tpu.memory_space<vmem>>, vector<1x128x256xbf16>
    %936 = vector.shape_cast %935 : vector<1x128x256xbf16> to vector<128x256xbf16>
    %cst_923 = arith.constant dense<0.000000e+00> : vector<1x256xf32>
    %937 = tpu.matmul %934, %936, %cst_923 {dimension_numbers = #tpu.dot_dimension_numbers<[1], [0], [0], [1], [0, 0, 1, 1], [], []>} : vector<1x128xbf16>, vector<128x256xbf16>, vector<1x256xf32> -> vector<1x256xf32>
    %938 = arith.addf %932, %937 : vector<1x256xf32>
    %c4_924 = arith.constant 4 : index
    %c0_925 = arith.constant 0 : index
    %c0_926 = arith.constant 0 : index
    %939 = vector.load %arg22[%c4_924, %c0_925, %c0_926] : memref<9x1x128xbf16, #tpu.memory_space<vmem>>, vector<1x1x128xbf16>
    %940 = vector.shape_cast %939 : vector<1x1x128xbf16> to vector<1x128xbf16>
    %c4_927 = arith.constant 4 : index
    %c0_928 = arith.constant 0 : index
    %c0_929 = arith.constant 0 : index
    %941 = vector.load %arg6[%c4_927, %c0_928, %c0_929] : memref<9x128x256xbf16, #tpu.memory_space<vmem>>, vector<1x128x256xbf16>
    %942 = vector.shape_cast %941 : vector<1x128x256xbf16> to vector<128x256xbf16>
    %cst_930 = arith.constant dense<0.000000e+00> : vector<1x256xf32>
    %943 = tpu.matmul %940, %942, %cst_930 {dimension_numbers = #tpu.dot_dimension_numbers<[1], [0], [0], [1], [0, 0, 1, 1], [], []>} : vector<1x128xbf16>, vector<128x256xbf16>, vector<1x256xf32> -> vector<1x256xf32>
    %944 = arith.addf %938, %943 : vector<1x256xf32>
    %c5_931 = arith.constant 5 : index
    %c0_932 = arith.constant 0 : index
    %c0_933 = arith.constant 0 : index
    %945 = vector.load %arg22[%c5_931, %c0_932, %c0_933] : memref<9x1x128xbf16, #tpu.memory_space<vmem>>, vector<1x1x128xbf16>
    %946 = vector.shape_cast %945 : vector<1x1x128xbf16> to vector<1x128xbf16>
    %c5_934 = arith.constant 5 : index
    %c0_935 = arith.constant 0 : index
    %c0_936 = arith.constant 0 : index
    %947 = vector.load %arg6[%c5_934, %c0_935, %c0_936] : memref<9x128x256xbf16, #tpu.memory_space<vmem>>, vector<1x128x256xbf16>
    %948 = vector.shape_cast %947 : vector<1x128x256xbf16> to vector<128x256xbf16>
    %cst_937 = arith.constant dense<0.000000e+00> : vector<1x256xf32>
    %949 = tpu.matmul %946, %948, %cst_937 {dimension_numbers = #tpu.dot_dimension_numbers<[1], [0], [0], [1], [0, 0, 1, 1], [], []>} : vector<1x128xbf16>, vector<128x256xbf16>, vector<1x256xf32> -> vector<1x256xf32>
    %950 = arith.addf %944, %949 : vector<1x256xf32>
    %c6_938 = arith.constant 6 : index
    %c0_939 = arith.constant 0 : index
    %c0_940 = arith.constant 0 : index
    %951 = vector.load %arg22[%c6_938, %c0_939, %c0_940] : memref<9x1x128xbf16, #tpu.memory_space<vmem>>, vector<1x1x128xbf16>
    %952 = vector.shape_cast %951 : vector<1x1x128xbf16> to vector<1x128xbf16>
    %c6_941 = arith.constant 6 : index
    %c0_942 = arith.constant 0 : index
    %c0_943 = arith.constant 0 : index
    %953 = vector.load %arg6[%c6_941, %c0_942, %c0_943] : memref<9x128x256xbf16, #tpu.memory_space<vmem>>, vector<1x128x256xbf16>
    %954 = vector.shape_cast %953 : vector<1x128x256xbf16> to vector<128x256xbf16>
    %cst_944 = arith.constant dense<0.000000e+00> : vector<1x256xf32>
    %955 = tpu.matmul %952, %954, %cst_944 {dimension_numbers = #tpu.dot_dimension_numbers<[1], [0], [0], [1], [0, 0, 1, 1], [], []>} : vector<1x128xbf16>, vector<128x256xbf16>, vector<1x256xf32> -> vector<1x256xf32>
    %956 = arith.addf %950, %955 : vector<1x256xf32>
    %c7_945 = arith.constant 7 : index
    %c0_946 = arith.constant 0 : index
    %c0_947 = arith.constant 0 : index
    %957 = vector.load %arg22[%c7_945, %c0_946, %c0_947] : memref<9x1x128xbf16, #tpu.memory_space<vmem>>, vector<1x1x128xbf16>
    %958 = vector.shape_cast %957 : vector<1x1x128xbf16> to vector<1x128xbf16>
    %c7_948 = arith.constant 7 : index
    %c0_949 = arith.constant 0 : index
    %c0_950 = arith.constant 0 : index
    %959 = vector.load %arg6[%c7_948, %c0_949, %c0_950] : memref<9x128x256xbf16, #tpu.memory_space<vmem>>, vector<1x128x256xbf16>
    %960 = vector.shape_cast %959 : vector<1x128x256xbf16> to vector<128x256xbf16>
    %cst_951 = arith.constant dense<0.000000e+00> : vector<1x256xf32>
    %961 = tpu.matmul %958, %960, %cst_951 {dimension_numbers = #tpu.dot_dimension_numbers<[1], [0], [0], [1], [0, 0, 1, 1], [], []>} : vector<1x128xbf16>, vector<128x256xbf16>, vector<1x256xf32> -> vector<1x256xf32>
    %962 = arith.addf %956, %961 : vector<1x256xf32>
    %c8_952 = arith.constant 8 : index
    %c0_953 = arith.constant 0 : index
    %c0_954 = arith.constant 0 : index
    %963 = vector.load %arg22[%c8_952, %c0_953, %c0_954] : memref<9x1x128xbf16, #tpu.memory_space<vmem>>, vector<1x1x128xbf16>
    %964 = vector.shape_cast %963 : vector<1x1x128xbf16> to vector<1x128xbf16>
    %c8_955 = arith.constant 8 : index
    %c0_956 = arith.constant 0 : index
    %c0_957 = arith.constant 0 : index
    %965 = vector.load %arg6[%c8_955, %c0_956, %c0_957] : memref<9x128x256xbf16, #tpu.memory_space<vmem>>, vector<1x128x256xbf16>
    %966 = vector.shape_cast %965 : vector<1x128x256xbf16> to vector<128x256xbf16>
    %cst_958 = arith.constant dense<0.000000e+00> : vector<1x256xf32>
    %967 = tpu.matmul %964, %966, %cst_958 {dimension_numbers = #tpu.dot_dimension_numbers<[1], [0], [0], [1], [0, 0, 1, 1], [], []>} : vector<1x128xbf16>, vector<128x256xbf16>, vector<1x256xf32> -> vector<1x256xf32>
    %968 = arith.addf %962, %967 : vector<1x256xf32>
    %c0_959 = arith.constant 0 : index
    %c0_960 = arith.constant 0 : index
    %969 = vector.load %arg11[%c0_959, %c0_960] : memref<1x256xf32, #tpu.memory_space<vmem>>, vector<1x256xf32>
    %970 = arith.addf %968, %969 : vector<1x256xf32>
    %cst_961 = arith.constant 0.000000e+00 : f32
    %971 = vector.broadcast %cst_961 : f32 to vector<1x256xf32>
    %972 = arith.maximumf %970, %971 : vector<1x256xf32>
    %c0_962 = arith.constant 0 : index
    %c0_963 = arith.constant 0 : index
    %c0_964 = arith.constant 0 : index
    %973 = vector.load %arg14[%c0_962, %c0_963, %c0_964] : memref<1x1x256xf32, #tpu.memory_space<vmem>>, vector<1x1x256xf32>
    %974 = vector.shape_cast %973 : vector<1x1x256xf32> to vector<1x256xf32>
    %975 = vector.shape_cast %972 : vector<1x256xf32> to vector<1x1x256xf32>
    tpu.vector_store %arg14[%c0_962, %c0_963, %c0_964], %975 {strides = array<i32>} : memref<1x1x256xf32, #tpu.memory_space<vmem>>, vector<1x1x256xf32>,
    return
  }
  func.func @transform_0(%arg0: i32) -> (i32, i32, i32) {
    %c0_i32 = arith.constant 0 : i32
    %c0_i32_0 = arith.constant 0 : i32
    %c0_i32_1 = arith.constant 0 : i32
    return %arg0, %c0_i32, %c0_i32_0 : i32, i32, i32
  }
  func.func @transform_1(%arg0: i32) -> (i32, i32) {
    %c0_i32 = arith.constant 0 : i32
    %c0_i32_0 = arith.constant 0 : i32
    %c0_i32_1 = arith.constant 0 : i32
    return %c0_i32, %c0_i32_0 : i32, i32
  }
  func.func @transform_2(%arg0: i32) -> (i32, i32, i32) {
    %c0_i32 = arith.constant 0 : i32
    %c0_i32_0 = arith.constant 0 : i32
    %c0_i32_1 = arith.constant 0 : i32
    %c0_i32_2 = arith.constant 0 : i32
    return %c0_i32, %c0_i32_0, %c0_i32_1 : i32, i32, i32
  }
  func.func @transform_3(%arg0: i32) -> (i32, i32, i32) {
    %c0_i32 = arith.constant 0 : i32
    %c0_i32_0 = arith.constant 0 : i32
    %c0_i32_1 = arith.constant 0 : i32
    %c0_i32_2 = arith.constant 0 : i32
    return %c0_i32, %c0_i32_0, %c0_i32_1 : i32, i32, i32
  }
  func.func @transform_4(%arg0: i32) -> (i32, i32, i32) {
    %c0_i32 = arith.constant 0 : i32
    %c0_i32_0 = arith.constant 0 : i32
    %c0_i32_1 = arith.constant 0 : i32
    %c0_i32_2 = arith.constant 0 : i32
    return %c0_i32, %c0_i32_0, %c0_i32_1 : i32, i32, i32
  }
  func.func @transform_5(%arg0: i32) -> (i32, i32, i32) {
    %c0_i32 = arith.constant 0 : i32
    %c0_i32_0 = arith.constant 0 : i32
    %c0_i32_1 = arith.constant 0 : i32
    %c0_i32_2 = arith.constant 0 : i32
    return %c0_i32, %c0_i32_0, %c0_i32_1 : i32, i32, i32
  }
  func.func @transform_6(%arg0: i32) -> (i32, i32) {
    %c0_i32 = arith.constant 0 : i32
    %c0_i32_0 = arith.constant 0 : i32
    %c0_i32_1 = arith.constant 0 : i32
    return %c0_i32, %c0_i32_0 : i32, i32
  }
  func.func @transform_7(%arg0: i32) -> (i32, i32) {
    %c0_i32 = arith.constant 0 : i32
    %c0_i32_0 = arith.constant 0 : i32
    %c0_i32_1 = arith.constant 0 : i32
    return %c0_i32, %c0_i32_0 : i32, i32
  }
  func.func @transform_8(%arg0: i32) -> (i32, i32) {
    %c0_i32 = arith.constant 0 : i32
    %c0_i32_0 = arith.constant 0 : i32
    %c0_i32_1 = arith.constant 0 : i32
    return %c0_i32, %c0_i32_0 : i32, i32
  }
  func.func @transform_9(%arg0: i32) -> (i32, i32) {
    %c0_i32 = arith.constant 0 : i32
    %c0_i32_0 = arith.constant 0 : i32
    %c0_i32_1 = arith.constant 0 : i32
    return %c0_i32, %c0_i32_0 : i32, i32
  }
  func.func @transform_10(%arg0: i32) -> (i32, i32) {
    %c0_i32 = arith.constant 0 : i32
    %c0_i32_0 = arith.constant 0 : i32
    %c0_i32_1 = arith.constant 0 : i32
    return %c0_i32, %c0_i32_0 : i32, i32
  }
  func.func @transform_11(%arg0: i32) -> (i32, i32, i32) {
    %c0_i32 = arith.constant 0 : i32
    %c0_i32_0 = arith.constant 0 : i32
    %c0_i32_1 = arith.constant 0 : i32
    return %arg0, %c0_i32, %c0_i32_0 : i32, i32, i32
  }
  func.func @transform_12(%arg0: i32) -> (i32, i32, i32) {
    %c0_i32 = arith.constant 0 : i32
    %c0_i32_0 = arith.constant 0 : i32
    %c0_i32_1 = arith.constant 0 : i32
    return %arg0, %c0_i32, %c0_i32_0 : i32, i32, i32
  }
  func.func @transform_13(%arg0: i32) -> (i32, i32, i32) {
    %c0_i32 = arith.constant 0 : i32
    %c0_i32_0 = arith.constant 0 : i32
    %c0_i32_1 = arith.constant 0 : i32
    return %arg0, %c0_i32, %c0_i32_0 : i32, i32, i32
  }
}

</mosaic_0001>

<bundles_post_ra>
// kernel: _fused_backbone_forward.1
= control target key start
LH: loop header
LB: loop body
LE: loop exit
PB: predicated region body
PF: predicated region fallthrough
CT: control target
= control target key end

     0   :  { %s7736_s0 = inlined_call_operand.vmem [shape: bf16[2,64,27], index: 0, kind: input, shape index: {}]   ;;  %s7737_s1 = inlined_call_operand.vmem [shape: bf16[27,16], index: 1, kind: input, shape index: {}]   ;;  %s7738_s2 = inlined_call_operand.vmem [shape: bf16[9,16,32], index: 2, kind: input, shape index: {}]   ;;  %s7739_s3 = inlined_call_operand.vmem [shape: bf16[9,32,64], index: 3, kind: input, shape index: {}]   ;;  %s7740_s4 = inlined_call_operand.vmem [shape: bf16[9,64,128], index: 4, kind: input, shape index: {}]   ;;  %s7741_s5 = inlined_call_operand.vmem [shape: bf16[9,128,256], index: 5, kind: input, shape index: {}]   ;;  %s7742_s6 = inlined_call_operand.vmem [shape: f32[1,16], index: 6, kind: input, shape index: {}]   ;;  %s7743_s7 = inlined_call_operand.vmem [shape: f32[1,32], index: 7, kind: input, shape index: {}]   ;;  %s7744_s8 = inlined_call_operand.vmem [shape: f32[1,64], index: 8, kind: input, shape index: {}]   ;;  %s7745_s9 = inlined_call_operand.vmem [shape: f32[1,128], index: 9, kind: input, shape index: {}]   ;;  %s7746_s10 = inlined_call_operand.vmem [shape: f32[1,256], index: 10, kind: input, shape index: {}]   ;;  %s7747_s11 = inlined_call_operand.hbm [shape: f32[2,16,64], index: 11, kind: output, shape index: {0}]   ;;  %s7748_s12 = inlined_call_operand.hbm [shape: f32[2,4,128], index: 12, kind: output, shape index: {1}]   ;;  %s7749_s13 = inlined_call_operand.hbm [shape: f32[2,1,256], index: 13, kind: output, shape index: {2}]  }
   0x1   :  { %7751 = sst [smem:[#allocation17_spill]] %s7736_s0 }
   0x2   :  { %7752 = sst [smem:[#allocation18_spill]] %s7737_s1 }
   0x3   :  { %7753 = sst [smem:[#allocation19_spill]] %s7738_s2 }
   0x4   :  { %7754 = sst [smem:[#allocation20_spill]] %s7739_s3 }
   0x5   :  { %7755 = sst [smem:[#allocation21_spill]] %s7740_s4 }
   0x6   :  { %7756 = sst [smem:[#allocation22_spill]] %s7741_s5 }
   0x7   :  { %7757 = sst [smem:[#allocation23_spill]] %s7742_s6 }
   0x8   :  { %7758 = sst [smem:[#allocation24_spill]] %s7743_s7 }
   0x9   :  { %7759 = sst [smem:[#allocation25_spill]] %s7744_s8 }
   0xa   :  { %19 = vsyncpa [#allocation11], 0 }
   0xb   :  { %21 = vsyncpa [#allocation11 + $0x1], 0 }
   0xc   :  { %22 = vsyncpa [#allocation13], 0 }
   0xd   :  { %24 = vsyncpa [#allocation13 + $0x1], 0  ;;  %s6078_s25 = smov 0   ;;  %s6080_s26 = smov 0  }
   0xe   :  { %s6082_s27 = smov 0   ;;  %s6084_s28 = smov 0  }
   0xf LB: > { %s6099_s29 = sadd.s32 4294967295, %s6002_s28   ;;  %s7750_s30 = sadd.s32 4294967294, %s6002_s28   ;;  %s6002_s28 = sphi %s6084_s28, %s7777_s28   ;;  %s5998_s27 = sphi %s6082_s27, %s7776_s27   ;;  %s5994_s26 = sphi %s6080_s26, %s7775_s26   ;;  %s5990_s25 = sphi %s6078_s25, %s7774_s25  }
  0x10   : > { %s6103_s14 = sadd.s32 1, %s6002_s28   ;;  %s273_s15 = sadd.s32 1, %s5998_s27 }
  0x11   : > { %s270_s16 = ssub.s32 %s6002_s28, %s6103_s14  ;;  %p283_p0 = scmp.ne.s32.totalorder %s5998_s27, %s5994_s26 }
  0x12   : > { %p271_p1 = scmp.eq.s32.totalorder %s270_s16, 0  ;;  %p284_p2 = scmp.eq.s32.totalorder %s6099_s29, 1 }
  0x13   : > { %p289_p3 = scmp.ne.s32.totalorder %s5994_s26, %s5990_s25  ;;  %p290_p4 = scmp.eq.s32.totalorder %s7750_s30, 1 }
  0x14   : > { %s6116_s17 = scalar_select %p271_p1, %s5998_s27, %s273_s15  }
  0x15   : > { %p6118_p5 = por %p284_p2, %p283_p0  ;;  %p6122_p6 = por %p290_p4, %p289_p3 }
  0x16   : > { %p4217_p7 = scmp.ge.s32.totalorder %s6002_s28, 1  ;;  %p398_p8 = scmp.lt.s32.totalorder %s6002_s28, 3 }
  0x18   : > { %p399_p9 = pnand %p4217_p7, %p398_p8 }
  0x19   : > { %s7762_s1 = sld [smem:[#allocation18_spill]] (!%p399_p9)  ;;  %p452_p10 = scmp.lt.s32.totalorder (!%p399_p9), %s6099_s29, 1 }
  0x1a   : > { %402 = sbr.rel (%p399_p9) target bundleno = 1113 (0x459), region = 64  ;;  %s7763_s0 = sld [smem:[#allocation17_spill]] (!%p399_p9) }
  0x1b   : > { %s7764_s2 = sld [smem:[#allocation19_spill]] (!%p399_p9) }
  0x1c   : > { %s7765_s6 = sld [smem:[#allocation23_spill]] (!%p399_p9) }
  0x1d   : > { %s7766_s3 = sld [smem:[#allocation20_spill]] (!%p399_p9) }
  0x1e   : > { %s7767_s7 = sld [smem:[#allocation24_spill]] (!%p399_p9) }
  0x1f   : > { %v4245_v0 = vld [vmem:[%s7762_s1 + $0x8] sm:$0xf]  ;;  %v5568_v1 = vld [vmem:[%s7762_s1 + $0x8] sm:$0x30]  ;;  %vm518_vm0 = vcmask 1044480   ;;  %vm519_vm1 = vcmask 1045504  }
  0x20   : > { %v4246_v2 = vor.u32 %v5568_v1, %v4245_v0  ;;  %v6004_v3 = vmov 65535   ;;  %s453_s24 = scalar_select %p452_p10, %s6099_s29, 1  ;;  %v5567_v7 = vld [vmem:[%s7762_s1] sm:$0xff]  ;;  %vm505_vm2 = vcmask 220160   ;;  %vm562_vm3 = vcmask 130048  }
  0x21   : > { %v520_v4 = vsel %vm518_vm0, 4294967295, %v6004_v3  ;;  %v6005_v12 = vmov 0.0   ;;  %vm575_vm4 = vcmask 125952   ;;  %v5578_v19 = vld [vmem:[%s7764_s2 + $0x8] sm:$0xff]  ;;  %v5573_v20 = vld [vmem:[%s7764_s2] sm:$0xff]  ;;  %v5583_v21 = vld [vmem:[%s7764_s2 + $0x10] sm:$0xff] }
  0x22   : > { %v521_v5 = vsel %vm519_vm1, %v520_v4, 0  ;;  %s5562_s15 = sshll.u32 %s453_s24, 5  ;;  %564 = vst.msk [vmem:[#allocation2 + $0x8] sm:$0xff] %vm562_vm3, %v6005_v12  ;;  %875 = vmatpush.bf16.msra.mxu1 %v5578_v19  ;;  %942 = vmatpush.bf16.msra.mxu2 %v5573_v20  ;;  %v6185_v22 = vld [vmem:[%s7765_s6] ss:$0 sm:$0xff]  ;;  %v5588_v26 = vld [vmem:[%s7764_s2 + $0x18] sm:$0xff] }
  0x23   : > { %v523_v6 = vand.u32 %v4246_v2, %v521_v5  ;;  %s456_s22 = scalar_lea.vmem %s7763_s0, %s5562_s15  ;;  %565 = vst.msk [vmem:[#allocation2 + $0x10] sm:$0xff] %vm562_vm3, %v6005_v12  ;;  %1020 = vmatpush.bf16.msra.mxu3 %v5583_v21  ;;  %v5593_v25 = vld [vmem:[%s7764_s2 + $0x20] sm:$0xff]  ;;  %v5603_v28 = vld [vmem:[%s7764_s2 + $0x30] sm:$0xff]  ;;  %vm1586_vm5 = vcmask 261120   ;;  %vm1611_vm6 = vcmask 254976   ;;  %vm1619_vm7 = vcmask 257026  }
  0x24   : > { %v5563_v8 = vld [vmem:[%s456_s22] sm:$0xff]  ;;  %v5564_v9 = vld [vmem:[%s456_s22 + $0x8] sm:$0xff]  ;;  %v5565_v10 = vld [vmem:[%s456_s22 + $0x10] sm:$0xff]  ;;  %563 = vst.msk [vmem:[#allocation2] sm:$0xff] %vm562_vm3, %v6005_v12  ;;  %s7768_s4 = sld [smem:[#allocation21_spill]]  ;;  %vm2197_vm8 = vcmask 523264  }
  0x25   : > { %531 = vmatpush.bf16.msra.mxu0 %v523_v6  ;;  %v5566_v11 = vld [vmem:[%s456_s22 + $0x18] sm:$0xff]  ;;  %566 = vst.msk [vmem:[#allocation2 + $0x18] sm:$0xff] %vm562_vm3, %v6005_v12  ;;  %vm2204_vm9 = vcmask 519168   ;;  %s7769_s8 = sld [smem:[#allocation25_spill]]  ;;  %vm2213_vm10 = vcmask 516096   ;;  %s6624_s24 = sand.u32 1, %s5994_s26  }
  0x26   : > { %567 = vst.msk [vmem:[#allocation2 + $0x20] sm:$0xff] %vm562_vm3, %v6005_v12  ;;  %1192 = vmatpush.bf16.msrb.mxu2 %v5593_v25  ;;  %1106 = vmatpush.bf16.msrb.mxu1 %v5588_v26  ;;  %s4218_s22 = sshll.u32 %s6624_s24, 4  ;;  %vm2207_vm11 = vcmask 523268   ;;  %vm2220_vm12 = vcmask 1041408   ;;  %vm2227_vm13 = vcmask 517121   ;;  %s7770_s5 = sld [smem:[#allocation22_spill]] }
  0x27   : > { %568 = vst.msk [vmem:[#allocation2 + $0x28] sm:$0xff] %vm562_vm3, %v6005_v12  ;;  %s6668_s30 = scalar_lea.vmem [#allocation10], %s4218_s22  ;;  %vm2831_vm14 = vcmask 1040384   ;;  %vm2832_vm15 = vsmask.f32 256  ;;  %s4219_s21 = sshll.u32 %s6624_s24, 2 }
  0x28   : > { %569 = vst.msk [vmem:[#allocation2 + $0x30] sm:$0xff] %vm562_vm3, %v6005_v12  ;;  %vm6980_vm0 = vmand %vm2831_vm14, %vm2832_vm15  ;;  %s7566_s6 = scalar_lea.vmem [#allocation12], %s4219_s21  ;;  %s4040_s22 = sand.u32 1, %s6099_s29  }
  0x29   : > { %532 = vmatpush.bf16.msra.mxu0 %v5567_v7  ;;  %570 = vst.msk [vmem:[#allocation2 + $0x38] sm:$0xff] %vm562_vm3, %v6005_v12  ;;  %s4075_s21 = sshll.u32 %s7566_s6, 4  ;;  %s7666_s15 = scalar_lea.sflag [#allocation13], %s4040_s22  ;;  %s4076_s21 = int_to_ptr.vmem [resolvable:$true] %s4075_s21 }
  0x2a   : > { %571 = vst.msk [vmem:[#allocation2 + $0x40] sm:$0xff] %vm562_vm3, %v6005_v12 }
  0x2b   : > { %572 = vst.msk [vmem:[#allocation2 + $0x48] sm:$0xff] %vm562_vm3, %v6005_v12  ;;  %v609_v13 = vld [vmem:[#allocation2 + $0x1] sm:$0xff] }
  0x2c   : > { %4247 = vmatmul.msk.bf16.vlgmr.msra.gmra.mxu0 %vm505_vm2, %v5563_v8  ;;  %573 = vst.msk [vmem:[#allocation2 + $0x50] sm:$0xff] %vm562_vm3, %v6005_v12  ;;  %v610_v14 = vpack.c.bf16 %v609_v13, %v609_v13  ;;  %v585_v15 = vld [vmem:[#allocation2] sm:$0xff] }
  0x2d   : > { %574 = vst.msk [vmem:[#allocation2 + $0x58] sm:$0xff] %vm562_vm3, %v6005_v12  ;;  %v586_v16 = vpack.c.bf16 %v585_v15, %v585_v15  ;;  %v634_v17 = vld [vmem:[#allocation2 + $0x2] sm:$0xff]  ;;  %1364 = vmatpush.bf16.msrb.mxu0 %v5603_v28 }
  0x2e   : > { %2825 = vst [vmem:[#allocation5] sm:$0xff] %v6005_v12  ;;  %v635_v18 = vpack.c.bf16 %v634_v17, %v634_v17 }
  0x2f   : > { %2826 = vst [vmem:[#allocation5 + $0x8] sm:$0xff] %v6005_v12 }
  0x30   : > { %576 = vst.msk [vmem:[#allocation2 + $0x60] sm:$0xf] %vm575_vm4, %v6005_v12 }
  0x31   : > { %612 = vst.msk [vmem:[#allocation6 + $0x20] sm:$0xf] %vm575_vm4, %v610_v14 }
  0x32   : > { %587 = vst.msk [vmem:[#allocation6] sm:$0xf] %vm575_vm4, %v586_v16 }
  0x33   : > { %637 = vst.msk [vmem:[#allocation6 + $0x40] sm:$0xf] %vm575_vm4, %v635_v18  ;;  %v5598_v18 = vld [vmem:[%s7764_s2 + $0x28] sm:$0xff] }
  0x34   : > { %1278 = vmatpush.bf16.msrb.mxu3 %v5598_v18  ;;  %1587 = vst.msk [vmem:[#allocation3] sm:$0xff] %vm1586_vm5, %v6005_v12 }
  0x35   : > { %1588 = vst.msk [vmem:[#allocation3 + $0x8] sm:$0xff] %vm1586_vm5, %v6005_v12 }
  0x36   : > { %1589 = vst.msk [vmem:[#allocation3 + $0x10] sm:$0xff] %vm1586_vm5, %v6005_v12 }
  0x37   : > { %1590 = vst.msk [vmem:[#allocation3 + $0x18] sm:$0xff] %vm1586_vm5, %v6005_v12 }
  0x38   : > { %1591 = vst.msk [vmem:[#allocation3 + $0x20] sm:$0xff] %vm1586_vm5, %v6005_v12 }
  0x39   : > { %1592 = vst.msk [vmem:[#allocation3 + $0x28] sm:$0xff] %vm1586_vm5, %v6005_v12 }
  0x3a   : > { %1593 = vst.msk [vmem:[#allocation3 + $0x30] sm:$0xff] %vm1586_vm5, %v6005_v12 }
  0x3b   : > { %1594 = vst.msk [vmem:[#allocation3 + $0x38] sm:$0xff] %vm1586_vm5, %v6005_v12 }
  0x3c   : > { %4248 = vmatmul.msk.bf16.gmra.mxu0 %vm505_vm2, %v5564_v9  ;;  %1595 = vst.msk [vmem:[#allocation3 + $0x40] sm:$0xff] %vm1586_vm5, %v6005_v12 }
  0x3d   : > { %1596 = vst.msk [vmem:[#allocation3 + $0x48] sm:$0xff] %vm1586_vm5, %v6005_v12 }
  0x3e   : > { %1597 = vst.msk [vmem:[#allocation3 + $0x50] sm:$0xff] %vm1586_vm5, %v6005_v12 }
  0x3f   : > { %1598 = vst.msk [vmem:[#allocation3 + $0x58] sm:$0xff] %vm1586_vm5, %v6005_v12  ;;  %v6450_v12 = vld [vmem:[%s7767_s7] ss:$0 sm:$0xff]  ;;  %s5900_s7 = scalar_lea.hbm %s7748_s12, 8 }
  0x4c   : > { %4249 = vmatmul.msk.bf16.gmra.mxu0 %vm505_vm2, %v5565_v10 }
  0x5c   : > { %4250 = vmatmul.msk.bf16.gmra.mxu0 %vm505_vm2, %v5566_v11 }
  0xa9   : > { %v534_v23 = vpop.f32.mrf.mxu0 }
  0xaa   : > { %v535_v24 = vadd.f32 %v6185_v22, %v534_v23 }
  0xac   : > { %v554_v27 = vmax.f32 %v535_v24, 0.0 }
  0xae   : > { %577 = vst.msk [vmem:[#allocation2 + $0xb] sm:$0xff] %vm562_vm3, %v554_v27 }
  0xb1   : > { %v536_v29 = vpop.f32.mrf.mxu0 }
  0xb2   : > { %v537_v30 = vadd.f32 %v6185_v22, %v536_v29 }
  0xb4   : > { %v555_v31 = vmax.f32 %v537_v30, 0.0 }
  0xb5   : > { %v659_v32 = vld [vmem:[#allocation2 + $0xa] sm:$0xff] }
  0xb6   : > { %v684_v33 = vld [vmem:[#allocation2 + $0xb] sm:$0xff]  ;;  %v660_v35 = vpack.c.bf16 %v659_v32, %v659_v32  ;;  %578 = vst.msk [vmem:[#allocation2 + $0x15] sm:$0xff] %vm562_vm3, %v555_v31  ;;  %v756_v32 = vld [vmem:[#allocation2 + $0x5a] sm:$0xff] }
  0xb7   : > { %v709_v34 = vld [vmem:[#allocation2 + $0xc] sm:$0xff]  ;;  %v685_v36 = vpack.c.bf16 %v684_v33, %v684_v33 }
  0xb8   : > { %v710_v37 = vpack.c.bf16 %v709_v34, %v709_v34  ;;  %662 = vst.msk [vmem:[#allocation6 + $0x60] sm:$0xf] %vm575_vm4, %v660_v35 }
  0xb9   : > { %687 = vst.msk [vmem:[#allocation6 + $0x80] sm:$0xf] %vm575_vm4, %v685_v36  ;;  %v539_v38 = vpop.f32.mrf.mxu0 }
  0xba   : > { %712 = vst.msk [vmem:[#allocation6 + $0xa0] sm:$0xf] %vm575_vm4, %v710_v37  ;;  %v540_v39 = vadd.f32 %v6185_v22, %v539_v38 }
  0xbb   : > { %615 = vst.msk [vmem:[#allocation6 + $0x24] sm:$0xf] %vm575_vm4, %v685_v36  ;;  %v757_v36 = vpack.c.bf16 %v756_v32, %v756_v32 }
  0xbc   : > { %v556_v40 = vmax.f32 %v540_v39, 0.0  ;;  %590 = vst.msk [vmem:[#allocation6 + $0x4] sm:$0xf] %vm575_vm4, %v660_v35 }
  0xbd   : > { %v663_v41 = vld [vmem:[#allocation2 + $0x14] sm:$0xff]  ;;  %640 = vst.msk [vmem:[#allocation6 + $0x44] sm:$0xf] %vm575_vm4, %v710_v37 }
  0xbe   : > { %v688_v42 = vld [vmem:[#allocation2 + $0x15] sm:$0xff]  ;;  %579 = vst.msk [vmem:[#allocation2 + $0x1f] sm:$0xff] %vm562_vm3, %v556_v40  ;;  %v592_v46 = vpack.c.bf16 %v663_v41, %v663_v41 }
  0xbf   : > { %v713_v43 = vld [vmem:[#allocation2 + $0x16] sm:$0xff]  ;;  %v760_v44 = vpack.c.bf16 %v688_v42, %v688_v42  ;;  %758 = vst.msk [vmem:[#allocation6 + $0xdc] sm:$0xf] %vm575_vm4, %v757_v36 }
  0xc0   : > { %v785_v45 = vpack.c.bf16 %v713_v43, %v713_v43  ;;  %593 = vst.msk [vmem:[#allocation6 + $0x8] sm:$0xf] %vm575_vm4, %v592_v46  ;;  %v5613_v43 = vld [vmem:[%s7764_s2 + $0x40] sm:$0xff] }
  0xc1   : > { %762 = vst.msk [vmem:[#allocation6 + $0xe0] sm:$0xf] %vm575_vm4, %v760_v44  ;;  %v541_v47 = vpop.f32.mrf.mxu0 }
  0xc2   : > { %787 = vst.msk [vmem:[#allocation6 + $0x100] sm:$0xf] %vm575_vm4, %v785_v45  ;;  %v542_v48 = vadd.f32 %v6185_v22, %v541_v47  ;;  %v5574_v49 = vld [vmem:[#allocation6 + $0x20] sm:$0xff] }
  0xc3   : > { %618 = vst.msk [vmem:[#allocation6 + $0x28] sm:$0xf] %vm575_vm4, %v760_v44  ;;  %v5569_v50 = vld [vmem:[#allocation6] sm:$0xff]  ;;  %4273 = vmatmul.msk.bf16.vlgmr.msra.gmra.mxu1 %vm562_vm3, %v5574_v49 }
  0xc4   : > { %v557_v51 = vmax.f32 %v542_v48, 0.0  ;;  %v5579_v52 = vld [vmem:[#allocation6 + $0x40] sm:$0xff]  ;;  %643 = vst.msk [vmem:[#allocation6 + $0x48] sm:$0xf] %vm575_vm4, %v785_v45  ;;  %4297 = vmatmul.msk.bf16.vlgmr.msra.gmra.mxu2 %vm562_vm3, %v5569_v50 }
  0xc5   : > { %v738_v53 = vld [vmem:[#allocation2 + $0x1e] sm:$0xff]  ;;  %737 = vst.msk [vmem:[#allocation6 + $0xc0] sm:$0xf] %vm575_vm4, %v592_v46  ;;  %4323 = vmatmul.msk.bf16.vlgmr.msra.gmra.mxu3 %vm562_vm3, %v5579_v52  ;;  %1536 = vmatpush.bf16.msra.mxu2 %v5613_v43 }
  0xc6   : > { %v763_v54 = vld [vmem:[#allocation2 + $0x1f] sm:$0xff]  ;;  %v739_v56 = vpack.c.bf16 %v738_v53, %v738_v53  ;;  %580 = vst.msk [vmem:[#allocation2 + $0x29] sm:$0xff] %vm562_vm3, %v557_v51 }
  0xc7   : > { %v788_v55 = vld [vmem:[#allocation2 + $0x20] sm:$0xff]  ;;  %v764_v57 = vpack.c.bf16 %v763_v54, %v763_v54  ;;  %665 = vst.msk [vmem:[#allocation6 + $0x64] sm:$0xf] %vm575_vm4, %v592_v46 }
  0xc8   : > { %v6217_v58 = vpack.c.bf16 %v788_v55, %v788_v55  ;;  %740 = vst.msk [vmem:[#allocation6 + $0xc4] sm:$0xf] %vm575_vm4, %v739_v56  ;;  %v781_v55 = vld [vmem:[#allocation2 + $0x5b] sm:$0xff] }
  0xc9   : > { %765 = vst.msk [vmem:[#allocation6 + $0xe4] sm:$0xf] %vm575_vm4, %v764_v57  ;;  %v544_v59 = vpop.f32.mrf.mxu0 }
  0xca   : > { %790 = vst.msk [vmem:[#allocation6 + $0x104] sm:$0xf] %vm575_vm4, %v6217_v58  ;;  %v545_v60 = vadd.f32 %v6185_v22, %v544_v59 }
  0xcb   : > { %621 = vst.msk [vmem:[#allocation6 + $0x2c] sm:$0xf] %vm575_vm4, %v764_v57 }
  0xcc   : > { %v558_v61 = vmax.f32 %v545_v60, 0.0  ;;  %596 = vst.msk [vmem:[#allocation6 + $0xc] sm:$0xf] %vm575_vm4, %v739_v56 }
  0xcd   : > { %646 = vst.msk [vmem:[#allocation6 + $0x4c] sm:$0xf] %vm575_vm4, %v6217_v58  ;;  %v622_v62 = vld [vmem:[#allocation2 + $0x29] sm:$0xff] }
  0xce   : > { %v597_v63 = vld [vmem:[#allocation2 + $0x28] sm:$0xff]  ;;  %581 = vst.msk [vmem:[#allocation2 + $0x33] sm:$0xff] %vm562_vm3, %v558_v61  ;;  %v6232_v1 = vpack.c.bf16 %v622_v62, %v622_v62 }
  0xcf   : > { %v647_v0 = vld [vmem:[#allocation2 + $0x2a] sm:$0xff]  ;;  %v598_v2 = vpack.c.bf16 %v597_v63, %v597_v63  ;;  %690 = vst.msk [vmem:[#allocation6 + $0x84] sm:$0xf] %vm575_vm4, %v760_v44  ;;  %v5608_v44 = vld [vmem:[%s7764_s2 + $0x38] sm:$0xff] }
  0xd0   : > { %v6234_v3 = vpack.c.bf16 %v647_v0, %v647_v0  ;;  %624 = vst.msk [vmem:[#allocation6 + $0x30] sm:$0xf] %vm575_vm4, %v6232_v1  ;;  %v5599_v5 = vld [vmem:[#allocation6 + $0xc0] sm:$0xff]  ;;  %1450 = vmatpush.bf16.msra.mxu1 %v5608_v44 }
  0xd1   : > { %v546_v4 = vpop.f32.mrf.mxu0  ;;  %599 = vst.msk [vmem:[#allocation6 + $0x10] sm:$0xf] %vm575_vm4, %v598_v2  ;;  %4427 = vmatmul.msk.bf16.vlgmr.msrb.gmra.mxu0 %vm562_vm3, %v5599_v5  ;;  %v5584_v59 = vld [vmem:[#allocation6 + $0x60] sm:$0xff] }
  0xd2   : > { %v547_v6 = vadd.f32 %v6185_v22, %v546_v4  ;;  %v5575_v7 = vld [vmem:[#allocation6 + $0x28] sm:$0xff]  ;;  %649 = vst.msk [vmem:[#allocation6 + $0x50] sm:$0xf] %vm575_vm4, %v6234_v3 }
  0xd3   : > { %v5570_v8 = vld [vmem:[#allocation6 + $0x8] sm:$0xff]  ;;  %743 = vst.msk [vmem:[#allocation6 + $0xc8] sm:$0xf] %vm575_vm4, %v598_v2  ;;  %4274 = vmatmul.msk.bf16.gmra.mxu1 %vm562_vm3, %v5575_v7 }
  0xd4   : > { %v559_v9 = vmax.f32 %v547_v6, 0.0  ;;  %v5580_v10 = vld [vmem:[#allocation6 + $0x48] sm:$0xff]  ;;  %715 = vst.msk [vmem:[#allocation6 + $0xa4] sm:$0xf] %vm575_vm4, %v785_v45  ;;  %4298 = vmatmul.msk.bf16.gmra.mxu2 %vm562_vm3, %v5570_v8 }
  0xd5   : > { %v625_v11 = vld [vmem:[#allocation2 + $0x33] sm:$0xff]  ;;  %668 = vst.msk [vmem:[#allocation6 + $0x68] sm:$0xf] %vm575_vm4, %v739_v56  ;;  %4324 = vmatmul.msk.bf16.gmra.mxu3 %vm562_vm3, %v5580_v10  ;;  %v806_v56 = vld [vmem:[#allocation2 + $0x5c] sm:$0xff]  ;;  %v5609_v10 = vld [vmem:[#allocation6 + $0x100] sm:$0xff] }
  0xd6   : > { %v600_v13 = vld [vmem:[#allocation2 + $0x32] sm:$0xff]  ;;  %582 = vst.msk [vmem:[#allocation2 + $0x3d] sm:$0xff] %vm562_vm3, %v559_v9  ;;  %v6251_v15 = vpack.c.bf16 %v625_v11, %v625_v11  ;;  %v5589_v61 = vld [vmem:[#allocation6 + $0x80] sm:$0xff] }
  0xd7   : > { %v650_v14 = vld [vmem:[#allocation2 + $0x34] sm:$0xff]  ;;  %v601_v16 = vpack.c.bf16 %v600_v13, %v600_v13  ;;  %671 = vst.msk [vmem:[#allocation6 + $0x6c] sm:$0xf] %vm575_vm4, %v598_v2  ;;  %v5604_v9 = vld [vmem:[#allocation6 + $0xe0] sm:$0xff] }
  0xd8   : > { %v6253_v17 = vpack.c.bf16 %v650_v14, %v650_v14  ;;  %627 = vst.msk [vmem:[#allocation6 + $0x34] sm:$0xf] %vm575_vm4, %v6251_v15 }
  0xd9   : > { %v549_v19 = vpop.f32.mrf.mxu0  ;;  %602 = vst.msk [vmem:[#allocation6 + $0x14] sm:$0xf] %vm575_vm4, %v601_v16 }
  0xda   : > { %v550_v20 = vadd.f32 %v6185_v22, %v549_v19  ;;  %652 = vst.msk [vmem:[#allocation6 + $0x54] sm:$0xf] %vm575_vm4, %v6253_v17 }
  0xdb   : > { %746 = vst.msk [vmem:[#allocation6 + $0xcc] sm:$0xf] %vm575_vm4, %v601_v16  ;;  %v5594_v62 = vld [vmem:[#allocation6 + $0xa0] sm:$0xff] }
  0xdc   : > { %v560_v21 = vmax.f32 %v550_v20, 0.0  ;;  %693 = vst.msk [vmem:[#allocation6 + $0x88] sm:$0xf] %vm575_vm4, %v764_v57  ;;  %v782_v57 = vpack.c.bf16 %v781_v55, %v781_v55 }
  0xdd   : > { %v628_v23 = vld [vmem:[#allocation2 + $0x3d] sm:$0xff]  ;;  %696 = vst.msk [vmem:[#allocation6 + $0x8c] sm:$0xf] %vm575_vm4, %v6232_v1 }
  0xde   : > { %v603_v24 = vld [vmem:[#allocation2 + $0x3c] sm:$0xff]  ;;  %583 = vst.msk [vmem:[#allocation2 + $0x47] sm:$0xff] %vm562_vm3, %v560_v21  ;;  %v6270_v26 = vpack.c.bf16 %v628_v23, %v628_v23  ;;  %v5585_v63 = vld [vmem:[#allocation6 + $0x68] sm:$0xff] }
  0xdf   : > { %v653_v25 = vld [vmem:[#allocation2 + $0x3e] sm:$0xff]  ;;  %v604_v27 = vpack.c.bf16 %v603_v24, %v603_v24  ;;  %718 = vst.msk [vmem:[#allocation6 + $0xa8] sm:$0xf] %vm575_vm4, %v6217_v58  ;;  %v807_v58 = vpack.c.bf16 %v806_v56, %v806_v56 }
  0xe0   : > { %v6272_v28 = vpack.c.bf16 %v653_v25, %v653_v25  ;;  %v5576_v29 = vld [vmem:[#allocation6 + $0x30] sm:$0xff]  ;;  %630 = vst.msk [vmem:[#allocation6 + $0x38] sm:$0xf] %vm575_vm4, %v6270_v26 }
  0xe1   : > { %v551_v30 = vpop.f32.mrf.mxu0  ;;  %v5571_v31 = vld [vmem:[#allocation6 + $0x10] sm:$0xff]  ;;  %605 = vst.msk [vmem:[#allocation6 + $0x18] sm:$0xf] %vm575_vm4, %v604_v27 }
  0xe2   : > { %v552_v33 = vadd.f32 %v6185_v22, %v551_v30  ;;  %v5581_v34 = vld [vmem:[#allocation6 + $0x50] sm:$0xff]  ;;  %v5600_v35 = vld [vmem:[#allocation6 + $0xc8] sm:$0xff]  ;;  %655 = vst.msk [vmem:[#allocation6 + $0x58] sm:$0xf] %vm575_vm4, %v6272_v28 }
  0xe3   : > { %749 = vst.msk [vmem:[#allocation6 + $0xd0] sm:$0xf] %vm575_vm4, %v604_v27  ;;  %4275 = vmatmul.msk.bf16.gmra.mxu1 %vm562_vm3, %v5576_v29  ;;  %4428 = vmatmul.msk.bf16.gmra.mxu0 %vm562_vm3, %v5600_v35 }
  0xe4   : > { %v561_v37 = vmax.f32 %v552_v33, 0.0  ;;  %4299 = vmatmul.msk.bf16.gmra.mxu2 %vm562_vm3, %v5571_v31  ;;  %721 = vst.msk [vmem:[#allocation6 + $0xac] sm:$0xf] %vm575_vm4, %v6234_v3  ;;  %v5590_v0 = vld [vmem:[#allocation6 + $0x88] sm:$0xff] }
  0xe5   : > { %v631_v38 = vld [vmem:[#allocation2 + $0x47] sm:$0xff]  ;;  %4325 = vmatmul.msk.bf16.gmra.mxu3 %vm562_vm3, %v5581_v34  ;;  %674 = vst.msk [vmem:[#allocation6 + $0x70] sm:$0xf] %vm575_vm4, %v601_v16 }
  0xe6   : > { %v606_v39 = vld [vmem:[#allocation2 + $0x46] sm:$0xff]  ;;  %584 = vst.msk [vmem:[#allocation2 + $0x51] sm:$0xff] %vm562_vm3, %v561_v37  ;;  %v632_v40 = vpack.c.bf16 %v631_v38, %v631_v38 }
  0xe7   : > { %v656_v22 = vld [vmem:[#allocation2 + $0x48] sm:$0xff]  ;;  %v607_v41 = vpack.c.bf16 %v606_v39, %v606_v39  ;;  %677 = vst.msk [vmem:[#allocation6 + $0x74] sm:$0xf] %vm575_vm4, %v604_v27 }
  0xe8   : > { %v657_v42 = vpack.c.bf16 %v656_v22, %v656_v22  ;;  %633 = vst.msk [vmem:[#allocation6 + $0x3c] sm:$0xf] %vm575_vm4, %v632_v40 }
  0xe9   : > { %608 = vst.msk [vmem:[#allocation6 + $0x1c] sm:$0xf] %vm575_vm4, %v607_v41 }
  0xea   : > { %658 = vst.msk [vmem:[#allocation6 + $0x5c] sm:$0xf] %vm575_vm4, %v657_v42 }
  0xeb   : > { %752 = vst.msk [vmem:[#allocation6 + $0xd4] sm:$0xf] %vm575_vm4, %v607_v41 }
  0xec   : > { %699 = vst.msk [vmem:[#allocation6 + $0x90] sm:$0xf] %vm575_vm4, %v6251_v15 }
  0xed   : > { %v753_v45 = vld [vmem:[#allocation2 + $0x50] sm:$0xff]  ;;  %702 = vst.msk [vmem:[#allocation6 + $0x94] sm:$0xf] %vm575_vm4, %v6270_v26 }
  0xee   : > { %v754_v46 = vpack.c.bf16 %v753_v45, %v753_v45  ;;  %v706_v47 = vld [vmem:[#allocation2 + $0x51] sm:$0xff]  ;;  %724 = vst.msk [vmem:[#allocation6 + $0xb0] sm:$0xf] %vm575_vm4, %v6253_v17 }
  0xef   : > { %v5577_v48 = vld [vmem:[#allocation6 + $0x38] sm:$0xff]  ;;  %v731_v49 = vld [vmem:[#allocation2 + $0x52] sm:$0xff]  ;;  %727 = vst.msk [vmem:[#allocation6 + $0xb4] sm:$0xf] %vm575_vm4, %v6272_v28  ;;  %v707_v51 = vpack.c.bf16 %v706_v47, %v706_v47 }
  0xf0   : > { %755 = vst.msk [vmem:[#allocation6 + $0xd8] sm:$0xf] %vm575_vm4, %v754_v46  ;;  %v5572_v50 = vld [vmem:[#allocation6 + $0x18] sm:$0xff]  ;;  %v732_v54 = vpack.c.bf16 %v731_v49, %v731_v49  ;;  %v5586_v2 = vld [vmem:[#allocation6 + $0x70] sm:$0xff] }
  0xf1   : > { %v5582_v52 = vld [vmem:[#allocation6 + $0x58] sm:$0xff]  ;;  %680 = vst.msk [vmem:[#allocation6 + $0x78] sm:$0xf] %vm575_vm4, %v607_v41 }
  0xf2   : > { %v5601_v53 = vld [vmem:[#allocation6 + $0xd0] sm:$0xff]  ;;  %683 = vst.msk [vmem:[#allocation6 + $0x7c] sm:$0xf] %vm575_vm4, %v754_v46 }
  0xf3   : > { %4276 = vmatmul.msk.bf16.gmra.mxu1 %vm562_vm3, %v5577_v48  ;;  %4429 = vmatmul.msk.bf16.gmra.mxu0 %vm562_vm3, %v5601_v53  ;;  %705 = vst.msk [vmem:[#allocation6 + $0x98] sm:$0xf] %vm575_vm4, %v632_v40 }
  0xf4   : > { %4300 = vmatmul.msk.bf16.gmra.mxu2 %vm562_vm3, %v5572_v50  ;;  %708 = vst.msk [vmem:[#allocation6 + $0x9c] sm:$0xf] %vm575_vm4, %v707_v51 }
  0xf5   : > { %4326 = vmatmul.msk.bf16.gmra.mxu3 %vm562_vm3, %v5582_v52  ;;  %730 = vst.msk [vmem:[#allocation6 + $0xb8] sm:$0xf] %vm575_vm4, %v657_v42 }
  0xf6   : > { %733 = vst.msk [vmem:[#allocation6 + $0xbc] sm:$0xf] %vm575_vm4, %v732_v54  ;;  %v5596_v4 = vld [vmem:[#allocation6 + $0xb0] sm:$0xff] }
  0xf7   : > { %768 = vst.msk [vmem:[#allocation6 + $0xe8] sm:$0xf] %vm575_vm4, %v6232_v1  ;;  %v5602_v60 = vld [vmem:[#allocation6 + $0xd8] sm:$0xff]  ;;  %v5595_v1 = vld [vmem:[#allocation6 + $0xa8] sm:$0xff] }
  0xf8   : > { %771 = vst.msk [vmem:[#allocation6 + $0xec] sm:$0xf] %vm575_vm4, %v6251_v15 }
  0xf9   : > { %793 = vst.msk [vmem:[#allocation6 + $0x108] sm:$0xf] %vm575_vm4, %v6234_v3  ;;  %v5591_v3 = vld [vmem:[#allocation6 + $0x90] sm:$0xff]  ;;  %v5587_v5 = vld [vmem:[#allocation6 + $0x78] sm:$0xff] }
  0xfa   : > { %796 = vst.msk [vmem:[#allocation6 + $0x10c] sm:$0xf] %vm575_vm4, %v6253_v17 }
  0xfb   : > { %774 = vst.msk [vmem:[#allocation6 + $0xf0] sm:$0xf] %vm575_vm4, %v6270_v26  ;;  %v5592_v6 = vld [vmem:[#allocation6 + $0x98] sm:$0xff] }
  0xfc   : > { %777 = vst.msk [vmem:[#allocation6 + $0xf4] sm:$0xf] %vm575_vm4, %v632_v40 }
  0xfd   : > { %799 = vst.msk [vmem:[#allocation6 + $0x110] sm:$0xf] %vm575_vm4, %v6272_v28  ;;  %v5597_v7 = vld [vmem:[#allocation6 + $0xb8] sm:$0xff] }
  0xfe   : > { %802 = vst.msk [vmem:[#allocation6 + $0x114] sm:$0xf] %vm575_vm4, %v657_v42 }
  0xff   : > { %780 = vst.msk [vmem:[#allocation6 + $0xf8] sm:$0xf] %vm575_vm4, %v707_v51  ;;  %v5605_v19 = vld [vmem:[#allocation6 + $0xe8] sm:$0xff] }
 0x100   : > { %783 = vst.msk [vmem:[#allocation6 + $0xfc] sm:$0xf] %vm575_vm4, %v782_v57 }
 0x101   : > { %805 = vst.msk [vmem:[#allocation6 + $0x118] sm:$0xf] %vm575_vm4, %v732_v54  ;;  %v5610_v20 = vld [vmem:[#allocation6 + $0x108] sm:$0xff] }
 0x102   : > { %808 = vst.msk [vmem:[#allocation6 + $0x11c] sm:$0xf] %vm575_vm4, %v807_v58 }
 0x103   : > { %4349 = vmatmul.msk.bf16.vlgmr.msrb.gmra.mxu1 %vm562_vm3, %v5584_v59  ;;  %4430 = vmatmul.msk.bf16.gmra.mxu0 %vm562_vm3, %v5602_v60  ;;  %v5606_v29 = vld [vmem:[#allocation6 + $0xf0] sm:$0xff] }
 0x104   : > { %4375 = vmatmul.msk.bf16.vlgmr.msrb.gmra.mxu2 %vm562_vm3, %v5589_v61 }
 0x105   : > { %4401 = vmatmul.msk.bf16.vlgmr.msrb.gmra.mxu3 %vm562_vm3, %v5594_v62  ;;  %v5611_v30 = vld [vmem:[#allocation6 + $0x110] sm:$0xff] }
 0x107   : > { %v5607_v38 = vld [vmem:[#allocation6 + $0xf8] sm:$0xff] }
 0x109   : > { %v5612_v39 = vld [vmem:[#allocation6 + $0x118] sm:$0xff] }
 0x113   : > { %4350 = vmatmul.msk.bf16.gmra.mxu1 %vm562_vm3, %v5585_v63 }
 0x114   : > { %4376 = vmatmul.msk.bf16.gmra.mxu2 %vm562_vm3, %v5590_v0  ;;  %v5619_v0 = vld [vmem:[%s7766_s3 + $0x18] sm:$0xff] }
 0x115   : > { %4402 = vmatmul.msk.bf16.gmra.mxu3 %vm562_vm3, %v5595_v1 }
 0x116   : > { %1846 = vmatpush.bf16.msra.mxu3 %v5619_v0 }
 0x123   : > { %4351 = vmatmul.msk.bf16.gmra.mxu1 %vm562_vm3, %v5586_v2 }
 0x124   : > { %4377 = vmatmul.msk.bf16.gmra.mxu2 %vm562_vm3, %v5591_v3 }
 0x125   : > { %4403 = vmatmul.msk.bf16.gmra.mxu3 %vm562_vm3, %v5596_v4 }
 0x133   : > { %4352 = vmatmul.msk.bf16.gmra.mxu1 %vm562_vm3, %v5587_v5 }
 0x134   : > { %4378 = vmatmul.msk.bf16.gmra.mxu2 %vm562_vm3, %v5592_v6 }
 0x135   : > { %4404 = vmatmul.msk.bf16.gmra.mxu3 %vm562_vm3, %v5597_v7 }
 0x140   : > { %v877_v8 = vpop.f32.mrf.mxu1 }
 0x143   : > { %4453 = vmatmul.msk.bf16.vlgmr.msra.gmra.mxu1 %vm562_vm3, %v5604_v9 }
 0x144   : > { %4479 = vmatmul.msk.bf16.vlgmr.msra.gmra.mxu2 %vm562_vm3, %v5609_v10 }
 0x147   : > { %v944_v11 = vpop.f32.mrf.mxu2 }
 0x148   : > { %v6355_v13 = vadd.f32 %v944_v11, %v877_v8  ;;  %v6357_v14 = vpop.f32.mrf.mxu3  ;;  %v6359_v15 = vpop.f32.mrf.mxu1 }
 0x14a   : > { %v1042_v1 = vadd.f32 %v6357_v14, %v6355_v13 }
 0x14e   : > { %v1366_v62 = vpop.f32.mrf.mxu0 }
 0x14f   : > { %v6361_v16 = vpop.f32.mrf.mxu2 }
 0x150   : > { %v6363_v17 = vpop.f32.mrf.mxu3  ;;  %v882_v18 = vpop.f32.mrf.mxu1  ;;  %v947_v5 = vadd.f32 %v6361_v16, %v6359_v15 }
 0x152   : > { %v1043_v9 = vadd.f32 %v6363_v17, %v947_v5 }
 0x153   : > { %4454 = vmatmul.msk.bf16.gmra.mxu1 %vm562_vm3, %v5605_v19 }
 0x154   : > { %4480 = vmatmul.msk.bf16.gmra.mxu2 %vm562_vm3, %v5610_v20 }
 0x156   : > { %v1368_v7 = vpop.f32.mrf.mxu0 }
 0x157   : > { %v949_v21 = vpop.f32.mrf.mxu2 }
 0x158   : > { %v6367_v23 = vadd.f32 %v949_v21, %v882_v18  ;;  %v6369_v24 = vpop.f32.mrf.mxu3  ;;  %v6371_v25 = vpop.f32.mrf.mxu1 }
 0x15a   : > { %v1044_v15 = vadd.f32 %v6369_v24, %v6367_v23 }
 0x15f   : > { %v6373_v26 = vpop.f32.mrf.mxu2 }
 0x160   : > { %v6375_v27 = vpop.f32.mrf.mxu3  ;;  %v887_v28 = vpop.f32.mrf.mxu1 }
 0x161   : > { %v1371_v17 = vpop.f32.mrf.mxu0 }
 0x163   : > { %4455 = vmatmul.msk.bf16.gmra.mxu1 %vm562_vm3, %v5606_v29 }
 0x164   : > { %4481 = vmatmul.msk.bf16.gmra.mxu2 %vm562_vm3, %v5611_v30 }
 0x167   : > { %v954_v31 = vpop.f32.mrf.mxu2 }
 0x168   : > { %v955_v32 = vadd.f32 %v954_v31, %v887_v28  ;;  %v6379_v33 = vpop.f32.mrf.mxu1  ;;  %v1032_v34 = vpop.f32.mrf.mxu3 }
 0x16a   : > { %v1046_v35 = vadd.f32 %v1032_v34, %v955_v32 }
 0x16f   : > { %v6381_v36 = vpop.f32.mrf.mxu2 }
 0x170   : > { %v892_v37 = vpop.f32.mrf.mxu1  ;;  %v6391_v48 = vpop.f32.mrf.mxu3 }
 0x173   : > { %4456 = vmatmul.msk.bf16.gmra.mxu1 %vm562_vm3, %v5607_v38 }
 0x174   : > { %4482 = vmatmul.msk.bf16.gmra.mxu2 %vm562_vm3, %v5612_v39 }
 0x177   : > { %v959_v22 = vpop.f32.mrf.mxu2 }
 0x178   : > { %v6385_v40 = vadd.f32 %v959_v22, %v892_v37  ;;  %v6387_v41 = vpop.f32.mrf.mxu1  ;;  %v6395_v51 = vpop.f32.mrf.mxu3  ;;  %v952_v37 = vadd.f32 %v6373_v26, %v6371_v25 }
 0x17f   : > { %v6389_v42 = vpop.f32.mrf.mxu2 }
 0x180   : > { %v1108_v43 = vpop.f32.mrf.mxu1  ;;  %v6399_v55 = vpop.f32.mrf.mxu3 }
 0x181   : > { %v1128_v3 = vadd.f32 %v1108_v43, %v1042_v1 }
 0x187   : > { %v1194_v44 = vpop.f32.mrf.mxu2 }
 0x188   : > { %v1110_v45 = vpop.f32.mrf.mxu1  ;;  %v1280_v61 = vpop.f32.mrf.mxu3  ;;  %v1214_v6 = vadd.f32 %v1194_v44, %v1128_v3  ;;  %v1045_v44 = vadd.f32 %v6375_v27, %v952_v37  ;;  %v5625_v3 = vld [vmem:[%s7766_s3 + $0x38] sm:$0xff] }
 0x189   : > { %v1129_v13 = vadd.f32 %v1110_v45, %v1043_v9  ;;  %1964 = vmatpush.bf16.msra.mxu0 %v5625_v3 }
 0x18a   : > { %v1300_v10 = vadd.f32 %v1280_v61, %v1214_v6 }
 0x18c   : > { %v1386_v18 = vadd.f32 %v1366_v62, %v1300_v10 }
 0x18f   : > { %v1196_v46 = vpop.f32.mrf.mxu2 }
 0x190   : > { %v1113_v47 = vpop.f32.mrf.mxu1  ;;  %v1282_v4 = vpop.f32.mrf.mxu3  ;;  %v1215_v14 = vadd.f32 %v1196_v46, %v1129_v13 }
 0x191   : > { %v1130_v30 = vadd.f32 %v1113_v47, %v1044_v15  ;;  %v1373_v46 = vpop.f32.mrf.mxu0 }
 0x192   : > { %v1301_v16 = vadd.f32 %v1282_v4, %v1215_v14 }
 0x197   : > { %v1199_v49 = vpop.f32.mrf.mxu2 }
 0x198   : > { %v6393_v50 = vpop.f32.mrf.mxu1  ;;  %v1285_v19 = vpop.f32.mrf.mxu3  ;;  %v1216_v32 = vadd.f32 %v1199_v49, %v1130_v30 }
 0x199   : > { %v1131_v47 = vadd.f32 %v6393_v50, %v1045_v44  ;;  %v1376_v10 = vpop.f32.mrf.mxu0  ;;  %v1048_v44 = vadd.f32 %v6395_v51, %v6385_v40  ;;  %v5616_v40 = vld [vmem:[%s7766_s3 + $0x8] sm:$0xff]  ;;  %v962_v51 = vadd.f32 %v6389_v42, %v6387_v41 }
 0x19a   : > { %v1302_v43 = vadd.f32 %v1285_v19, %v1216_v32  ;;  %1880 = vmatpush.bf16.msrb.mxu1 %v5616_v40 }
 0x19f   : > { %v6397_v52 = vpop.f32.mrf.mxu2 }
 0x1a0   : > { %v1118_v53 = vpop.f32.mrf.mxu1  ;;  %v1287_v39 = vpop.f32.mrf.mxu3  ;;  %v1217_v25 = vadd.f32 %v6397_v52, %v1131_v47 }
 0x1a1   : > { %v1132_v54 = vadd.f32 %v1118_v53, %v1046_v35  ;;  %v1387_v35 = vadd.f32 %v1368_v7, %v1301_v16  ;;  %v1388_v53 = vadd.f32 %v1371_v17, %v1302_v43  ;;  %v957_v7 = vadd.f32 %v6381_v36, %v6379_v33 }
 0x1a2   : > { %v1303_v5 = vadd.f32 %v1287_v39, %v1217_v25 }
 0x1a4   : > { %v1389_v14 = vadd.f32 %v1373_v46, %v1303_v5 }
 0x1a7   : > { %v1204_v56 = vpop.f32.mrf.mxu2 }
 0x1a8   : > { %v6401_v57 = vadd.f32 %v1204_v56, %v1132_v54  ;;  %v6403_v58 = vpop.f32.mrf.mxu1  ;;  %v1290_v52 = vpop.f32.mrf.mxu3 }
 0x1aa   : > { %v1304_v43 = vadd.f32 %v1290_v52, %v6401_v57  ;;  %v1049_v52 = vadd.f32 %v6399_v55, %v962_v51 }
 0x1af   : > { %v6409_v59 = vpop.f32.mrf.mxu2 }
 0x1b0   : > { %v6413_v60 = vpop.f32.mrf.mxu1 }
 0x1b7   : > { %v6429_v63 = vpop.f32.mrf.mxu2 }
 0x1b8   : > { %v6438_v2 = vpop.f32.mrf.mxu1 }
 0x1bf   : > { %v6444_v8 = vpop.f32.mrf.mxu2 }
 0x1c0   : > { %v1452_v11 = vpop.f32.mrf.mxu1 }
 0x1c1   : > { %v1472_v20 = vadd.f32 %v1452_v11, %v1386_v18 }
 0x1c7   : > { %v1538_v21 = vpop.f32.mrf.mxu2 }
 0x1c8   : > { %v1558_v28 = vadd.f32 %v1538_v21, %v1472_v20  ;;  %v1454_v29 = vpop.f32.mrf.mxu1 }
 0x1c9   : > { %v1473_v38 = vadd.f32 %v1454_v29, %v1387_v35 }
 0x1ca   : > { %v1570_v31 = vadd.f32 %v6450_v12, %v1558_v28 }
 0x1cc   : > { %v1578_v34 = vmax.f32 %v1570_v31, 0.0  ;;  %v1047_v31 = vadd.f32 %v6391_v48, %v957_v7 }
 0x1ce   : > { %1601 = vst.msk [vmem:[#allocation3 + $0xb] sm:$0xff] %vm1586_vm5, %v1578_v34 }
 0x1cf   : > { %v1540_v22 = vpop.f32.mrf.mxu2 }
 0x1d0   : > { %v1559_v23 = vadd.f32 %v1540_v22, %v1473_v38  ;;  %v1457_v24 = vpop.f32.mrf.mxu1  ;;  %v1133_v38 = vadd.f32 %v6403_v58, %v1047_v31  ;;  %v1292_v22 = vpop.f32.mrf.mxu3 }
 0x1d1   : > { %v1474_v0 = vadd.f32 %v1457_v24, %v1388_v53  ;;  %v5618_v24 = vld [vmem:[%s7766_s3 + $0x10] sm:$0xff] }
 0x1d2   : > { %v1571_v45 = vadd.f32 %v6450_v12, %v1559_v23  ;;  %v1219_v23 = vadd.f32 %v6409_v59, %v1133_v38  ;;  %1847 = vmatpush.bf16.msra.mxu3 %v5618_v24 }
 0x1d4   : > { %v1579_v49 = vmax.f32 %v1571_v45, 0.0  ;;  %v1378_v45 = vpop.f32.mrf.mxu0  ;;  %v1305_v59 = vadd.f32 %v1292_v22, %v1219_v23 }
 0x1d5   : > { %v1679_v26 = vld [vmem:[#allocation3 + $0xa] ss:$2 sm:$0xf]  ;;  %v1702_v54 = vld [vmem:[#allocation3 + $0xb] ss:$2 sm:$0xf] }
 0x1d6   : > { %v1680_v56 = vpack.c.bf16 %v1679_v26, %v1679_v26  ;;  %v1703_v61 = vpack.c.bf16 %v1702_v54, %v1702_v54  ;;  %v1725_v62 = vld [vmem:[#allocation3 + $0xc] ss:$2 sm:$0xf]  ;;  %1602 = vst.msk [vmem:[#allocation3 + $0x15] sm:$0xff] %vm1586_vm5, %v1579_v49  ;;  %v1390_v26 = vadd.f32 %v1376_v10, %v1304_v43 }
 0x1d7   : > { %v1726_v1 = vpack.c.bf16 %v1725_v62, %v1725_v62  ;;  %v1543_v27 = vpop.f32.mrf.mxu2 }
 0x1d8   : > { %1682 = vst.msk [vmem:[#allocation7 + $0x18] sm:$0x3] %vm1611_vm6, %v1680_v56  ;;  %v1560_v50 = vadd.f32 %v1543_v27, %v1474_v0  ;;  %v1459_v4 = vpop.f32.mrf.mxu1  ;;  %v1134_v56 = vadd.f32 %v6413_v60, %v1048_v44  ;;  %v1295_v60 = vpop.f32.mrf.mxu3  ;;  %v5615_v44 = vld [vmem:[%s7766_s3] sm:$0xff] }
 0x1d9   : > { %1705 = vst.msk [vmem:[#allocation7 + $0x20] sm:$0x3] %vm1611_vm6, %v1703_v61  ;;  %v1475_v17 = vadd.f32 %v1459_v4, %v1389_v14  ;;  %v1391_v4 = vadd.f32 %v1378_v45, %v1305_v59  ;;  %v5622_v45 = vld [vmem:[%s7766_s3 + $0x28] sm:$0xff]  ;;  %1881 = vmatpush.bf16.msrb.mxu1 %v5615_v44  ;;  %v5639_v59 = vld [vmem:[%s7766_s3 + $0x80] sm:$0xff] }
 0x1da   : > { %1728 = vst.msk [vmem:[#allocation7 + $0x28] sm:$0x3] %vm1611_vm6, %v1726_v1  ;;  %v1572_v6 = vadd.f32 %v6450_v12, %v1560_v50  ;;  %v1220_v27 = vadd.f32 %v6429_v63, %v1134_v56  ;;  %1921 = vmatpush.bf16.msrb.mxu3 %v5622_v45 }
 0x1dc   : > { %v1580_v9 = vmax.f32 %v1572_v6, 0.0  ;;  %v1306_v6 = vadd.f32 %v1295_v60, %v1220_v27 }
 0x1dd   : > { %v1614_v11 = vld [vmem:[#allocation3 + $0x14] ss:$2 sm:$0xf]  ;;  %v1638_v13 = vld [vmem:[#allocation3 + $0x15] ss:$2 sm:$0xf] }
 0x1de   : > { %v1615_v18 = vpack.c.bf16 %v1614_v11, %v1614_v11  ;;  %v1639_v19 = vpack.c.bf16 %v1638_v13, %v1638_v13  ;;  %v1661_v20 = vld [vmem:[#allocation3 + $0x16] ss:$2 sm:$0xf]  ;;  %v1767_v28 = vld [vmem:[#allocation3 + $0x15] ss:$2 sm:$0xf] }
 0x1df   : > { %v1747_v21 = vld [vmem:[#allocation3 + $0x14] ss:$2 sm:$0xf]  ;;  %v1662_v15 = vpack.c.bf16 %v1661_v20, %v1661_v20  ;;  %v1545_v30 = vpop.f32.mrf.mxu2  ;;  %1603 = vst.msk [vmem:[#allocation3 + $0x1f] sm:$0xff] %vm1586_vm5, %v1580_v9  ;;  %v1768_v39 = vpack.c.bf16 %v1767_v28, %v1767_v28 }
 0x1e0   : > { %v1748_v16 = vpack.c.bf16 %v1747_v21, %v1747_v21  ;;  %v1787_v29 = vld [vmem:[#allocation3 + $0x16] ss:$2 sm:$0xf]  ;;  %v1617_v32 = vrot.slane %v1615_v18, 6  ;;  %v1641_v33 = vrot.slane %v1639_v19, 6  ;;  %v1462_v34 = vpop.f32.mrf.mxu1  ;;  %v1561_v37 = vadd.f32 %v1545_v30, %v1475_v17  ;;  %v1381_v18 = vpop.f32.mrf.mxu0 }
 0x1e1   : > { %v1788_v36 = vpack.c.bf16 %v1787_v29, %v1787_v29  ;;  %v1664_v35 = vrot.slane %v1662_v15, 6  ;;  %1770 = vst.msk [vmem:[#allocation7 + $0x38] sm:$0x3] %vm1611_vm6, %v1768_v39  ;;  %v1476_v1 = vadd.f32 %v1462_v34, %v1390_v26  ;;  %v1135_v19 = vadd.f32 %v6438_v2, %v1049_v52 }
 0x1e2   : > { %1750 = vst.msk [vmem:[#allocation7 + $0x30] sm:$0x3] %vm1611_vm6, %v1748_v16  ;;  %v1573_v48 = vadd.f32 %v6450_v12, %v1561_v37  ;;  %v1297_v37 = vpop.f32.mrf.mxu3 }
 0x1e3   : > { %1620 = vst.msk [vmem:[#allocation7] sm:$0xc] %vm1619_vm7, %v1617_v32  ;;  %v1221_v30 = vadd.f32 %v6444_v8, %v1135_v19 }
 0x1e4   : > { %1790 = vst.msk [vmem:[#allocation7 + $0x40] sm:$0x3] %vm1611_vm6, %v1788_v36  ;;  %v1581_v58 = vmax.f32 %v1573_v48, 0.0  ;;  %v1392_v36 = vadd.f32 %v1381_v18, %v1306_v6 }
 0x1e5   : > { %1643 = vst.msk [vmem:[#allocation7 + $0x8] sm:$0xc] %vm1619_vm7, %v1641_v33  ;;  %v1307_v8 = vadd.f32 %v1297_v37, %v1221_v30 }
 0x1e6   : > { %1666 = vst.msk [vmem:[#allocation7 + $0x10] sm:$0xc] %vm1619_vm7, %v1664_v35  ;;  %v1684_v46 = vld [vmem:[#allocation3 + $0x1e] ss:$2 sm:$0xf] }
 0x1e7   : > { %v1707_v57 = vld [vmem:[#allocation3 + $0x1f] ss:$2 sm:$0xf]  ;;  %v1548_v47 = vpop.f32.mrf.mxu2  ;;  %v1685_v49 = vpack.c.bf16 %v1684_v46, %v1684_v46  ;;  %v1730_v25 = vld [vmem:[#allocation3 + $0x20] ss:$2 sm:$0xf] }
 0x1e8   : > { %v1708_v53 = vpack.c.bf16 %v1707_v57, %v1707_v57  ;;  %1604 = vst.msk [vmem:[#allocation3 + $0x29] sm:$0xff] %vm1586_vm5, %v1581_v58  ;;  %v1464_v54 = vpop.f32.mrf.mxu1  ;;  %v1731_v61 = vpack.c.bf16 %v1730_v25, %v1730_v25  ;;  %v1562_v50 = vadd.f32 %v1548_v47, %v1476_v1  ;;  %v1383_v48 = vpop.f32.mrf.mxu0  ;;  %v5624_v58 = vld [vmem:[%s7766_s3 + $0x30] sm:$0xff]  ;;  %v5621_v57 = vld [vmem:[%s7766_s3 + $0x20] sm:$0xff]  ;;  %v5640_v47 = vld [vmem:[%s7766_s3 + $0x88] sm:$0xff] }
 0x1e9   : > { %v1687_v62 = vrot.slane %v1685_v49, 6  ;;  %v1477_v5 = vadd.f32 %v1464_v54, %v1391_v4  ;;  %v1393_v24 = vadd.f32 %v1383_v48, %v1307_v8  ;;  %1965 = vmatpush.bf16.msra.mxu0 %v5624_v58  ;;  %2179 = vmatpush.bf16.msra.mxu1 %v5640_v47  ;;  %v5636_v58 = vld [vmem:[%s7766_s3 + $0x70] sm:$0xff]  ;;  %v5633_v47 = vld [vmem:[%s7766_s3 + $0x60] sm:$0xff] }
 0x1ea   : > { %v1710_v0 = vrot.slane %v1708_v53, 6  ;;  %v1733_v3 = vrot.slane %v1731_v61, 6  ;;  %v1574_v13 = vadd.f32 %v6450_v12, %v1562_v50  ;;  %1922 = vmatpush.bf16.msrb.mxu3 %v5621_v57 }
 0x1eb   : > { %1689 = vst.msk [vmem:[#allocation7 + $0x18] sm:$0xc] %vm1619_vm7, %v1687_v62 }
 0x1ec   : > { %1712 = vst.msk [vmem:[#allocation7 + $0x20] sm:$0xc] %vm1619_vm7, %v1710_v0  ;;  %v1582_v2 = vmax.f32 %v1574_v13, 0.0  ;;  %v1609_v13 = vld [vmem:[#allocation3] ss:$2 sm:$0xf] }
 0x1ed   : > { %1735 = vst.msk [vmem:[#allocation7 + $0x28] sm:$0xc] %vm1619_vm7, %v1733_v3  ;;  %2180 = vmatpush.bf16.msra.mxu1 %v5639_v59  ;;  %v1610_v30 = vpack.c.bf16 %v1609_v13, %v1609_v13 }
 0x1ee   : > { %1605 = vst.msk [vmem:[#allocation3 + $0x33] sm:$0xff] %vm1586_vm5, %v1582_v2 }
 0x1ef   : > { %v1622_v7 = vld [vmem:[#allocation3 + $0x28] ss:$2 sm:$0xf]  ;;  %v1645_v9 = vld [vmem:[#allocation3 + $0x29] ss:$2 sm:$0xf]  ;;  %v1550_v41 = vpop.f32.mrf.mxu2 }
 0x1f0   : > { %v1623_v42 = vpack.c.bf16 %v1622_v7, %v1622_v7  ;;  %v1646_v63 = vpack.c.bf16 %v1645_v9, %v1645_v9  ;;  %v1668_v10 = vld [vmem:[#allocation3 + $0x2a] ss:$2 sm:$0xf]  ;;  %v1563_v14 = vadd.f32 %v1550_v41, %v1477_v5  ;;  %v1771_v15 = vld [vmem:[#allocation3 + $0x29] ss:$2 sm:$0xf]  ;;  %v1467_v28 = vpop.f32.mrf.mxu1 }
 0x1f1   : > { %v1751_v11 = vld [vmem:[#allocation3 + $0x28] ss:$2 sm:$0xf]  ;;  %v1669_v20 = vpack.c.bf16 %v1668_v10, %v1668_v10  ;;  %v1772_v55 = vpack.c.bf16 %v1771_v15, %v1771_v15  ;;  %v1478_v35 = vadd.f32 %v1467_v28, %v1392_v36  ;;  %v5631_v15 = vld [vmem:[%s7766_s3 + $0x58] sm:$0xff]  ;;  %1612 = vst.msk [vmem:[#allocation7] sm:$0x3] %vm1611_vm6, %v1610_v30 }
 0x1f2   : > { %v1752_v21 = vpack.c.bf16 %v1751_v11, %v1751_v11  ;;  %v1791_v16 = vld [vmem:[#allocation3 + $0x2a] ss:$2 sm:$0xf]  ;;  %1624 = vst.msk [vmem:[#allocation7 + $0x4] sm:$0x3] %vm1611_vm6, %v1623_v42  ;;  %v1575_v17 = vadd.f32 %v6450_v12, %v1563_v14  ;;  %2050 = vmatpush.bf16.msrb.mxu0 %v5631_v15 }
 0x1f3   : > { %v1792_v29 = vpack.c.bf16 %v1791_v16, %v1791_v16  ;;  %1647 = vst.msk [vmem:[#allocation7 + $0xc] sm:$0x3] %vm1611_vm6, %v1646_v63  ;;  %v1774_v32 = vrot.slane %v1772_v55, 6  ;;  %v1656_v14 = vld [vmem:[#allocation3 + $0x2] ss:$2 sm:$0xf] }
 0x1f4   : > { %v1754_v31 = vrot.slane %v1752_v21, 6  ;;  %1670 = vst.msk [vmem:[#allocation7 + $0x14] sm:$0x3] %vm1611_vm6, %v1669_v20  ;;  %v1583_v34 = vmax.f32 %v1575_v17, 0.0  ;;  %v5630_v17 = vld [vmem:[%s7766_s3 + $0x50] sm:$0xff] }
 0x1f5   : > { %v1794_v33 = vrot.slane %v1792_v29, 6  ;;  %1776 = vst.msk [vmem:[#allocation7 + $0x38] sm:$0xc] %vm1619_vm7, %v1774_v32  ;;  %v1691_v49 = vld [vmem:[#allocation3 + $0x32] ss:$2 sm:$0xf] }
 0x1f6   : > { %1756 = vst.msk [vmem:[#allocation7 + $0x30] sm:$0xc] %vm1619_vm7, %v1754_v31  ;;  %v1714_v53 = vld [vmem:[#allocation3 + $0x33] ss:$2 sm:$0xf]  ;;  %v1692_v26 = vpack.c.bf16 %v1691_v49, %v1691_v49  ;;  %v1657_v31 = vpack.c.bf16 %v1656_v14, %v1656_v14  ;;  %2051 = vmatpush.bf16.msrb.mxu0 %v5630_v17  ;;  %v5655_v30 = vld [vmem:[%s7768_s4 + $0x70] sm:$0xff] }
 0x1f7   : > { %1796 = vst.msk [vmem:[#allocation7 + $0x40] sm:$0xc] %vm1619_vm7, %v1794_v33  ;;  %v1553_v38 = vpop.f32.mrf.mxu2  ;;  %v1715_v54 = vpack.c.bf16 %v1714_v53, %v1714_v53  ;;  %v1737_v56 = vld [vmem:[#allocation3 + $0x34] ss:$2 sm:$0xf]  ;;  %v5628_v33 = vld [vmem:[%s7766_s3 + $0x48] sm:$0xff] }
 0x1f8   : > { %v1564_v39 = vadd.f32 %v1553_v38, %v1478_v35  ;;  %1606 = vst.msk [vmem:[#allocation3 + $0x3d] sm:$0xff] %vm1586_vm5, %v1583_v34  ;;  %v1469_v43 = vpop.f32.mrf.mxu1  ;;  %v1738_v0 = vpack.c.bf16 %v1737_v56, %v1737_v56  ;;  %v5877_v17 = vld [vmem:[%s7769_s8] ss:$0 sm:$0xff] }
 0x1f9   : > { %v1479_v46 = vadd.f32 %v1469_v43, %v1393_v24  ;;  %1693 = vst.msk [vmem:[#allocation7 + $0x1c] sm:$0x3] %vm1611_vm6, %v1692_v26  ;;  %v5637_v43 = vld [vmem:[%s7766_s3 + $0x78] sm:$0xff]  ;;  %v5627_v24 = vld [vmem:[%s7766_s3 + $0x40] sm:$0xff] }
 0x1fa   : > { %v1576_v22 = vadd.f32 %v6450_v12, %v1564_v39  ;;  %1716 = vst.msk [vmem:[#allocation7 + $0x24] sm:$0x3] %vm1611_vm6, %v1715_v54  ;;  %v5647_v54 = vld [vmem:[%s7768_s4 + $0x30] sm:$0xff] }
 0x1fb   : > { %1739 = vst.msk [vmem:[#allocation7 + $0x2c] sm:$0x3] %vm1611_vm6, %v1738_v0 }
 0x1fc   : > { %v1584_v23 = vmax.f32 %v1576_v22, 0.0  ;;  %1659 = vst.msk [vmem:[#allocation7 + $0x10] sm:$0x3] %vm1611_vm6, %v1657_v31 }
 0x1fe   : > { %1607 = vst.msk [vmem:[#allocation3 + $0x47] sm:$0xff] %vm1586_vm5, %v1584_v23 }
 0x1ff   : > { %v1555_v25 = vpop.f32.mrf.mxu2  ;;  %v1626_v61 = vld [vmem:[#allocation3 + $0x3c] ss:$2 sm:$0xf]  ;;  %v1649_v40 = vld [vmem:[#allocation3 + $0x3d] ss:$2 sm:$0xf] }
 0x200   : > { %v1565_v62 = vadd.f32 %v1555_v25, %v1479_v46  ;;  %v1627_v1 = vpack.c.bf16 %v1626_v61, %v1626_v61  ;;  %v1672_v51 = vld [vmem:[#allocation3 + $0x3e] ss:$2 sm:$0xf]  ;;  %v1650_v27 = vpack.c.bf16 %v1649_v40, %v1649_v40  ;;  %v1777_v5 = vld [vmem:[#allocation3 + $0x3d] ss:$2 sm:$0xf] }
 0x201   : > { %v1673_v3 = vpack.c.bf16 %v1672_v51, %v1672_v51  ;;  %v1757_v50 = vld [vmem:[#allocation3 + $0x3c] ss:$2 sm:$0xf]  ;;  %v1778_v41 = vpack.c.bf16 %v1777_v5, %v1777_v5  ;;  %v5648_v25 = vld [vmem:[%s7768_s4 + $0x38] sm:$0xff] }
 0x202   : > { %v1577_v4 = vadd.f32 %v6450_v12, %v1565_v62  ;;  %v1629_v60 = vrot.slane %v1627_v1, 6  ;;  %v1652_v52 = vrot.slane %v1650_v27, 6  ;;  %v1758_v7 = vpack.c.bf16 %v1757_v50, %v1757_v50  ;;  %v1797_v9 = vld [vmem:[#allocation3 + $0x3e] ss:$2 sm:$0xf]  ;;  %2412 = vmatpush.bf16.msrb.mxu2 %v5648_v25  ;;  %v5879_v50 = vld [vmem:[#allocation5] sm:$0xff] }
 0x203   : > { %v1675_v6 = vrot.slane %v1673_v3, 6  ;;  %v1798_v42 = vpack.c.bf16 %v1797_v9, %v1797_v9  ;;  %v1633_v12 = vld [vmem:[#allocation3 + $0x1] ss:$2 sm:$0xf]  ;;  %1779 = vst.msk [vmem:[#allocation7 + $0x3c] sm:$0x3] %vm1611_vm6, %v1778_v41 }
 0x204   : > { %1631 = vst.msk [vmem:[#allocation7 + $0x4] sm:$0xc] %vm1619_vm7, %v1629_v60  ;;  %v1585_v28 = vmax.f32 %v1577_v4, 0.0  ;;  %v1634_v29 = vpack.c.bf16 %v1633_v12, %v1633_v12  ;;  %v5634_v46 = vld [vmem:[%s7766_s3 + $0x68] sm:$0xff]  ;;  %v5645_v12 = vld [vmem:[%s7768_s4 + $0x20] sm:$0xff]  ;;  %v5672_v25 = vld [vmem:[%s7768_s4 + $0xf8] sm:$0xff] }
 0x205   : > { %1654 = vst.msk [vmem:[#allocation7 + $0xc] sm:$0xc] %vm1619_vm7, %v1652_v52  ;;  %v1695_v63 = vld [vmem:[#allocation3 + $0x46] ss:$2 sm:$0xf] }
 0x206   : > { %1677 = vst.msk [vmem:[#allocation7 + $0x14] sm:$0xc] %vm1619_vm7, %v1675_v6  ;;  %v1696_v10 = vpack.c.bf16 %v1695_v63, %v1695_v63  ;;  %v1718_v11 = vld [vmem:[#allocation3 + $0x47] ss:$2 sm:$0xf]  ;;  %2413 = vmatpush.bf16.msrb.mxu2 %v5647_v54 }
 0x207   : > { %1799 = vst.msk [vmem:[#allocation7 + $0x44] sm:$0x3] %vm1611_vm6, %v1798_v42  ;;  %v1719_v18 = vpack.c.bf16 %v1718_v11, %v1718_v11  ;;  %v1741_v19 = vld [vmem:[#allocation3 + $0x48] ss:$2 sm:$0xf]  ;;  %v5646_v40 = vld [vmem:[%s7768_s4 + $0x28] sm:$0xff] }
 0x208   : > { %1759 = vst.msk [vmem:[#allocation7 + $0x34] sm:$0x3] %vm1611_vm6, %v1758_v7  ;;  %v1698_v20 = vrot.slane %v1696_v10, 6  ;;  %v1742_v21 = vpack.c.bf16 %v1741_v19, %v1741_v19  ;;  %v5644_v10 = vld [vmem:[%s7768_s4 + $0x18] sm:$0xff] }
 0x209   : > { %v1721_v16 = vrot.slane %v1719_v18, 6  ;;  %1608 = vst.msk [vmem:[#allocation3 + $0x51] sm:$0xff] %vm1586_vm5, %v1585_v28  ;;  %v5652_v11 = vld [vmem:[%s7768_s4 + $0x58] sm:$0xff] }
 0x20a   : > { %v1744_v55 = vrot.slane %v1742_v21, 6  ;;  %1700 = vst.msk [vmem:[#allocation7 + $0x1c] sm:$0xc] %vm1619_vm7, %v1698_v20  ;;  %2414 = vmatpush.bf16.msrb.mxu2 %v5646_v40  ;;  %v5643_v20 = vld [vmem:[%s7768_s4 + $0x10] sm:$0xff]  ;;  %v5656_v21 = vld [vmem:[%s7768_s4 + $0x78] sm:$0xff] }
 0x20b   : > { %1723 = vst.msk [vmem:[#allocation7 + $0x24] sm:$0xc] %vm1619_vm7, %v1721_v16  ;;  %v5614_v39 = vld [vmem:[#allocation7] sm:$0xff]  ;;  %v5651_v16 = vld [vmem:[%s7768_s4 + $0x50] sm:$0xff] }
 0x20c   : > { %1746 = vst.msk [vmem:[#allocation7 + $0x2c] sm:$0xc] %vm1619_vm7, %v1744_v55  ;;  %4512 = vmatmul.msk.bf16.vlgmr.msrb.gmra.mxu1 %vm1586_vm5, %v5614_v39  ;;  %v5671_v40 = vld [vmem:[%s7768_s4 + $0xf0] sm:$0xff] }
 0x20d   : > { %1636 = vst.msk [vmem:[#allocation7 + $0x8] sm:$0x3] %vm1611_vm6, %v1634_v29  ;;  %v5620_v57 = vld [vmem:[#allocation7 + $0x10] sm:$0xff]  ;;  %2553 = vmatpush.bf16.msrb.mxu1 %v5656_v21  ;;  %v5670_v21 = vld [vmem:[%s7768_s4 + $0xe8] sm:$0xff] }
 0x20e   : > { %2200 = vst.msk [vmem:[#allocation4] sm:$0xff] %vm2197_vm8, %v5879_v50  ;;  %2415 = vmatpush.bf16.msrb.mxu2 %v5645_v12 }
 0x20f   : > { %2201 = vst.msk [vmem:[#allocation4 + $0x8] sm:$0xff] %vm2197_vm8, %v5879_v50 }
 0x210   : > { %v1761_v2 = vld [vmem:[#allocation3 + $0x50] ss:$2 sm:$0xf]  ;;  %v1781_v36 = vld [vmem:[#allocation3 + $0x51] ss:$2 sm:$0xf] }
 0x211   : > { %v5623_v32 = vld [vmem:[#allocation7 + $0x18] sm:$0xff]  ;;  %v1762_v34 = vpack.c.bf16 %v1761_v2, %v1761_v2  ;;  %v1782_v35 = vpack.c.bf16 %v1781_v36, %v1781_v36  ;;  %2202 = vst.msk [vmem:[#allocation4 + $0x10] sm:$0xff] %vm2197_vm8, %v5879_v50  ;;  %v5650_v36 = vld [vmem:[%s7768_s4 + $0x48] sm:$0xff]  ;;  %2554 = vmatpush.bf16.msrb.mxu1 %v5655_v30 }
 0x212   : > { %4546 = vmatmul.msk.bf16.vlgmr.msra.gmra.mxu0 %vm1586_vm5, %v5623_v32  ;;  %v1801_v37 = vld [vmem:[#allocation3 + $0x52] ss:$2 sm:$0xf]  ;;  %v5626_v49 = vld [vmem:[#allocation7 + $0x20] sm:$0xff]  ;;  %2203 = vst.msk [vmem:[#allocation4 + $0x18] sm:$0xff] %vm2197_vm8, %v5879_v50 }
 0x213   : > { %v1802_v8 = vpack.c.bf16 %v1801_v37, %v1801_v37  ;;  %v1764_v22 = vrot.slane %v1762_v34, 6  ;;  %v1784_v48 = vrot.slane %v1782_v35, 6  ;;  %2136 = vmatpush.bf16.msra.mxu0 %v5637_v43  ;;  %v5629_v44 = vld [vmem:[#allocation7 + $0x28] sm:$0xff] }
 0x214   : > { %v5617_v38 = vld [vmem:[#allocation7 + $0x8] sm:$0xff] }
 0x215   : > { %4499 = vmatmul.msk.bf16.vlgmr.msra.gmra.mxu3 %vm1586_vm5, %v5617_v38  ;;  %v1804_v23 = vrot.slane %v1802_v8, 6  ;;  %1766 = vst.msk [vmem:[#allocation7 + $0x34] sm:$0xc] %vm1619_vm7, %v1764_v22  ;;  %v2230_v28 = vld [vmem:[#allocation4 + $0x1] ss:$2 sm:$0x3] }
 0x216   : > { %2007 = vmatpush.bf16.msra.mxu3 %v5628_v33  ;;  %1786 = vst.msk [vmem:[#allocation7 + $0x3c] sm:$0xc] %vm1619_vm7, %v1784_v48  ;;  %v2231_v31 = vpack.c.bf16 %v2230_v28, %v2230_v28  ;;  %v5642_v33 = vld [vmem:[%s7768_s4 + $0x8] sm:$0xff]  ;;  %v2211_v2 = vld [vmem:[#allocation4] ss:$2 sm:$0x3] }
 0x217   : > { %1806 = vst.msk [vmem:[#allocation7 + $0x44] sm:$0xc] %vm1619_vm7, %v1804_v23  ;;  %2137 = vmatpush.bf16.msra.mxu0 %v5636_v58  ;;  %v2212_v34 = vpack.c.bf16 %v2211_v2, %v2211_v2  ;;  %v2247_v8 = vld [vmem:[#allocation4 + $0x2] ss:$2 sm:$0x3]  ;;  %v5641_v48 = vld [vmem:[%s7768_s4] sm:$0xff] }
 0x218   : > { %2233 = vst.msk [vmem:[#allocation8 + $0x2] sm:$0x1] %vm2213_vm10, %v2231_v31  ;;  %v2248_v43 = vpack.c.bf16 %v2247_v8, %v2247_v8  ;;  %v5660_v23 = vld [vmem:[%s7768_s4 + $0x98] sm:$0xff] }
 0x219   : > { %2214 = vst.msk [vmem:[#allocation8] sm:$0x1] %vm2213_vm10, %v2212_v34  ;;  %2604 = vmatpush.bf16.msra.mxu2 %v5660_v23 }
 0x21a   : > { %2008 = vmatpush.bf16.msra.mxu3 %v5627_v24  ;;  %v5654_v24 = vld [vmem:[%s7768_s4 + $0x68] sm:$0xff]  ;;  %2250 = vst.msk [vmem:[#allocation8 + $0x4] sm:$0x1] %vm2213_vm10, %v2248_v43 }
 0x21b   : > { %2555 = vmatpush.bf16.msrb.mxu1 %v5654_v24 }
 0x21c   : > { %v5632_v53 = vld [vmem:[#allocation7 + $0x30] sm:$0xff] }
 0x21d   : > { %v5635_v59 = vld [vmem:[#allocation7 + $0x38] sm:$0xff] }
 0x21e   : > { %v5638_v45 = vld [vmem:[#allocation7 + $0x40] sm:$0xff] }
 0x21f   : > { %4631 = vmatmul.msk.bf16.vlgmr.msra.gmra.mxu1 %vm1586_vm5, %v5638_v45  ;;  %v5664_v45 = vld [vmem:[%s7768_s4 + $0xb8] sm:$0xff] }
 0x222   : > { %4580 = vmatmul.msk.bf16.vlgmr.msrb.gmra.mxu0 %vm1586_vm5, %v5629_v44  ;;  %v5649_v44 = vld [vmem:[%s7768_s4 + $0x40] sm:$0xff] }
 0x223   : > { %2502 = vmatpush.bf16.msrb.mxu0 %v5652_v11 }
 0x225   : > { %4529 = vmatmul.msk.bf16.vlgmr.msrb.gmra.mxu3 %vm1586_vm5, %v5620_v57  ;;  %v5668_v57 = vld [vmem:[%s7768_s4 + $0xd8] sm:$0xff] }
 0x226   : > { %2093 = vmatpush.bf16.msrb.mxu3 %v5634_v46 }
 0x227   : > { %2503 = vmatpush.bf16.msrb.mxu0 %v5651_v16 }
 0x22a   : > { %2094 = vmatpush.bf16.msrb.mxu3 %v5633_v47  ;;  %v5659_v47 = vld [vmem:[%s7768_s4 + $0x90] sm:$0xff] }
 0x22b   : > { %2504 = vmatpush.bf16.msrb.mxu0 %v5650_v36  ;;  %2605 = vmatpush.bf16.msra.mxu2 %v5659_v47 }
 0x22f   : > { %2505 = vmatpush.bf16.msrb.mxu0 %v5649_v44 }
 0x232   : > { %4614 = vmatmul.msk.bf16.vlgmr.msra.gmra.mxu0 %vm1586_vm5, %v5635_v59 }
 0x233   : > { %2706 = vmatpush.bf16.msra.mxu0 %v5668_v57 }
 0x235   : > { %4563 = vmatmul.msk.bf16.vlgmr.msra.gmra.mxu3 %vm1586_vm5, %v5626_v49  ;;  %v5653_v49 = vld [vmem:[%s7768_s4 + $0x60] sm:$0xff] }
 0x236   : > { %2452 = vmatpush.bf16.msra.mxu3 %v5644_v10  ;;  %2556 = vmatpush.bf16.msrb.mxu1 %v5653_v49  ;;  %v5665_v10 = vld [vmem:[%s7768_s4 + $0xc0] sm:$0xff] }
 0x23a   : > { %2453 = vmatpush.bf16.msra.mxu3 %v5643_v20  ;;  %2757 = vmatpush.bf16.msra.mxu1 %v5672_v25 }
 0x23e   : > { %2454 = vmatpush.bf16.msra.mxu3 %v5642_v33  ;;  %2758 = vmatpush.bf16.msra.mxu1 %v5671_v40  ;;  %v5675_v40 = vld [vmem:[%s7768_s4 + $0x110] sm:$0xff] }
 0x242   : > { %2455 = vmatpush.bf16.msra.mxu3 %v5641_v48  ;;  %2759 = vmatpush.bf16.msra.mxu1 %v5670_v21  ;;  %v5673_v21 = vld [vmem:[%s7768_s4 + $0x100] sm:$0xff] }
 0x245   : > { %4597 = vmatmul.msk.bf16.vlgmr.msrb.gmra.mxu3 %vm1586_vm5, %v5632_v53 }
 0x246   : > { %2655 = vmatpush.bf16.msrb.mxu3 %v5664_v45 }
 0x289   : > { %v1883_v27 = vpop.f32.mrf.mxu1 }
 0x28f   : > { %v1967_v56 = vpop.f32.mrf.mxu0 }
 0x291   : > { %v1885_v52 = vpop.f32.mrf.mxu1 }
 0x297   : > { %v1969_v0 = vpop.f32.mrf.mxu0 }
 0x298   : > { %v1849_v26 = vpop.f32.mrf.mxu3 }
 0x299   : > { %v1884_v4 = vadd.f32 %v1883_v27, %v1849_v26  ;;  %v5663_v26 = vld [vmem:[%s7768_s4 + $0xb0] sm:$0xff] }
 0x29a   : > { %2656 = vmatpush.bf16.msrb.mxu3 %v5663_v26  ;;  %v5676_v26 = vld [vmem:[%s7768_s4 + $0x118] sm:$0xff] }
 0x29c   : > { %v2182_v15 = vpop.f32.mrf.mxu1 }
 0x29f   : > { %v2053_v51 = vpop.f32.mrf.mxu0 }
 0x2a0   : > { %v1851_v61 = vpop.f32.mrf.mxu3 }
 0x2a1   : > { %v1886_v9 = vadd.f32 %v1885_v52, %v1851_v61  ;;  %v5658_v61 = vld [vmem:[%s7768_s4 + $0x88] sm:$0xff] }
 0x2a2   : > { %2606 = vmatpush.bf16.msra.mxu2 %v5658_v61 }
 0x2a4   : > { %v2184_v59 = vpop.f32.mrf.mxu1 }
 0x2a7   : > { %v2055_v5 = vpop.f32.mrf.mxu0 }
 0x2a8   : > { %v1924_v62 = vpop.f32.mrf.mxu3 }
 0x2a9   : > { %v1929_v60 = vadd.f32 %v1924_v62, %v1884_v4  ;;  %v5657_v4 = vld [vmem:[%s7768_s4 + $0x80] sm:$0xff] }
 0x2aa   : > { %2607 = vmatpush.bf16.msra.mxu2 %v5657_v4  ;;  %v5707_v4 = vld [vmem:[%s7770_s5 + $0xf4] sm:$0xf] }
 0x2ab   : > { %v1972_v7 = vadd.f32 %v1967_v56, %v1929_v60  ;;  %v5667_v56 = vld [vmem:[%s7768_s4 + $0xd0] sm:$0xff] }
 0x2ac   : > { %2707 = vmatpush.bf16.msra.mxu0 %v5667_v56 }
 0x2af   : > { %v2139_v13 = vpop.f32.mrf.mxu0 }
 0x2b0   : > { %v1926_v1 = vpop.f32.mrf.mxu3 }
 0x2b1   : > { %v1930_v42 = vadd.f32 %v1926_v1, %v1886_v9  ;;  %v5666_v1 = vld [vmem:[%s7768_s4 + $0xc8] sm:$0xff]  ;;  %v5661_v9 = vld [vmem:[%s7768_s4 + $0xa0] sm:$0xff] }
 0x2b2   : > { %2708 = vmatpush.bf16.msra.mxu0 %v5666_v1 }
 0x2b3   : > { %v1973_v18 = vadd.f32 %v1969_v0, %v1930_v42  ;;  %v5662_v0 = vld [vmem:[%s7768_s4 + $0xa8] sm:$0xff] }
 0x2b4   : > { %2657 = vmatpush.bf16.msrb.mxu3 %v5662_v0 }
 0x2b6   : > { %2709 = vmatpush.bf16.msra.mxu0 %v5665_v10  ;;  %v4917_v10 = vld [vmem:[%s7770_s5 + $0xe8] sm:$0xf0] }
 0x2b7   : > { %v2141_v58 = vpop.f32.mrf.mxu0 }
 0x2b8   : > { %v2010_v3 = vpop.f32.mrf.mxu3  ;;  %2658 = vmatpush.bf16.msrb.mxu3 %v5661_v9  ;;  %v4915_v9 = vld [vmem:[%s7770_s5 + $0xe0] sm:$0xf] }
 0x2b9   : > { %v2015_v41 = vadd.f32 %v2010_v3, %v1972_v7 }
 0x2bb   : > { %v2058_v63 = vadd.f32 %v2053_v51, %v2015_v41 }
 0x2c0   : > { %v2012_v6 = vpop.f32.mrf.mxu3 }
 0x2c1   : > { %v2016_v55 = vadd.f32 %v2012_v6, %v1973_v18 }
 0x2c3   : > { %v2059_v37 = vadd.f32 %v2055_v5, %v2016_v55 }
 0x2c8   : > { %v2096_v14 = vpop.f32.mrf.mxu3 }
 0x2c9   : > { %v2101_v19 = vadd.f32 %v2096_v14, %v2058_v63 }
 0x2cb   : > { %v2144_v29 = vadd.f32 %v2139_v13, %v2101_v19 }
 0x2cd   : > { %v2187_v32 = vadd.f32 %v2182_v15, %v2144_v29 }
 0x2cf   : > { %v2193_v35 = vadd.f32 %v5877_v17, %v2187_v32 }
 0x2d0   : > { %v2098_v38 = vpop.f32.mrf.mxu3 }
 0x2d1   : > { %v2195_v39 = vmax.f32 %v2193_v35, 0.0  ;;  %v2102_v22 = vadd.f32 %v2098_v38, %v2059_v37 }
 0x2d3   : > { %v2145_v46 = vadd.f32 %v2141_v58, %v2102_v22  ;;  %2206 = vst.msk [vmem:[#allocation4 + $0x7] sm:$0xf] %vm2204_vm9, %v2195_v39  ;;  %v5669_v22 = vld [vmem:[%s7768_s4 + $0xe0] sm:$0xff] }
 0x2d4   : > { %2208 = vst.msk [vmem:[#allocation4 + $0x9] sm:$0xf0] %vm2207_vm11, %v2195_v39  ;;  %2760 = vmatpush.bf16.msra.mxu1 %v5669_v22  ;;  %v5689_v22 = vld [vmem:[%s7770_s5 + $0x64] sm:$0xf] }
 0x2d5   : > { %v2188_v53 = vadd.f32 %v2184_v59, %v2145_v46  ;;  %2198 = vst.msk [vmem:[%s6668_s30] sm:$0xff] %vm2197_vm8, %v2195_v39 }
 0x2d7   : > { %v2194_v54 = vadd.f32 %v5877_v17, %v2188_v53 }
 0x2d9   : > { %v2196_v62 = vmax.f32 %v2194_v54, 0.0 }
 0x2da   : > { %v2264_v51 = vld [vmem:[#allocation4 + $0x6] ss:$2 sm:$0x3]  ;;  %v2281_v27 = vld [vmem:[#allocation4 + $0x7] ss:$2 sm:$0x3] }
 0x2db   : > { %2209 = vst.msk [vmem:[#allocation4 + $0x13] sm:$0xf] %vm2204_vm9, %v2196_v62  ;;  %v2235_v3 = vld [vmem:[#allocation4 + $0xd] ss:$2 sm:$0x3]  ;;  %v2265_v50 = vpack.c.bf16 %v2264_v51, %v2264_v51  ;;  %v2282_v60 = vpack.c.bf16 %v2281_v27, %v2281_v27 }
 0x2dc   : > { %2210 = vst.msk [vmem:[#allocation4 + $0x15] sm:$0xf0] %vm2207_vm11, %v2196_v62  ;;  %v2236_v5 = vpack.c.bf16 %v2235_v3, %v2235_v3  ;;  %v2216_v52 = vld [vmem:[#allocation4 + $0xc] ss:$2 sm:$0x3] }
 0x2dd   : > { %v2217_v6 = vpack.c.bf16 %v2216_v52, %v2216_v52  ;;  %v2252_v7 = vld [vmem:[#allocation4 + $0xe] ss:$2 sm:$0x3]  ;;  %2267 = vst.msk [vmem:[#allocation8 + $0x6] sm:$0x1] %vm2213_vm10, %v2265_v50 }
 0x2de   : > { %v2238_v41 = vrot.slane %v2236_v5, 2  ;;  %v2253_v42 = vpack.c.bf16 %v2252_v7, %v2252_v7  ;;  %2284 = vst.msk [vmem:[#allocation8 + $0x8] sm:$0x1] %vm2213_vm10, %v2282_v60  ;;  %v2298_v63 = vld [vmem:[#allocation4 + $0x8] ss:$2 sm:$0x3] }
 0x2df   : > { %v2219_v12 = vrot.slane %v2217_v6, 2  ;;  %v2299_v11 = vpack.c.bf16 %v2298_v63, %v2298_v63  ;;  %v2314_v13 = vld [vmem:[#allocation4 + $0xc] ss:$2 sm:$0x3]  ;;  %2199 = vst.msk [vmem:[%s6668_s30 + $0x8] sm:$0xff] %vm2197_vm8, %v2196_v62 }
 0x2e0   : > { %v2241_v14 = vsel %vm2220_vm12, %v2236_v5, %v2238_v41  ;;  %v2255_v18 = vrot.slane %v2253_v42, 2  ;;  %v2330_v19 = vld [vmem:[#allocation4 + $0xd] ss:$2 sm:$0x3]  ;;  %v2315_v55 = vpack.c.bf16 %v2314_v13, %v2314_v13  ;;  %v4923_v27 = vld [vmem:[%s7770_s5 + $0xf0] sm:$0xf] }
 0x2e1   : > { %v2243_v20 = vrot.slane %v2241_v14, 7  ;;  %2301 = vst.msk [vmem:[#allocation8 + $0xa] sm:$0x1] %vm2213_vm10, %v2299_v11  ;;  %v2223_v28 = vsel %vm2220_vm12, %v2217_v6, %v2219_v12  ;;  %v2331_v29 = vpack.c.bf16 %v2330_v19, %v2330_v19  ;;  %v2346_v62 = vld [vmem:[#allocation4 + $0xe] ss:$2 sm:$0x3] }
 0x2e2   : > { %v2269_v15 = vld [vmem:[#allocation4 + $0x12] ss:$2 sm:$0x3]  ;;  %v2286_v16 = vld [vmem:[#allocation4 + $0x13] ss:$2 sm:$0x3]  ;;  %v2258_v33 = vsel %vm2220_vm12, %v2253_v42, %v2255_v18  ;;  %v2347_v0 = vpack.c.bf16 %v2346_v62, %v2346_v62 }
 0x2e3   : > { %v2270_v17 = vpack.c.bf16 %v2269_v15, %v2269_v15  ;;  %v2287_v30 = vpack.c.bf16 %v2286_v16, %v2286_v16  ;;  %v2303_v31 = vld [vmem:[#allocation4 + $0x14] ss:$2 sm:$0x3]  ;;  %v2319_v32 = vld [vmem:[#allocation4 + $0x18] ss:$2 sm:$0x3] }
 0x2e4   : > { %v2304_v2 = vpack.c.bf16 %v2303_v31, %v2303_v31  ;;  %v2320_v36 = vpack.c.bf16 %v2319_v32, %v2319_v32  ;;  %v2335_v34 = vld [vmem:[#allocation4 + $0x19] ss:$2 sm:$0x3]  ;;  %v2351_v35 = vld [vmem:[#allocation4 + $0x1a] ss:$2 sm:$0x3] }
 0x2e5   : > { %v2272_v37 = vrot.slane %v2270_v17, 2  ;;  %v2289_v38 = vrot.slane %v2287_v30, 2  ;;  %v2336_v8 = vpack.c.bf16 %v2335_v34, %v2335_v34  ;;  %v2352_v39 = vpack.c.bf16 %v2351_v35, %v2351_v35  ;;  %2245 = vst.msk [vmem:[#allocation8 + $0x2] sm:$0x2] %vm2227_vm13, %v2243_v20  ;;  %v5708_v3 = vld [vmem:[%s7770_s5 + $0xf4] sm:$0xf0] }
 0x2e6   : > { %v2306_v48 = vrot.slane %v2304_v2, 2  ;;  %v2322_v43 = vrot.slane %v2320_v36, 2  ;;  %v2225_v23 = vrot.slane %v2223_v28, 7  ;;  %v2260_v24 = vrot.slane %v2258_v33, 7  ;;  %2317 = vst.msk [vmem:[#allocation8 + $0xc] sm:$0x1] %vm2213_vm10, %v2315_v55 }
 0x2e7   : > { %v2338_v58 = vrot.slane %v2336_v8, 2  ;;  %v2354_v44 = vrot.slane %v2352_v39, 2  ;;  %v2275_v45 = vsel %vm2220_vm12, %v2270_v17, %v2272_v37  ;;  %v2292_v46 = vsel %vm2220_vm12, %v2287_v30, %v2289_v38  ;;  %2333 = vst.msk [vmem:[#allocation8 + $0xe] sm:$0x1] %vm2213_vm10, %v2331_v29  ;;  %v4925_v60 = vld [vmem:[%s7770_s5 + $0xf8] sm:$0xf0] }
 0x2e8   : > { %2228 = vst.msk [vmem:[#allocation8] sm:$0x2] %vm2227_vm13, %v2225_v23  ;;  %v2277_v57 = vrot.slane %v2275_v45, 7  ;;  %v2294_v47 = vrot.slane %v2292_v46, 7  ;;  %v2309_v59 = vsel %vm2220_vm12, %v2304_v2, %v2306_v48  ;;  %v2325_v49 = vsel %vm2220_vm12, %v2320_v36, %v2322_v43  ;;  %v5706_v41 = vld [vmem:[%s7770_s5 + $0xe4] sm:$0xf0] }
 0x2e9   : > { %2262 = vst.msk [vmem:[#allocation8 + $0x4] sm:$0x2] %vm2227_vm13, %v2260_v24  ;;  %v2311_v53 = vrot.slane %v2309_v59, 7  ;;  %v2327_v25 = vrot.slane %v2325_v49, 7  ;;  %v2341_v54 = vsel %vm2220_vm12, %v2336_v8, %v2338_v58  ;;  %v2357_v56 = vsel %vm2220_vm12, %v2352_v39, %v2354_v44  ;;  %v5674_v42 = vld [vmem:[%s7768_s4 + $0x108] sm:$0xff]  ;;  %s5558_s4 = sshll.u32 %s6099_s29, 2 }
 0x2ea   : > { %2279 = vst.msk [vmem:[#allocation8 + $0x6] sm:$0x2] %vm2227_vm13, %v2277_v57  ;;  %v2343_v61 = vrot.slane %v2341_v54, 7  ;;  %v2359_v51 = vrot.slane %v2357_v56, 7  ;;  %v4924_v50 = vor.u32 %v5708_v3, %v4923_v27  ;;  %v4928_v52 = vor.u32 %v5707_v4, %v4925_v60  ;;  %v5705_v12 = vld [vmem:[%s7770_s5 + $0xe4] sm:$0xf]  ;;  %s4073_s0 = scalar_lea.hbm %s7748_s12, %s5558_s4 }
 0x2eb   : > { %2296 = vst.msk [vmem:[#allocation8 + $0x8] sm:$0x2] %vm2227_vm13, %v2294_v47  ;;  %v4916_v63 = vor.u32 %v5706_v41, %v4915_v9  ;;  %v4920_v11 = vor.u32 %v5705_v12, %v4917_v10  ;;  %v4907_v13 = vld [vmem:[%s7770_s5 + $0xd0] sm:$0xf]  ;;  %v5704_v14 = vld [vmem:[%s7770_s5 + $0xd4] sm:$0xf0] }
 0x2ec   : > { %v2371_v1 = vld [vmem:[#allocation8 + $0x2] sm:$0x3]  ;;  %2313 = vst.msk [vmem:[#allocation8 + $0xa] sm:$0x2] %vm2227_vm13, %v2311_v53  ;;  %v4908_v18 = vor.u32 %v5704_v14, %v4907_v13  ;;  %v5703_v19 = vld [vmem:[%s7770_s5 + $0xd4] sm:$0xf] }
 0x2ed   : > { %4656 = vmatmul.msk.bf16.vlgmr.msrb.gmra.mxu2 %vm2197_vm8, %v2371_v1  ;;  %2329 = vst.msk [vmem:[#allocation8 + $0xc] sm:$0x2] %vm2227_vm13, %v2327_v25  ;;  %v4909_v20 = vld [vmem:[%s7770_s5 + $0xd8] sm:$0xf0]  ;;  %v4987_v15 = vld [vmem:[%s7770_s5 + $0x70] sm:$0xf] }
 0x2ee   : > { %2808 = vmatpush.bf16.msrb.mxu2 %v5676_v26  ;;  %2345 = vst.msk [vmem:[#allocation8 + $0xe] sm:$0x2] %vm2227_vm13, %v2343_v61  ;;  %v5692_v16 = vld [vmem:[%s7770_s5 + $0x74] sm:$0xf0]  ;;  %v5691_v28 = vld [vmem:[%s7770_s5 + $0x74] sm:$0xf]  ;;  %v4912_v29 = vor.u32 %v5703_v19, %v4909_v20 }
 0x2ef   : > { %v2362_v5 = vld [vmem:[#allocation8] sm:$0x3]  ;;  %2349 = vst.msk [vmem:[#allocation8 + $0x10] sm:$0x1] %vm2213_vm10, %v2347_v0  ;;  %v4989_v55 = vld [vmem:[%s7770_s5 + $0x78] sm:$0xf0]  ;;  %v4988_v17 = vor.u32 %v5692_v16, %v4987_v15 }
 0x2f0   : > { %4673 = vmatmul.msk.bf16.vlgmr.msra.gmra.mxu3 %vm2197_vm8, %v2362_v5  ;;  %v2461_v6 = vld [vmem:[#allocation8 + $0x4] sm:$0x3]  ;;  %2361 = vst.msk [vmem:[#allocation8 + $0x10] sm:$0x2] %vm2227_vm13, %v2359_v51  ;;  %v4899_v30 = vld [vmem:[%s7770_s5 + $0xc0] sm:$0xf]  ;;  %v4992_v37 = vor.u32 %v5691_v28, %v4989_v55 }
 0x2f1   : > { %4698 = vmatmul.msk.bf16.vlgmr.msrb.gmra.mxu0 %vm2197_vm8, %v2461_v6  ;;  %v2512_v7 = vld [vmem:[#allocation8 + $0x6] sm:$0x3]  ;;  %3000 = vmatpush.bf16.msra.mxu3 %v4924_v50  ;;  %v5702_v31 = vld [vmem:[%s7770_s5 + $0xc4] sm:$0xf0]  ;;  %v5701_v32 = vld [vmem:[%s7770_s5 + $0xc4] sm:$0xf] }
 0x2f2   : > { %4723 = vmatmul.msk.bf16.vlgmr.msrb.gmra.mxu1 %vm2197_vm8, %v2512_v7  ;;  %2809 = vmatpush.bf16.msrb.mxu2 %v5675_v40  ;;  %v4901_v33 = vld [vmem:[%s7770_s5 + $0xc8] sm:$0xf0]  ;;  %v4900_v2 = vor.u32 %v5702_v31, %v4899_v30  ;;  %v4979_v36 = vld [vmem:[%s7770_s5 + $0x60] sm:$0xf]  ;;  %v5690_v34 = vld [vmem:[%s7770_s5 + $0x64] sm:$0xf0] }
 0x2f3   : > { %3013 = vmatpush.bf16.msrb.mxu0 %v4928_v52  ;;  %3106 = vmatpush.bf16.msrb.mxu1 %v4988_v17  ;;  %v2563_v35 = vld [vmem:[#allocation8 + $0x8] sm:$0x3]  ;;  %v4980_v38 = vor.u32 %v5690_v34, %v4979_v36  ;;  %v4891_v8 = vld [vmem:[%s7770_s5 + $0xb0] sm:$0xf]  ;;  %v4981_v48 = vld [vmem:[%s7770_s5 + $0x68] sm:$0xf0]  ;;  %v4904_v43 = vor.u32 %v5701_v32, %v4901_v33 }
 0x2f4   : > { %v5700_v39 = vld [vmem:[%s7770_s5 + $0xb4] sm:$0xf0]  ;;  %v5699_v23 = vld [vmem:[%s7770_s5 + $0xb4] sm:$0xf]  ;;  %v4893_v24 = vld [vmem:[%s7770_s5 + $0xb8] sm:$0xf0]  ;;  %v4984_v47 = vor.u32 %v5689_v22, %v4981_v48 }
 0x2f5   : > { %3001 = vmatpush.bf16.msra.mxu3 %v4916_v63  ;;  %v4971_v58 = vld [vmem:[%s7770_s5 + $0x50] sm:$0xf]  ;;  %v5688_v44 = vld [vmem:[%s7770_s5 + $0x54] sm:$0xf0]  ;;  %v4892_v46 = vor.u32 %v5700_v39, %v4891_v8  ;;  %v2665_v57 = vld [vmem:[#allocation8 + $0xc] sm:$0x3]  ;;  %v4896_v26 = vor.u32 %v5699_v23, %v4893_v24 }
 0x2f6   : > { %2810 = vmatpush.bf16.msrb.mxu2 %v5674_v42  ;;  %v2614_v45 = vld [vmem:[#allocation8 + $0xa] sm:$0x3]  ;;  %v4883_v59 = vld [vmem:[%s7770_s5 + $0xa0] sm:$0xf]  ;;  %v5698_v49 = vld [vmem:[%s7770_s5 + $0xa4] sm:$0xf0]  ;;  %v4972_v54 = vor.u32 %v5688_v44, %v4971_v58 }
 0x2f7   : > { %3014 = vmatpush.bf16.msrb.mxu0 %v4920_v11  ;;  %3107 = vmatpush.bf16.msrb.mxu1 %v4980_v38  ;;  %v5687_v53 = vld [vmem:[%s7770_s5 + $0x54] sm:$0xf]  ;;  %v4973_v25 = vld [vmem:[%s7770_s5 + $0x58] sm:$0xf0]  ;;  %v5697_v56 = vld [vmem:[%s7770_s5 + $0xa4] sm:$0xf]  ;;  %v4884_v40 = vor.u32 %v5698_v49, %v4883_v59 }
 0x2f8   : > { %v4885_v61 = vld [vmem:[%s7770_s5 + $0xa8] sm:$0xf0]  ;;  %v4963_v62 = vld [vmem:[%s7770_s5 + $0x40] sm:$0xf]  ;;  %v5686_v0 = vld [vmem:[%s7770_s5 + $0x44] sm:$0xf0]  ;;  %v4976_v51 = vor.u32 %v5687_v53, %v4973_v25 }
 0x2f9   : > { %3002 = vmatpush.bf16.msra.mxu3 %v4908_v18  ;;  %v2716_v1 = vld [vmem:[#allocation8 + $0xe] sm:$0x3]  ;;  %v4875_v27 = vld [vmem:[%s7770_s5 + $0x90] sm:$0xf]  ;;  %v5696_v3 = vld [vmem:[%s7770_s5 + $0x94] sm:$0xf0]  ;;  %v4888_v60 = vor.u32 %v5697_v56, %v4885_v61  ;;  %v4964_v5 = vor.u32 %v5686_v0, %v4963_v62 }
 0x2fa   : > { %2811 = vmatpush.bf16.msrb.mxu2 %v5673_v21  ;;  %v5685_v50 = vld [vmem:[%s7770_s5 + $0x44] sm:$0xf]  ;;  %v4965_v4 = vld [vmem:[%s7770_s5 + $0x48] sm:$0xf0]  ;;  %v5695_v52 = vld [vmem:[%s7770_s5 + $0x94] sm:$0xf]  ;;  %v4876_v42 = vor.u32 %v5696_v3, %v4875_v27 }
 0x2fb   : > { %3015 = vmatpush.bf16.msrb.mxu0 %v4912_v29  ;;  %3108 = vmatpush.bf16.msrb.mxu1 %v4972_v54  ;;  %v4877_v6 = vld [vmem:[%s7770_s5 + $0x98] sm:$0xf0]  ;;  %v4955_v7 = vld [vmem:[%s7770_s5 + $0x30] sm:$0xf]  ;;  %v5684_v9 = vld [vmem:[%s7770_s5 + $0x34] sm:$0xf0]  ;;  %v4968_v63 = vor.u32 %v5685_v50, %v4965_v4 }
 0x2fc   : > { %v5683_v41 = vld [vmem:[%s7770_s5 + $0x34] sm:$0xf]  ;;  %v4957_v12 = vld [vmem:[%s7770_s5 + $0x38] sm:$0xf0]  ;;  %v4867_v10 = vld [vmem:[%s7770_s5 + $0x80] sm:$0xf]  ;;  %v4880_v13 = vor.u32 %v5695_v52, %v4877_v6  ;;  %v4956_v14 = vor.u32 %v5684_v9, %v4955_v7 }
 0x2fd   : > { %4748 = vmatmul.msk.bf16.vlgmr.msra.gmra.mxu2 %vm2197_vm8, %v2563_v35  ;;  %3003 = vmatpush.bf16.msra.mxu3 %v4900_v2  ;;  %v5694_v11 = vld [vmem:[%s7770_s5 + $0x84] sm:$0xf0]  ;;  %v5693_v18 = vld [vmem:[%s7770_s5 + $0x84] sm:$0xf]  ;;  %v5067_v19 = vld [vmem:[%s7770_s5 + $0x170] sm:$0xf]  ;;  %v4960_v17 = vor.u32 %v5683_v41, %v4957_v12 }
 0x2fe   : > { %3119 = vmatpush.bf16.msra.mxu2 %v4992_v37  ;;  %v5724_v20 = vld [vmem:[%s7770_s5 + $0x174] sm:$0xf0]  ;;  %v4869_v21 = vld [vmem:[%s7770_s5 + $0x88] sm:$0xf0]  ;;  %v4947_v15 = vld [vmem:[%s7770_s5 + $0x20] sm:$0xf]  ;;  %v4868_v28 = vor.u32 %v5694_v11, %v4867_v10 }
 0x2ff   : > { %3016 = vmatpush.bf16.msrb.mxu0 %v4904_v43  ;;  %3109 = vmatpush.bf16.msrb.mxu1 %v4964_v5  ;;  %v5682_v16 = vld [vmem:[%s7770_s5 + $0x24] sm:$0xf0]  ;;  %v5723_v55 = vld [vmem:[%s7770_s5 + $0x174] sm:$0xf]  ;;  %v5069_v29 = vld [vmem:[%s7770_s5 + $0x178] sm:$0xf0]  ;;  %v5068_v31 = vor.u32 %v5724_v20, %v5067_v19  ;;  %v4872_v33 = vor.u32 %v5693_v18, %v4869_v21 }
 0x300   : > { %4773 = vmatmul.msk.bf16.vlgmr.msrb.gmra.mxu3 %vm2197_vm8, %v2614_v45  ;;  %v5681_v30 = vld [vmem:[%s7770_s5 + $0x24] sm:$0xf]  ;;  %v4949_v32 = vld [vmem:[%s7770_s5 + $0x28] sm:$0xf0]  ;;  %v4948_v2 = vor.u32 %v5682_v16, %v4947_v15  ;;  %v5059_v36 = vld [vmem:[%s7770_s5 + $0x160] sm:$0xf]  ;;  %v5072_v37 = vor.u32 %v5723_v55, %v5069_v29 }
 0x301   : > { %4798 = vmatmul.msk.bf16.vlgmr.msra.gmra.mxu0 %vm2197_vm8, %v2665_v57  ;;  %3004 = vmatpush.bf16.msra.mxu3 %v4892_v46  ;;  %v5722_v34 = vld [vmem:[%s7770_s5 + $0x164] sm:$0xf0]  ;;  %v2767_v35 = vld [vmem:[#allocation8 + $0x10] sm:$0x3]  ;;  %v4939_v38 = vld [vmem:[%s7770_s5 + $0x10] sm:$0xf]  ;;  %v4952_v23 = vor.u32 %v5681_v30, %v4949_v32 }
 0x302   : > { %4823 = vmatmul.msk.bf16.vlgmr.msra.gmra.mxu1 %vm2197_vm8, %v2716_v1  ;;  %3120 = vmatpush.bf16.msra.mxu2 %v4984_v47  ;;  %v5680_v8 = vld [vmem:[%s7770_s5 + $0x14] sm:$0xf0]  ;;  %v5679_v39 = vld [vmem:[%s7770_s5 + $0x14] sm:$0xf]  ;;  %v4941_v22 = vld [vmem:[%s7770_s5 + $0x18] sm:$0xf0]  ;;  %v5060_v24 = vor.u32 %v5722_v34, %v5059_v36 }
 0x303   : > { %3017 = vmatpush.bf16.msrb.mxu0 %v4896_v26  ;;  %3110 = vmatpush.bf16.msrb.mxu1 %v4956_v14  ;;  %v5721_v48 = vld [vmem:[%s7770_s5 + $0x164] sm:$0xf]  ;;  %v5061_v43 = vld [vmem:[%s7770_s5 + $0x168] sm:$0xf0]  ;;  %v4931_v58 = vld [vmem:[%s7770_s5] sm:$0xf]  ;;  %v4940_v57 = vor.u32 %v5680_v8, %v4939_v38  ;;  %v4944_v1 = vor.u32 %v5679_v39, %v4941_v22 }
 0x304   : > { %v5678_v44 = vld [vmem:[%s7770_s5 + $0x4] sm:$0xf0]  ;;  %v5051_v45 = vld [vmem:[%s7770_s5 + $0x150] sm:$0xf]  ;;  %v5720_v46 = vld [vmem:[%s7770_s5 + $0x154] sm:$0xf0]  ;;  %v5064_v25 = vor.u32 %v5721_v48, %v5061_v43 }
 0x305   : > { %3005 = vmatpush.bf16.msra.mxu3 %v4884_v40  ;;  %v5719_v47 = vld [vmem:[%s7770_s5 + $0x154] sm:$0xf]  ;;  %v5053_v59 = vld [vmem:[%s7770_s5 + $0x158] sm:$0xf0]  ;;  %v5147_v49 = vld [vmem:[%s7770_s5 + $0x1f0] sm:$0xf]  ;;  %v5052_v3 = vor.u32 %v5720_v46, %v5051_v45 }
 0x306   : > { %3121 = vmatpush.bf16.msra.mxu2 %v4976_v51  ;;  %v5740_v53 = vld [vmem:[%s7770_s5 + $0x1f4] sm:$0xf0]  ;;  %v2840_v54 = vld [vmem:[#allocation9 + $0x1] sm:$0x1]  ;;  %v2834_v0 = vld [vmem:[#allocation9] sm:$0x1]  ;;  %v5056_v7 = vor.u32 %v5719_v47, %v5053_v59 }
 0x307   : > { %3018 = vmatpush.bf16.msrb.mxu0 %v4888_v60  ;;  %3111 = vmatpush.bf16.msrb.mxu1 %v4948_v2  ;;  %v2837_v26 = vld [vmem:[#allocation5 + $0x1] sm:$0x1]  ;;  %v2829_v62 = vld [vmem:[#allocation5] sm:$0x1]  ;;  %v5677_v40 = vld [vmem:[%s7770_s5 + $0x4] sm:$0xf]  ;;  %v4932_v60 = vor.u32 %v5678_v44, %v4931_v58  ;;  %v5148_v9 = vor.u32 %v5740_v53, %v5147_v49 }
 0x308   : > { %v2838_v61 = vpack.c.bf16 %v2837_v26, %v2837_v26  ;;  %v4933_v51 = vld [vmem:[%s7770_s5 + $0x8] sm:$0xf0]  ;;  %v5739_v27 = vld [vmem:[%s7770_s5 + $0x1f4] sm:$0xf]  ;;  %v2830_v50 = vpack.c.bf16 %v2829_v62, %v2829_v62  ;;  %v5149_v4 = vld [vmem:[%s7770_s5 + $0x1f8] sm:$0xf0] }
 0x309   : > { %3006 = vmatpush.bf16.msra.mxu3 %v4876_v42  ;;  %v5043_v5 = vld [vmem:[%s7770_s5 + $0x140] sm:$0xf]  ;;  %v5718_v52 = vld [vmem:[%s7770_s5 + $0x144] sm:$0xf0]  ;;  %v5717_v41 = vld [vmem:[%s7770_s5 + $0x144] sm:$0xf]  ;;  %v4936_v11 = vor.u32 %v5677_v40, %v4933_v51  ;;  %v5152_v14 = vor.u32 %v5739_v27, %v5149_v4 }
 0x30a   : > { %3122 = vmatpush.bf16.msra.mxu2 %v4968_v63  ;;  %v2841_v6 = vsel %vm6980_vm0, %v2838_v61, %v2840_v54  ;;  %v5045_v42 = vld [vmem:[%s7770_s5 + $0x148] sm:$0xf0]  ;;  %v2835_v63 = vsel %vm6980_vm0, %v2830_v50, %v2834_v0  ;;  %v5139_v12 = vld [vmem:[%s7770_s5 + $0x1e0] sm:$0xf]  ;;  %v5738_v10 = vld [vmem:[%s7770_s5 + $0x1e4] sm:$0xf0] }
 0x30b   : > { %3019 = vmatpush.bf16.msrb.mxu0 %v4880_v13  ;;  %3112 = vmatpush.bf16.msrb.mxu1 %v4940_v57  ;;  %2842 = vst [vmem:[#allocation9 + $0x1] sm:$0x1] %v2841_v6  ;;  %v5044_v13 = vor.u32 %v5718_v52, %v5043_v5  ;;  %v5035_v18 = vld [vmem:[%s7770_s5 + $0x130] sm:$0xf]  ;;  %v5716_v19 = vld [vmem:[%s7770_s5 + $0x134] sm:$0xf0]  ;;  %v5048_v15 = vor.u32 %v5717_v41, %v5045_v42 }
 0x30c   : > { %2836 = vst [vmem:[#allocation9] sm:$0x1] %v2835_v63  ;;  %v5737_v20 = vld [vmem:[%s7770_s5 + $0x1e4] sm:$0xf]  ;;  %v5141_v21 = vld [vmem:[%s7770_s5 + $0x1e8] sm:$0xf0]  ;;  %v5140_v16 = vor.u32 %v5738_v10, %v5139_v12 }
 0x30d   : > { %4848 = vmatmul.msk.bf16.vlgmr.msrb.gmra.mxu2 %vm2197_vm8, %v2767_v35  ;;  %3007 = vmatpush.bf16.msra.mxu3 %v4868_v28  ;;  %v5715_v28 = vld [vmem:[%s7770_s5 + $0x134] sm:$0xf]  ;;  %v5037_v55 = vld [vmem:[%s7770_s5 + $0x138] sm:$0xf0]  ;;  %v5131_v29 = vld [vmem:[%s7770_s5 + $0x1d0] sm:$0xf]  ;;  %v5144_v32 = vor.u32 %v5737_v20, %v5141_v21 }
 0x30e   : > { %3123 = vmatpush.bf16.msra.mxu2 %v4960_v17  ;;  %v5736_v17 = vld [vmem:[%s7770_s5 + $0x1d4] sm:$0xf0]  ;;  %v5735_v30 = vld [vmem:[%s7770_s5 + $0x1d4] sm:$0xf]  ;;  %v5027_v2 = vld [vmem:[%s7770_s5 + $0x120] sm:$0xf] }
 0x30f   : > { %3020 = vmatpush.bf16.msrb.mxu0 %v4872_v33  ;;  %3113 = vmatpush.bf16.msrb.mxu1 %v4932_v60  ;;  %v5714_v36 = vld [vmem:[%s7770_s5 + $0x124] sm:$0xf0]  ;;  %v5133_v34 = vld [vmem:[%s7770_s5 + $0x1d8] sm:$0xf0]  ;;  %v5132_v38 = vor.u32 %v5736_v17, %v5131_v29  ;;  %v5713_v8 = vld [vmem:[%s7770_s5 + $0x124] sm:$0xf] }
 0x310   : > { %v5029_v39 = vld [vmem:[%s7770_s5 + $0x128] sm:$0xf0]  ;;  %v5123_v22 = vld [vmem:[%s7770_s5 + $0x1c0] sm:$0xf]  ;;  %v5734_v48 = vld [vmem:[%s7770_s5 + $0x1c4] sm:$0xf0]  ;;  %v5028_v43 = vor.u32 %v5714_v36, %v5027_v2 }
 0x311   : > { %3230 = vmatpush.bf16.msrb.mxu3 %v5068_v31  ;;  %v5036_v31 = vor.u32 %v5716_v19, %v5035_v18  ;;  %v5125_v58 = vld [vmem:[%s7770_s5 + $0x1c8] sm:$0xf0]  ;;  %v5032_v44 = vor.u32 %v5713_v8, %v5029_v39  ;;  %v5124_v45 = vor.u32 %v5734_v48, %v5123_v22  ;;  %v5731_v57 = vld [vmem:[%s7770_s5 + $0x1b4] sm:$0xf]  ;;  %v5117_v47 = vld [vmem:[%s7770_s5 + $0x1b8] sm:$0xf0] }
 0x312   : > { %3124 = vmatpush.bf16.msra.mxu2 %v4952_v23  ;;  %v2902_v33 = vld [vmem:[#allocation9 + $0x1] sm:$0x1]  ;;  %v5136_v23 = vor.u32 %v5735_v30, %v5133_v34  ;;  %v5120_v59 = vor.u32 %v5731_v57, %v5117_v47  ;;  %v5729_v49 = vld [vmem:[%s7770_s5 + $0x1a4] sm:$0xf]  ;;  %v5109_v53 = vld [vmem:[%s7770_s5 + $0x1a8] sm:$0xf0] }
 0x313   : > { %3243 = vmatpush.bf16.msra.mxu0 %v5072_v37  ;;  %3356 = vmatpush.bf16.msra.mxu1 %v5148_v9  ;;  %v2885_v35 = vld [vmem:[#allocation9] sm:$0x1]  ;;  %v5040_v37 = vor.u32 %v5715_v28, %v5037_v55  ;;  %v5019_v26 = vld [vmem:[%s7770_s5 + $0x110] sm:$0xf]  ;;  %v5712_v54 = vld [vmem:[%s7770_s5 + $0x114] sm:$0xf0] }
 0x314   : > { %3008 = vmatmul.bf16.vlgmr.msra.gmra.mxu3 %v2902_v33  ;;  %3021 = vmatmul.bf16.vlgmr.msrb.gmra.mxu0 %v2902_v33  ;;  %v5711_v61 = vld [vmem:[%s7770_s5 + $0x114] sm:$0xf]  ;;  %v5020_v62 = vor.u32 %v5712_v54, %v5019_v26  ;;  %v5021_v0 = vld [vmem:[%s7770_s5 + $0x118] sm:$0xf0]  ;;  %v5732_v40 = vld [vmem:[%s7770_s5 + $0x1b4] sm:$0xf0] }
 0x315   : > { %3231 = vmatpush.bf16.msrb.mxu3 %v5060_v24  ;;  %3114 = vmatmul.bf16.vlgmr.msrb.gmra.mxu1 %v2885_v35  ;;  %v5733_v24 = vld [vmem:[%s7770_s5 + $0x1c4] sm:$0xf]  ;;  %v5024_v51 = vor.u32 %v5711_v61, %v5021_v0  ;;  %v5101_v50 = vld [vmem:[%s7770_s5 + $0x198] sm:$0xf0]  ;;  %v5011_v60 = vld [vmem:[%s7770_s5 + $0x100] sm:$0xf] }
 0x316   : > { %3125 = vmatpush.bf16.msra.mxu2 %v4944_v1  ;;  %v5128_v46 = vor.u32 %v5733_v24, %v5125_v58  ;;  %v5115_v1 = vld [vmem:[%s7770_s5 + $0x1b0] sm:$0xf]  ;;  %v5710_v5 = vld [vmem:[%s7770_s5 + $0x104] sm:$0xf0]  ;;  %v5709_v52 = vld [vmem:[%s7770_s5 + $0x104] sm:$0xf] }
 0x317   : > { %3244 = vmatpush.bf16.msra.mxu0 %v5064_v25  ;;  %3357 = vmatpush.bf16.msra.mxu1 %v5140_v16  ;;  %v5112_v25 = vor.u32 %v5729_v49, %v5109_v53  ;;  %v5116_v27 = vor.u32 %v5732_v40, %v5115_v1  ;;  %v5012_v6 = vor.u32 %v5710_v5, %v5011_v60  ;;  %v5107_v9 = vld [vmem:[%s7770_s5 + $0x1a0] sm:$0xf]  ;;  %v5730_v41 = vld [vmem:[%s7770_s5 + $0x1a4] sm:$0xf0]  ;;  %v5725_v12 = vld [vmem:[%s7770_s5 + $0x184] sm:$0xf] }
 0x318   : > { %v5108_v63 = vor.u32 %v5730_v41, %v5107_v9  ;;  %v5093_v10 = vld [vmem:[%s7770_s5 + $0x188] sm:$0xf0]  ;;  %v5755_v18 = vld [vmem:[%s7770_s5 + $0x274] sm:$0xf]  ;;  %v5229_v19 = vld [vmem:[%s7770_s5 + $0x278] sm:$0xf0] }
 0x319   : > { %3232 = vmatpush.bf16.msrb.mxu3 %v5052_v3  ;;  %v5727_v3 = vld [vmem:[%s7770_s5 + $0x194] sm:$0xf]  ;;  %v5232_v21 = vor.u32 %v5755_v18, %v5229_v19  ;;  %v2846_v16 = vld [vmem:[#allocation9 + $0x2] sm:$0x1]  ;;  %v2849_v28 = vld [vmem:[#allocation5 + $0x4] sm:$0x1] }
 0x31a   : > { %3126 = vmatpush.bf16.msra.mxu2 %v4936_v11  ;;  %v5104_v4 = vor.u32 %v5727_v3, %v5101_v50  ;;  %v5227_v11 = vld [vmem:[%s7770_s5 + $0x270] sm:$0xf]  ;;  %v2850_v29 = vpack.c.bf16 %v2849_v28, %v2849_v28  ;;  %v2852_v17 = vld [vmem:[#allocation9 + $0x3] sm:$0x1]  ;;  %v5219_v33 = vld [vmem:[%s7770_s5 + $0x260] sm:$0xf] }
 0x31b   : > { %3245 = vmatpush.bf16.msra.mxu0 %v5056_v7  ;;  %3358 = vmatpush.bf16.msra.mxu1 %v5132_v38  ;;  %v5013_v7 = vld [vmem:[%s7770_s5 + $0x108] sm:$0xf0]  ;;  %v5099_v30 = vld [vmem:[%s7770_s5 + $0x190] sm:$0xf]  ;;  %v5754_v2 = vld [vmem:[%s7770_s5 + $0x264] sm:$0xf0] }
 0x31c   : > { %v5016_v42 = vor.u32 %v5709_v52, %v5013_v7  ;;  %v5753_v36 = vld [vmem:[%s7770_s5 + $0x264] sm:$0xf]  ;;  %v5221_v38 = vld [vmem:[%s7770_s5 + $0x268] sm:$0xf0]  ;;  %v5091_v8 = vld [vmem:[%s7770_s5 + $0x180] sm:$0xf] }
 0x31d   : > { %3233 = vmatpush.bf16.msrb.mxu3 %v5044_v13  ;;  %3127 = vmatmul.bf16.vlgmr.msra.gmra.mxu2 %v2885_v35  ;;  %v5096_v13 = vor.u32 %v5725_v12, %v5093_v10  ;;  %v2853_v35 = vsel %vm6980_vm0, %v2850_v29, %v2852_v17  ;;  %v5726_v39 = vld [vmem:[%s7770_s5 + $0x184] sm:$0xf0]  ;;  %v5224_v22 = vor.u32 %v5753_v36, %v5221_v38  ;;  %v5751_v24 = vld [vmem:[%s7770_s5 + $0x254] sm:$0xf]  ;;  %v5213_v58 = vld [vmem:[%s7770_s5 + $0x258] sm:$0xf0] }
 0x31e   : > { %3369 = vmatpush.bf16.msrb.mxu2 %v5152_v14  ;;  %v5756_v14 = vld [vmem:[%s7770_s5 + $0x274] sm:$0xf0]  ;;  %v5092_v48 = vor.u32 %v5726_v39, %v5091_v8  ;;  %2854 = vst [vmem:[#allocation9 + $0x3] sm:$0x1] %v2853_v35  ;;  %v5750_v57 = vld [vmem:[%s7770_s5 + $0x244] sm:$0xf0] }
 0x31f   : > { %3246 = vmatpush.bf16.msra.mxu0 %v5048_v15  ;;  %3359 = vmatpush.bf16.msra.mxu1 %v5124_v45  ;;  %v5228_v20 = vor.u32 %v5756_v14, %v5227_v11  ;;  %v2843_v15 = vld [vmem:[#allocation5 + $0x2] sm:$0x1]  ;;  %v5216_v45 = vor.u32 %v5751_v24, %v5213_v58  ;;  %v5749_v47 = vld [vmem:[%s7770_s5 + $0x244] sm:$0xf]  ;;  %v5307_v49 = vld [vmem:[%s7770_s5 + $0x2f0] sm:$0xf] }
 0x320   : > { %v2844_v55 = vpack.c.bf16 %v2843_v15, %v2843_v15  ;;  %v5772_v53 = vld [vmem:[%s7770_s5 + $0x2f4] sm:$0xf0]  ;;  %v5771_v26 = vld [vmem:[%s7770_s5 + $0x2f4] sm:$0xf]  ;;  %v5309_v54 = vld [vmem:[%s7770_s5 + $0x2f8] sm:$0xf0] }
 0x321   : > { %3234 = vmatpush.bf16.msrb.mxu3 %v5036_v31  ;;  %v5728_v31 = vld [vmem:[%s7770_s5 + $0x194] sm:$0xf0]  ;;  %v5312_v61 = vor.u32 %v5771_v26, %v5309_v54  ;;  %v5747_v3 = vld [vmem:[%s7770_s5 + $0x234] sm:$0xf]  ;;  %v5197_v50 = vld [vmem:[%s7770_s5 + $0x238] sm:$0xf0] }
 0x322   : > { %3370 = vmatpush.bf16.msrb.mxu2 %v5144_v32  ;;  %v5100_v32 = vor.u32 %v5728_v31, %v5099_v30  ;;  %v2847_v34 = vsel %vm6980_vm0, %v2844_v55, %v2846_v16  ;;  %v5200_v60 = vor.u32 %v5747_v3, %v5197_v50  ;;  %v5299_v5 = vld [vmem:[%s7770_s5 + $0x2e0] sm:$0xf]  ;;  %v5770_v52 = vld [vmem:[%s7770_s5 + $0x2e4] sm:$0xf0]  ;;  %v5301_v9 = vld [vmem:[%s7770_s5 + $0x2e8] sm:$0xf0] }
 0x323   : > { %3247 = vmatpush.bf16.msra.mxu0 %v5040_v37  ;;  %3360 = vmatpush.bf16.msra.mxu1 %v5116_v27  ;;  %v5220_v37 = vor.u32 %v5754_v2, %v5219_v33  ;;  %2848 = vst [vmem:[#allocation9 + $0x2] sm:$0x1] %v2847_v34  ;;  %v5748_v27 = vld [vmem:[%s7770_s5 + $0x234] sm:$0xf0]  ;;  %v5300_v7 = vor.u32 %v5770_v52, %v5299_v5  ;;  %v5187_v41 = vld [vmem:[%s7770_s5 + $0x220] sm:$0xf] }
 0x324   : > { %v5745_v10 = vld [vmem:[%s7770_s5 + $0x224] sm:$0xf]  ;;  %v5189_v11 = vld [vmem:[%s7770_s5 + $0x228] sm:$0xf0]  ;;  %v5768_v18 = vld [vmem:[%s7770_s5 + $0x2d4] sm:$0xf0] }
 0x325   : > { %3235 = vmatpush.bf16.msrb.mxu3 %v5028_v43  ;;  %v5211_v43 = vld [vmem:[%s7770_s5 + $0x250] sm:$0xf]  ;;  %v3258_v40 = vld [vmem:[#allocation9 + $0x3] sm:$0x1]  ;;  %v5192_v14 = vor.u32 %v5745_v10, %v5189_v11  ;;  %v5767_v19 = vld [vmem:[%s7770_s5 + $0x2d4] sm:$0xf] }
 0x326   : > { %3371 = vmatpush.bf16.msrb.mxu2 %v5136_v23  ;;  %v5752_v23 = vld [vmem:[%s7770_s5 + $0x254] sm:$0xf0]  ;;  %v5179_v16 = vld [vmem:[%s7770_s5 + $0x210] sm:$0xf]  ;;  %v5743_v55 = vld [vmem:[%s7770_s5 + $0x214] sm:$0xf] }
 0x327   : > { %3248 = vmatpush.bf16.msra.mxu0 %v5032_v44  ;;  %3361 = vmatpush.bf16.msra.mxu1 %v5108_v63  ;;  %v5212_v44 = vor.u32 %v5752_v23, %v5211_v43  ;;  %v5744_v28 = vld [vmem:[%s7770_s5 + $0x214] sm:$0xf0]  ;;  %v5181_v29 = vld [vmem:[%s7770_s5 + $0x218] sm:$0xf0]  ;;  %v5283_v17 = vld [vmem:[%s7770_s5 + $0x2c0] sm:$0xf] }
 0x328   : > { %v5766_v30 = vld [vmem:[%s7770_s5 + $0x2c4] sm:$0xf0]  ;;  %v5184_v33 = vor.u32 %v5743_v55, %v5181_v29  ;;  %v5765_v2 = vld [vmem:[%s7770_s5 + $0x2c4] sm:$0xf]  ;;  %v5285_v36 = vld [vmem:[%s7770_s5 + $0x2c8] sm:$0xf0] }
 0x329   : > { %3236 = vmatpush.bf16.msrb.mxu3 %v5020_v62  ;;  %v5171_v34 = vld [vmem:[%s7770_s5 + $0x200] sm:$0xf]  ;;  %v5742_v38 = vld [vmem:[%s7770_s5 + $0x204] sm:$0xf0]  ;;  %v5741_v8 = vld [vmem:[%s7770_s5 + $0x204] sm:$0xf] }
 0x32a   : > { %3372 = vmatpush.bf16.msrb.mxu2 %v5128_v46  ;;  %v5203_v46 = vld [vmem:[%s7770_s5 + $0x240] sm:$0xf]  ;;  %v3132_v1 = vld [vmem:[#allocation9 + $0x2] sm:$0x1]  ;;  %v5173_v39 = vld [vmem:[%s7770_s5 + $0x208] sm:$0xf0] }
 0x32b   : > { %3249 = vmatpush.bf16.msra.mxu0 %v5024_v51  ;;  %3362 = vmatpush.bf16.msra.mxu1 %v5100_v32  ;;  %v5204_v62 = vor.u32 %v5750_v57, %v5203_v46  ;;  %v5195_v51 = vld [vmem:[%s7770_s5 + $0x230] sm:$0xf]  ;;  %v5180_v32 = vor.u32 %v5744_v28, %v5179_v16  ;;  %v5764_v23 = vld [vmem:[%s7770_s5 + $0x2b4] sm:$0xf0]  ;;  %v5763_v24 = vld [vmem:[%s7770_s5 + $0x2b4] sm:$0xf]  ;;  %v5172_v46 = vor.u32 %v5742_v38, %v5171_v34 }
 0x32c   : > { %v5275_v43 = vld [vmem:[%s7770_s5 + $0x2b0] sm:$0xf]  ;;  %v5277_v58 = vld [vmem:[%s7770_s5 + $0x2b8] sm:$0xf0]  ;;  %v5176_v57 = vor.u32 %v5741_v8, %v5173_v39  ;;  %v5761_v5 = vld [vmem:[%s7770_s5 + $0x2a4] sm:$0xf] }
 0x32d   : > { %3237 = vmatpush.bf16.msrb.mxu3 %v5012_v6  ;;  %v5769_v6 = vld [vmem:[%s7770_s5 + $0x2e4] sm:$0xf]  ;;  %v5280_v26 = vor.u32 %v5763_v24, %v5277_v58  ;;  %v5381_v10 = vld [vmem:[%s7770_s5 + $0x368] sm:$0xf0]  ;;  %v5259_v11 = vld [vmem:[%s7770_s5 + $0x290] sm:$0xf] }
 0x32e   : > { %3373 = vmatpush.bf16.msrb.mxu2 %v5120_v59  ;;  %v5205_v59 = vld [vmem:[%s7770_s5 + $0x248] sm:$0xf0]  ;;  %v5304_v63 = vor.u32 %v5769_v6, %v5301_v9  ;;  %v5379_v9 = vld [vmem:[%s7770_s5 + $0x360] sm:$0xf]  ;;  %v5371_v28 = vld [vmem:[%s7770_s5 + $0x350] sm:$0xf] }
 0x32f   : > { %3250 = vmatpush.bf16.msra.mxu0 %v5016_v42  ;;  %3363 = vmatpush.bf16.msra.mxu1 %v5092_v48  ;;  %v5208_v0 = vor.u32 %v5749_v47, %v5205_v59  ;;  %v5746_v42 = vld [vmem:[%s7770_s5 + $0x224] sm:$0xf0]  ;;  %v5288_v48 = vor.u32 %v5765_v2, %v5285_v36  ;;  %v5787_v47 = vld [vmem:[%s7770_s5 + $0x374] sm:$0xf]  ;;  %v5389_v59 = vld [vmem:[%s7770_s5 + $0x378] sm:$0xf0] }
 0x330   : > { %3238 = vmatmul.bf16.vlgmr.msrb.gmra.mxu3 %v3132_v1  ;;  %v5188_v12 = vor.u32 %v5746_v42, %v5187_v41  ;;  %v5392_v54 = vor.u32 %v5787_v47, %v5389_v59  ;;  %v5786_v41 = vld [vmem:[%s7770_s5 + $0x364] sm:$0xf0]  ;;  %v5784_v55 = vld [vmem:[%s7770_s5 + $0x354] sm:$0xf0]  ;;  %v5783_v29 = vld [vmem:[%s7770_s5 + $0x354] sm:$0xf] }
 0x331   : > { %3482 = vmatpush.bf16.msra.mxu3 %v5228_v20  ;;  %v5293_v20 = vld [vmem:[%s7770_s5 + $0x2d8] sm:$0xf0]  ;;  %v5757_v36 = vld [vmem:[%s7770_s5 + $0x284] sm:$0xf]  ;;  %v5253_v34 = vld [vmem:[%s7770_s5 + $0x288] sm:$0xf0] }
 0x332   : > { %3374 = vmatpush.bf16.msrb.mxu2 %v5112_v25  ;;  %v5308_v25 = vor.u32 %v5772_v53, %v5307_v49  ;;  %3251 = vmatmul.bf16.vlgmr.msra.gmra.mxu0 %v3132_v1  ;;  %v5296_v15 = vor.u32 %v5767_v19, %v5293_v20  ;;  %v5276_v53 = vor.u32 %v5764_v23, %v5275_v43  ;;  %v5760_v19 = vld [vmem:[%s7770_s5 + $0x294] sm:$0xf0]  ;;  %v5759_v20 = vld [vmem:[%s7770_s5 + $0x294] sm:$0xf]  ;;  %v5782_v39 = vld [vmem:[%s7770_s5 + $0x344] sm:$0xf0] }
 0x333   : > { %3495 = vmatpush.bf16.msrb.mxu0 %v5232_v21  ;;  %3364 = vmatmul.bf16.vlgmr.msra.gmra.mxu1 %v3258_v40  ;;  %v5256_v23 = vor.u32 %v5757_v36, %v5253_v34  ;;  %v5467_v58 = vld [vmem:[%s7770_s5 + $0x3f0] sm:$0xf]  ;;  %v5469_v47 = vld [vmem:[%s7770_s5 + $0x3f8] sm:$0xf0]  ;;  %v5774_v36 = vld [vmem:[%s7770_s5 + $0x304] sm:$0xf0] }
 0x334   : > { %3608 = vmatpush.bf16.msrb.mxu1 %v5308_v25  ;;  %v5355_v59 = vld [vmem:[%s7770_s5 + $0x330] sm:$0xf]  ;;  %v5773_v34 = vld [vmem:[%s7770_s5 + $0x304] sm:$0xf]  ;;  %s4077_s23 = sshll.u32 %s4073_s0, 4  ;;  %s4078_s23 = int_to_ptr.hbm [resolvable:$true] %s4077_s23 }
 0x335   : > { %3483 = vmatpush.bf16.msra.mxu3 %v5220_v37  ;;  %v5284_v37 = vor.u32 %v5766_v30, %v5283_v17  ;;  %v5372_v17 = vor.u32 %v5784_v55, %v5371_v28  ;;  %v5373_v30 = vld [vmem:[%s7770_s5 + $0x358] sm:$0xf0]  ;;  %v5798_v28 = vld [vmem:[%s7770_s5 + $0x3c4] sm:$0xf0]  ;;  %s5894_s1 = sshra.s32 %s4078_s23, 4  ;;  %s5895_s1 = int_to_ptr.hbm [resolvable:$true] %s5894_s1 }
 0x336   : > { %3375 = vmatpush.bf16.msrb.mxu2 %v5104_v4  ;;  %v5196_v4 = vor.u32 %v5748_v27, %v5195_v51  ;;  %v5376_v2 = vor.u32 %v5783_v29, %v5373_v30  ;;  %v5797_v29 = vld [vmem:[%s7770_s5 + $0x3c4] sm:$0xf]  ;;  %s5896_s16 = scalar_lea.hbm %s5895_s1, 4  ;;  %p5901_p0 = scmp.lt.s32.totalorder %s5895_s1, %s7748_s12 }
 0x337   : > { %3496 = vmatpush.bf16.msrb.mxu0 %v5224_v22  ;;  %p5897_p11 = scmp.ne.s32.totalorder %s5895_s1, %s5896_s16  ;;  %p5902_p1 = scmp.lt.s32.totalorder %s5900_s7, %s5896_s16 }
 0x338   : > { %3609 = vmatpush.bf16.msrb.mxu1 %v5300_v7  ;;  %v5269_v7 = vld [vmem:[%s7770_s5 + $0x2a8] sm:$0xf0] }
 0x339   : > { %3484 = vmatpush.bf16.msra.mxu3 %v5212_v44  ;;  %v5387_v44 = vld [vmem:[%s7770_s5 + $0x370] sm:$0xf]  ;;  %v5272_v42 = vor.u32 %v5761_v5, %v5269_v7  ;;  %v5777_v5 = vld [vmem:[%s7770_s5 + $0x324] sm:$0xf]  ;;  %p5898_p12 = pnand %p5897_p11, %p6118_p5  ;;  %p5903_p2 = por %p5902_p1, %p5901_p0 }
 0x33a   : > { %3376 = vmatpush.bf16.msrb.mxu2 %v5096_v13  ;;  %v5291_v13 = vld [vmem:[%s7770_s5 + $0x2d0] sm:$0xf] }
 0x33b   : > { %3497 = vmatpush.bf16.msrb.mxu0 %v5216_v45  ;;  %v5292_v21 = vor.u32 %v5768_v18, %v5291_v13  ;;  %v5788_v45 = vld [vmem:[%s7770_s5 + $0x374] sm:$0xf0]  ;;  %v5451_v7 = vld [vmem:[%s7770_s5 + $0x3d0] sm:$0xf]  ;;  %p5899_p13 = pneg %p5898_p12 }
 0x33c   : > { %v5388_v25 = vor.u32 %v5788_v45, %v5387_v44  ;;  %v5804_v44 = vld [vmem:[%s7770_s5 + $0x3f4] sm:$0xf0]  ;;  %v5803_v45 = vld [vmem:[%s7770_s5 + $0x3f4] sm:$0xf] }
 0x33d   : > { %3377 = vmatmul.bf16.vlgmr.msrb.gmra.mxu2 %v3258_v40  ;;  %3485 = vmatpush.bf16.msra.mxu3 %v5204_v62  ;;  %p5904_p3 = pnand %p5903_p2, %p5899_p13 }
 0x33e   : > { %3621 = vmatpush.bf16.msra.mxu2 %v5312_v61  ;;  %3610 = vmatpush.bf16.msrb.mxu1 %v5292_v21  ;;  %v5261_v21 = vld [vmem:[%s7770_s5 + $0x298] sm:$0xf0] }
 0x33f   : > { %3498 = vmatpush.bf16.msrb.mxu0 %v5208_v0  ;;  %v5264_v16 = vor.u32 %v5759_v20, %v5261_v21  ;;  %v5775_v20 = vld [vmem:[%s7770_s5 + $0x314] sm:$0xf] }
 0x341   : > { %3486 = vmatpush.bf16.msra.mxu3 %v5196_v4  ;;  %v5267_v4 = vld [vmem:[%s7770_s5 + $0x2a0] sm:$0xf] }
 0x342   : > { %3622 = vmatpush.bf16.msra.mxu2 %v5304_v63  ;;  %3611 = vmatpush.bf16.msrb.mxu1 %v5284_v37  ;;  %v5380_v63 = vor.u32 %v5786_v41, %v5379_v9  ;;  %v5800_v9 = vld [vmem:[%s7770_s5 + $0x3d4] sm:$0xf0] }
 0x343   : > { %3499 = vmatpush.bf16.msrb.mxu0 %v5200_v60  ;;  %v5762_v60 = vld [vmem:[%s7770_s5 + $0x2a4] sm:$0xf0] }
 0x344   : > { %v5268_v6 = vor.u32 %v5762_v60, %v5267_v4  ;;  %v5347_v4 = vld [vmem:[%s7770_s5 + $0x320] sm:$0xf]  ;;  %v5778_v60 = vld [vmem:[%s7770_s5 + $0x324] sm:$0xf0] }
 0x345   : > { %3487 = vmatpush.bf16.msra.mxu3 %v5188_v12  ;;  %v5785_v12 = vld [vmem:[%s7770_s5 + $0x364] sm:$0xf] }
 0x346   : > { %3623 = vmatpush.bf16.msra.mxu2 %v5296_v15  ;;  %3612 = vmatpush.bf16.msrb.mxu1 %v5276_v53  ;;  %v5384_v18 = vor.u32 %v5785_v12, %v5381_v10  ;;  %v5260_v15 = vor.u32 %v5760_v19, %v5259_v11  ;;  %v5472_v53 = vor.u32 %v5803_v45, %v5469_v47  ;;  %v5453_v12 = vld [vmem:[%s7770_s5 + $0x3d8] sm:$0xf0]  ;;  %v5776_v19 = vld [vmem:[%s7770_s5 + $0x314] sm:$0xf0]  ;;  %v5427_v45 = vld [vmem:[%s7770_s5 + $0x3a0] sm:$0xf] }
 0x347   : > { %3500 = vmatpush.bf16.msrb.mxu0 %v5192_v14  ;;  %v5348_v11 = vor.u32 %v5778_v60, %v5347_v4  ;;  %v5429_v47 = vld [vmem:[%s7770_s5 + $0x3a8] sm:$0xf0]  ;;  %v2870_v60 = vld [vmem:[#allocation9 + $0x6] sm:$0x1] }
 0x349   : > { %3488 = vmatpush.bf16.msra.mxu3 %v5180_v32  ;;  %v5758_v32 = vld [vmem:[%s7770_s5 + $0x284] sm:$0xf0] }
 0x34a   : > { %3624 = vmatpush.bf16.msra.mxu2 %v5288_v48  ;;  %3613 = vmatpush.bf16.msrb.mxu1 %v5268_v6  ;;  %v5365_v48 = vld [vmem:[%s7770_s5 + $0x348] sm:$0xf0] }
 0x34b   : > { %3501 = vmatpush.bf16.msrb.mxu0 %v5184_v33  ;;  %v5349_v6 = vld [vmem:[%s7770_s5 + $0x328] sm:$0xf0] }
 0x34d   : > { %3489 = vmatpush.bf16.msra.mxu3 %v5172_v46 }
 0x34e   : > { %3625 = vmatpush.bf16.msra.mxu2 %v5280_v26  ;;  %3614 = vmatpush.bf16.msrb.mxu1 %v5260_v15  ;;  %v5357_v26 = vld [vmem:[%s7770_s5 + $0x338] sm:$0xf0] }
 0x34f   : > { %3502 = vmatpush.bf16.msrb.mxu0 %v5176_v57  ;;  %v5468_v57 = vor.u32 %v5804_v44, %v5467_v58  ;;  %v5341_v15 = vld [vmem:[%s7770_s5 + $0x318] sm:$0xf0]  ;;  %v2867_v58 = vld [vmem:[#allocation5 + $0x8] sm:$0x1] }
 0x351   : > { %3734 = vmatpush.bf16.msrb.mxu3 %v5388_v25  ;;  %v5779_v25 = vld [vmem:[%s7770_s5 + $0x334] sm:$0xf] }
 0x352   : > { %3626 = vmatpush.bf16.msra.mxu2 %v5272_v42  ;;  %v5878_v42 = vld [vmem:[%s7745_s9] ss:$0 sm:$0xff] }
 0x353   : > { %3747 = vmatpush.bf16.msra.mxu0 %v5392_v54  ;;  %v5459_v54 = vld [vmem:[%s7770_s5 + $0x3e0] sm:$0xf] }
 0x355   : > { %3735 = vmatpush.bf16.msrb.mxu3 %v5380_v63  ;;  %v5799_v63 = vld [vmem:[%s7770_s5 + $0x3d4] sm:$0xf] }
 0x356   : > { %3627 = vmatpush.bf16.msra.mxu2 %v5264_v16  ;;  %v5456_v21 = vor.u32 %v5799_v63, %v5453_v12  ;;  %v5443_v16 = vld [vmem:[%s7770_s5 + $0x3c0] sm:$0xf]  ;;  %v5790_v12 = vld [vmem:[%s7770_s5 + $0x384] sm:$0xf0] }
 0x357   : > { %3748 = vmatpush.bf16.msra.mxu0 %v5384_v18  ;;  %v5339_v18 = vld [vmem:[%s7770_s5 + $0x310] sm:$0xf]  ;;  %v5411_v63 = vld [vmem:[%s7770_s5 + $0x380] sm:$0xf] }
 0x358   : > { %v5340_v30 = vor.u32 %v5776_v19, %v5339_v18  ;;  %v5549_v18 = vld [vmem:[%s7770_s5 + $0x478] sm:$0xf0]  ;;  %v5412_v19 = vor.u32 %v5790_v12, %v5411_v63 }
 0x359   : > { %3736 = vmatpush.bf16.msrb.mxu3 %v5372_v17  ;;  %v5445_v17 = vld [vmem:[%s7770_s5 + $0x3c8] sm:$0xf0] }
 0x35a   : > { %3628 = vmatpush.bf16.msra.mxu2 %v5256_v23 }
 0x35b   : > { %3749 = vmatpush.bf16.msra.mxu0 %v5376_v2  ;;  %v5444_v2 = vor.u32 %v5798_v28, %v5443_v16 }
 0x35e   : > { %3873 = vmatpush.bf16.msrb.mxu2 %v5472_v53  ;;  %v2864_v53 = vld [vmem:[#allocation9 + $0x5] sm:$0x1] }
 0x36e   : > { %v2507_v31 = vpop.f32.mrf.mxu0 }
 0x36f   : > { %v2558_v35 = vpop.f32.mrf.mxu1 }
 0x370   : > { %v2417_v22 = vpop.f32.mrf.mxu2 }
 0x373   : > { %v2457_v49 = vpop.f32.mrf.mxu3 }
 0x374   : > { %v2458_v1 = vadd.f32 %v2457_v49, %v2417_v22  ;;  %v5781_v22 = vld [vmem:[%s7770_s5 + $0x344] sm:$0xf]  ;;  %v5780_v49 = vld [vmem:[%s7770_s5 + $0x334] sm:$0xf0] }
 0x375   : > { %v5368_v46 = vor.u32 %v5781_v22, %v5365_v48  ;;  %v5437_v22 = vld [vmem:[%s7770_s5 + $0x3b8] sm:$0xf0] }
 0x376   : > { %v2509_v61 = vpop.f32.mrf.mxu0  ;;  %v2511_v51 = vadd.f32 %v2507_v31, %v2458_v1  ;;  %v5251_v31 = vld [vmem:[%s7770_s5 + $0x280] sm:$0xf]  ;;  %v5801_v1 = vld [vmem:[%s7770_s5 + $0x3e4] sm:$0xf] }
 0x377   : > { %v2560_v62 = vpop.f32.mrf.mxu1  ;;  %v5252_v8 = vor.u32 %v5758_v32, %v5251_v31  ;;  %3750 = vmatpush.bf16.msra.mxu0 %v5368_v46  ;;  %v5331_v31 = vld [vmem:[%s7770_s5 + $0x300] sm:$0xf]  ;;  %v5794_v46 = vld [vmem:[%s7770_s5 + $0x3a4] sm:$0xf0] }
 0x378   : > { %v2419_v0 = vpop.f32.mrf.mxu2  ;;  %v2562_v52 = vadd.f32 %v2558_v35, %v2511_v51  ;;  %v5363_v35 = vld [vmem:[%s7770_s5 + $0x340] sm:$0xf]  ;;  %v5356_v51 = vor.u32 %v5780_v49, %v5355_v59  ;;  %v2868_v59 = vpack.c.bf16 %v2867_v58, %v2867_v58  ;;  %v2858_v49 = vld [vmem:[#allocation9 + $0x4] sm:$0x1] }
 0x379   : > { %v5364_v24 = vor.u32 %v5782_v39, %v5363_v35  ;;  %3615 = vmatpush.bf16.msrb.mxu1 %v5252_v8  ;;  %v5802_v0 = vld [vmem:[%s7770_s5 + $0x3e4] sm:$0xf0]  ;;  %v5448_v35 = vor.u32 %v5797_v29, %v5445_v17  ;;  %v5796_v8 = vld [vmem:[%s7770_s5 + $0x3b4] sm:$0xf0]  ;;  %v5795_v39 = vld [vmem:[%s7770_s5 + $0x3b4] sm:$0xf] }
 0x37a   : > { %v5440_v44 = vor.u32 %v5795_v39, %v5437_v22  ;;  %v5818_v29 = vld [vmem:[%s7770_s5 + $0x464] sm:$0xf0]  ;;  %v5817_v17 = vld [vmem:[%s7770_s5 + $0x464] sm:$0xf]  ;;  %v5816_v39 = vld [vmem:[%s7770_s5 + $0x454] sm:$0xf0] }
 0x37b   : > { %v2459_v40 = vpop.f32.mrf.mxu3  ;;  %3737 = vmatpush.bf16.msrb.mxu3 %v5364_v24  ;;  %v5815_v22 = vld [vmem:[%s7770_s5 + $0x454] sm:$0xf] }
 0x37c   : > { %v5461_v40 = vld [vmem:[%s7770_s5 + $0x3e8] sm:$0xf0] }
 0x37d   : > { %3860 = vmatpush.bf16.msra.mxu1 %v5468_v57  ;;  %v5793_v57 = vld [vmem:[%s7770_s5 + $0x3a4] sm:$0xf] }
 0x37e   : > { %v7316_v27 = vpop.f32.mrf.mxu0 }
 0x37f   : > { %v7318_v3 = vpop.f32.mrf.mxu1  ;;  %3738 = vmatpush.bf16.msrb.mxu3 %v5356_v51 }
 0x380   : > { %v2609_v50 = vpop.f32.mrf.mxu2 }
 0x381   : > { %v2613_v13 = vadd.f32 %v2609_v50, %v2562_v52  ;;  %v5460_v50 = vor.u32 %v5802_v0, %v5459_v54  ;;  %v5464_v52 = vor.u32 %v5801_v1, %v5461_v40  ;;  %v5792_v0 = vld [vmem:[%s7770_s5 + $0x394] sm:$0xf0] }
 0x383   : > { %v2660_v14 = vpop.f32.mrf.mxu3  ;;  %3861 = vmatpush.bf16.msra.mxu1 %v5460_v50  ;;  %3874 = vmatpush.bf16.msrb.mxu2 %v5464_v52  ;;  %v5421_v50 = vld [vmem:[%s7770_s5 + $0x398] sm:$0xf0] }
 0x384   : > { %v2664_v37 = vadd.f32 %v2660_v14, %v2613_v13  ;;  %v5352_v14 = vor.u32 %v5777_v5, %v5349_v6  ;;  %3739 = vmatpush.bf16.msrb.mxu3 %v5348_v11  ;;  %v2876_v5 = vld [vmem:[#allocation9 + $0x7] sm:$0x1] }
 0x386   : > { %v2713_v33 = vpop.f32.mrf.mxu0  ;;  %v2715_v61 = vadd.f32 %v7316_v27, %v2664_v37  ;;  %v5360_v27 = vor.u32 %v5779_v25, %v5357_v26  ;;  %v5333_v37 = vld [vmem:[%s7770_s5 + $0x308] sm:$0xf0]  ;;  %v5428_v25 = vor.u32 %v5794_v46, %v5427_v45  ;;  %v5419_v26 = vld [vmem:[%s7770_s5 + $0x390] sm:$0xf]  ;;  %v5814_v45 = vld [vmem:[%s7770_s5 + $0x444] sm:$0xf0] }
 0x387   : > { %v2764_v38 = vpop.f32.mrf.mxu1  ;;  %v5344_v33 = vor.u32 %v5775_v20, %v5341_v15  ;;  %3875 = vmatpush.bf16.msrb.mxu2 %v5456_v21  ;;  %v5336_v23 = vor.u32 %v5773_v34, %v5333_v37  ;;  %v5789_v20 = vld [vmem:[%s7770_s5 + $0x384] sm:$0xf]  ;;  %v5413_v21 = vld [vmem:[%s7770_s5 + $0x388] sm:$0xf0]  ;;  %v2882_v15 = vld [vmem:[#allocation9 + $0x8] sm:$0x1] }
 0x388   : > { %v2611_v43 = vpop.f32.mrf.mxu2  ;;  %v2766_v41 = vadd.f32 %v7318_v3, %v2715_v61  ;;  %3751 = vmatpush.bf16.msra.mxu0 %v5360_v27  ;;  %v5452_v3 = vor.u32 %v5800_v9, %v5451_v7  ;;  %v5435_v38 = vld [vmem:[%s7770_s5 + $0x3b0] sm:$0xf]  ;;  %3740 = vmatpush.bf16.msrb.mxu3 %v5340_v30  ;;  %v5791_v27 = vld [vmem:[%s7770_s5 + $0x394] sm:$0xf]  ;;  %v5420_v9 = vor.u32 %v5792_v0, %v5419_v26  ;;  %v5813_v46 = vld [vmem:[%s7770_s5 + $0x444] sm:$0xf] }
 0x389   : > { %v5332_v43 = vor.u32 %v5774_v36, %v5331_v31  ;;  %v5436_v24 = vor.u32 %v5796_v8, %v5435_v38  ;;  %v5531_v37 = vld [vmem:[%s7770_s5 + $0x450] sm:$0xf]  ;;  %v5517_v0 = vld [vmem:[%s7770_s5 + $0x438] sm:$0xf0] }
 0x38a   : > { %3862 = vmatpush.bf16.msra.mxu1 %v5452_v3  ;;  %v5819_v3 = vld [vmem:[%s7770_s5 + $0x474] sm:$0xf] }
 0x38b   : > { %v2662_v62 = vpop.f32.mrf.mxu3  ;;  %3876 = vmatpush.bf16.msrb.mxu2 %v5448_v35  ;;  %v5552_v28 = vor.u32 %v5819_v3, %v5549_v18 }
 0x38c   : > { %3752 = vmatpush.bf16.msra.mxu0 %v5352_v14  ;;  %3741 = vmatpush.bf16.msrb.mxu3 %v5332_v43  ;;  %v5432_v62 = vor.u32 %v5793_v57, %v5429_v47  ;;  %v5820_v14 = vld [vmem:[%s7770_s5 + $0x474] sm:$0xf0]  ;;  %v5525_v57 = vld [vmem:[%s7770_s5 + $0x448] sm:$0xf0] }
 0x38e   : > { %3863 = vmatpush.bf16.msra.mxu1 %v5444_v2 }
 0x38f   : > { %3877 = vmatpush.bf16.msrb.mxu2 %v5440_v44  ;;  %v5523_v44 = vld [vmem:[%s7770_s5 + $0x440] sm:$0xf] }
 0x390   : > { %v2813_v10 = vpop.f32.mrf.mxu2  ;;  %3753 = vmatpush.bf16.msra.mxu0 %v5344_v33  ;;  %v5416_v33 = vor.u32 %v5789_v20, %v5413_v21 }
 0x391   : > { %v2817_v13 = vadd.f32 %v2813_v10, %v2766_v41  ;;  %v2871_v41 = vsel %vm6980_vm0, %v2868_v59, %v2870_v60  ;;  %v3022_v36 = vpop.f32.mrf.mxu0  ;;  %v5509_v60 = vld [vmem:[%s7770_s5 + $0x428] sm:$0xf0] }
 0x392   : > { %3864 = vmatpush.bf16.msra.mxu1 %v5436_v24  ;;  %2872 = vst [vmem:[#allocation9 + $0x6] sm:$0x1] %v2871_v41  ;;  %v3115_v8 = vpop.f32.mrf.mxu1  ;;  %v5532_v24 = vor.u32 %v5816_v39, %v5531_v37  ;;  %v5807_v41 = vld [vmem:[%s7770_s5 + $0x414] sm:$0xf] }
 0x393   : > { %v2822_v55 = vadd.f32 %v5878_v42, %v2817_v13  ;;  %3878 = vmatpush.bf16.msrb.mxu2 %v5432_v62  ;;  %v5424_v42 = vor.u32 %v5791_v27, %v5421_v50  ;;  %v5547_v13 = vld [vmem:[%s7770_s5 + $0x470] sm:$0xf]  ;;  %v5811_v62 = vld [vmem:[%s7770_s5 + $0x434] sm:$0xf]  ;;  %v5507_v27 = vld [vmem:[%s7770_s5 + $0x420] sm:$0xf] }
 0x394   : > { %3754 = vmatpush.bf16.msra.mxu0 %v5336_v23  ;;  %v5548_v16 = vor.u32 %v5820_v14, %v5547_v13  ;;  %v5810_v50 = vld [vmem:[%s7770_s5 + $0x424] sm:$0xf0]  ;;  %v5805_v13 = vld [vmem:[%s7770_s5 + $0x404] sm:$0xf]  ;;  %v5493_v14 = vld [vmem:[%s7770_s5 + $0x408] sm:$0xf0] }
 0x395   : > { %v7484_v32 = vmax.f32 %v2822_v55, 0.0  ;;  %v5539_v55 = vld [vmem:[%s7770_s5 + $0x460] sm:$0xf]  ;;  %v5496_v18 = vor.u32 %v5805_v13, %v5493_v14 }
 0x396   : > { %3865 = vmatpush.bf16.msra.mxu1 %v5428_v25  ;;  %v5540_v35 = vor.u32 %v5818_v29, %v5539_v55  ;;  %v5515_v25 = vld [vmem:[%s7770_s5 + $0x430] sm:$0xf] }
 0x397   : > { %2827 = vst [vmem:[#allocation5 + $0x5] sm:$0x3] %v7484_v32  ;;  %3879 = vmatpush.bf16.msrb.mxu2 %v5424_v42  ;;  %v3009_v34 = vpop.f32.mrf.mxu3  ;;  %v5501_v42 = vld [vmem:[%s7770_s5 + $0x418] sm:$0xf0] }
 0x398   : > { %2828 = vst [vmem:[#allocation5 + $0x7] sm:$0xc] %v7484_v32  ;;  %v2815_v48 = vpop.f32.mrf.mxu2  ;;  %v7598_v23 = vadd.f32 %v3115_v8, %v3009_v34  ;;  %v5504_v12 = vor.u32 %v5807_v41, %v5501_v42 }
 0x399   : > { %2824 = vst [vmem:[%s7566_s6] sm:$0xf] %v7484_v32  ;;  %v5541_v32 = vld [vmem:[%s7770_s5 + $0x468] sm:$0xf0]  ;;  %v5533_v48 = vld [vmem:[%s7770_s5 + $0x458] sm:$0xf0]  ;;  %v3024_v47 = vpop.f32.mrf.mxu0 }
 0x39a   : > { %3866 = vmatpush.bf16.msra.mxu1 %v5420_v9  ;;  %v5544_v56 = vor.u32 %v5817_v17, %v5541_v32  ;;  %v5536_v58 = vor.u32 %v5815_v22, %v5533_v48  ;;  %v5808_v9 = vld [vmem:[%s7770_s5 + $0x414] sm:$0xf0] }
 0x39b   : > { %3880 = vmatpush.bf16.msrb.mxu2 %v5416_v33 }
 0x39e   : > { %v2855_v54 = vld [vmem:[#allocation5 + $0x5] sm:$0x1]  ;;  %v2861_v61 = vld [vmem:[#allocation5 + $0x6] sm:$0x1]  ;;  %3867 = vmatpush.bf16.msra.mxu1 %v5412_v19 }
 0x39f   : > { %v2856_v1 = vpack.c.bf16 %v2855_v54, %v2855_v54  ;;  %v2862_v40 = vpack.c.bf16 %v2861_v61, %v2861_v61  ;;  %v2873_v51 = vld [vmem:[#allocation5 + $0x9] sm:$0x1]  ;;  %v2879_v52 = vld [vmem:[#allocation5 + $0xa] sm:$0x1]  ;;  %v3011_v59 = vpop.f32.mrf.mxu3  ;;  %v3117_v54 = vpop.f32.mrf.mxu1  ;;  %v5812_v61 = vld [vmem:[%s7770_s5 + $0x434] sm:$0xf0] }
 0x3a0   : > { %v2874_v4 = vpack.c.bf16 %v2873_v51, %v2873_v51  ;;  %v2880_v11 = vpack.c.bf16 %v2879_v52, %v2879_v52  ;;  %v3128_v38 = vpop.f32.mrf.mxu2  ;;  %v5520_v51 = vor.u32 %v5811_v62, %v5517_v0  ;;  %v5508_v52 = vor.u32 %v5810_v50, %v5507_v27 }
 0x3a1   : > { %v2859_v6 = vsel %vm6980_vm0, %v2856_v1, %v2858_v49  ;;  %v2865_v7 = vsel %vm6980_vm0, %v2862_v40, %v2864_v53  ;;  %v7596_v43 = vadd.f32 %v3128_v38, %v3022_v36  ;;  %v5524_v49 = vor.u32 %v5814_v45, %v5523_v44  ;;  %v3636_v1 = vld [vmem:[#allocation9 + $0x6] sm:$0x1] }
 0x3a2   : > { %2860 = vst [vmem:[#allocation9 + $0x4] sm:$0x1] %v2859_v6  ;;  %v2877_v10 = vsel %vm6980_vm0, %v2874_v4, %v2876_v5  ;;  %v2883_v30 = vsel %vm6980_vm0, %v2880_v11, %v2882_v15  ;;  %v5528_v53 = vor.u32 %v5813_v46, %v5525_v57  ;;  %v5516_v40 = vor.u32 %v5812_v61, %v5515_v25  ;;  %v5809_v4 = vld [vmem:[%s7770_s5 + $0x424] sm:$0xf]  ;;  %v5806_v11 = vld [vmem:[%s7770_s5 + $0x404] sm:$0xf0] }
 0x3a3   : > { %2866 = vst [vmem:[#allocation9 + $0x5] sm:$0x1] %v2865_v7  ;;  %v5512_v6 = vor.u32 %v5809_v4, %v5509_v60  ;;  %v5499_v7 = vld [vmem:[%s7770_s5 + $0x410] sm:$0xf] }
 0x3a4   : > { %2878 = vst [vmem:[#allocation9 + $0x7] sm:$0x1] %v2877_v10  ;;  %v5500_v63 = vor.u32 %v5808_v9, %v5499_v7  ;;  %v5491_v10 = vld [vmem:[%s7770_s5 + $0x400] sm:$0xf] }
 0x3a5   : > { %2884 = vst [vmem:[#allocation9 + $0x8] sm:$0x1] %v2883_v30  ;;  %v5492_v3 = vor.u32 %v5806_v11, %v5491_v10 }
 0x3a8   : > { %v3130_v26 = vpop.f32.mrf.mxu2 }
 0x3a9   : > { %v3384_v31 = vld [vmem:[#allocation9 + $0x4] sm:$0x1] }
 0x3aa   : > { %3490 = vmatmul.bf16.vlgmr.msra.gmra.mxu3 %v3384_v31  ;;  %3503 = vmatmul.bf16.vlgmr.msrb.gmra.mxu0 %v3384_v31  ;;  %v3510_v2 = vld [vmem:[#allocation9 + $0x5] sm:$0x1] }
 0x3ab   : > { %3616 = vmatmul.bf16.vlgmr.msrb.gmra.mxu1 %v3510_v2  ;;  %3629 = vmatmul.bf16.vlgmr.msra.gmra.mxu2 %v3510_v2  ;;  %v3762_v5 = vld [vmem:[#allocation9 + $0x7] sm:$0x1] }
 0x3ac   : > { %3986 = vmatpush.bf16.msra.mxu3 %v5548_v16  ;;  %3999 = vmatpush.bf16.msrb.mxu0 %v5552_v28  ;;  %v3888_v19 = vld [vmem:[#allocation9 + $0x8] sm:$0x1] }
 0x3b0   : > { %3987 = vmatpush.bf16.msra.mxu3 %v5540_v35  ;;  %4000 = vmatpush.bf16.msrb.mxu0 %v5544_v56 }
 0x3b4   : > { %3988 = vmatpush.bf16.msra.mxu3 %v5532_v24  ;;  %4001 = vmatpush.bf16.msrb.mxu0 %v5536_v58 }
 0x3b8   : > { %3989 = vmatpush.bf16.msra.mxu3 %v5524_v49  ;;  %4002 = vmatpush.bf16.msrb.mxu0 %v5528_v53 }
 0x3ba   : > { %3742 = vmatmul.bf16.vlgmr.msrb.gmra.mxu3 %v3636_v1  ;;  %3755 = vmatmul.bf16.vlgmr.msra.gmra.mxu0 %v3636_v1 }
 0x3bb   : > { %3868 = vmatmul.bf16.vlgmr.msra.gmra.mxu1 %v3762_v5  ;;  %3881 = vmatmul.bf16.vlgmr.msrb.gmra.mxu2 %v3762_v5 }
 0x3bc   : > { %3990 = vmatpush.bf16.msra.mxu3 %v5516_v40  ;;  %4003 = vmatpush.bf16.msrb.mxu0 %v5520_v51 }
 0x3c0   : > { %3991 = vmatpush.bf16.msra.mxu3 %v5508_v52  ;;  %4004 = vmatpush.bf16.msrb.mxu0 %v5512_v6 }
 0x3c4   : > { %3992 = vmatpush.bf16.msra.mxu3 %v5500_v63  ;;  %4005 = vmatpush.bf16.msrb.mxu0 %v5504_v12 }
 0x3c8   : > { %3993 = vmatpush.bf16.msra.mxu3 %v5492_v3  ;;  %4006 = vmatpush.bf16.msrb.mxu0 %v5496_v18 }
 0x3cb   : > { %3994 = vmatmul.bf16.vlgmr.msra.gmra.mxu3 %v3888_v19  ;;  %4007 = vmatmul.bf16.vlgmr.msrb.gmra.mxu0 %v3888_v19 }
 0x3cc   : > { %5907 = shalt.err (!%p5904_p3)
}
 0x3cd   : > { %5823 = dma.vmem_to_hbm [thread:$0]  (%p6118_p5), %s4076_s21, 64, %s4078_s23, %s7666_s15  }
 0x3ce   : > { %s5821_s6 = sshll.u32 %s6099_s29, 4  ;;  %s4058_s20 = sshll.u32 %s6668_s30, 4  ;;  %s4059_s20 = int_to_ptr.vmem [resolvable:$true] %s4058_s20 }
 0x3cf   : > { %s4057_s4 = scalar_lea.hbm %s7747_s11, %s5821_s6  ;;  %s4036_s7 = scalar_lea.sflag [#allocation11], %s6624_s24 }
 0x3d0   : > { %s4060_s8 = sshll.u32 %s4057_s4, 4  ;;  %s5928_s21 = scalar_lea.hbm %s7747_s11, 32  ;;  %s4061_s8 = int_to_ptr.hbm [resolvable:$true] %s4060_s8 }
 0x3d1   : > { %s5922_s0 = sshra.s32 %s4061_s8, 4  ;;  %s5923_s0 = int_to_ptr.hbm [resolvable:$true] %s5922_s0 }
 0x3d2   : > { %s5924_s1 = scalar_lea.hbm %s5923_s0, 16  ;;  %p5929_p9 = scmp.lt.s32.totalorder %s5923_s0, %s7747_s11 }
 0x3d3   : > { %p5925_p4 = scmp.ne.s32.totalorder %s5923_s0, %s5924_s1  ;;  %p5930_p10 = scmp.lt.s32.totalorder %s5928_s21, %s5924_s1 }
 0x3d5   : > { %p5926_p7 = pnand %p5925_p4, %p6118_p5  ;;  %p5931_p11 = por %p5930_p10, %p5929_p9 }
 0x3d7   : > { %p5927_p8 = pneg %p5926_p7 }
 0x3d9   : > { %p5932_p12 = pnand %p5931_p11, %p5927_p8 }
 0x3db   : > { %5935 = shalt.err (!%p5932_p12)
}
 0x3dc   : > { %s6006_s30 = smov 128   ;;  %s6007_s6 = smov 8   ;;  %v3252_v20 = vpop.f32.mrf.mxu0  ;;  %v3365_v15 = vpop.f32.mrf.mxu1  ;;  %v4014_v46 = vld [vmem:[%s7746_s10] sm:$0x3]  ;;  %v4030_v50 = vlaneseq }
 0x3dd   : > { %5822 = dma.vmem_to_hbm [thread:$0]  (%p6118_p5), %s4059_s20, 256, %s4061_s8, %s4036_s7, %s6006_s30, %s6006_s30, %s6007_s6   ;;  %v3257_v21 = vadd.f32 %v3252_v20, %v7596_v43  ;;  %v3239_v16 = vpop.f32.mrf.mxu3  ;;  %v3378_v55 = vpop.f32.mrf.mxu2  ;;  %v4017_v25 = vperm.slane %v4014_v46, 1  ;;  %v4016_v1 = vperm.slane %v4014_v46, 0 }
 0x3de   : > { %v3256_v28 = vadd.f32 %v3239_v16, %v7598_v23  ;;  %s4220_s4 = sshll.u32 %s6624_s24, 1  ;;  %s5559_s20 = sshll.u32 %s6099_s29, 1  ;;  %vm4032_vm1 = vcmp.lt.s32.totalorder %v4030_v50, 256 }
 0x3df   : > { %v3383_v29 = vadd.f32 %v3378_v55, %v3257_v21  ;;  %s4087_s0 = scalar_lea.hbm %s7749_s13, %s5559_s20  ;;  %s451_s1 = scalar_lea.vmem [#allocation14], %s4220_s4 }
 0x3e0   : > { %v3382_v30 = vadd.f32 %v3365_v15, %v3256_v28  ;;  %s4089_s16 = sshll.u32 %s451_s1, 4  ;;  %s4091_s2 = sshll.u32 %s4087_s0, 4  ;;  %s4090_s16 = int_to_ptr.vmem [resolvable:$true] %s4089_s16  ;;  %s4092_s2 = int_to_ptr.hbm [resolvable:$true] %s4091_s2 }
 0x3e1   : > { %s5950_s29 = sshra.s32 %s4092_s2, 4  ;;  %s5956_s3 = scalar_lea.hbm %s7749_s13, 4  ;;  %s5951_s29 = int_to_ptr.hbm [resolvable:$true] %s5950_s29 }
 0x3e2   : > { %s5952_s24 = scalar_lea.hbm %s5951_s29, 2  ;;  %p5957_p2 = scmp.lt.s32.totalorder %s5951_s29, %s7749_s13 }
 0x3e3   : > { %p5953_p13 = scmp.ne.s32.totalorder %s5951_s29, %s5952_s24  ;;  %p5958_p3 = scmp.lt.s32.totalorder %s5956_s3, %s5952_s24 }
 0x3e4   : > { %v3254_v17 = vpop.f32.mrf.mxu0  ;;  %v3367_v31 = vpop.f32.mrf.mxu1 }
 0x3e5   : > { %v3241_v32 = vpop.f32.mrf.mxu3  ;;  %v3380_v33 = vpop.f32.mrf.mxu2  ;;  %p5954_p0 = pnand %p5953_p13, %p6118_p5  ;;  %p5959_p4 = por %p5958_p3, %p5957_p2 }
 0x3e7   : > { %p5955_p1 = pneg %p5954_p0 }
 0x3e9   : > { %p5960_p7 = pnand %p5959_p4, %p5955_p1 }
 0x427   : > { %v3504_v2 = vpop.f32.mrf.mxu0 }
 0x428   : > { %v3617_v36 = vpop.f32.mrf.mxu1  ;;  %v3509_v58 = vadd.f32 %v3504_v2, %v3383_v29 }
 0x42d   : > { %v3491_v34 = vpop.f32.mrf.mxu3 }
 0x42e   : > { %v3630_v35 = vpop.f32.mrf.mxu2  ;;  %v3508_v44 = vadd.f32 %v3491_v34, %v3382_v30 }
 0x42f   : > { %v3506_v56 = vpop.f32.mrf.mxu0  ;;  %v3635_v45 = vadd.f32 %v3630_v35, %v3509_v58 }
 0x430   : > { %v3619_v37 = vpop.f32.mrf.mxu1  ;;  %v3634_v49 = vadd.f32 %v3617_v36, %v3508_v44 }
 0x435   : > { %v3493_v38 = vpop.f32.mrf.mxu3 }
 0x436   : > { %v3632_v8 = vpop.f32.mrf.mxu2 }
 0x437   : > { %v3756_v39 = vpop.f32.mrf.mxu0 }
 0x438   : > { %v3869_v22 = vpop.f32.mrf.mxu1  ;;  %v3761_v57 = vadd.f32 %v3756_v39, %v3635_v45 }
 0x43d   : > { %v3743_v48 = vpop.f32.mrf.mxu3 }
 0x43e   : > { %v3882_v43 = vpop.f32.mrf.mxu2  ;;  %v3760_v54 = vadd.f32 %v3743_v48, %v3634_v49 }
 0x43f   : > { %v3758_v23 = vpop.f32.mrf.mxu0  ;;  %v3887_v53 = vadd.f32 %v3882_v43, %v3761_v57 }
 0x440   : > { %v3871_v24 = vpop.f32.mrf.mxu1  ;;  %v3886_v0 = vadd.f32 %v3869_v22, %v3760_v54 }
 0x445   : > { %v3745_v47 = vpop.f32.mrf.mxu3 }
 0x446   : > { %v3884_v59 = vpop.f32.mrf.mxu2 }
 0x448   : > { %v4008_v26 = vpop.f32.mrf.mxu0 }
 0x449   : > { %v4013_v61 = vadd.f32 %v4008_v26, %v3887_v53 }
 0x44b   : > { %v4021_v62 = vadd.f32 %v4017_v25, %v4013_v61 }
 0x44d   : > { %v4023_v51 = vmax.f32 %v4021_v62, 0.0 }
 0x44e   : > { %v3995_v40 = vpop.f32.mrf.mxu3 }
 0x44f   : > { %v4012_v27 = vadd.f32 %v3995_v40, %v3886_v0  ;;  %v4026_v5 = vrot.slane %v4023_v51, 7 }
 0x450   : > { %v4010_v4 = vpop.f32.mrf.mxu0 }
 0x451   : > { %v4020_v60 = vadd.f32 %v4016_v1, %v4012_v27 }
 0x453   : > { %v4022_v52 = vmax.f32 %v4020_v60, 0.0 }
 0x455   : > { %v4028_v6 = vsel %vm2831_vm14, %v4022_v52, %v4026_v5 }
 0x456   : > { %v3997_v7 = vpop.f32.mrf.mxu3  ;;  %4034 = vst.msk [vmem:[%s451_s1] sm:$0x3] %vm4032_vm1, %v4028_v6 }
 0x457   : > { %5963 = shalt.err (!%p5960_p7)
}
 0x458   : > { %5824 = dma.vmem_to_hbm [thread:$0]  (%p6118_p5), %s4090_s16, 32, %s4092_s2, %s7666_s15  }
 0x459 PF: > { %p5838_p8 = scmp.ge.s32.totalorder %s6002_s28, 2  ;;  %s4103_s22 = sand.u32 1, %s5990_s25  }
 0x45a   : > { %s4104_s5 = scalar_lea.sflag [#allocation11], %s4103_s22 }
 0x45b   : > { %p5829_p9 = pnand %p5838_p8, %p6122_p6 }
 0x45d   : > { %p5830_p10 = pneg %p5829_p9 }
 0x45f   : > { %5981 = dma.done.wait (%p5830_p10), %s4104_s5, 256  }
 0x460   : > { %5983 = vsyncadd (%p5830_p10), %s4104_s5, 4294967040  ;;  %s7773_s4 = sadd.s32 4294967294, %s6002_s28  }
 0x461   : > { %s4113_s20 = sand.u32 1, %s7773_s4  }
 0x462   : > { %s4114_s8 = scalar_lea.sflag [#allocation13], %s4113_s20 }
 0x463   : > { %5985 = dma.done.wait (%p5830_p10), %s4114_s8, 96  }
 0x464   : > { %5987 = vsyncadd (%p5830_p10), %s4114_s8, 4294967200  ;;  %p27_p5 = scmp.ge.s32.totalorder %s6103_s14, 4   ;;  %s7774_s25 = smov %s5994_s26 }
 0x465   : > { %s7775_s26 = smov %s5998_s27  ;;  %s7776_s27 = smov %s6116_s17 }
 0x466   : > { %s7777_s28 = smov %s6103_s14  ;;  %29 = sbr.rel (!%p27_p5) target bundleno = 15 (0xf), region = 235 }
 0x46b   :  { %4130 = vsyncpa [#allocation11], 1 }
 0x46c   :  { %4132 = vsyncpa [#allocation11 + $0x1], 1 }
 0x46d   :  { %4133 = vsyncpa [#allocation13], 1 }
 0x46e   :  { %4135 = vsyncpa [#allocation13 + $0x1], 1 }

</bundles_post_ra>
